<compile_context>
chip_gen: v7x
topology: tpu7x:2x2x1
jax: 0.10.0
libtpu: 0.0.40
codegen_flags: <defaults>
</compile_context>

<pallas_src>
import functools

import jax
import jax.numpy as jnp
from jax import lax
from jax.experimental import pallas as pl
from jax.experimental.pallas import tpu as pltpu

FEATURES = 64
EPS = 1e-5
PAD = 2                                   # spatial zero border = max dilation
DILS = [1, 2, 1, 1, 2, 1, 1, 1, 2, 1, 1, 2, 1, 1, 1]   # conv1_1 .. conv1_15
MAX_DIL = max(DILS)


def _round_up(v, m):
    return ((v + m - 1) // m) * m


def _device_kind():
    try:
        return jax.devices()[0].device_kind.lower()
    except Exception:
        return ""


def _vmem_cap_bytes():
    """~85% of physical VMEM; safe fallback that fits every generation."""
    try:
        info = pltpu.get_tpu_info()
        cap = int(getattr(info, "vmem_capacity_bytes", 0) or 0)
        if cap > 0:
            return int(cap * 0.85)
    except Exception:
        pass
    return 54 * (1 << 20)                 # <= v7x's 64 MiB per-core VMEM


def _vmem_limit(need_bytes):
    cap = _vmem_cap_bytes()
    need = int(need_bytes * 1.25) + 4 * (1 << 20)
    return min(max(need, 32 * (1 << 20)), cap)


def _pick_tile(H, W):
    body = (H + 2 * PAD) * _round_up(W + 2 * PAD, 16)
    kind = _device_kind()
    # v5e: single vector-store slot, no bf16 VALU -> keep vreg pressure low.
    tm_max = 128 if ("v5e" in kind or "v5 lite" in kind) else 256
    if body >= 8 * 256 and tm_max >= 256:
        return 256
    return 128


# -----------------------------------------------------------------------------
# Kernels
# -----------------------------------------------------------------------------
def _conv3x3_bn_relu_kernel(x_ref, w_ref, b_ref, m_ref, o_ref, *,
                            dil, wp, tm, lo, hi):
    """3x3 (dilated) conv + folded BN + ReLU for one (tm, Cout) output tile.

    x_ref : (Lc, Cin)        whole canonical activation (bf16, VMEM resident)
    w_ref : (3, 3*Cin, Cout) bf16 weights, kx packed along K, BN scale folded
    b_ref : (1, Cout)        f32 folded BN bias
    m_ref : (tm, 1)          f32 interior mask for this tile
    o_ref : (tm, Cout)       bf16 output tile
    """
    lc = x_ref.shape[0]
    cout = o_ref.shape[1]
    tmw = tm + 32
    base = pl.program_id(1) * tm
    has_interior = jnp.logical_and(base < hi, base + tm > lo)

    @pl.when(jnp.logical_not(has_interior))
    def _():
        # Pure-margin tile: must be written as exact zeros (it is the zero
        # padding the next layer's taps read) but needs no compute.
        o_ref[...] = jnp.zeros_like(o_ref)

    @pl.when(has_interior)
    def _():
        acc = jnp.zeros((tm, cout), jnp.float32)
        for ky in range(3):
            row_off = (ky - 1) * dil * wp
            # 16-aligned window start; interior tiles never clamp (asserted in
            # adnet_forward) -- the clamp only keeps the load statically legal.
            start = jnp.clip(base + row_off - 16, 0, lc - tmw)
            start = pl.multiple_of(start, 16)
            window = x_ref[pl.ds(start, tmw), :]             # (tmw, Cin) bf16
            # Pack the three kx taps along K -> one (tm,3Cin)x(3Cin,Cout)
            # MXU matmul per ky instead of three K=Cin matmuls.
            lhs = jnp.concatenate(
                [window[16 - dil:16 - dil + tm, :],
                 window[16:16 + tm, :],
                 window[16 + dil:16 + dil + tm, :]], axis=-1)
            acc = acc + jnp.dot(lhs, w_ref[ky],
                                preferred_element_type=jnp.float32)
        y = jnp.maximum(acc + b_ref[...], 0.0)
        # Border / margin positions must stay exactly zero.
        o_ref[...] = (y * m_ref[...]).astype(o_ref.dtype)


def _conv16_final_kernel(x0_ref, h_ref, w16_ref, w3_ref, b3_ref, m_ref, o_ref,
                         *, wp, tm, lo, hi):
    """conv1_16 (3x3, 64->3, no BN/bias/ReLU) fused with the residual head:
       out2 = x - (tanh(cat[x, x1]) @ W3 + b3) * x1."""
    lc = h_ref.shape[0]
    tmw = tm + 32
    base = pl.program_id(1) * tm
    has_interior = jnp.logical_and(base < hi, base + tm > lo)

    @pl.when(jnp.logical_not(has_interior))
    def _():
        o_ref[...] = jnp.zeros_like(o_ref)   # cropped away afterwards

    @pl.when(has_interior)
    def _():
        acc = jnp.zeros((tm, 3), jnp.float32)
        for ky in range(3):
            row_off = (ky - 1) * wp                          # dilation 1
            start = jnp.clip(base + row_off - 16, 0, lc - tmw)
            start = pl.multiple_of(start, 16)
            window = h_ref[pl.ds(start, tmw), :]             # (tmw, 64) bf16
            lhs = jnp.concatenate(
                [window[15:15 + tm, :],
                 window[16:16 + tm, :],
                 window[17:17 + tm, :]], axis=-1)            # (tm, 192)
            acc = acc + jnp.dot(lhs, w16_ref[ky],
                                preferred_element_type=jnp.float32)
        x1 = acc * m_ref[...]                   # conv1_16 output, zero outside
        x = x0_ref[...]                         # original input tile (tm, 3) f32
        tx = jnp.tanh(x)
        tx1 = jnp.tanh(x1)
        # conv3: 1x1, 6 -> 3 with bias, as VPU broadcast FMAs (a 3-lane-wide
        # MXU matmul would waste >97% of the array; tanh runs on the EUP).
        out = jnp.zeros((tm, 3), jnp.float32)
        for i in range(3):
            out = out + tx[:, i:i + 1] * w3_ref[i:i + 1, :]
            out = out + tx1[:, i:i + 1] * w3_ref[i + 3:i + 4, :]
        out = out + b3_ref[...]
        o_ref[...] = (x - out * x1).astype(o_ref.dtype)


# -----------------------------------------------------------------------------
# pallas_call wrappers
# -----------------------------------------------------------------------------
def conv3x3_bn_relu(x, w_packed, bias, mask, *, dil, wp, tm, lo, hi,
                    slab_buffers):
    N, Lc, Cin = x.shape
    Cout = w_packed.shape[-1]
    kernel = functools.partial(_conv3x3_bn_relu_kernel,
                               dil=dil, wp=wp, tm=tm, lo=lo, hi=hi)
    slab_kwargs = {}
    if slab_buffers == 1:
        slab_kwargs["pipeline_mode"] = pl.Buffered(1)   # fit v7x 64 MiB VMEM
    need = (slab_buffers * Lc * Cin * x.dtype.itemsize
            + 2 * (w_packed.size * w_packed.dtype.itemsize
                   + Cout * 4 + tm * 4 + tm * Cout * 2))
    return pl.pallas_call(
        kernel,
        out_shape=jax.ShapeDtypeStruct((N, Lc, Cout), jnp.bfloat16),
        grid=(N, Lc // tm),
        in_specs=[
            pl.BlockSpec((None, Lc, Cin), lambda b, r: (b, 0, 0),
                         **slab_kwargs),                         # resident slab
            pl.BlockSpec((3, 3 * Cin, Cout), lambda b, r: (0, 0, 0)),
            pl.BlockSpec((1, Cout), lambda b, r: (0, 0)),
            pl.BlockSpec((tm, 1), lambda b, r: (r, 0)),
        ],
        out_specs=pl.BlockSpec((None, tm, Cout), lambda b, r: (b, r, 0)),
        compiler_params=pltpu.CompilerParams(
            dimension_semantics=("parallel", "arbitrary"),
            vmem_limit_bytes=_vmem_limit(need)),
    )(x, w_packed, bias, mask)


def conv16_final(x0, h, w16, w3, b3, mask, *, wp, tm, lo, hi, slab_buffers):
    N, Lc, Ch = h.shape
    Cx = x0.shape[-1]
    kernel = functools.partial(_conv16_final_kernel, wp=wp, tm=tm, lo=lo, hi=hi)
    slab_kwargs = {}
    if slab_buffers == 1:
        slab_kwargs["pipeline_mode"] = pl.Buffered(1)
    need = (slab_buffers * Lc * Ch * h.dtype.itemsize
            + 2 * (tm * Cx * 4 + w16.size * w16.dtype.itemsize
                   + w3.size * 4 + 3 * 4 + tm * 4 + tm * 3 * 4))
    return pl.pallas_call(
        kernel,
        out_shape=jax.ShapeDtypeStruct((N, Lc, 3), jnp.float32),
        grid=(N, Lc // tm),
        in_specs=[
            pl.BlockSpec((None, tm, Cx), lambda b, r: (b, r, 0)),
            pl.BlockSpec((None, Lc, Ch), lambda b, r: (b, 0, 0),
                         **slab_kwargs),                         # resident slab
            pl.BlockSpec((3, 3 * Ch, 3), lambda b, r: (0, 0, 0)),
            pl.BlockSpec((6, 3), lambda b, r: (0, 0)),
            pl.BlockSpec((1, 3), lambda b, r: (0, 0)),
            pl.BlockSpec((tm, 1), lambda b, r: (r, 0)),
        ],
        out_specs=pl.BlockSpec((None, tm, 3), lambda b, r: (b, r, 0)),
        compiler_params=pltpu.CompilerParams(
            dimension_semantics=("parallel", "arbitrary"),
            vmem_limit_bytes=_vmem_limit(need)),
    )(x0, h, w16, w3, b3, mask)


# -----------------------------------------------------------------------------
# Deterministic parameter init (mirrors ADNet.__init__)
# -----------------------------------------------------------------------------
def init_params(key, channels):
    std = (2.0 / (9.0 * 64)) ** 0.5
    clip_b = 0.025
    params = {}
    keys = jax.random.split(key, 33)
    ki = 0
    for i in range(15):
        cin = channels if i == 0 else FEATURES
        w = std * jax.random.normal(keys[ki], (FEATURES, cin, 3, 3), jnp.float32)
        ki += 1
        gamma = std * jax.random.normal(keys[ki], (FEATURES,), jnp.float32)
        ki += 1
        gamma = jnp.where((gamma >= 0) & (gamma < clip_b), clip_b, gamma)
        gamma = jnp.where((gamma > -clip_b) & (gamma < 0), -clip_b, gamma)
        # BN inference form with buffers set in __init__ (mean=0, var=0.01).
        scale = gamma / jnp.sqrt(0.01 + EPS)
        # (Cout,Cin,ky,kx) -> (ky,kx,Cin,Cout) -> (3, 3*Cin, Cout); fold BN.
        w_packed = jnp.transpose(w, (2, 3, 1, 0)).reshape(3, 3 * cin, FEATURES)
        params[f"w{i}"] = (w_packed * scale[None, None, :]).astype(jnp.bfloat16)
        params[f"b{i}"] = jnp.zeros((1, FEATURES), jnp.float32)  # beta - mean*scale
    # conv1_16: 3x3, 64 -> 3, no BN / bias / ReLU
    w16 = std * jax.random.normal(keys[ki], (3, FEATURES, 3, 3), jnp.float32)
    ki += 1
    params["w_c16"] = jnp.transpose(w16, (2, 3, 1, 0)).reshape(
        3, 3 * FEATURES, 3).astype(jnp.bfloat16)
    # conv3: 1x1, 6 -> 3, with bias (PyTorch default uniform bias init)
    w3 = std * jax.random.normal(keys[ki], (3, 6, 1, 1), jnp.float32)
    ki += 1
    bound = 1.0 / (6.0 ** 0.5)
    b3 = jax.random.uniform(keys[ki], (3,), jnp.float32, -bound, bound)
    ki += 1
    params["w_c3"] = w3[:, :, 0, 0].T         # (6, 3): rows 0-2 hit x, 3-5 x1
    params["b_c3"] = b3.reshape(1, 3)
    return params


# -----------------------------------------------------------------------------
# Full ADNet forward (Pallas path)
# -----------------------------------------------------------------------------
def adnet_forward(x_nhwc, params):
    N, H, W, C = x_nhwc.shape
    if C != 3:
        raise ValueError("ADNet's residual head requires 3 input channels")
    tm = _pick_tile(H, W)
    Hp = H + 2 * PAD
    Wp = _round_up(W + 2 * PAD, 16)          # mult of 16: row-tap offsets stay
    body = Hp * Wp                           # 16-aligned (bf16 sublane tile)
    F = tm + 16                              # leading zero margin
    Lc = _round_up(F + body + tm + 16, tm)   # + trailing zero margin

    # Static invariants the masked/clamped margin handling relies on.
    assert PAD >= MAX_DIL and Wp % 16 == 0 and tm % 16 == 0 and Lc % tm == 0
    lo = F + PAD * Wp + PAD                                  # first interior
    hi = F + (PAD + H - 1) * Wp + (PAD + W - 1) + 1          # last interior + 1
    assert lo - (tm - 1) >= MAX_DIL * Wp + 16                # no leading clamp
    assert (hi - 1) + MAX_DIL * Wp + tm + 16 <= Lc           # no trailing clamp

    # Canonical flat layout: [F zeros | Hp*Wp zero-bordered image | zeros].
    xp = jnp.pad(x_nhwc, ((0, 0), (PAD, PAD), (PAD, Wp - W - PAD), (0, 0)))
    x0 = jnp.pad(xp.reshape(N, body, C), ((0, 0), (F, Lc - F - body), (0, 0)))

    hh = jnp.arange(Hp)
    ww = jnp.arange(Wp)
    m2d = ((hh[:, None] >= PAD) & (hh[:, None] < PAD + H) &
           (ww[None, :] >= PAD) & (ww[None, :] < PAD + W))
    mask = jnp.pad(m2d.reshape(body).astype(jnp.float32),
                   (F, Lc - F - body))[:, None]              # (Lc, 1)

    # Single-buffer the resident slab only if double-buffering would not fit.
    cap = _vmem_cap_bytes()
    slab_bytes = Lc * FEATURES * 2
    slab_buffers = 1 if 2 * slab_bytes > cap - 16 * (1 << 20) else 2

    h = x0.astype(jnp.bfloat16)
    for i in range(15):
        h = conv3x3_bn_relu(h, params[f"w{i}"], params[f"b{i}"], mask,
                            dil=DILS[i], wp=Wp, tm=tm, lo=lo, hi=hi,
                            slab_buffers=slab_buffers)
    out = conv16_final(x0, h, params["w_c16"], params["w_c3"], params["b_c3"],
                       mask, wp=Wp, tm=tm, lo=lo, hi=hi,
                       slab_buffers=slab_buffers)
    out = out[:, F:F + body, :].reshape(N, Hp, Wp, 3)
    return out[:, PAD:PAD + H, PAD:PAD + W, :]


# -----------------------------------------------------------------------------
# Pure-JAX reference (f32) for validation
# -----------------------------------------------------------------------------
def _reference_forward(x_nhwc, params):
    dn = ("NHWC", "HWIO", "NHWC")
    h = x_nhwc
    for i in range(15):
        cin = h.shape[-1]
        w = params[f"w{i}"].astype(jnp.float32).reshape(3, 3, cin, FEATURES)
        d = DILS[i]
        h = lax.conv_general_dilated(h, w, (1, 1), ((d, d), (d, d)),
                                     rhs_dilation=(d, d), dimension_numbers=dn)
        h = jnp.maximum(h + params[f"b{i}"].reshape(1, 1, 1, FEATURES), 0.0)
    w16 = params["w_c16"].astype(jnp.float32).reshape(3, 3, FEATURES, 3)
    x1 = lax.conv_general_dilated(h, w16, (1, 1), ((1, 1), (1, 1)),
                                  dimension_numbers=dn)
    t = jnp.tanh(jnp.concatenate([x_nhwc, x1], axis=-1))
    out = (jnp.einsum("nhwi,io->nhwo", t, params["w_c3"])
           + params["b_c3"].reshape(1, 1, 1, 3))
    return x_nhwc - out * x1


if __name__ == "__main__":
    key = jax.random.PRNGKey(0)
    k_param, k_x = jax.random.split(key)

    N, C, H, W = 2, 3, 16, 16          # channels must be 3 (cat -> 6 -> conv3)
    x_nchw = jax.random.normal(k_x, (N, C, H, W), jnp.float32)
    x_nhwc = jnp.transpose(x_nchw, (0, 2, 3, 1))   # NCHW (PyTorch) -> NHWC

    params = init_params(k_param, C)

    fwd = jax.jit(adnet_forward)
    out = fwd(x_nhwc, params)
    jax.block_until_ready(out)

    assert out.shape == (N, H, W, C)
    assert bool(jnp.all(jnp.isfinite(out)))

    # Validate against the f32 JAX reference (bf16 activations -> loose tols).
    ref = _reference_forward(x_nhwc, params)
    full_err = float(jnp.max(jnp.abs(out - ref))
                     / (jnp.max(jnp.abs(ref)) + 1e-6))
    res_kernel = x_nhwc - out          # isolates the denoising branch
    res_ref = x_nhwc - ref
    res_err = float(jnp.max(jnp.abs(res_kernel - res_ref))
                    / (jnp.max(jnp.abs(res_ref)) + 1e-6))
    assert full_err < 0.05, f"full-output mismatch: {full_err}"
    assert res_err < 0.35, f"residual-branch mismatch: {res_err}"
    print("KERNEL_OK")
</pallas_src>

<mosaic_0001>
module attributes {stable_mosaic.version = 11 : i64} {
  func.func @_conv3x3_bn_relu_kernel(%arg0: i32, %arg1: i32, %arg2: memref<1x1024x64xbf16, #tpu.memory_space<vmem>>, %arg3: memref<3x192x64xbf16, #tpu.memory_space<vmem>>, %arg4: memref<1x64xf32, #tpu.memory_space<vmem>>, %arg5: memref<128x1xf32, #tpu.memory_space<vmem>>, %arg6: memref<1x128x64xbf16, #tpu.memory_space<vmem>>) attributes {dimension_semantics = [#tpu.dimension_semantics<parallel>, #tpu.dimension_semantics<arbitrary>], iteration_bounds = array<i64: 2, 8>, scalar_prefetch = 0 : i64, scratch_operands = 0 : i64, tpu.core_type = #tpu.core_type<tc>, window_params = [{transform_indices = @transform_0, window_bounds = array<i64: 1, 1024, 64>}, {pipeline_mode = #tpu.pipeline_mode<synchronous>, transform_indices = @transform_1, window_bounds = array<i64: 3, 192, 64>}, {pipeline_mode = #tpu.pipeline_mode<synchronous>, transform_indices = @transform_2, window_bounds = array<i64: 1, 64>}, {transform_indices = @transform_3, window_bounds = array<i64: 128, 1>}, {transform_indices = @transform_4, window_bounds = array<i64: 1, 128, 64>}]} {
    %c128_i32 = arith.constant 128 : i32
    %0 = arith.muli %arg1, %c128_i32 : i32
    %c706_i32 = arith.constant 706 : i32
    %1 = arith.cmpi slt, %0, %c706_i32 : i32
    %c128_i32_0 = arith.constant 128 : i32
    %2 = arith.addi %0, %c128_i32_0 : i32
    %c210_i32 = arith.constant 210 : i32
    %3 = arith.cmpi sgt, %2, %c210_i32 : i32
    %4 = arith.andi %1, %3 : i1
    %true = arith.constant true
    %5 = arith.xori %4, %true : i1
    %6 = arith.extui %5 : i1 to i32
    %c0_i32 = arith.constant 0 : i32
    %7 = arith.cmpi ne, %6, %c0_i32 : i32
    scf.if %7 {
      %cst = arith.constant 0.000000e+00 : bf16
      %10 = vector.broadcast %cst : bf16 to vector<128x64xbf16>
      %c0 = arith.constant 0 : index
      %c0_2 = arith.constant 0 : index
      %c0_3 = arith.constant 0 : index
      %11 = vector.load %arg6[%c0, %c0_2, %c0_3] : memref<1x128x64xbf16, #tpu.memory_space<vmem>>, vector<1x128x64xbf16>
      %12 = vector.shape_cast %11 : vector<1x128x64xbf16> to vector<128x64xbf16>
      %13 = vector.shape_cast %10 : vector<128x64xbf16> to vector<1x128x64xbf16>
      tpu.vector_store %arg6[%c0, %c0_2, %c0_3], %13 {strides = array<i32>} : memref<1x128x64xbf16, #tpu.memory_space<vmem>>, vector<1x128x64xbf16>,
    } else {
    }
    %8 = arith.extui %4 : i1 to i32
    %c0_i32_1 = arith.constant 0 : i32
    %9 = arith.cmpi ne, %8, %c0_i32_1 : i32
    scf.if %9 {
      %cst = arith.constant 0.000000e+00 : f32
      %10 = vector.broadcast %cst : f32 to vector<128x64xf32>
      %c-64_i32 = arith.constant -64 : i32
      %11 = arith.addi %0, %c-64_i32 : i32
      %c16_i32 = arith.constant 16 : i32
      %12 = arith.subi %11, %c16_i32 : i32
      %c0_i32_2 = arith.constant 0 : i32
      %c864_i32 = arith.constant 864 : i32
      %13 = arith.maxsi %c0_i32_2, %12 : i32
      %14 = arith.minsi %c864_i32, %13 : i32
      %15 = tpu.assume_multiple %14, 16 : i32
      %c0 = arith.constant 0 : index
      %16 = arith.index_cast %15 : i32 to index
      %c0_3 = arith.constant 0 : index
      %17 = vector.load %arg2[%c0, %16, %c0_3] : memref<1x1024x64xbf16, #tpu.memory_space<vmem>>, vector<1x160x64xbf16>
      %18 = vector.shape_cast %17 : vector<1x160x64xbf16> to vector<160x64xbf16>
      %19 = vector.extract_strided_slice %18 {offsets = [14, 0], sizes = [128, 64], strides = [1, 1]} : vector<160x64xbf16> to vector<128x64xbf16>
      %20 = vector.extract_strided_slice %18 {offsets = [16, 0], sizes = [128, 64], strides = [1, 1]} : vector<160x64xbf16> to vector<128x64xbf16>
      %21 = vector.extract_strided_slice %18 {offsets = [18, 0], sizes = [128, 64], strides = [1, 1]} : vector<160x64xbf16> to vector<128x64xbf16>
      %22 = tpu.concatenate %19, %20, %21 in 1 : vector<128x64xbf16>, vector<128x64xbf16>, vector<128x64xbf16> -> vector<128x192xbf16>
      %c0_4 = arith.constant 0 : index
      %c0_5 = arith.constant 0 : index
      %c0_6 = arith.constant 0 : index
      %23 = vector.load %arg3[%c0_4, %c0_5, %c0_6] : memref<3x192x64xbf16, #tpu.memory_space<vmem>>, vector<1x192x64xbf16>
      %24 = vector.shape_cast %23 : vector<1x192x64xbf16> to vector<192x64xbf16>
      %cst_7 = arith.constant dense<0.000000e+00> : vector<128x64xf32>
      %25 = tpu.matmul %22, %24, %cst_7 {dimension_numbers = #tpu.dot_dimension_numbers<[1], [0], [0], [1], [0, 0, 1, 1], [], []>} : vector<128x192xbf16>, vector<192x64xbf16>, vector<128x64xf32> -> vector<128x64xf32>
      %26 = arith.addf %10, %25 : vector<128x64xf32>
      %c0_i32_8 = arith.constant 0 : i32
      %27 = arith.addi %0, %c0_i32_8 : i32
      %c16_i32_9 = arith.constant 16 : i32
      %28 = arith.subi %27, %c16_i32_9 : i32
      %c0_i32_10 = arith.constant 0 : i32
      %c864_i32_11 = arith.constant 864 : i32
      %29 = arith.maxsi %c0_i32_10, %28 : i32
      %30 = arith.minsi %c864_i32_11, %29 : i32
      %31 = tpu.assume_multiple %30, 16 : i32
      %c0_12 = arith.constant 0 : index
      %32 = arith.index_cast %31 : i32 to index
      %c0_13 = arith.constant 0 : index
      %33 = vector.load %arg2[%c0_12, %32, %c0_13] : memref<1x1024x64xbf16, #tpu.memory_space<vmem>>, vector<1x160x64xbf16>
      %34 = vector.shape_cast %33 : vector<1x160x64xbf16> to vector<160x64xbf16>
      %35 = vector.extract_strided_slice %34 {offsets = [14, 0], sizes = [128, 64], strides = [1, 1]} : vector<160x64xbf16> to vector<128x64xbf16>
      %36 = vector.extract_strided_slice %34 {offsets = [16, 0], sizes = [128, 64], strides = [1, 1]} : vector<160x64xbf16> to vector<128x64xbf16>
      %37 = vector.extract_strided_slice %34 {offsets = [18, 0], sizes = [128, 64], strides = [1, 1]} : vector<160x64xbf16> to vector<128x64xbf16>
      %38 = tpu.concatenate %35, %36, %37 in 1 : vector<128x64xbf16>, vector<128x64xbf16>, vector<128x64xbf16> -> vector<128x192xbf16>
      %c1 = arith.constant 1 : index
      %c0_14 = arith.constant 0 : index
      %c0_15 = arith.constant 0 : index
      %39 = vector.load %arg3[%c1, %c0_14, %c0_15] : memref<3x192x64xbf16, #tpu.memory_space<vmem>>, vector<1x192x64xbf16>
      %40 = vector.shape_cast %39 : vector<1x192x64xbf16> to vector<192x64xbf16>
      %cst_16 = arith.constant dense<0.000000e+00> : vector<128x64xf32>
      %41 = tpu.matmul %38, %40, %cst_16 {dimension_numbers = #tpu.dot_dimension_numbers<[1], [0], [0], [1], [0, 0, 1, 1], [], []>} : vector<128x192xbf16>, vector<192x64xbf16>, vector<128x64xf32> -> vector<128x64xf32>
      %42 = arith.addf %26, %41 : vector<128x64xf32>
      %c64_i32 = arith.constant 64 : i32
      %43 = arith.addi %0, %c64_i32 : i32
      %c16_i32_17 = arith.constant 16 : i32
      %44 = arith.subi %43, %c16_i32_17 : i32
      %c0_i32_18 = arith.constant 0 : i32
      %c864_i32_19 = arith.constant 864 : i32
      %45 = arith.maxsi %c0_i32_18, %44 : i32
      %46 = arith.minsi %c864_i32_19, %45 : i32
      %47 = tpu.assume_multiple %46, 16 : i32
      %c0_20 = arith.constant 0 : index
      %48 = arith.index_cast %47 : i32 to index
      %c0_21 = arith.constant 0 : index
      %49 = vector.load %arg2[%c0_20, %48, %c0_21] : memref<1x1024x64xbf16, #tpu.memory_space<vmem>>, vector<1x160x64xbf16>
      %50 = vector.shape_cast %49 : vector<1x160x64xbf16> to vector<160x64xbf16>
      %51 = vector.extract_strided_slice %50 {offsets = [14, 0], sizes = [128, 64], strides = [1, 1]} : vector<160x64xbf16> to vector<128x64xbf16>
      %52 = vector.extract_strided_slice %50 {offsets = [16, 0], sizes = [128, 64], strides = [1, 1]} : vector<160x64xbf16> to vector<128x64xbf16>
      %53 = vector.extract_strided_slice %50 {offsets = [18, 0], sizes = [128, 64], strides = [1, 1]} : vector<160x64xbf16> to vector<128x64xbf16>
      %54 = tpu.concatenate %51, %52, %53 in 1 : vector<128x64xbf16>, vector<128x64xbf16>, vector<128x64xbf16> -> vector<128x192xbf16>
      %c2 = arith.constant 2 : index
      %c0_22 = arith.constant 0 : index
      %c0_23 = arith.constant 0 : index
      %55 = vector.load %arg3[%c2, %c0_22, %c0_23] : memref<3x192x64xbf16, #tpu.memory_space<vmem>>, vector<1x192x64xbf16>
      %56 = vector.shape_cast %55 : vector<1x192x64xbf16> to vector<192x64xbf16>
      %cst_24 = arith.constant dense<0.000000e+00> : vector<128x64xf32>
      %57 = tpu.matmul %54, %56, %cst_24 {dimension_numbers = #tpu.dot_dimension_numbers<[1], [0], [0], [1], [0, 0, 1, 1], [], []>} : vector<128x192xbf16>, vector<192x64xbf16>, vector<128x64xf32> -> vector<128x64xf32>
      %58 = arith.addf %42, %57 : vector<128x64xf32>
      %c0_25 = arith.constant 0 : index
      %c0_26 = arith.constant 0 : index
      %59 = vector.load %arg4[%c0_25, %c0_26] : memref<1x64xf32, #tpu.memory_space<vmem>>, vector<1x64xf32>
      %60 = vector.broadcast %59 : vector<1x64xf32> to vector<128x64xf32>
      %61 = arith.addf %58, %60 : vector<128x64xf32>
      %cst_27 = arith.constant 0.000000e+00 : f32
      %62 = vector.broadcast %cst_27 : f32 to vector<128x64xf32>
      %63 = arith.maximumf %61, %62 : vector<128x64xf32>
      %c0_28 = arith.constant 0 : index
      %c0_29 = arith.constant 0 : index
      %64 = vector.load %arg5[%c0_28, %c0_29] : memref<128x1xf32, #tpu.memory_space<vmem>>, vector<128x1xf32>
      %65 = vector.broadcast %64 : vector<128x1xf32> to vector<128x64xf32>
      %66 = arith.mulf %63, %65 : vector<128x64xf32>
      %67 = arith.truncf %66 : vector<128x64xf32> to vector<128x64xbf16>
      %c0_30 = arith.constant 0 : index
      %c0_31 = arith.constant 0 : index
      %c0_32 = arith.constant 0 : index
      %68 = vector.load %arg6[%c0_30, %c0_31, %c0_32] : memref<1x128x64xbf16, #tpu.memory_space<vmem>>, vector<1x128x64xbf16>
      %69 = vector.shape_cast %68 : vector<1x128x64xbf16> to vector<128x64xbf16>
      %70 = vector.shape_cast %67 : vector<128x64xbf16> to vector<1x128x64xbf16>
      tpu.vector_store %arg6[%c0_30, %c0_31, %c0_32], %70 {strides = array<i32>} : memref<1x128x64xbf16, #tpu.memory_space<vmem>>, vector<1x128x64xbf16>,
    } else {
    }
    return
  }
  func.func @transform_0(%arg0: i32, %arg1: i32) -> (i32, i32, i32) {
    %c0_i32 = arith.constant 0 : i32
    %c0_i32_0 = arith.constant 0 : i32
    %c0_i32_1 = arith.constant 0 : i32
    return %arg0, %c0_i32, %c0_i32_0 : i32, i32, i32
  }
  func.func @transform_1(%arg0: i32, %arg1: i32) -> (i32, i32, i32) {
    %c0_i32 = arith.constant 0 : i32
    %c0_i32_0 = arith.constant 0 : i32
    %c0_i32_1 = arith.constant 0 : i32
    %c0_i32_2 = arith.constant 0 : i32
    return %c0_i32, %c0_i32_0, %c0_i32_1 : i32, i32, i32
  }
  func.func @transform_2(%arg0: i32, %arg1: i32) -> (i32, i32) {
    %c0_i32 = arith.constant 0 : i32
    %c0_i32_0 = arith.constant 0 : i32
    %c0_i32_1 = arith.constant 0 : i32
    return %c0_i32, %c0_i32_0 : i32, i32
  }
  func.func @transform_3(%arg0: i32, %arg1: i32) -> (i32, i32) {
    %c0_i32 = arith.constant 0 : i32
    %c0_i32_0 = arith.constant 0 : i32
    return %arg1, %c0_i32 : i32, i32
  }
  func.func @transform_4(%arg0: i32, %arg1: i32) -> (i32, i32, i32) {
    %c0_i32 = arith.constant 0 : i32
    %c0_i32_0 = arith.constant 0 : i32
    return %arg0, %arg1, %c0_i32 : i32, i32, i32
  }
}

module attributes {stable_mosaic.version = 11 : i64} {
  func.func @_conv3x3_bn_relu_kernel(%arg0: i32, %arg1: i32, %arg2: memref<1x1024x3xbf16, #tpu.memory_space<vmem>>, %arg3: memref<3x9x64xbf16, #tpu.memory_space<vmem>>, %arg4: memref<1x64xf32, #tpu.memory_space<vmem>>, %arg5: memref<128x1xf32, #tpu.memory_space<vmem>>, %arg6: memref<1x128x64xbf16, #tpu.memory_space<vmem>>) attributes {dimension_semantics = [#tpu.dimension_semantics<parallel>, #tpu.dimension_semantics<arbitrary>], iteration_bounds = array<i64: 2, 8>, scalar_prefetch = 0 : i64, scratch_operands = 0 : i64, tpu.core_type = #tpu.core_type<tc>, window_params = [{transform_indices = @transform_0, window_bounds = array<i64: 1, 1024, 3>}, {pipeline_mode = #tpu.pipeline_mode<synchronous>, transform_indices = @transform_1, window_bounds = array<i64: 3, 9, 64>}, {pipeline_mode = #tpu.pipeline_mode<synchronous>, transform_indices = @transform_2, window_bounds = array<i64: 1, 64>}, {transform_indices = @transform_3, window_bounds = array<i64: 128, 1>}, {transform_indices = @transform_4, window_bounds = array<i64: 1, 128, 64>}]} {
    %c128_i32 = arith.constant 128 : i32
    %0 = arith.muli %arg1, %c128_i32 : i32
    %c706_i32 = arith.constant 706 : i32
    %1 = arith.cmpi slt, %0, %c706_i32 : i32
    %c128_i32_0 = arith.constant 128 : i32
    %2 = arith.addi %0, %c128_i32_0 : i32
    %c210_i32 = arith.constant 210 : i32
    %3 = arith.cmpi sgt, %2, %c210_i32 : i32
    %4 = arith.andi %1, %3 : i1
    %true = arith.constant true
    %5 = arith.xori %4, %true : i1
    %6 = arith.extui %5 : i1 to i32
    %c0_i32 = arith.constant 0 : i32
    %7 = arith.cmpi ne, %6, %c0_i32 : i32
    scf.if %7 {
      %cst = arith.constant 0.000000e+00 : bf16
      %10 = vector.broadcast %cst : bf16 to vector<128x64xbf16>
      %c0 = arith.constant 0 : index
      %c0_2 = arith.constant 0 : index
      %c0_3 = arith.constant 0 : index
      %11 = vector.load %arg6[%c0, %c0_2, %c0_3] : memref<1x128x64xbf16, #tpu.memory_space<vmem>>, vector<1x128x64xbf16>
      %12 = vector.shape_cast %11 : vector<1x128x64xbf16> to vector<128x64xbf16>
      %13 = vector.shape_cast %10 : vector<128x64xbf16> to vector<1x128x64xbf16>
      tpu.vector_store %arg6[%c0, %c0_2, %c0_3], %13 {strides = array<i32>} : memref<1x128x64xbf16, #tpu.memory_space<vmem>>, vector<1x128x64xbf16>,
    } else {
    }
    %8 = arith.extui %4 : i1 to i32
    %c0_i32_1 = arith.constant 0 : i32
    %9 = arith.cmpi ne, %8, %c0_i32_1 : i32
    scf.if %9 {
      %cst = arith.constant 0.000000e+00 : f32
      %10 = vector.broadcast %cst : f32 to vector<128x64xf32>
      %c-32_i32 = arith.constant -32 : i32
      %11 = arith.addi %0, %c-32_i32 : i32
      %c16_i32 = arith.constant 16 : i32
      %12 = arith.subi %11, %c16_i32 : i32
      %c0_i32_2 = arith.constant 0 : i32
      %c864_i32 = arith.constant 864 : i32
      %13 = arith.maxsi %c0_i32_2, %12 : i32
      %14 = arith.minsi %c864_i32, %13 : i32
      %15 = tpu.assume_multiple %14, 16 : i32
      %c0 = arith.constant 0 : index
      %16 = arith.index_cast %15 : i32 to index
      %c0_3 = arith.constant 0 : index
      %17 = vector.load %arg2[%c0, %16, %c0_3] : memref<1x1024x3xbf16, #tpu.memory_space<vmem>>, vector<1x160x3xbf16>
      %18 = vector.shape_cast %17 : vector<1x160x3xbf16> to vector<160x3xbf16>
      %19 = vector.extract_strided_slice %18 {offsets = [15, 0], sizes = [128, 3], strides = [1, 1]} : vector<160x3xbf16> to vector<128x3xbf16>
      %20 = vector.extract_strided_slice %18 {offsets = [16, 0], sizes = [128, 3], strides = [1, 1]} : vector<160x3xbf16> to vector<128x3xbf16>
      %21 = vector.extract_strided_slice %18 {offsets = [17, 0], sizes = [128, 3], strides = [1, 1]} : vector<160x3xbf16> to vector<128x3xbf16>
      %22 = tpu.concatenate %19, %20, %21 in 1 : vector<128x3xbf16>, vector<128x3xbf16>, vector<128x3xbf16> -> vector<128x9xbf16>
      %c0_4 = arith.constant 0 : index
      %c0_5 = arith.constant 0 : index
      %c0_6 = arith.constant 0 : index
      %23 = vector.load %arg3[%c0_4, %c0_5, %c0_6] : memref<3x9x64xbf16, #tpu.memory_space<vmem>>, vector<1x9x64xbf16>
      %24 = vector.shape_cast %23 : vector<1x9x64xbf16> to vector<9x64xbf16>
      %cst_7 = arith.constant dense<0.000000e+00> : vector<128x64xf32>
      %25 = tpu.matmul %22, %24, %cst_7 {dimension_numbers = #tpu.dot_dimension_numbers<[1], [0], [0], [1], [0, 0, 1, 1], [], []>} : vector<128x9xbf16>, vector<9x64xbf16>, vector<128x64xf32> -> vector<128x64xf32>
      %26 = arith.addf %10, %25 : vector<128x64xf32>
      %c0_i32_8 = arith.constant 0 : i32
      %27 = arith.addi %0, %c0_i32_8 : i32
      %c16_i32_9 = arith.constant 16 : i32
      %28 = arith.subi %27, %c16_i32_9 : i32
      %c0_i32_10 = arith.constant 0 : i32
      %c864_i32_11 = arith.constant 864 : i32
      %29 = arith.maxsi %c0_i32_10, %28 : i32
      %30 = arith.minsi %c864_i32_11, %29 : i32
      %31 = tpu.assume_multiple %30, 16 : i32
      %c0_12 = arith.constant 0 : index
      %32 = arith.index_cast %31 : i32 to index
      %c0_13 = arith.constant 0 : index
      %33 = vector.load %arg2[%c0_12, %32, %c0_13] : memref<1x1024x3xbf16, #tpu.memory_space<vmem>>, vector<1x160x3xbf16>
      %34 = vector.shape_cast %33 : vector<1x160x3xbf16> to vector<160x3xbf16>
      %35 = vector.extract_strided_slice %34 {offsets = [15, 0], sizes = [128, 3], strides = [1, 1]} : vector<160x3xbf16> to vector<128x3xbf16>
      %36 = vector.extract_strided_slice %34 {offsets = [16, 0], sizes = [128, 3], strides = [1, 1]} : vector<160x3xbf16> to vector<128x3xbf16>
      %37 = vector.extract_strided_slice %34 {offsets = [17, 0], sizes = [128, 3], strides = [1, 1]} : vector<160x3xbf16> to vector<128x3xbf16>
      %38 = tpu.concatenate %35, %36, %37 in 1 : vector<128x3xbf16>, vector<128x3xbf16>, vector<128x3xbf16> -> vector<128x9xbf16>
      %c1 = arith.constant 1 : index
      %c0_14 = arith.constant 0 : index
      %c0_15 = arith.constant 0 : index
      %39 = vector.load %arg3[%c1, %c0_14, %c0_15] : memref<3x9x64xbf16, #tpu.memory_space<vmem>>, vector<1x9x64xbf16>
      %40 = vector.shape_cast %39 : vector<1x9x64xbf16> to vector<9x64xbf16>
      %cst_16 = arith.constant dense<0.000000e+00> : vector<128x64xf32>
      %41 = tpu.matmul %38, %40, %cst_16 {dimension_numbers = #tpu.dot_dimension_numbers<[1], [0], [0], [1], [0, 0, 1, 1], [], []>} : vector<128x9xbf16>, vector<9x64xbf16>, vector<128x64xf32> -> vector<128x64xf32>
      %42 = arith.addf %26, %41 : vector<128x64xf32>
      %c32_i32 = arith.constant 32 : i32
      %43 = arith.addi %0, %c32_i32 : i32
      %c16_i32_17 = arith.constant 16 : i32
      %44 = arith.subi %43, %c16_i32_17 : i32
      %c0_i32_18 = arith.constant 0 : i32
      %c864_i32_19 = arith.constant 864 : i32
      %45 = arith.maxsi %c0_i32_18, %44 : i32
      %46 = arith.minsi %c864_i32_19, %45 : i32
      %47 = tpu.assume_multiple %46, 16 : i32
      %c0_20 = arith.constant 0 : index
      %48 = arith.index_cast %47 : i32 to index
      %c0_21 = arith.constant 0 : index
      %49 = vector.load %arg2[%c0_20, %48, %c0_21] : memref<1x1024x3xbf16, #tpu.memory_space<vmem>>, vector<1x160x3xbf16>
      %50 = vector.shape_cast %49 : vector<1x160x3xbf16> to vector<160x3xbf16>
      %51 = vector.extract_strided_slice %50 {offsets = [15, 0], sizes = [128, 3], strides = [1, 1]} : vector<160x3xbf16> to vector<128x3xbf16>
      %52 = vector.extract_strided_slice %50 {offsets = [16, 0], sizes = [128, 3], strides = [1, 1]} : vector<160x3xbf16> to vector<128x3xbf16>
      %53 = vector.extract_strided_slice %50 {offsets = [17, 0], sizes = [128, 3], strides = [1, 1]} : vector<160x3xbf16> to vector<128x3xbf16>
      %54 = tpu.concatenate %51, %52, %53 in 1 : vector<128x3xbf16>, vector<128x3xbf16>, vector<128x3xbf16> -> vector<128x9xbf16>
      %c2 = arith.constant 2 : index
      %c0_22 = arith.constant 0 : index
      %c0_23 = arith.constant 0 : index
      %55 = vector.load %arg3[%c2, %c0_22, %c0_23] : memref<3x9x64xbf16, #tpu.memory_space<vmem>>, vector<1x9x64xbf16>
      %56 = vector.shape_cast %55 : vector<1x9x64xbf16> to vector<9x64xbf16>
      %cst_24 = arith.constant dense<0.000000e+00> : vector<128x64xf32>
      %57 = tpu.matmul %54, %56, %cst_24 {dimension_numbers = #tpu.dot_dimension_numbers<[1], [0], [0], [1], [0, 0, 1, 1], [], []>} : vector<128x9xbf16>, vector<9x64xbf16>, vector<128x64xf32> -> vector<128x64xf32>
      %58 = arith.addf %42, %57 : vector<128x64xf32>
      %c0_25 = arith.constant 0 : index
      %c0_26 = arith.constant 0 : index
      %59 = vector.load %arg4[%c0_25, %c0_26] : memref<1x64xf32, #tpu.memory_space<vmem>>, vector<1x64xf32>
      %60 = vector.broadcast %59 : vector<1x64xf32> to vector<128x64xf32>
      %61 = arith.addf %58, %60 : vector<128x64xf32>
      %cst_27 = arith.constant 0.000000e+00 : f32
      %62 = vector.broadcast %cst_27 : f32 to vector<128x64xf32>
      %63 = arith.maximumf %61, %62 : vector<128x64xf32>
      %c0_28 = arith.constant 0 : index
      %c0_29 = arith.constant 0 : index
      %64 = vector.load %arg5[%c0_28, %c0_29] : memref<128x1xf32, #tpu.memory_space<vmem>>, vector<128x1xf32>
      %65 = vector.broadcast %64 : vector<128x1xf32> to vector<128x64xf32>
      %66 = arith.mulf %63, %65 : vector<128x64xf32>
      %67 = arith.truncf %66 : vector<128x64xf32> to vector<128x64xbf16>
      %c0_30 = arith.constant 0 : index
      %c0_31 = arith.constant 0 : index
      %c0_32 = arith.constant 0 : index
      %68 = vector.load %arg6[%c0_30, %c0_31, %c0_32] : memref<1x128x64xbf16, #tpu.memory_space<vmem>>, vector<1x128x64xbf16>
      %69 = vector.shape_cast %68 : vector<1x128x64xbf16> to vector<128x64xbf16>
      %70 = vector.shape_cast %67 : vector<128x64xbf16> to vector<1x128x64xbf16>
      tpu.vector_store %arg6[%c0_30, %c0_31, %c0_32], %70 {strides = array<i32>} : memref<1x128x64xbf16, #tpu.memory_space<vmem>>, vector<1x128x64xbf16>,
    } else {
    }
    return
  }
  func.func @transform_0(%arg0: i32, %arg1: i32) -> (i32, i32, i32) {
    %c0_i32 = arith.constant 0 : i32
    %c0_i32_0 = arith.constant 0 : i32
    %c0_i32_1 = arith.constant 0 : i32
    return %arg0, %c0_i32, %c0_i32_0 : i32, i32, i32
  }
  func.func @transform_1(%arg0: i32, %arg1: i32) -> (i32, i32, i32) {
    %c0_i32 = arith.constant 0 : i32
    %c0_i32_0 = arith.constant 0 : i32
    %c0_i32_1 = arith.constant 0 : i32
    %c0_i32_2 = arith.constant 0 : i32
    return %c0_i32, %c0_i32_0, %c0_i32_1 : i32, i32, i32
  }
  func.func @transform_2(%arg0: i32, %arg1: i32) -> (i32, i32) {
    %c0_i32 = arith.constant 0 : i32
    %c0_i32_0 = arith.constant 0 : i32
    %c0_i32_1 = arith.constant 0 : i32
    return %c0_i32, %c0_i32_0 : i32, i32
  }
  func.func @transform_3(%arg0: i32, %arg1: i32) -> (i32, i32) {
    %c0_i32 = arith.constant 0 : i32
    %c0_i32_0 = arith.constant 0 : i32
    return %arg1, %c0_i32 : i32, i32
  }
  func.func @transform_4(%arg0: i32, %arg1: i32) -> (i32, i32, i32) {
    %c0_i32 = arith.constant 0 : i32
    %c0_i32_0 = arith.constant 0 : i32
    return %arg0, %arg1, %c0_i32 : i32, i32, i32
  }
}

module attributes {stable_mosaic.version = 11 : i64} {
  func.func @_conv3x3_bn_relu_kernel(%arg0: i32, %arg1: i32, %arg2: memref<1x1024x64xbf16, #tpu.memory_space<vmem>>, %arg3: memref<3x192x64xbf16, #tpu.memory_space<vmem>>, %arg4: memref<1x64xf32, #tpu.memory_space<vmem>>, %arg5: memref<128x1xf32, #tpu.memory_space<vmem>>, %arg6: memref<1x128x64xbf16, #tpu.memory_space<vmem>>) attributes {dimension_semantics = [#tpu.dimension_semantics<parallel>, #tpu.dimension_semantics<arbitrary>], iteration_bounds = array<i64: 2, 8>, scalar_prefetch = 0 : i64, scratch_operands = 0 : i64, tpu.core_type = #tpu.core_type<tc>, window_params = [{transform_indices = @transform_0, window_bounds = array<i64: 1, 1024, 64>}, {pipeline_mode = #tpu.pipeline_mode<synchronous>, transform_indices = @transform_1, window_bounds = array<i64: 3, 192, 64>}, {pipeline_mode = #tpu.pipeline_mode<synchronous>, transform_indices = @transform_2, window_bounds = array<i64: 1, 64>}, {transform_indices = @transform_3, window_bounds = array<i64: 128, 1>}, {transform_indices = @transform_4, window_bounds = array<i64: 1, 128, 64>}]} {
    %c128_i32 = arith.constant 128 : i32
    %0 = arith.muli %arg1, %c128_i32 : i32
    %c706_i32 = arith.constant 706 : i32
    %1 = arith.cmpi slt, %0, %c706_i32 : i32
    %c128_i32_0 = arith.constant 128 : i32
    %2 = arith.addi %0, %c128_i32_0 : i32
    %c210_i32 = arith.constant 210 : i32
    %3 = arith.cmpi sgt, %2, %c210_i32 : i32
    %4 = arith.andi %1, %3 : i1
    %true = arith.constant true
    %5 = arith.xori %4, %true : i1
    %6 = arith.extui %5 : i1 to i32
    %c0_i32 = arith.constant 0 : i32
    %7 = arith.cmpi ne, %6, %c0_i32 : i32
    scf.if %7 {
      %cst = arith.constant 0.000000e+00 : bf16
      %10 = vector.broadcast %cst : bf16 to vector<128x64xbf16>
      %c0 = arith.constant 0 : index
      %c0_2 = arith.constant 0 : index
      %c0_3 = arith.constant 0 : index
      %11 = vector.load %arg6[%c0, %c0_2, %c0_3] : memref<1x128x64xbf16, #tpu.memory_space<vmem>>, vector<1x128x64xbf16>
      %12 = vector.shape_cast %11 : vector<1x128x64xbf16> to vector<128x64xbf16>
      %13 = vector.shape_cast %10 : vector<128x64xbf16> to vector<1x128x64xbf16>
      tpu.vector_store %arg6[%c0, %c0_2, %c0_3], %13 {strides = array<i32>} : memref<1x128x64xbf16, #tpu.memory_space<vmem>>, vector<1x128x64xbf16>,
    } else {
    }
    %8 = arith.extui %4 : i1 to i32
    %c0_i32_1 = arith.constant 0 : i32
    %9 = arith.cmpi ne, %8, %c0_i32_1 : i32
    scf.if %9 {
      %cst = arith.constant 0.000000e+00 : f32
      %10 = vector.broadcast %cst : f32 to vector<128x64xf32>
      %c-32_i32 = arith.constant -32 : i32
      %11 = arith.addi %0, %c-32_i32 : i32
      %c16_i32 = arith.constant 16 : i32
      %12 = arith.subi %11, %c16_i32 : i32
      %c0_i32_2 = arith.constant 0 : i32
      %c864_i32 = arith.constant 864 : i32
      %13 = arith.maxsi %c0_i32_2, %12 : i32
      %14 = arith.minsi %c864_i32, %13 : i32
      %15 = tpu.assume_multiple %14, 16 : i32
      %c0 = arith.constant 0 : index
      %16 = arith.index_cast %15 : i32 to index
      %c0_3 = arith.constant 0 : index
      %17 = vector.load %arg2[%c0, %16, %c0_3] : memref<1x1024x64xbf16, #tpu.memory_space<vmem>>, vector<1x160x64xbf16>
      %18 = vector.shape_cast %17 : vector<1x160x64xbf16> to vector<160x64xbf16>
      %19 = vector.extract_strided_slice %18 {offsets = [15, 0], sizes = [128, 64], strides = [1, 1]} : vector<160x64xbf16> to vector<128x64xbf16>
      %20 = vector.extract_strided_slice %18 {offsets = [16, 0], sizes = [128, 64], strides = [1, 1]} : vector<160x64xbf16> to vector<128x64xbf16>
      %21 = vector.extract_strided_slice %18 {offsets = [17, 0], sizes = [128, 64], strides = [1, 1]} : vector<160x64xbf16> to vector<128x64xbf16>
      %22 = tpu.concatenate %19, %20, %21 in 1 : vector<128x64xbf16>, vector<128x64xbf16>, vector<128x64xbf16> -> vector<128x192xbf16>
      %c0_4 = arith.constant 0 : index
      %c0_5 = arith.constant 0 : index
      %c0_6 = arith.constant 0 : index
      %23 = vector.load %arg3[%c0_4, %c0_5, %c0_6] : memref<3x192x64xbf16, #tpu.memory_space<vmem>>, vector<1x192x64xbf16>
      %24 = vector.shape_cast %23 : vector<1x192x64xbf16> to vector<192x64xbf16>
      %cst_7 = arith.constant dense<0.000000e+00> : vector<128x64xf32>
      %25 = tpu.matmul %22, %24, %cst_7 {dimension_numbers = #tpu.dot_dimension_numbers<[1], [0], [0], [1], [0, 0, 1, 1], [], []>} : vector<128x192xbf16>, vector<192x64xbf16>, vector<128x64xf32> -> vector<128x64xf32>
      %26 = arith.addf %10, %25 : vector<128x64xf32>
      %c0_i32_8 = arith.constant 0 : i32
      %27 = arith.addi %0, %c0_i32_8 : i32
      %c16_i32_9 = arith.constant 16 : i32
      %28 = arith.subi %27, %c16_i32_9 : i32
      %c0_i32_10 = arith.constant 0 : i32
      %c864_i32_11 = arith.constant 864 : i32
      %29 = arith.maxsi %c0_i32_10, %28 : i32
      %30 = arith.minsi %c864_i32_11, %29 : i32
      %31 = tpu.assume_multiple %30, 16 : i32
      %c0_12 = arith.constant 0 : index
      %32 = arith.index_cast %31 : i32 to index
      %c0_13 = arith.constant 0 : index
      %33 = vector.load %arg2[%c0_12, %32, %c0_13] : memref<1x1024x64xbf16, #tpu.memory_space<vmem>>, vector<1x160x64xbf16>
      %34 = vector.shape_cast %33 : vector<1x160x64xbf16> to vector<160x64xbf16>
      %35 = vector.extract_strided_slice %34 {offsets = [15, 0], sizes = [128, 64], strides = [1, 1]} : vector<160x64xbf16> to vector<128x64xbf16>
      %36 = vector.extract_strided_slice %34 {offsets = [16, 0], sizes = [128, 64], strides = [1, 1]} : vector<160x64xbf16> to vector<128x64xbf16>
      %37 = vector.extract_strided_slice %34 {offsets = [17, 0], sizes = [128, 64], strides = [1, 1]} : vector<160x64xbf16> to vector<128x64xbf16>
      %38 = tpu.concatenate %35, %36, %37 in 1 : vector<128x64xbf16>, vector<128x64xbf16>, vector<128x64xbf16> -> vector<128x192xbf16>
      %c1 = arith.constant 1 : index
      %c0_14 = arith.constant 0 : index
      %c0_15 = arith.constant 0 : index
      %39 = vector.load %arg3[%c1, %c0_14, %c0_15] : memref<3x192x64xbf16, #tpu.memory_space<vmem>>, vector<1x192x64xbf16>
      %40 = vector.shape_cast %39 : vector<1x192x64xbf16> to vector<192x64xbf16>
      %cst_16 = arith.constant dense<0.000000e+00> : vector<128x64xf32>
      %41 = tpu.matmul %38, %40, %cst_16 {dimension_numbers = #tpu.dot_dimension_numbers<[1], [0], [0], [1], [0, 0, 1, 1], [], []>} : vector<128x192xbf16>, vector<192x64xbf16>, vector<128x64xf32> -> vector<128x64xf32>
      %42 = arith.addf %26, %41 : vector<128x64xf32>
      %c32_i32 = arith.constant 32 : i32
      %43 = arith.addi %0, %c32_i32 : i32
      %c16_i32_17 = arith.constant 16 : i32
      %44 = arith.subi %43, %c16_i32_17 : i32
      %c0_i32_18 = arith.constant 0 : i32
      %c864_i32_19 = arith.constant 864 : i32
      %45 = arith.maxsi %c0_i32_18, %44 : i32
      %46 = arith.minsi %c864_i32_19, %45 : i32
      %47 = tpu.assume_multiple %46, 16 : i32
      %c0_20 = arith.constant 0 : index
      %48 = arith.index_cast %47 : i32 to index
      %c0_21 = arith.constant 0 : index
      %49 = vector.load %arg2[%c0_20, %48, %c0_21] : memref<1x1024x64xbf16, #tpu.memory_space<vmem>>, vector<1x160x64xbf16>
      %50 = vector.shape_cast %49 : vector<1x160x64xbf16> to vector<160x64xbf16>
      %51 = vector.extract_strided_slice %50 {offsets = [15, 0], sizes = [128, 64], strides = [1, 1]} : vector<160x64xbf16> to vector<128x64xbf16>
      %52 = vector.extract_strided_slice %50 {offsets = [16, 0], sizes = [128, 64], strides = [1, 1]} : vector<160x64xbf16> to vector<128x64xbf16>
      %53 = vector.extract_strided_slice %50 {offsets = [17, 0], sizes = [128, 64], strides = [1, 1]} : vector<160x64xbf16> to vector<128x64xbf16>
      %54 = tpu.concatenate %51, %52, %53 in 1 : vector<128x64xbf16>, vector<128x64xbf16>, vector<128x64xbf16> -> vector<128x192xbf16>
      %c2 = arith.constant 2 : index
      %c0_22 = arith.constant 0 : index
      %c0_23 = arith.constant 0 : index
      %55 = vector.load %arg3[%c2, %c0_22, %c0_23] : memref<3x192x64xbf16, #tpu.memory_space<vmem>>, vector<1x192x64xbf16>
      %56 = vector.shape_cast %55 : vector<1x192x64xbf16> to vector<192x64xbf16>
      %cst_24 = arith.constant dense<0.000000e+00> : vector<128x64xf32>
      %57 = tpu.matmul %54, %56, %cst_24 {dimension_numbers = #tpu.dot_dimension_numbers<[1], [0], [0], [1], [0, 0, 1, 1], [], []>} : vector<128x192xbf16>, vector<192x64xbf16>, vector<128x64xf32> -> vector<128x64xf32>
      %58 = arith.addf %42, %57 : vector<128x64xf32>
      %c0_25 = arith.constant 0 : index
      %c0_26 = arith.constant 0 : index
      %59 = vector.load %arg4[%c0_25, %c0_26] : memref<1x64xf32, #tpu.memory_space<vmem>>, vector<1x64xf32>
      %60 = vector.broadcast %59 : vector<1x64xf32> to vector<128x64xf32>
      %61 = arith.addf %58, %60 : vector<128x64xf32>
      %cst_27 = arith.constant 0.000000e+00 : f32
      %62 = vector.broadcast %cst_27 : f32 to vector<128x64xf32>
      %63 = arith.maximumf %61, %62 : vector<128x64xf32>
      %c0_28 = arith.constant 0 : index
      %c0_29 = arith.constant 0 : index
      %64 = vector.load %arg5[%c0_28, %c0_29] : memref<128x1xf32, #tpu.memory_space<vmem>>, vector<128x1xf32>
      %65 = vector.broadcast %64 : vector<128x1xf32> to vector<128x64xf32>
      %66 = arith.mulf %63, %65 : vector<128x64xf32>
      %67 = arith.truncf %66 : vector<128x64xf32> to vector<128x64xbf16>
      %c0_30 = arith.constant 0 : index
      %c0_31 = arith.constant 0 : index
      %c0_32 = arith.constant 0 : index
      %68 = vector.load %arg6[%c0_30, %c0_31, %c0_32] : memref<1x128x64xbf16, #tpu.memory_space<vmem>>, vector<1x128x64xbf16>
      %69 = vector.shape_cast %68 : vector<1x128x64xbf16> to vector<128x64xbf16>
      %70 = vector.shape_cast %67 : vector<128x64xbf16> to vector<1x128x64xbf16>
      tpu.vector_store %arg6[%c0_30, %c0_31, %c0_32], %70 {strides = array<i32>} : memref<1x128x64xbf16, #tpu.memory_space<vmem>>, vector<1x128x64xbf16>,
    } else {
    }
    return
  }
  func.func @transform_0(%arg0: i32, %arg1: i32) -> (i32, i32, i32) {
    %c0_i32 = arith.constant 0 : i32
    %c0_i32_0 = arith.constant 0 : i32
    %c0_i32_1 = arith.constant 0 : i32
    return %arg0, %c0_i32, %c0_i32_0 : i32, i32, i32
  }
  func.func @transform_1(%arg0: i32, %arg1: i32) -> (i32, i32, i32) {
    %c0_i32 = arith.constant 0 : i32
    %c0_i32_0 = arith.constant 0 : i32
    %c0_i32_1 = arith.constant 0 : i32
    %c0_i32_2 = arith.constant 0 : i32
    return %c0_i32, %c0_i32_0, %c0_i32_1 : i32, i32, i32
  }
  func.func @transform_2(%arg0: i32, %arg1: i32) -> (i32, i32) {
    %c0_i32 = arith.constant 0 : i32
    %c0_i32_0 = arith.constant 0 : i32
    %c0_i32_1 = arith.constant 0 : i32
    return %c0_i32, %c0_i32_0 : i32, i32
  }
  func.func @transform_3(%arg0: i32, %arg1: i32) -> (i32, i32) {
    %c0_i32 = arith.constant 0 : i32
    %c0_i32_0 = arith.constant 0 : i32
    return %arg1, %c0_i32 : i32, i32
  }
  func.func @transform_4(%arg0: i32, %arg1: i32) -> (i32, i32, i32) {
    %c0_i32 = arith.constant 0 : i32
    %c0_i32_0 = arith.constant 0 : i32
    return %arg0, %arg1, %c0_i32 : i32, i32, i32
  }
}

module attributes {stable_mosaic.version = 11 : i64} {
  func.func @_conv16_final_kernel(%arg0: i32, %arg1: i32, %arg2: memref<1x128x3xf32, #tpu.memory_space<vmem>>, %arg3: memref<1x1024x64xbf16, #tpu.memory_space<vmem>>, %arg4: memref<3x192x3xbf16, #tpu.memory_space<vmem>>, %arg5: memref<6x3xf32, #tpu.memory_space<vmem>>, %arg6: memref<1x3xf32, #tpu.memory_space<vmem>>, %arg7: memref<128x1xf32, #tpu.memory_space<vmem>>, %arg8: memref<1x128x3xf32, #tpu.memory_space<vmem>>) attributes {dimension_semantics = [#tpu.dimension_semantics<parallel>, #tpu.dimension_semantics<arbitrary>], iteration_bounds = array<i64: 2, 8>, scalar_prefetch = 0 : i64, scratch_operands = 0 : i64, tpu.core_type = #tpu.core_type<tc>, window_params = [{transform_indices = @transform_0, window_bounds = array<i64: 1, 128, 3>}, {transform_indices = @transform_1, window_bounds = array<i64: 1, 1024, 64>}, {pipeline_mode = #tpu.pipeline_mode<synchronous>, transform_indices = @transform_2, window_bounds = array<i64: 3, 192, 3>}, {pipeline_mode = #tpu.pipeline_mode<synchronous>, transform_indices = @transform_3, window_bounds = array<i64: 6, 3>}, {pipeline_mode = #tpu.pipeline_mode<synchronous>, transform_indices = @transform_4, window_bounds = array<i64: 1, 3>}, {transform_indices = @transform_5, window_bounds = array<i64: 128, 1>}, {transform_indices = @transform_6, window_bounds = array<i64: 1, 128, 3>}]} {
    %c128_i32 = arith.constant 128 : i32
    %0 = arith.muli %arg1, %c128_i32 : i32
    %c706_i32 = arith.constant 706 : i32
    %1 = arith.cmpi slt, %0, %c706_i32 : i32
    %c128_i32_0 = arith.constant 128 : i32
    %2 = arith.addi %0, %c128_i32_0 : i32
    %c210_i32 = arith.constant 210 : i32
    %3 = arith.cmpi sgt, %2, %c210_i32 : i32
    %4 = arith.andi %1, %3 : i1
    %true = arith.constant true
    %5 = arith.xori %4, %true : i1
    %6 = arith.extui %5 : i1 to i32
    %c0_i32 = arith.constant 0 : i32
    %7 = arith.cmpi ne, %6, %c0_i32 : i32
    scf.if %7 {
      %cst = arith.constant 0.000000e+00 : f32
      %10 = vector.broadcast %cst : f32 to vector<128x3xf32>
      %c0 = arith.constant 0 : index
      %c0_2 = arith.constant 0 : index
      %c0_3 = arith.constant 0 : index
      %11 = vector.load %arg8[%c0, %c0_2, %c0_3] : memref<1x128x3xf32, #tpu.memory_space<vmem>>, vector<1x128x3xf32>
      %12 = vector.shape_cast %11 : vector<1x128x3xf32> to vector<128x3xf32>
      %13 = vector.shape_cast %10 : vector<128x3xf32> to vector<1x128x3xf32>
      tpu.vector_store %arg8[%c0, %c0_2, %c0_3], %13 {strides = array<i32>} : memref<1x128x3xf32, #tpu.memory_space<vmem>>, vector<1x128x3xf32>,
    } else {
    }
    %8 = arith.extui %4 : i1 to i32
    %c0_i32_1 = arith.constant 0 : i32
    %9 = arith.cmpi ne, %8, %c0_i32_1 : i32
    scf.if %9 {
      %cst = arith.constant 0.000000e+00 : f32
      %10 = vector.broadcast %cst : f32 to vector<128x3xf32>
      %c-32_i32 = arith.constant -32 : i32
      %11 = arith.addi %0, %c-32_i32 : i32
      %c16_i32 = arith.constant 16 : i32
      %12 = arith.subi %11, %c16_i32 : i32
      %c0_i32_2 = arith.constant 0 : i32
      %c864_i32 = arith.constant 864 : i32
      %13 = arith.maxsi %c0_i32_2, %12 : i32
      %14 = arith.minsi %c864_i32, %13 : i32
      %15 = tpu.assume_multiple %14, 16 : i32
      %c0 = arith.constant 0 : index
      %16 = arith.index_cast %15 : i32 to index
      %c0_3 = arith.constant 0 : index
      %17 = vector.load %arg3[%c0, %16, %c0_3] : memref<1x1024x64xbf16, #tpu.memory_space<vmem>>, vector<1x160x64xbf16>
      %18 = vector.shape_cast %17 : vector<1x160x64xbf16> to vector<160x64xbf16>
      %19 = vector.extract_strided_slice %18 {offsets = [15, 0], sizes = [128, 64], strides = [1, 1]} : vector<160x64xbf16> to vector<128x64xbf16>
      %20 = vector.extract_strided_slice %18 {offsets = [16, 0], sizes = [128, 64], strides = [1, 1]} : vector<160x64xbf16> to vector<128x64xbf16>
      %21 = vector.extract_strided_slice %18 {offsets = [17, 0], sizes = [128, 64], strides = [1, 1]} : vector<160x64xbf16> to vector<128x64xbf16>
      %22 = tpu.concatenate %19, %20, %21 in 1 : vector<128x64xbf16>, vector<128x64xbf16>, vector<128x64xbf16> -> vector<128x192xbf16>
      %c0_4 = arith.constant 0 : index
      %c0_5 = arith.constant 0 : index
      %c0_6 = arith.constant 0 : index
      %23 = vector.load %arg4[%c0_4, %c0_5, %c0_6] : memref<3x192x3xbf16, #tpu.memory_space<vmem>>, vector<1x192x3xbf16>
      %24 = vector.shape_cast %23 : vector<1x192x3xbf16> to vector<192x3xbf16>
      %cst_7 = arith.constant dense<0.000000e+00> : vector<128x3xf32>
      %25 = tpu.matmul %22, %24, %cst_7 {dimension_numbers = #tpu.dot_dimension_numbers<[1], [0], [0], [1], [0, 0, 1, 1], [], []>} : vector<128x192xbf16>, vector<192x3xbf16>, vector<128x3xf32> -> vector<128x3xf32>
      %26 = arith.addf %10, %25 : vector<128x3xf32>
      %c0_i32_8 = arith.constant 0 : i32
      %27 = arith.addi %0, %c0_i32_8 : i32
      %c16_i32_9 = arith.constant 16 : i32
      %28 = arith.subi %27, %c16_i32_9 : i32
      %c0_i32_10 = arith.constant 0 : i32
      %c864_i32_11 = arith.constant 864 : i32
      %29 = arith.maxsi %c0_i32_10, %28 : i32
      %30 = arith.minsi %c864_i32_11, %29 : i32
      %31 = tpu.assume_multiple %30, 16 : i32
      %c0_12 = arith.constant 0 : index
      %32 = arith.index_cast %31 : i32 to index
      %c0_13 = arith.constant 0 : index
      %33 = vector.load %arg3[%c0_12, %32, %c0_13] : memref<1x1024x64xbf16, #tpu.memory_space<vmem>>, vector<1x160x64xbf16>
      %34 = vector.shape_cast %33 : vector<1x160x64xbf16> to vector<160x64xbf16>
      %35 = vector.extract_strided_slice %34 {offsets = [15, 0], sizes = [128, 64], strides = [1, 1]} : vector<160x64xbf16> to vector<128x64xbf16>
      %36 = vector.extract_strided_slice %34 {offsets = [16, 0], sizes = [128, 64], strides = [1, 1]} : vector<160x64xbf16> to vector<128x64xbf16>
      %37 = vector.extract_strided_slice %34 {offsets = [17, 0], sizes = [128, 64], strides = [1, 1]} : vector<160x64xbf16> to vector<128x64xbf16>
      %38 = tpu.concatenate %35, %36, %37 in 1 : vector<128x64xbf16>, vector<128x64xbf16>, vector<128x64xbf16> -> vector<128x192xbf16>
      %c1 = arith.constant 1 : index
      %c0_14 = arith.constant 0 : index
      %c0_15 = arith.constant 0 : index
      %39 = vector.load %arg4[%c1, %c0_14, %c0_15] : memref<3x192x3xbf16, #tpu.memory_space<vmem>>, vector<1x192x3xbf16>
      %40 = vector.shape_cast %39 : vector<1x192x3xbf16> to vector<192x3xbf16>
      %cst_16 = arith.constant dense<0.000000e+00> : vector<128x3xf32>
      %41 = tpu.matmul %38, %40, %cst_16 {dimension_numbers = #tpu.dot_dimension_numbers<[1], [0], [0], [1], [0, 0, 1, 1], [], []>} : vector<128x192xbf16>, vector<192x3xbf16>, vector<128x3xf32> -> vector<128x3xf32>
      %42 = arith.addf %26, %41 : vector<128x3xf32>
      %c32_i32 = arith.constant 32 : i32
      %43 = arith.addi %0, %c32_i32 : i32
      %c16_i32_17 = arith.constant 16 : i32
      %44 = arith.subi %43, %c16_i32_17 : i32
      %c0_i32_18 = arith.constant 0 : i32
      %c864_i32_19 = arith.constant 864 : i32
      %45 = arith.maxsi %c0_i32_18, %44 : i32
      %46 = arith.minsi %c864_i32_19, %45 : i32
      %47 = tpu.assume_multiple %46, 16 : i32
      %c0_20 = arith.constant 0 : index
      %48 = arith.index_cast %47 : i32 to index
      %c0_21 = arith.constant 0 : index
      %49 = vector.load %arg3[%c0_20, %48, %c0_21] : memref<1x1024x64xbf16, #tpu.memory_space<vmem>>, vector<1x160x64xbf16>
      %50 = vector.shape_cast %49 : vector<1x160x64xbf16> to vector<160x64xbf16>
      %51 = vector.extract_strided_slice %50 {offsets = [15, 0], sizes = [128, 64], strides = [1, 1]} : vector<160x64xbf16> to vector<128x64xbf16>
      %52 = vector.extract_strided_slice %50 {offsets = [16, 0], sizes = [128, 64], strides = [1, 1]} : vector<160x64xbf16> to vector<128x64xbf16>
      %53 = vector.extract_strided_slice %50 {offsets = [17, 0], sizes = [128, 64], strides = [1, 1]} : vector<160x64xbf16> to vector<128x64xbf16>
      %54 = tpu.concatenate %51, %52, %53 in 1 : vector<128x64xbf16>, vector<128x64xbf16>, vector<128x64xbf16> -> vector<128x192xbf16>
      %c2 = arith.constant 2 : index
      %c0_22 = arith.constant 0 : index
      %c0_23 = arith.constant 0 : index
      %55 = vector.load %arg4[%c2, %c0_22, %c0_23] : memref<3x192x3xbf16, #tpu.memory_space<vmem>>, vector<1x192x3xbf16>
      %56 = vector.shape_cast %55 : vector<1x192x3xbf16> to vector<192x3xbf16>
      %cst_24 = arith.constant dense<0.000000e+00> : vector<128x3xf32>
      %57 = tpu.matmul %54, %56, %cst_24 {dimension_numbers = #tpu.dot_dimension_numbers<[1], [0], [0], [1], [0, 0, 1, 1], [], []>} : vector<128x192xbf16>, vector<192x3xbf16>, vector<128x3xf32> -> vector<128x3xf32>
      %58 = arith.addf %42, %57 : vector<128x3xf32>
      %c0_25 = arith.constant 0 : index
      %c0_26 = arith.constant 0 : index
      %59 = vector.load %arg7[%c0_25, %c0_26] : memref<128x1xf32, #tpu.memory_space<vmem>>, vector<128x1xf32>
      %60 = vector.broadcast %59 : vector<128x1xf32> to vector<128x3xf32>
      %61 = arith.mulf %58, %60 : vector<128x3xf32>
      %c0_27 = arith.constant 0 : index
      %c0_28 = arith.constant 0 : index
      %c0_29 = arith.constant 0 : index
      %62 = vector.load %arg2[%c0_27, %c0_28, %c0_29] : memref<1x128x3xf32, #tpu.memory_space<vmem>>, vector<1x128x3xf32>
      %63 = vector.shape_cast %62 : vector<1x128x3xf32> to vector<128x3xf32>
      %64 = math.tanh %63 : vector<128x3xf32>
      %65 = math.tanh %61 : vector<128x3xf32>
      %cst_30 = arith.constant 0.000000e+00 : f32
      %66 = vector.broadcast %cst_30 : f32 to vector<128x3xf32>
      %67 = vector.extract_strided_slice %64 {offsets = [0, 0], sizes = [128, 1], strides = [1, 1]} : vector<128x3xf32> to vector<128x1xf32>
      %c0_31 = arith.constant 0 : index
      %c0_32 = arith.constant 0 : index
      %68 = vector.load %arg5[%c0_31, %c0_32] : memref<6x3xf32, #tpu.memory_space<vmem>>, vector<1x3xf32>
      %69 = vector.broadcast %67 : vector<128x1xf32> to vector<128x3xf32>
      %70 = vector.broadcast %68 : vector<1x3xf32> to vector<128x3xf32>
      %71 = arith.mulf %69, %70 : vector<128x3xf32>
      %72 = arith.addf %66, %71 : vector<128x3xf32>
      %73 = vector.extract_strided_slice %65 {offsets = [0, 0], sizes = [128, 1], strides = [1, 1]} : vector<128x3xf32> to vector<128x1xf32>
      %c3 = arith.constant 3 : index
      %c0_33 = arith.constant 0 : index
      %74 = vector.load %arg5[%c3, %c0_33] : memref<6x3xf32, #tpu.memory_space<vmem>>, vector<1x3xf32>
      %75 = vector.broadcast %73 : vector<128x1xf32> to vector<128x3xf32>
      %76 = vector.broadcast %74 : vector<1x3xf32> to vector<128x3xf32>
      %77 = arith.mulf %75, %76 : vector<128x3xf32>
      %78 = arith.addf %72, %77 : vector<128x3xf32>
      %79 = vector.extract_strided_slice %64 {offsets = [0, 1], sizes = [128, 1], strides = [1, 1]} : vector<128x3xf32> to vector<128x1xf32>
      %c1_34 = arith.constant 1 : index
      %c0_35 = arith.constant 0 : index
      %80 = vector.load %arg5[%c1_34, %c0_35] : memref<6x3xf32, #tpu.memory_space<vmem>>, vector<1x3xf32>
      %81 = vector.broadcast %79 : vector<128x1xf32> to vector<128x3xf32>
      %82 = vector.broadcast %80 : vector<1x3xf32> to vector<128x3xf32>
      %83 = arith.mulf %81, %82 : vector<128x3xf32>
      %84 = arith.addf %78, %83 : vector<128x3xf32>
      %85 = vector.extract_strided_slice %65 {offsets = [0, 1], sizes = [128, 1], strides = [1, 1]} : vector<128x3xf32> to vector<128x1xf32>
      %c4 = arith.constant 4 : index
      %c0_36 = arith.constant 0 : index
      %86 = vector.load %arg5[%c4, %c0_36] : memref<6x3xf32, #tpu.memory_space<vmem>>, vector<1x3xf32>
      %87 = vector.broadcast %85 : vector<128x1xf32> to vector<128x3xf32>
      %88 = vector.broadcast %86 : vector<1x3xf32> to vector<128x3xf32>
      %89 = arith.mulf %87, %88 : vector<128x3xf32>
      %90 = arith.addf %84, %89 : vector<128x3xf32>
      %91 = vector.extract_strided_slice %64 {offsets = [0, 2], sizes = [128, 1], strides = [1, 1]} : vector<128x3xf32> to vector<128x1xf32>
      %c2_37 = arith.constant 2 : index
      %c0_38 = arith.constant 0 : index
      %92 = vector.load %arg5[%c2_37, %c0_38] : memref<6x3xf32, #tpu.memory_space<vmem>>, vector<1x3xf32>
      %93 = vector.broadcast %91 : vector<128x1xf32> to vector<128x3xf32>
      %94 = vector.broadcast %92 : vector<1x3xf32> to vector<128x3xf32>
      %95 = arith.mulf %93, %94 : vector<128x3xf32>
      %96 = arith.addf %90, %95 : vector<128x3xf32>
      %97 = vector.extract_strided_slice %65 {offsets = [0, 2], sizes = [128, 1], strides = [1, 1]} : vector<128x3xf32> to vector<128x1xf32>
      %c5 = arith.constant 5 : index
      %c0_39 = arith.constant 0 : index
      %98 = vector.load %arg5[%c5, %c0_39] : memref<6x3xf32, #tpu.memory_space<vmem>>, vector<1x3xf32>
      %99 = vector.broadcast %97 : vector<128x1xf32> to vector<128x3xf32>
      %100 = vector.broadcast %98 : vector<1x3xf32> to vector<128x3xf32>
      %101 = arith.mulf %99, %100 : vector<128x3xf32>
      %102 = arith.addf %96, %101 : vector<128x3xf32>
      %c0_40 = arith.constant 0 : index
      %c0_41 = arith.constant 0 : index
      %103 = vector.load %arg6[%c0_40, %c0_41] : memref<1x3xf32, #tpu.memory_space<vmem>>, vector<1x3xf32>
      %104 = vector.broadcast %103 : vector<1x3xf32> to vector<128x3xf32>
      %105 = arith.addf %102, %104 : vector<128x3xf32>
      %106 = arith.mulf %105, %61 : vector<128x3xf32>
      %107 = arith.subf %63, %106 : vector<128x3xf32>
      %c0_42 = arith.constant 0 : index
      %c0_43 = arith.constant 0 : index
      %c0_44 = arith.constant 0 : index
      %108 = vector.load %arg8[%c0_42, %c0_43, %c0_44] : memref<1x128x3xf32, #tpu.memory_space<vmem>>, vector<1x128x3xf32>
      %109 = vector.shape_cast %108 : vector<1x128x3xf32> to vector<128x3xf32>
      %110 = vector.shape_cast %107 : vector<128x3xf32> to vector<1x128x3xf32>
      tpu.vector_store %arg8[%c0_42, %c0_43, %c0_44], %110 {strides = array<i32>} : memref<1x128x3xf32, #tpu.memory_space<vmem>>, vector<1x128x3xf32>,
    } else {
    }
    return
  }
  func.func @transform_0(%arg0: i32, %arg1: i32) -> (i32, i32, i32) {
    %c0_i32 = arith.constant 0 : i32
    %c0_i32_0 = arith.constant 0 : i32
    return %arg0, %arg1, %c0_i32 : i32, i32, i32
  }
  func.func @transform_1(%arg0: i32, %arg1: i32) -> (i32, i32, i32) {
    %c0_i32 = arith.constant 0 : i32
    %c0_i32_0 = arith.constant 0 : i32
    %c0_i32_1 = arith.constant 0 : i32
    return %arg0, %c0_i32, %c0_i32_0 : i32, i32, i32
  }
  func.func @transform_2(%arg0: i32, %arg1: i32) -> (i32, i32, i32) {
    %c0_i32 = arith.constant 0 : i32
    %c0_i32_0 = arith.constant 0 : i32
    %c0_i32_1 = arith.constant 0 : i32
    %c0_i32_2 = arith.constant 0 : i32
    return %c0_i32, %c0_i32_0, %c0_i32_1 : i32, i32, i32
  }
  func.func @transform_3(%arg0: i32, %arg1: i32) -> (i32, i32) {
    %c0_i32 = arith.constant 0 : i32
    %c0_i32_0 = arith.constant 0 : i32
    %c0_i32_1 = arith.constant 0 : i32
    return %c0_i32, %c0_i32_0 : i32, i32
  }
  func.func @transform_4(%arg0: i32, %arg1: i32) -> (i32, i32) {
    %c0_i32 = arith.constant 0 : i32
    %c0_i32_0 = arith.constant 0 : i32
    %c0_i32_1 = arith.constant 0 : i32
    return %c0_i32, %c0_i32_0 : i32, i32
  }
  func.func @transform_5(%arg0: i32, %arg1: i32) -> (i32, i32) {
    %c0_i32 = arith.constant 0 : i32
    %c0_i32_0 = arith.constant 0 : i32
    return %arg1, %c0_i32 : i32, i32
  }
  func.func @transform_6(%arg0: i32, %arg1: i32) -> (i32, i32, i32) {
    %c0_i32 = arith.constant 0 : i32
    %c0_i32_0 = arith.constant 0 : i32
    return %arg0, %arg1, %c0_i32 : i32, i32, i32
  }
}

</mosaic_0001>

<bundles_post_ra>
// kernel: adnet_forward.16
= control target key start
LH: loop header
LB: loop body
LE: loop exit
PB: predicated region body
PF: predicated region fallthrough
CT: control target
= control target key end

     0   :  { %s2437_s15 = smov 0   ;;  %s2439_s16 = smov 0   ;;  %s3340_s0 = inlined_call_operand.vmem [shape: bf16[2,1024,3], index: 0, kind: input, shape index: {}]   ;;  %s3341_s1 = inlined_call_operand.vmem [shape: bf16[3,9,64], index: 1, kind: input, shape index: {}]   ;;  %s3342_s2 = inlined_call_operand.vmem [shape: f32[1,64], index: 2, kind: input, shape index: {}]   ;;  %s3343_s3 = inlined_call_operand.vmem [shape: f32[1024,1], index: 3, kind: input, shape index: {}]   ;;  %s3344_s4 = inlined_call_operand.vmem [shape: bf16[2,1024,64], index: 4, kind: output, shape index: {}]  }
   0x1   :  { %s2441_s17 = smov 0   ;;  %s2443_s18 = smov 0  }
   0x2   :  { %s2445_s19 = smov 0  }
   0x3 LB: > { %s23_s20 = sadd.s32 1, %s2397_s17  ;;  %s26_s21 = sadd.s32 1, %s2401_s18  ;;  %s2405_s19 = sphi %s2445_s19, %s14_s19   ;;  %s2401_s18 = sphi %s2443_s18, %s3480_s18   ;;  %s2397_s17 = sphi %s2441_s17, %s3479_s17   ;;  %s2393_s16 = sphi %s2439_s16, %s3478_s16   ;;  %s2389_s15 = sphi %s2437_s15, %s3477_s15  }
   0x4   : > { %p24_p0 = scmp.ge.s32.totalorder %s23_s20, 8  ;;  %p1994_p1 = scmp.ge.s32.totalorder %s2405_s19, 1 }
   0x5   : > { %p187_p2 = scmp.lt.s32.totalorder %s2405_s19, 17 }
   0x6   : > { %s3482_s20 = smov (%p24_p0, %s23_s20), 0  ;;  %s3484_s21 = smov (!%p24_p0, %s26_s21), %s2401_s18 }
   0x7   : > { %p188_p3 = pnand %p1994_p1, %p187_p2  ;;  %p28_p4 = scmp.ge.s32.totalorder %s3484_s21, 2 }
   0x8   : > { %p222_p5 = scmp.lt.s32.totalorder (!%p188_p3), %s2393_s16, 1  ;;  %s1997_s22 = sshll.u32 (!%p188_p3), %s2389_s15, 4 }
   0x9   : > { %s3486_s21 = smov (%p28_p4, %s3484_s21), 0  ;;  %191 = sbr.rel (%p188_p3) target bundleno = 505 (0x1f9), region = 36 }
   0xa   : > { %p228_p6 = scmp.lt.s32.totalorder (!%p188_p3), %s1997_s22, 127  ;;  %s2002_s23 = sshll.u32 (!%p188_p3), %s2389_s15, 7 }
   0xb   : > { %p245_p7 = scmp.lt.s32.totalorder (!%p188_p3), %s2002_s23, 706  ;;  %s246_s12 = sadd.s32 (!%p188_p3), 128, %s2002_s23 }
   0xc   : > { %p247_p8 = scmp.gt.s32.totalorder (!%p188_p3), %s246_s12, 210 }
   0xe   : > { %p2482_p9 = pnand (!%p188_p3), %p247_p8, %p245_p7 }
  0x10   : > { %s3488_s16 = smov (!%p222_p5, %s2393_s16), 1  ;;  %s3490_s22 = smov (!%p228_p6, %s1997_s22), 127 }
  0x11   : > { %s2125_s24 = sshll.u32 %s3488_s16, 9  ;;  %s2000_s25 = sshll.u32 %s3488_s16, 7 }
  0x12   : > { %s2470_s28 = scalar_lea.vmem %s3340_s0, %s2125_s24  ;;  %s1998_s29 = sshll.u32 %s3490_s22, 3 }
  0x13   : > { %s2475_s6 = scalar_lea.vmem %s3343_s3, %s1998_s29  ;;  %s239_s7 = sadd.s32 %s2000_s25, %s3490_s22 }
  0x14   : > { %s2001_s8 = sshll.u32 %s239_s7, 2  ;;  %251 = sbr.rel (%p2482_p9) target bundleno = 496 (0x1f0), region = 40 }
  0x15   : > { %s2480_s11 = scalar_lea.vmem %s3344_s4, %s2001_s8 }
  0x1b   : > { %s508_s14 = sadd.s32 4294967280, %s2002_s23  ;;  %s252_s15 = sadd.s32 4294967248, %s2002_s23  ;;  %vm423_vm0 = vcmask 1042432   ;;  %vm330_vm1 = vsmask.f32 3328  ;;  %vm863_vm2 = vcmask 1043456  }
  0x1c   : > { %p509_p10 = scmp.gt.s32.totalorder %s508_s14, 0  ;;  %p2027_p11 = scmp.lt.s32.totalorder %s508_s14, 864  ;;  %vm864_vm3 = vcmask 1044480   ;;  %vm459_vm4 = vcmask 23552   ;;  %vm487_vm5 = vcmask 48128   ;;  %vm838_vm7 = vcmask 72704  }
  0x1d   : > { %p253_p12 = scmp.gt.s32.totalorder %s252_s15, 0  ;;  %p2003_p13 = scmp.lt.s32.totalorder %s252_s15, 864  ;;  %vm761_vm6 = vsmask.f32 4352  ;;  %vm1851_vm8 = vcmask 519168  }
  0x1e   : > { %s3492_s14 = smov (!%p509_p10, %s508_s14), 0  ;;  %s2491_s25 = sadd.s32 16, %s2002_s23 }
  0x1f   : > { %s3494_s14 = smov (!%p2027_p11, %s3492_s14), 864  ;;  %s3496_s15 = smov (!%p253_p12, %s252_s15), 0 }
  0x20   : > { %s513_s16 = sshra.s32 %s3494_s14, 3  ;;  %s3498_s15 = smov (!%p2003_p13, %s3496_s15), 864 }
  0x21   : > { %s2032_s22 = sshll.u32 %s513_s16, 2  ;;  %s257_s26 = sshra.s32 %s3498_s15, 3 }
  0x22   : > { %s2489_s24 = scalar_lea.vmem %s2470_s28, %s2032_s22  ;;  %p1168_p0 = scmp.gt.s32.totalorder %s2491_s25, 0 }
  0x23   : > { %v2494_v0 = vld [vmem:[%s2489_s24 + $0x8] sm:$0xf]  ;;  %v2497_v1 = vld [vmem:[%s2489_s24 + $0xc] sm:$0xf]  ;;  %v2502_v3 = vld [vmem:[%s2489_s24 + $0x10] sm:$0xf] }
  0x24   : > { %v2042_v2 = vcombine.low %v2494_v0, %v2497_v1  ;;  %v2505_v4 = vld [vmem:[%s2489_s24 + $0x14] sm:$0xf]  ;;  %s2008_s23 = sshll.u32 %s257_s26, 2  ;;  %v2511_v7 = vld [vmem:[%s2489_s24 + $0x18] sm:$0xf]  ;;  %s2407_s29 = smov 6  }
  0x25   : > { %v2043_v5 = vcombine.low %v2502_v3, %v2505_v4  ;;  %v2514_v8 = vld [vmem:[%s2489_s24 + $0x1c] sm:$0xf]  ;;  %s2517_s27 = scalar_lea.vmem %s2470_s28, %s2008_s23  ;;  %p2071_p1 = scmp.lt.s32.totalorder %s2491_s25, 864  ;;  %v2556_v29 = vld [vmem:[%s2489_s24 + $0x20] sm:$0xf] }
  0x26   : > { %v678_v6 = vrot.slane %v2042_v2, 5  ;;  %v2521_v10 = vld [vmem:[%s2517_s27 + $0x8] sm:$0xf]  ;;  %v2524_v11 = vld [vmem:[%s2517_s27 + $0xc] sm:$0xf]  ;;  %v2536_v15 = vcombine.low %v2511_v7, %v2514_v8  ;;  %v587_v19 = vshrl.u32 %v2042_v2, 16 }
  0x27   : > { %v679_v9 = vrot.slane %v2043_v5, 5  ;;  %v2527_v12 = vld [vmem:[%s2517_s27 + $0x10] sm:$0xf]  ;;  %v2018_v13 = vcombine.low %v2521_v10, %v2524_v11  ;;  %v2532_v14 = vld [vmem:[%s2517_s27 + $0x14] sm:$0xf]  ;;  %v590_v20 = vshll.u32 %v2042_v2, 16 }
  0x28   : > { %695 = vrot.lane.b32.xlu0 %v678_v6, %s2407_s29  ;;  %v2539_v16 = vld [vmem:[%s2517_s27 + $0x18] sm:$0xf]  ;;  %v2019_v17 = vcombine.low %v2527_v12, %v2532_v14  ;;  %v2545_v18 = vld [vmem:[%s2517_s27 + $0x1c] sm:$0xf]  ;;  %s1169_s30 = scalar_select %p1168_p0, %s2491_s25, 0  ;;  %v595_v24 = vshrl.u32 %v2043_v5, 16 }
  0x29   : > { %v424_v21 = vrot.slane %v2018_v13, 5  ;;  %v2552_v22 = vcombine.low %v2539_v16, %v2545_v18  ;;  %v332_v23 = vshrl.u32 %v2018_v13, 16  ;;  %v680_v25 = vsel %vm423_vm0, %v678_v6, %v679_v9  ;;  %v2562_v34 = vld [vmem:[%s2489_s24 + $0x24] sm:$0xf]  ;;  %v2571_v41 = vld [vmem:[%s2517_s27 + $0x20] sm:$0xf] }
  0x2a   : > { %v425_v26 = vrot.slane %v2019_v17, 5  ;;  %v335_v27 = vshll.u32 %v2018_v13, 16  ;;  %v598_v28 = vshll.u32 %v2043_v5, 16  ;;  %v681_v30 = vrot.slane %v2536_v15, 5  ;;  %s3500_s30 = smov (!%p2071_p1, %s1169_s30), 864  ;;  %s2408_s8 = smov 3  }
  0x2b   : > { %441 = vrot.lane.b32.xlu1 %v424_v21, %s2407_s29  ;;  %v427_v31 = vrot.slane %v2552_v22, 5  ;;  %v340_v32 = vshrl.u32 %v2019_v17, 16  ;;  %v343_v33 = vshll.u32 %v2019_v17, 16  ;;  %v589_v36 = vrot.slane %v587_v19, 4  ;;  %v2574_v42 = vld [vmem:[%s2517_s27 + $0x24] sm:$0xf] }
  0x2c   : > { %v426_v35 = vsel %vm423_vm0, %v424_v21, %v425_v26  ;;  %v334_v37 = vrot.slane %v332_v23, 4  ;;  %v337_v38 = vrot.slane %v335_v27, 5  ;;  %v349_v44 = vshrl.u32 %v2552_v22, 16  ;;  %v2586_v47 = vld [vmem:[%s2517_s27 + $0x28] sm:$0xf]  ;;  %s1172_s5 = sshra.s32 %s3500_s30, 3 }
  0x2d   : > { %443 = vrot.lane.b32.xlu0 %v426_v35, %s2407_s29  ;;  %v342_v39 = vrot.slane %v340_v32, 4  ;;  %v345_v40 = vrot.slane %v343_v33, 5  ;;  %v428_v43 = vsel %vm423_vm0, %v425_v26, %v427_v31  ;;  %v352_v45 = vshll.u32 %v2552_v22, 16  ;;  %v2589_v48 = vld [vmem:[%s2517_s27 + $0x2c] sm:$0xf]  ;;  %s2076_s7 = sshll.u32 %s1172_s5, 2 }
  0x2e   : > { %v2583_v46 = vcombine.low %v2556_v29, %v2562_v34  ;;  %3383 = vst [vmem:[#allocation2_spill] sm:$0xff] %v2589_v48  ;;  %v682_v49 = vsel %vm423_vm0, %v679_v9, %v681_v30  ;;  %v592_v50 = vrot.slane %v590_v20, 5  ;;  %v597_v51 = vrot.slane %v595_v24, 4  ;;  %v2611_v5 = vld [vmem:[%s2489_s24 + $0x28] sm:$0xf]  ;;  %s2627_s9 = scalar_lea.vmem %s2470_s28, %s2076_s7 }
  0x2f   : > { %697 = vrot.lane.b32.xlu1 %v680_v25, %s2407_s29  ;;  %v600_v52 = vrot.slane %v598_v28, 5  ;;  %v338_v53 = vor.u32 %v337_v38, %v334_v37  ;;  %v604_v54 = vshrl.u32 %v2536_v15, 16  ;;  %v607_v55 = vshll.u32 %v2536_v15, 16  ;;  %v2614_v6 = vld [vmem:[%s2489_s24 + $0x2c] sm:$0xf] }
  0x30   : > { %v2599_v56 = vcombine.low %v2571_v41, %v2574_v42  ;;  %v346_v57 = vor.u32 %v345_v40, %v342_v39  ;;  %v351_v58 = vrot.slane %v349_v44, 4  ;;  %v354_v59 = vrot.slane %v352_v45, 5  ;;  %v2637_v39 = vld [vmem:[%s2627_s9 + $0x8] sm:$0xf]  ;;  %v2640_v40 = vld [vmem:[%s2489_s24 + $0x34] sm:$0xf] }
  0x31   : > { %445 = vrot.lane.b32.xlu0 %v428_v43, %s2407_s29  ;;  %v2605_v60 = vcombine.low %v2586_v47, %v2589_v48  ;;  %v593_v63 = vor.u32 %v592_v50, %v589_v36  ;;  %v601_v2 = vor.u32 %v600_v52, %v597_v51  ;;  %v606_v9 = vrot.slane %v604_v54, 4  ;;  %v2632_v36 = vld [vmem:[%s2489_s24 + $0x30] sm:$0xf]  ;;  %v2645_v50 = vld [vmem:[%s2627_s9 + $0xc] sm:$0xf] }
  0x32   : > { %v358_v61 = vshrl.u32 %v2599_v56, 16  ;;  %v361_v62 = vshll.u32 %v2599_v56, 16  ;;  %v609_v13 = vrot.slane %v607_v55, 5  ;;  %v613_v17 = vshrl.u32 %v2583_v46, 16  ;;  %v2654_v54 = vld [vmem:[%s2489_s24 + $0x38] sm:$0xf] }
  0x33   : > { %699 = vrot.lane.b32.xlu1 %v682_v49, %s2407_s29  ;;  %v616_v19 = vshll.u32 %v2583_v46, 16  ;;  %v347_v20 = vsel %vm330_vm1, %v338_v53, %v346_v57  ;;  %v355_v21 = vor.u32 %v354_v59, %v351_v58  ;;  %v367_v23 = vshrl.u32 %v2605_v60, 16  ;;  %v2657_v55 = vld [vmem:[%s2489_s24 + $0x3c] sm:$0xf] }
  0x34   : > { %v360_v24 = vrot.slane %v358_v61, 4  ;;  %v363_v25 = vrot.slane %v361_v62, 5  ;;  %v370_v26 = vshll.u32 %v2605_v60, 16  ;;  %v2624_v27 = vcombine.low %v2611_v5, %v2614_v6  ;;  %3384 = vst [vmem:[#allocation3_spill] sm:$0xff] %v2657_v55  ;;  %v2741_v15 = vld [vmem:[%s2517_s27 + $0x3c] sm:$0xf] }
  0x35   : > { %402 = vrot.lane.b32.xlu0 %v338_v53, %s2408_s8  ;;  %v602_v28 = vsel %vm330_vm1, %v593_v63, %v601_v2  ;;  %v610_v32 = vor.u32 %v609_v13, %v606_v9  ;;  %v615_v33 = vrot.slane %v613_v17, 4  ;;  %v618_v35 = vrot.slane %v616_v19, 5  ;;  %3394 = vst [vmem:[#allocation13_spill] sm:$0xff] %v2741_v15 }
  0x36   : > { %v356_v37 = vsel %vm330_vm1, %v346_v57, %v355_v21  ;;  %v369_v38 = vrot.slane %v367_v23, 4  ;;  %v364_v43 = vor.u32 %v363_v25, %v360_v24  ;;  %v372_v44 = vrot.slane %v370_v26, 5  ;;  %v2688_v23 = vld [vmem:[%s2627_s9 + $0x18] sm:$0xf]  ;;  %v2691_v24 = vld [vmem:[%s2627_s9 + $0x1c] sm:$0xf] }
  0x37   : > { %657 = vrot.lane.b32.xlu1 %v593_v63, %s2408_s8  ;;  %v622_v45 = vshrl.u32 %v2624_v27, 16  ;;  %v625_v49 = vshll.u32 %v2624_v27, 16  ;;  %v611_v51 = vsel %vm330_vm1, %v601_v2, %v610_v32  ;;  %v619_v52 = vor.u32 %v618_v35, %v615_v33  ;;  %v2668_v63 = vld [vmem:[%s2627_s9 + $0x10] sm:$0xf]  ;;  %v2671_v2 = vld [vmem:[%s2627_s9 + $0x14] sm:$0xf] }
  0x38   : > { %v2651_v53 = vcombine.low %v2632_v36, %v2640_v40  ;;  %v2662_v57 = vcombine.low %v2637_v39, %v2645_v50  ;;  %v365_v58 = vsel %vm330_vm1, %v355_v21, %v364_v43  ;;  %v2665_v59 = vor.u32 %v372_v44, %v369_v38  ;;  %3387 = vst [vmem:[#allocation6_spill] sm:$0xff] %v2691_v24 }
  0x39   : > { %404 = vrot.lane.b32.xlu0 %v347_v20, %s2408_s8  ;;  %v624_v61 = vrot.slane %v622_v45, 4  ;;  %v627_v62 = vrot.slane %v625_v49, 5  ;;  %v2676_v9 = vcombine.low %v2654_v54, %v2657_v55  ;;  %v620_v13 = vsel %vm330_vm1, %v610_v32, %v619_v52  ;;  %v2709_v45 = vld [vmem:[%s2489_s24 + $0x40] sm:$0xf] }
  0x3a   : > { %3385 = vst [vmem:[#allocation4_spill] sm:$0xff] %v2665_v59  ;;  %v429_v17 = vrot.slane %v2599_v56, 5  ;;  %v631_v19 = vshrl.u32 %v2651_v53, 16  ;;  %v634_v20 = vshll.u32 %v2651_v53, 16  ;;  %v2685_v21 = vcombine.low %v2668_v63, %v2671_v2  ;;  %3389 = vst [vmem:[#allocation8_spill] sm:$0xff] %v2709_v45 }
  0x3b   : > { %659 = vrot.lane.b32.xlu1 %v602_v28, %s2408_s8  ;;  %3386 = vst [vmem:[#allocation5_spill] sm:$0xff] %v2676_v9  ;;  %v374_v25 = vsel %vm330_vm1, %v364_v43, %v2665_v59  ;;  %v628_v26 = vor.u32 %v627_v62, %v624_v61  ;;  %v1246_v56 = vshrl.u32 %v2662_v57, 16  ;;  %v1249_v28 = vshll.u32 %v2662_v57, 16 }
  0x3c   : > { %v683_v32 = vrot.slane %v2583_v46, 5  ;;  %v640_v33 = vshrl.u32 %v2676_v9, 16  ;;  %v643_v35 = vshll.u32 %v2676_v9, 16  ;;  %v633_v38 = vrot.slane %v631_v19, 4  ;;  %v2729_v46 = vld [vmem:[%s2517_s27 + $0x34] sm:$0xf] }
  0x3d   : > { %406 = vrot.lane.b32.xlu0 %v356_v37, %s2408_s8  ;;  %v430_v37 = vsel %vm423_vm0, %v427_v31, %v429_v17  ;;  %v636_v43 = vrot.slane %v634_v20, 5  ;;  %v2706_v44 = vcombine.low %v2688_v23, %v2691_v24  ;;  %v431_v49 = vrot.slane %v2605_v60, 5  ;;  %3392 = vst [vmem:[#allocation11_spill] sm:$0xff] %v2729_v46 }
  0x3e   : > { %v1254_v22 = vshrl.u32 %v2685_v21, 16  ;;  %v1257_v31 = vshll.u32 %v2685_v21, 16  ;;  %v1248_v61 = vrot.slane %v1246_v56, 4  ;;  %v1251_v62 = vrot.slane %v1249_v28, 5  ;;  %v2738_v28 = vld [vmem:[%s2517_s27 + $0x38] sm:$0xf] }
  0x3f   : > { %661 = vrot.lane.b32.xlu1 %v611_v51, %s2408_s8  ;;  %3388 = vst [vmem:[#allocation7_spill] sm:$0xff] %v2706_v44  ;;  %v2717_v51 = vld [vmem:[%s2489_s24 + $0x44] sm:$0xf]  ;;  %v684_v19 = vsel %vm423_vm0, %v681_v30, %v683_v32  ;;  %v642_v60 = vrot.slane %v640_v33, 4  ;;  %v645_v20 = vrot.slane %v643_v35, 5  ;;  %v637_v59 = vor.u32 %v636_v43, %v633_v38  ;;  %3393 = vst [vmem:[#allocation12_spill] sm:$0xff] %v2738_v28 }
  0x40   : > { %3390 = vst [vmem:[#allocation9_spill] sm:$0xff] %v2717_v51  ;;  %v1263_v48 = vshrl.u32 %v2706_v44, 16  ;;  %v2735_v56 = vcombine.low %v2709_v45, %v2717_v51  ;;  %v3395_v30 = vrot.slane %v2624_v27, 5  ;;  %v432_v35 = vsel %vm423_vm0, %v429_v17, %v431_v49 }
  0x41   : > { %408 = vrot.lane.b32.xlu0 %v365_v58, %s2408_s8  ;;  %v629_v58 = vsel %vm330_vm1, %v619_v52, %v628_v26  ;;  %v1266_v52 = vshll.u32 %v2706_v44, 16  ;;  %v1259_v38 = vrot.slane %v1257_v31, 5  ;;  %v1252_v43 = vor.u32 %v1251_v62, %v1248_v61  ;;  %v2762_v62 = vld [vmem:[%s2627_s9 + $0x20] sm:$0xf] }
  0x42   : > { %v686_v33 = vsel %vm423_vm0, %v683_v32, %v3395_v30  ;;  %v3355_v51 = vrot.slane %v2735_v56, 5  ;;  %v687_v24 = vrot.slane %v2651_v53, 5  ;;  %v2758_v17 = vcombine.low %v2738_v28, %v2741_v15  ;;  %3396 = vst [vmem:[#allocation14_spill] sm:$0xff] %v2762_v62 }
  0x43   : > { %663 = vrot.lane.b32.xlu1 %v620_v13, %s2408_s8  ;;  %v2328_v13 = vld [vmem:[%s2489_s24 + $0x48] ss:$0 sps:$4 sm:$0xff]   ;;  %v1265_v31 = vrot.slane %v1263_v48, 4  ;;  %v1268_v61 = vrot.slane %v1266_v52, 5  ;;  %v1338_v48 = vrot.slane %v2685_v21, 5  ;;  %v3410_v28 = vrot.slane %v2706_v44, 5 }
  0x44   : > { %v693_v55 = vrot.slane %v2328_v13, 5  ;;  %v2765_v13 = vld [vmem:[%s2627_s9 + $0x24] sm:$0xf]  ;;  %v385_v30 = vshrl.u32 %v2758_v17, 16  ;;  %v388_v32 = vshll.u32 %v2758_v17, 16 }
  0x45   : > { %410 = vrot.lane.b32.xlu0 %v374_v25, %s2408_s8  ;;  %v2726_v25 = vld [vmem:[%s2517_s27 + $0x30] sm:$0xf]  ;;  %3397 = vst [vmem:[#allocation15_spill] sm:$0xff] %v2765_v13  ;;  %v2795_v15 = vor.u32 %v1268_v61, %v1265_v31  ;;  %v2814_v61 = vld [vmem:[%s2517_s27 + $0x44] sm:$0xf] }
  0x46   : > { %3391 = vst [vmem:[#allocation10_spill] sm:$0xff] %v2726_v25  ;;  %v2023_v45 = vcombine.low %v2726_v25, %v2729_v46  ;;  %v390_v52 = vrot.slane %v388_v32, 5  ;;  %v2806_v46 = vld [vmem:[%s2517_s27 + $0x40] sm:$0xf]  ;;  %3408 = vst [vmem:[#allocation25_spill] sm:$0xff] %v2814_v61  ;;  %v2825_v25 = vsel %vm423_vm0, %v1338_v48, %v3410_v28 }
  0x47   : > { %447 = vrot.lane.b32.xlu1 %v430_v37, %s2407_s29  ;;  %v1256_v37 = vrot.slane %v1254_v22, 4  ;;  %v638_v22 = vsel %vm330_vm1, %v628_v26, %v637_v59  ;;  %3406 = vst [vmem:[#allocation23_spill] sm:$0xff] %v2806_v46  ;;  %v2856_v44 = vld [vmem:[%s2489_s24 + $0x4] sm:$0xf] }
  0x48   : > { %v433_v26 = vrot.slane %v2023_v45, 5 }
  0x49   : > { %665 = vrot.lane.b32.xlu0 %v629_v58, %s2408_s8  ;;  %v2752_v58 = vor.u32 %v645_v20, %v642_v60  ;;  %v1260_v53 = vor.u32 %v1259_v38, %v1256_v37  ;;  %v376_v60 = vshrl.u32 %v2023_v45, 16  ;;  %v379_v20 = vshll.u32 %v2023_v45, 16  ;;  %v2789_v38 = vld [vmem:[%s2627_s9 + $0x2c] sm:$0xf] }
  0x4a   : > { %v2786_v21 = vsel %vm423_vm0, %v431_v49, %v433_v26  ;;  %3402 = vst [vmem:[#allocation20_spill] sm:$0xff] %v2789_v38 }
  0x4b   : > { %701 = vrot.lane.b32.xlu1 %v684_v19, %s2407_s29  ;;  %v2770_v19 = vsel %vm423_vm0, %v3355_v51, %v693_v55  ;;  %v2780_v55 = vcombine.low %v2762_v62, %v2765_v13  ;;  %v378_v37 = vrot.slane %v376_v60, 4  ;;  %v381_v45 = vrot.slane %v379_v20, 5  ;;  %3401 = vst [vmem:[#allocation19_spill] sm:$0xff] %v2786_v21  ;;  %v2803_v21 = vld [vmem:[%s2627_s9 + $0x44] sm:$0xf] }
  0x4c   : > { %3398 = vst [vmem:[#allocation16_spill] sm:$0xff] %v2770_v19  ;;  %v387_v51 = vrot.slane %v385_v30, 4  ;;  %v3404_v19 = vrot.slane %v2624_v27, 5  ;;  %v435_v20 = vrot.slane %v2758_v17, 5  ;;  %3405 = vst [vmem:[#allocation22_spill] sm:$0xff] %v2803_v21  ;;  %v647_v32 = vsel %vm330_vm1, %v637_v59, %v2752_v58 }
  0x4d   : > { %449 = vrot.lane.b32.xlu0 %v432_v35, %s2407_s29  ;;  %3399 = vst [vmem:[#allocation17_spill] sm:$0xff] %v2780_v55  ;;  %v2783_v35 = vld [vmem:[%s2627_s9 + $0x28] sm:$0xf]  ;;  %v1261_v30 = vsel %vm330_vm1, %v1252_v43, %v1260_v53  ;;  %v3409_v17 = vrot.slane %v2662_v57, 5  ;;  %v1272_v59 = vshrl.u32 %v2780_v55, 16 }
  0x4e   : > { %3400 = vst [vmem:[#allocation18_spill] sm:$0xff] %v2783_v35  ;;  %v688_v60 = vsel %vm423_vm0, %v3404_v19, %v687_v24  ;;  %v391_v31 = vor.u32 %v390_v52, %v387_v51  ;;  %v2335_v27 = vld [vmem:[%s2627_s9 + $0x48] ss:$0 sps:$4 sm:$0xff]   ;;  %v2829_v51 = vsel %vm423_vm0, %v433_v26, %v435_v20  ;;  %v1275_v52 = vshll.u32 %v2780_v55, 16 }
  0x4f   : > { %703 = vrot.lane.b32.xlu1 %v686_v33, %s2407_s29  ;;  %v2792_v33 = vld [vmem:[%s2627_s9 + $0x40] sm:$0xf]  ;;  %v2336_v19 = vld [vmem:[%s2517_s27 + $0x48] ss:$0 sps:$4 sm:$0xff]   ;;  %v1339_v49 = vsel %vm423_vm0, %v3409_v17, %v1338_v48  ;;  %3411 = vst [vmem:[#allocation26_spill] sm:$0xff] %v2829_v51  ;;  %v1270_v26 = vsel %vm330_vm1, %v1260_v53, %v2795_v15  ;;  %v3414_v48 = vrot.slane %v2676_v9, 5  ;;  %v2025_v51 = vcombine.low %v2806_v46, %v2814_v61 }
  0x50   : > { %3403 = vst [vmem:[#allocation21_spill] sm:$0xff] %v2792_v33  ;;  %v2842_v28 = vcombine.low %v2792_v33, %v2803_v21  ;;  %v649_v17 = vshrl.u32 %v2735_v56, 16  ;;  %v1352_v33 = vrot.slane %v2335_v27, 5  ;;  %v1274_v53 = vrot.slane %v1272_v59, 4 }
  0x51   : > { %667 = vrot.lane.b32.xlu0 %v638_v22, %s2408_s8  ;;  %v2811_v22 = vor.u32 %v381_v45, %v378_v37  ;;  %v690_v45 = vsel %vm423_vm0, %v687_v24, %v3414_v48  ;;  %v437_v55 = vrot.slane %v2025_v51, 5  ;;  %v2860_v24 = vld [vmem:[%s2517_s27 + $0x4] sm:$0xf]  ;;  %v1277_v48 = vrot.slane %v1275_v52, 5 }
  0x52   : > { %v3377_v21 = vrot.slane %v2842_v28, 5  ;;  %v651_v52 = vrot.slane %v649_v17, 4 }
  0x53   : > { %3407 = vst [vmem:[#allocation24_spill] sm:$0xff] %v2811_v22  ;;  %1316 = vrot.lane.b32.xlu1 %v1252_v43, %s2408_s8  ;;  %v2834_v43 = vcombine.low %v2783_v35, %v2789_v38  ;;  %v2838_v37 = vsel %vm330_vm1, %v2811_v22, %v391_v31  ;;  %v439_v22 = vrot.slane %v2336_v19, 5  ;;  %v397_v38 = vshll.u32 %v2025_v51, 16 }
  0x54   : > { %3413 = vst [vmem:[#allocation28_spill] sm:$0xff] %v2838_v37  ;;  %v652_v37 = vshll.u32 %v2735_v56, 16  ;;  %v2867_v27 = vsel %vm423_vm0, %v3377_v21, %v1352_v33  ;;  %v2871_v59 = vsel %vm423_vm0, %v435_v20, %v437_v55  ;;  %v1278_v20 = vor.u32 %v1277_v48, %v1274_v53  ;;  %v3423_v48 = vld [vmem:[#allocation17_spill] sm:$0xff] }
  0x55   : > { %3412 = vst [vmem:[#allocation27_spill] sm:$0xff] %v2834_v43  ;;  %1318 = vrot.lane.b32.xlu0 %v1261_v30, %s2408_s8  ;;  %v394_v30 = vshrl.u32 %v2025_v51, 16  ;;  %v1281_v9 = vshrl.u32 %v2834_v43, 16  ;;  %v1284_v61 = vshll.u32 %v2834_v43, 16  ;;  %v2874_v51 = vsel %vm423_vm0, %v437_v55, %v439_v22  ;;  %v2345_v22 = vld [vmem:[%s3341_s1 + $0x8] sm:$0x1f]  }
  0x56   : > { %v654_v46 = vrot.slane %v652_v37, 5 }
  0x57   : > { %669 = vrot.lane.b32.xlu1 %v647_v32, %s2408_s8  ;;  %v396_v19 = vrot.slane %v394_v30, 4  ;;  %v399_v32 = vrot.slane %v397_v38, 5  ;;  %v2346_v30 = vld [vmem:[%s3341_s1] sm:$0x1f]   ;;  %v2409_v38 = vmov 65535   ;;  %v1283_v33 = vrot.slane %v1281_v9, 4 }
  0x58   : > { %v655_v17 = vor.u32 %v654_v46, %v651_v52  ;;  %v865_v55 = vsel %vm863_vm2, 4294967295, %v2409_v38  ;;  %v3419_v46 = vld [vmem:[#allocation3_spill] sm:$0xff] }
  0x59   : > { %705 = vrot.lane.b32.xlu0 %v688_v60, %s2407_s29  ;;  %v2881_v60 = vor.u32 %v399_v32, %v396_v19  ;;  %v2902_v19 = vld [vmem:[%s2627_s9 + $0x4] sm:$0xf]  ;;  %v3415_v32 = vrot.slane %v2662_v57, 5  ;;  %v1286_v57 = vrot.slane %v1284_v61, 5  ;;  %v2961_v61 = vld [vmem:[%s2627_s9 + $0x38] sm:$0xf] }
  0x5b   : > { %1320 = vrot.lane.b32.xlu1 %v1270_v26, %s2408_s8  ;;  %v2909_v37 = vsel %vm330_vm1, %v391_v31, %v2881_v60  ;;  %v2356_v26 = vld [vmem:[%s3341_s1 + $0x10] sm:$0x1f]   ;;  %v866_v31 = vsel %vm864_vm3, %v865_v55, 0  ;;  %v1287_v9 = vor.u32 %v1286_v57, %v1283_v33 }
  0x5c   : > { %v868_v52 = vand.u32 %v2345_v22, %v866_v31  ;;  %v2925_v38 = vand.u32 %v2346_v30, %v866_v31  ;;  %v2936_v55 = vld [vmem:[%s2627_s9 + $0x34] sm:$0xf]  ;;  %v2942_v30 = vand.u32 %v2356_v26, %v866_v31  ;;  %v1279_v26 = vsel %vm330_vm1, %v2795_v15, %v1278_v20  ;;  %v3421_v31 = vld [vmem:[#allocation5_spill] sm:$0xff] }
  0x5d   : > { %1354 = vrot.lane.b32.xlu0 %v3415_v32, %s2407_s29  ;;  %v656_v32 = vsel %vm330_vm1, %v2752_v58, %v655_v17  ;;  %v3420_v15 = vrot.slane %v2735_v56, 5  ;;  %v1342_v22 = vrot.slane %v3423_v48, 5  ;;  %v1288_v62 = vsel %vm330_vm1, %v1278_v20, %v1287_v9  ;;  %v3430_v57 = vld [vmem:[#allocation12_spill] sm:$0xff] }
  0x5e   : > { %2175 = vmatprep.subr.bf16.mxu1 %v868_v52  ;;  %2193 = vmatprep.subr.bf16.mxu0 %v2925_v38 }
  0x5f   : > { %1356 = vrot.lane.b32.xlu1 %v1339_v49, %s2407_s29  ;;  %v2933_v49 = vld [vmem:[%s2627_s9 + $0x30] sm:$0xf]  ;;  %2176 = vmatpush3.bf16.msra.mxu1 %v868_v52  ;;  %v3422_v52 = vrot.slane %v3421_v31, 5 }
  0x60   : > { %3416 = vst [vmem:[#allocation29_spill] sm:$0xff] %v2933_v49  ;;  %v2091_v58 = vcombine.low %v2933_v49, %v2936_v55  ;;  %2194 = vmatpush3.bf16.msra.mxu0 %v2925_v38  ;;  %2229 = vmatprep.subr.bf16.mxu1 %v2925_v38  ;;  %v3431_v49 = vld [vmem:[#allocation11_spill] sm:$0xff] }
  0x61   : > { %707 = vrot.lane.b32.xlu0 %v690_v45, %s2407_s29  ;;  %2211 = vmatprep.subr.bf16.mxu0 %v2942_v30  ;;  %v692_v45 = vsel %vm423_vm0, %v3422_v52, %v3420_v15  ;;  %v3427_v15 = vld [vmem:[#allocation7_spill] sm:$0xff] }
  0x62   : > { %v1290_v21 = vshrl.u32 %v2091_v58, 16  ;;  %v1293_v35 = vshll.u32 %v2091_v58, 16  ;;  %v3428_v31 = vrot.slane %v3427_v15, 5  ;;  %v3429_v52 = vld [vmem:[#allocation27_spill] sm:$0xff]  ;;  %v3432_v15 = vld [vmem:[#allocation16_spill] sm:$0xff] }
  0x63   : > { %1358 = vrot.lane.b32.xlu1 %v2825_v25, %s2407_s29  ;;  %v2964_v25 = vld [vmem:[%s2627_s9 + $0x3c] sm:$0xf]  ;;  %v1344_v53 = vrot.slane %v3429_v52, 5 }
  0x64   : > { %v2092_v56 = vcombine.low %v2961_v61, %v2964_v25  ;;  %v1343_v48 = vsel %vm423_vm0, %v3428_v31, %v1342_v22  ;;  %v1295_v43 = vrot.slane %v1293_v35, 5  ;;  %v2083_v31 = vcombine.low %v2936_v55, %v2961_v61  ;;  %v3434_v35 = vld [vmem:[#allocation4_spill] sm:$0xff] }
  0x65   : > { %671 = vrot.lane.b32.xlu0 %v656_v32, %s2408_s8  ;;  %v1345_v32 = vsel %vm423_vm0, %v1342_v22, %v1344_v53 }
  0x66   : > { %v1299_v33 = vshrl.u32 %v2092_v56, 16  ;;  %v1302_v20 = vshll.u32 %v2092_v56, 16 }
  0x67   : > { %1322 = vrot.lane.b32.xlu1 %v1279_v26, %s2408_s8 }
  0x68   : > { %v1301_v52 = vrot.slane %v1299_v33, 4  ;;  %v1304_v26 = vrot.slane %v1302_v20, 5  ;;  %v3437_v20 = vld [vmem:[#allocation23_spill] sm:$0xff] }
  0x69   : > { %673 = vrot.lane.b32.xlu0 %v655_v17, %s2408_s8  ;;  %v1292_v17 = vrot.slane %v1290_v21, 4  ;;  %v3433_v21 = vld [vmem:[#allocation24_spill] sm:$0xff] }
  0x6a   : > { %v1305_v22 = vor.u32 %v1304_v26, %v1301_v52  ;;  %v3439_v26 = vld [vmem:[#allocation19_spill] sm:$0xff] }
  0x6b   : > { %709 = vrot.lane.b32.xlu1 %v692_v45, %s2407_s29  ;;  %v1296_v45 = vor.u32 %v1295_v43, %v1292_v17  ;;  %v1346_v43 = vrot.slane %v2091_v58, 5  ;;  %v1311_v17 = vshll.u32 %v2842_v28, 16  ;;  %v1348_v58 = vrot.slane %v2092_v56, 5 }
  0x6d   : > { %1324 = vrot.lane.b32.xlu0 %v1288_v62, %s2408_s8  ;;  %v383_v62 = vsel %vm330_vm1, %v3434_v35, %v3433_v21  ;;  %v1297_v13 = vsel %vm330_vm1, %v1287_v9, %v1296_v45  ;;  %v3436_v21 = vld [vmem:[#allocation21_spill] sm:$0xff]  ;;  %v1306_v9 = vsel %vm330_vm1, %v1296_v45, %v1305_v22  ;;  %v1313_v52 = vrot.slane %v1311_v17, 5  ;;  %v3440_v35 = vld [vmem:[#allocation26_spill] sm:$0xff] }
  0x6e   : > { %v1679_v17 = vld [vmem:[%s2475_s6 + $0x20] sm:$0xff] }
  0x6f   : > { %1360 = vrot.lane.b32.xlu1 %v1343_v48, %s2407_s29  ;;  %v1308_v48 = vshrl.u32 %v2842_v28, 16 }
  0x71   : > { %711 = vrot.lane.b32.xlu0 %v3432_v15, %s2407_s29  ;;  %v3435_v15 = vld [vmem:[#allocation28_spill] sm:$0xff] }
  0x73   : > { %1362 = vrot.lane.b32.xlu1 %v1345_v32, %s2407_s29  ;;  %v3438_v32 = vld [vmem:[#allocation13_spill] sm:$0xff] }
  0x75   : > { %412 = vrot.lane.b32.xlu0 %v383_v62, %s2408_s8  ;;  %v1310_v62 = vrot.slane %v1308_v48, 4  ;;  %v1680_v48 = vld [vmem:[%s2475_s6 + $0x28] sm:$0xff] }
  0x77   : > { %1326 = vrot.lane.b32.xlu1 %v1297_v13, %s2408_s8  ;;  %v1347_v13 = vsel %vm423_vm0, %v1344_v53, %v1346_v43  ;;  %v1314_v33 = vor.u32 %v1313_v52, %v1310_v62  ;;  %v3441_v53 = vrot.slane %v2842_v28, 5  ;;  %v1676_v28 = vld [vmem:[%s2475_s6 + $0x8] sm:$0xff]  ;;  %v1686_v52 = vld [vmem:[%s2475_s6 + $0x58] sm:$0xff] }
  0x79   : > { %414 = vrot.lane.b32.xlu0 %v3435_v15, %s2408_s8  ;;  %v1349_v15 = vsel %vm423_vm0, %v1346_v43, %v1348_v58  ;;  %v1315_v45 = vsel %vm330_vm1, %v1305_v22, %v1314_v33  ;;  %v1351_v56 = vsel %vm423_vm0, %v1348_v58, %v3441_v53  ;;  %v1677_v22 = vld [vmem:[%s2475_s6 + $0x10] sm:$0xff]  ;;  %v1683_v58 = vld [vmem:[%s2475_s6 + $0x40] sm:$0xff] }
  0x7b   : > { %451 = vrot.lane.b32.xlu1 %v3439_v26, %s2407_s29  ;;  %v1684_v26 = vld [vmem:[%s2475_s6 + $0x48] sm:$0xff] }
  0x7d   : > { %1328 = vrot.lane.b32.xlu0 %v1306_v9, %s2408_s8 }
  0x7f   : > { %1364 = vrot.lane.b32.xlu1 %v1347_v13, %s2407_s29 }
  0x81   : > { %453 = vrot.lane.b32.xlu0 %v3440_v35, %s2407_s29 }
  0x83   : > { %1366 = vrot.lane.b32.xlu1 %v1349_v15, %s2407_s29 }
  0x85   : > { %416 = vrot.lane.b32.xlu0 %v2909_v37, %s2408_s8  ;;  %v2410_v37 = vmov 0  }
  0x86   : > { %2308 = vset.pattern.permute.xlu0 %v2410_v37  ;;  %2309 = vset.pattern.permute.xlu1 %v2410_v37 }
  0x87   : > { %1330 = vrot.lane.b32.xlu1 %v1315_v45, %s2408_s8  ;;  %v3442_v45 = vcombine.low %v2860_v24, %v2521_v10  ;;  %v1687_v24 = vld [vmem:[%s2475_s6 + $0x60] sm:$0xff] }
  0x89   : > { %418 = vrot.lane.b32.xlu0 %v2881_v60, %s2408_s8  ;;  %v1675_v60 = vld [vmem:[%s2475_s6] sm:$0xff] }
  0x8b   : > { %455 = vrot.lane.b32.xlu1 %v2871_v59, %s2407_s29  ;;  %v1678_v59 = vld [vmem:[%s2475_s6 + $0x18] sm:$0xff] }
  0x8d   : > { %1332 = vrot.lane.b32.xlu0 %v1314_v33, %s2408_s8 }
  0x8f   : > { %1368 = vrot.lane.b32.xlu1 %v1351_v56, %s2407_s29  ;;  %v1685_v56 = vld [vmem:[%s2475_s6 + $0x50] sm:$0xff] }
  0x91   : > { %457 = vrot.lane.b32.xlu0 %v2874_v51, %s2407_s29  ;;  %v1682_v51 = vld [vmem:[%s2475_s6 + $0x38] sm:$0xff] }
  0x93   : > { %1370 = vrot.lane.b32.xlu1 %v2867_v27, %s2407_s29  ;;  %v1681_v27 = vld [vmem:[%s2475_s6 + $0x30] sm:$0xff] }
  0x95   : > { %1693 = vperm.xlu0 %2308, %v1675_v60  }
  0x97   : > { %1698 = vperm.xlu1 %2309, %v1676_v28   ;;  %v3443_v28 = vcombine.low %v2856_v44, %v2494_v0  ;;  %v3445_v44 = vcombine.low %v2497_v1, %v2502_v3  ;;  %v1689_v3 = vld [vmem:[%s2475_s6 + $0x70] sm:$0xff] }
  0x99   : > { %1708 = vperm.xlu0 %2308, %v1678_v59  }
  0x9a   : > { %v696_v43 = vpop.permute.xlu0 %695 }
  0x9b   : > { %1703 = vperm.xlu1 %2309, %v1677_v22  }
  0x9d   : > { %v442_v33 = vpop.permute.xlu1 %441  ;;  %1718 = vperm.xlu0 %2308, %v1680_v48   ;;  %v1688_v48 = vld [vmem:[%s2475_s6 + $0x68] sm:$0xff] }
  0x9f   : > { %v444_v35 = vpop.permute.xlu0 %443  ;;  %1713 = vperm.xlu1 %2309, %v1679_v17  }
  0xa1   : > { %v698_v9 = vpop.permute.xlu1 %697  ;;  %1728 = vperm.xlu0 %2308, %v1682_v51  }
  0xa3   : > { %v446_v13 = vpop.permute.xlu0 %445  ;;  %1723 = vperm.xlu1 %2309, %v1681_v27  }
  0xa5   : > { %v700_v62 = vpop.permute.xlu1 %699  ;;  %1738 = vperm.xlu0 %2308, %v1684_v26  }
  0xa7   : > { %v403_v15 = vpop.permute.xlu0 %402  ;;  %1733 = vperm.xlu1 %2309, %v1683_v58  }
  0xa8   : > { %v462_v53 = vsel %vm459_vm4, %v3442_v45, %v403_v15  ;;  %v1690_v45 = vld [vmem:[%s2475_s6 + $0x78] sm:$0xff] }
  0xa9   : > { %v658_v37 = vpop.permute.xlu1 %657  ;;  %v489_v60 = vsel %vm487_vm5, %v462_v53, %v442_v33  ;;  %1748 = vperm.xlu0 %2308, %v1686_v52   ;;  %v3444_v33 = vcombine.low %v2524_v11, %v2527_v12 }
  0xaa   : > { %v715_v59 = vsel %vm459_vm4, %v3443_v28, %v658_v37  ;;  %v967_v22 = vshrl.u32 %v489_v60, 16  ;;  %v970_v51 = vshll.u32 %v489_v60, 16 }
  0xab   : > { %v741_v17 = vsel %vm487_vm5, %v715_v59, %v696_v43  ;;  %v405_v27 = vpop.permute.xlu0 %404  ;;  %1743 = vperm.xlu1 %2309, %v1685_v56  }
  0xac   : > { %v762_v10 = vshrl.u32 %v741_v17, 16  ;;  %v765_v26 = vshll.u32 %v741_v17, 16  ;;  %v465_v52 = vsel %vm459_vm4, %v3444_v33, %v405_v27  ;;  %v969_v0 = vrot.slane %v967_v22, 3 }
  0xad   : > { %v660_v58 = vpop.permute.xlu1 %659  ;;  %1758 = vperm.xlu0 %2308, %v1688_v48   ;;  %v491_v15 = vsel %vm487_vm5, %v465_v52, %v444_v35  ;;  %v972_v53 = vrot.slane %v970_v51, 4  ;;  %v3446_v22 = vcombine.low %v2532_v14, %v2539_v16 }
  0xae   : > { %v718_v43 = vsel %vm459_vm4, %v3445_v44, %v660_v58  ;;  %v974_v37 = vshrl.u32 %v491_v15, 16  ;;  %v977_v11 = vshll.u32 %v491_v15, 16  ;;  %v764_v60 = vrot.slane %v762_v10, 3 }
  0xaf   : > { %v743_v56 = vsel %vm487_vm5, %v718_v43, %v698_v9  ;;  %v407_v12 = vpop.permute.xlu0 %406  ;;  %1753 = vperm.xlu1 %2309, %v1687_v24   ;;  %v767_v48 = vrot.slane %v765_v26, 4  ;;  %v3447_v10 = vcombine.low %v2505_v4, %v2511_v7  ;;  %v973_v44 = vor.u32 %v972_v53, %v969_v0 }
  0xb0   : > { %v769_v28 = vshrl.u32 %v743_v56, 16  ;;  %v772_v59 = vshll.u32 %v743_v56, 16  ;;  %v468_v1 = vsel %vm459_vm4, %v3446_v22, %v407_v12  ;;  %v976_v35 = vrot.slane %v974_v37, 3 }
  0xb1   : > { %v979_v17 = vrot.slane %v977_v11, 4  ;;  %v662_v27 = vpop.permute.xlu1 %661  ;;  %v493_v51 = vsel %vm487_vm5, %v468_v1, %v446_v13  ;;  %1768 = vperm.xlu0 %2308, %v1690_v45   ;;  %v768_v37 = vor.u32 %v767_v48, %v764_v60  ;;  %v3448_v53 = vcombine.low %v2545_v18, %v2571_v41 }
  0xb2   : > { %v771_v9 = vrot.slane %v769_v28, 3  ;;  %v774_v58 = vrot.slane %v772_v59, 4  ;;  %v721_v24 = vsel %vm459_vm4, %v3447_v10, %v662_v27  ;;  %v982_v33 = vshrl.u32 %v493_v51, 16 }
  0xb3   : > { %v745_v14 = vsel %vm487_vm5, %v721_v24, %v700_v62  ;;  %v985_v16 = vshll.u32 %v493_v51, 16  ;;  %v409_v52 = vpop.permute.xlu0 %408  ;;  %v980_v26 = vor.u32 %v979_v17, %v976_v35  ;;  %1763 = vperm.xlu1 %2309, %v1689_v3   ;;  %v3449_v18 = vcombine.low %v2514_v8, %v2556_v29 }
  0xb4   : > { %v777_v43 = vshrl.u32 %v745_v14, 16  ;;  %v780_v15 = vshll.u32 %v745_v14, 16  ;;  %v984_v56 = vrot.slane %v982_v33, 3  ;;  %v775_v11 = vor.u32 %v774_v58, %v771_v9 }
  0xb5   : > { %v987_v13 = vrot.slane %v985_v16, 4  ;;  %v664_v45 = vpop.permute.xlu1 %663  ;;  %v981_v12 = vsel %vm761_vm6, %v973_v44, %v980_v26  ;;  %v471_v22 = vsel %vm459_vm4, %v3448_v53, %v409_v52  ;;  %v3450_v33 = vcombine.low %v2574_v42, %v2586_v47 }
  0xb6   : > { %v779_v4 = vrot.slane %v777_v43, 3  ;;  %v782_v7 = vrot.slane %v780_v15, 4  ;;  %2195 = vmatprep.mubr.msk.bf16.mxu0 %vm838_vm7, %v981_v12  ;;  %v776_v62 = vsel %vm761_vm6, %v768_v37, %v775_v11  ;;  %v724_v41 = vsel %vm459_vm4, %v3449_v18, %v664_v45 }
  0xb7   : > { %v988_v28 = vor.u32 %v987_v13, %v984_v56  ;;  %v411_v59 = vpop.permute.xlu0 %410  ;;  %2177 = vmatprep.mubr.msk.bf16.mxu1 %vm838_vm7, %v776_v62 }
  0xb8   : > { %v783_v0 = vor.u32 %v782_v7, %v779_v4  ;;  %v474_v14 = vsel %vm459_vm4, %v3450_v33, %v411_v59 }
  0xb9   : > { %v448_v60 = vpop.permute.xlu1 %447  ;;  %v989_v1 = vsel %vm761_vm6, %v980_v26, %v988_v28 }
  0xba   : > { %v495_v3 = vsel %vm487_vm5, %v471_v22, %v448_v60  ;;  %v784_v48 = vsel %vm761_vm6, %v775_v11, %v783_v0  ;;  %2196 = vmatmul.mubr.msk.bf16.vlgmr.msra.gmra.mrb[0].mxu0 %vm838_vm7, %v989_v1 }
  0xbb   : > { %v990_v35 = vshrl.u32 %v495_v3, 16  ;;  %v993_v17 = vshll.u32 %v495_v3, 16  ;;  %2178 = vmatmul.mubr.msk.bf16.vlgmr.msra.gmra.mrb[0].mxu1 %vm838_vm7, %v784_v48  ;;  %v666_v27 = vpop.permute.xlu0 %665  ;;  %2212 = vmatpush3.bf16.msra.mxu0 %v2942_v30  ;;  %v3452_v3 = vcombine.low %v2614_v6, %v2632_v36  ;;  %v3454_v6 = vcombine.low %v2645_v50, %v2668_v63 }
  0xbc   : > { %2230 = vmatpush3.bf16.msra.mxu1 %v2925_v38  ;;  %v3451_v38 = vcombine.low %v2562_v34, %v2611_v5  ;;  %v3456_v50 = vcombine.low %v2671_v2, %v2688_v23 }
  0xbd   : > { %v992_v51 = vrot.slane %v990_v35, 3  ;;  %v995_v9 = vrot.slane %v993_v17, 4  ;;  %v702_v58 = vpop.permute.xlu1 %701 }
  0xbe   : > { %v747_v10 = vsel %vm487_vm5, %v724_v41, %v702_v58  ;;  %v727_v8 = vsel %vm459_vm4, %v3451_v38, %v666_v27  ;;  %v3453_v41 = vcombine.low %v2902_v19, %v2637_v39 }
  0xbf   : > { %v996_v24 = vor.u32 %v995_v9, %v992_v51  ;;  %v785_v16 = vshrl.u32 %v747_v10, 16  ;;  %v788_v30 = vshll.u32 %v747_v10, 16  ;;  %v450_v52 = vpop.permute.xlu0 %449 }
  0xc0   : > { %v497_v29 = vsel %vm487_vm5, %v474_v14, %v450_v52  ;;  %v3455_v52 = vcombine.low %v2640_v40, %v2654_v54 }
  0xc1   : > { %v787_v44 = vrot.slane %v785_v16, 3  ;;  %v790_v26 = vrot.slane %v788_v30, 4  ;;  %v704_v43 = vpop.permute.xlu1 %703  ;;  %v998_v15 = vshrl.u32 %v497_v29, 16  ;;  %v1001_v56 = vshll.u32 %v497_v29, 16 }
  0xc2   : > { %v749_v13 = vsel %vm487_vm5, %v727_v8, %v704_v43  ;;  %v997_v42 = vsel %vm761_vm6, %v988_v28, %v996_v24 }
  0xc3   : > { %v791_v47 = vor.u32 %v790_v26, %v787_v44  ;;  %v793_v45 = vshrl.u32 %v749_v13, 16  ;;  %v796_v37 = vshll.u32 %v749_v13, 16  ;;  %v1000_v11 = vrot.slane %v998_v15, 3  ;;  %2199 = vmatprep.mubr.msk.bf16.mxu0 %vm838_vm7, %v997_v42  ;;  %v668_v34 = vpop.permute.xlu0 %667 }
  0xc4   : > { %v1003_v5 = vrot.slane %v1001_v56, 4 }
  0xc5   : > { %v795_v12 = vrot.slane %v793_v45, 3  ;;  %v798_v4 = vrot.slane %v796_v37, 4  ;;  %v1317_v7 = vpop.permute.xlu1 %1316  ;;  %v792_v62 = vsel %vm761_vm6, %v783_v0, %v791_v47  ;;  %v730_v0 = vsel %vm459_vm4, %v3452_v3, %v668_v34 }
  0xc6   : > { %v3115_v59 = vor.u32 %v1003_v5, %v1000_v11  ;;  %2181 = vmatprep.mubr.msk.bf16.mxu1 %vm838_vm7, %v792_v62  ;;  %v1374_v51 = vsel %vm459_vm4, %v3453_v41, %v1317_v7  ;;  %v3459_v41 = vld [vmem:[#allocation9_spill] sm:$0xff] }
  0xc7   : > { %v799_v53 = vor.u32 %v798_v4, %v795_v12  ;;  %v1319_v22 = vpop.permute.xlu0 %1318 }
  0xc8   : > { %v1005_v28 = vsel %vm761_vm6, %v996_v24, %v3115_v59  ;;  %v1377_v36 = vsel %vm459_vm4, %v3454_v6, %v1319_v22 }
  0xc9   : > { %v670_v60 = vpop.permute.xlu1 %669  ;;  %v800_v1 = vsel %vm761_vm6, %v791_v47, %v799_v53  ;;  %2200 = vmatmul.mubr.msk.bf16.gmra.mrb[4].mxu0 %vm838_vm7, %v1005_v28 }
  0xca   : > { %2182 = vmatmul.mubr.msk.bf16.gmra.mrb[4].mxu1 %vm838_vm7, %v800_v1  ;;  %v733_v39 = vsel %vm459_vm4, %v3455_v52, %v670_v60  ;;  %v3457_v1 = vld [vmem:[#allocation8_spill] sm:$0xff] }
  0xcb   : > { %v706_v48 = vpop.permute.xlu0 %705  ;;  %v3458_v3 = vcombine.low %v3419_v46, %v3457_v1 }
  0xcc   : > { %v751_v35 = vsel %vm487_vm5, %v730_v0, %v706_v48 }
  0xcd   : > { %v1321_v17 = vpop.permute.xlu1 %1320  ;;  %v801_v27 = vshrl.u32 %v751_v35, 16  ;;  %v804_v18 = vshll.u32 %v751_v35, 16 }
  0xce   : > { %v1380_v63 = vsel %vm459_vm4, %v3456_v50, %v1321_v17 }
  0xcf   : > { %v803_v9 = vrot.slane %v801_v27, 3  ;;  %v806_v58 = vrot.slane %v804_v18, 4  ;;  %v1355_v10 = vpop.permute.xlu0 %1354 }
  0xd0   : > { %v1400_v24 = vsel %vm487_vm5, %v1374_v51, %v1355_v10  ;;  %v2041_v51 = vcombine.low %v3459_v41, %v3459_v41  ;;  %v3461_v10 = vld [vmem:[#allocation14_spill] sm:$0xff] }
  0xd1   : > { %v807_v33 = vor.u32 %v806_v58, %v803_v9  ;;  %v1357_v14 = vpop.permute.xlu1 %1356  ;;  %v1420_v16 = vshrl.u32 %v1400_v24, 16  ;;  %v1423_v30 = vshll.u32 %v1400_v24, 16  ;;  %v3460_v58 = vld [vmem:[#allocation6_spill] sm:$0xff] }
  0xd2   : > { %v1402_v19 = vsel %vm487_vm5, %v1377_v36, %v1357_v14  ;;  %v3462_v46 = vcombine.low %v3460_v58, %v3461_v10 }
  0xd3   : > { %v1427_v38 = vshrl.u32 %v1402_v19, 16  ;;  %v1430_v8 = vshll.u32 %v1402_v19, 16  ;;  %v1422_v29 = vrot.slane %v1420_v16, 3  ;;  %v1425_v44 = vrot.slane %v1423_v30, 4  ;;  %v708_v26 = vpop.permute.xlu0 %707 }
  0xd4   : > { %v753_v43 = vsel %vm487_vm5, %v733_v39, %v708_v26  ;;  %v808_v15 = vsel %vm761_vm6, %v799_v53, %v807_v33 }
  0xd5   : > { %v1429_v56 = vrot.slane %v1427_v38, 3  ;;  %v1432_v40 = vrot.slane %v1430_v8, 4  ;;  %v1426_v54 = vor.u32 %v1425_v44, %v1422_v29  ;;  %v1359_v13 = vpop.permute.xlu1 %1358  ;;  %v809_v42 = vshrl.u32 %v753_v43, 16  ;;  %2185 = vmatprep.mubr.msk.bf16.mxu1 %vm838_vm7, %v808_v15  ;;  %v3463_v38 = vld [vmem:[#allocation15_spill] sm:$0xff]  ;;  %v3464_v8 = vld [vmem:[#allocation18_spill] sm:$0xff] }
  0xd6   : > { %v1404_v47 = vsel %vm487_vm5, %v1380_v63, %v1359_v13  ;;  %v812_v45 = vshll.u32 %v753_v43, 16  ;;  %v3465_v29 = vcombine.low %v3463_v38, %v3464_v8 }
  0xd7   : > { %v1433_v37 = vor.u32 %v1432_v40, %v1429_v56  ;;  %v1435_v11 = vshrl.u32 %v1404_v47, 16  ;;  %v1438_v34 = vshll.u32 %v1404_v47, 16  ;;  %v811_v2 = vrot.slane %v809_v42, 3  ;;  %v672_v23 = vpop.permute.xlu0 %671 }
  0xd8   : > { %v814_v5 = vrot.slane %v812_v45, 4  ;;  %v736_v0 = vsel %vm459_vm4, %v3458_v3, %v672_v23 }
  0xd9   : > { %v1437_v12 = vrot.slane %v1435_v11, 3  ;;  %v1440_v4 = vrot.slane %v1438_v34, 4  ;;  %v1323_v7 = vpop.permute.xlu1 %1322  ;;  %v1434_v62 = vsel %vm761_vm6, %v1426_v54, %v1433_v37 }
  0xda   : > { %v815_v53 = vor.u32 %v814_v5, %v811_v2  ;;  %2213 = vmatprep.mubr.msk.bf16.mxu0 %vm838_vm7, %v1434_v62  ;;  %v1383_v24 = vsel %vm459_vm4, %v3462_v46, %v1323_v7 }
  0xdb   : > { %v1441_v22 = vor.u32 %v1440_v4, %v1437_v12  ;;  %v674_v28 = vpop.permute.xlu0 %673 }
  0xdc   : > { %v816_v60 = vsel %vm761_vm6, %v807_v33, %v815_v53  ;;  %v739_v30 = vsel %vm459_vm4, %v2041_v51, %v674_v28  ;;  %v3467_v28 = vld [vmem:[#allocation10_spill] sm:$0xff] }
  0xdd   : > { %v710_v48 = vpop.permute.xlu1 %709  ;;  %2186 = vmatmul.mubr.msk.bf16.gmra.mrb[8].mxu1 %vm838_vm7, %v816_v60  ;;  %v1442_v35 = vsel %vm761_vm6, %v1433_v37, %v1441_v22 }
  0xde   : > { %v755_v17 = vsel %vm487_vm5, %v736_v0, %v710_v48  ;;  %2214 = vmatmul.mubr.msk.bf16.vlgmr.msra.gmra.mrb[0].mxu0 %vm838_vm7, %v1442_v35 }
  0xdf   : > { %v817_v27 = vshrl.u32 %v755_v17, 16  ;;  %v820_v18 = vshll.u32 %v755_v17, 16  ;;  %v1325_v9 = vpop.permute.xlu0 %1324 }
  0xe0   : > { %v1386_v44 = vsel %vm459_vm4, %v3465_v29, %v1325_v9 }
  0xe1   : > { %v819_v6 = vrot.slane %v817_v27, 3  ;;  %v822_v36 = vrot.slane %v820_v18, 4  ;;  %v1361_v33 = vpop.permute.xlu1 %1360  ;;  %v3469_v27 = vld [vmem:[#allocation20_spill] sm:$0xff]  ;;  %v3470_v18 = vld [vmem:[#allocation29_spill] sm:$0xff] }
  0xe2   : > { %v1406_v14 = vsel %vm487_vm5, %v1383_v24, %v1361_v33  ;;  %v3471_v41 = vcombine.low %v3469_v27, %v3470_v18 }
  0xe3   : > { %v823_v16 = vor.u32 %v822_v36, %v819_v6  ;;  %v1443_v52 = vshrl.u32 %v1406_v14, 16  ;;  %v1446_v39 = vshll.u32 %v1406_v14, 16  ;;  %v712_v19 = vpop.permute.xlu0 %711  ;;  %v3472_v6 = vcombine.low %v3431_v49, %v3430_v57 }
  0xe4   : > { %v757_v26 = vsel %vm487_vm5, %v739_v30, %v712_v19 }
  0xe5   : > { %v1445_v50 = vrot.slane %v1443_v52, 3  ;;  %v1448_v63 = vrot.slane %v1446_v39, 4  ;;  %v1363_v43 = vpop.permute.xlu1 %1362  ;;  %v825_v15 = vshrl.u32 %v757_v26, 16  ;;  %v828_v56 = vshll.u32 %v757_v26, 16 }
  0xe6   : > { %v1408_v40 = vsel %vm487_vm5, %v1386_v44, %v1363_v43  ;;  %v824_v54 = vsel %vm761_vm6, %v815_v53, %v823_v16  ;;  %v3466_v53 = vld [vmem:[#allocation2_spill] sm:$0xff] }
  0xe7   : > { %v1449_v13 = vor.u32 %v1448_v63, %v1445_v50  ;;  %v1451_v42 = vshrl.u32 %v1408_v40, 16  ;;  %v1454_v47 = vshll.u32 %v1408_v40, 16  ;;  %v827_v45 = vrot.slane %v825_v15, 3  ;;  %2189 = vmatprep.mubr.msk.bf16.mxu1 %vm838_vm7, %v824_v54  ;;  %v413_v37 = vpop.permute.xlu0 %412 }
  0xe8   : > { %v830_v11 = vrot.slane %v828_v56, 4  ;;  %v3468_v60 = vcombine.low %v3466_v53, %v3467_v28 }
  0xe9   : > { %v1453_v34 = vrot.slane %v1451_v42, 3  ;;  %v1456_v2 = vrot.slane %v1454_v47, 4  ;;  %v1327_v23 = vpop.permute.xlu1 %1326  ;;  %v1450_v5 = vsel %vm761_vm6, %v1441_v22, %v1449_v13  ;;  %v3473_v42 = vcombine.low %v3438_v32, %v3437_v20 }
  0xea   : > { %v831_v12 = vor.u32 %v830_v11, %v827_v45  ;;  %2217 = vmatprep.mubr.msk.bf16.mxu0 %vm838_vm7, %v1450_v5  ;;  %v477_v1 = vsel %vm459_vm4, %v3468_v60, %v413_v37  ;;  %v1389_v51 = vsel %vm459_vm4, %v3471_v41, %v1327_v23  ;;  %v3474_v23 = vld [vmem:[#allocation25_spill] sm:$0xff]  ;;  %v3476_v32 = vcombine.low %v2964_v25, %v3436_v21 }
  0xeb   : > { %v1457_v4 = vor.u32 %v1456_v2, %v1453_v34  ;;  %v415_v7 = vpop.permute.xlu0 %414  ;;  %v2017_v5 = vcombine.low %v3474_v23, %v3474_v23 }
  0xec   : > { %v832_v62 = vsel %vm761_vm6, %v823_v16, %v831_v12  ;;  %v480_v36 = vsel %vm459_vm4, %v3472_v6, %v415_v7 }
  0xed   : > { %v452_v3 = vpop.permute.xlu1 %451  ;;  %2190 = vmatmul.mubr.msk.bf16.gmra.mrb[12].mxu1 %vm838_vm7, %v832_v62  ;;  %v1458_v0 = vsel %vm761_vm6, %v1449_v13, %v1457_v4 }
  0xee   : > { %v499_v48 = vsel %vm487_vm5, %v477_v1, %v452_v3  ;;  %2218 = vmatmul.mubr.msk.bf16.gmra.mrb[4].mxu0 %vm838_vm7, %v1458_v0 }
  0xef   : > { %v1006_v22 = vshrl.u32 %v499_v48, 16  ;;  %v1009_v35 = vshll.u32 %v499_v48, 16  ;;  %v1329_v17 = vpop.permute.xlu0 %1328 }
  0xf0   : > { %v1392_v30 = vsel %vm459_vm4, %v2083_v31, %v1329_v17 }
  0xf1   : > { %v1008_v9 = vrot.slane %v1006_v22, 3  ;;  %v1011_v58 = vrot.slane %v1009_v35, 4  ;;  %v1365_v10 = vpop.permute.xlu1 %1364 }
  0xf2   : > { %v1410_v46 = vsel %vm487_vm5, %v1389_v51, %v1365_v10 }
  0xf3   : > { %v1012_v24 = vor.u32 %v1011_v58, %v1008_v9  ;;  %v1459_v33 = vshrl.u32 %v1410_v46, 16  ;;  %v1462_v14 = vshll.u32 %v1410_v46, 16  ;;  %v454_v16 = vpop.permute.xlu0 %453 }
  0xf4   : > { %v501_v52 = vsel %vm487_vm5, %v480_v36, %v454_v16 }
  0xf5   : > { %v1461_v39 = vrot.slane %v1459_v33, 3  ;;  %v1464_v19 = vrot.slane %v1462_v14, 4  ;;  %v1367_v38 = vpop.permute.xlu1 %1366  ;;  %v1014_v8 = vshrl.u32 %v501_v52, 16  ;;  %v1017_v29 = vshll.u32 %v501_v52, 16 }
  0xf6   : > { %v1412_v44 = vsel %vm487_vm5, %v1392_v30, %v1367_v38  ;;  %v1013_v49 = vsel %vm761_vm6, %v3115_v59, %v1012_v24 }
  0xf7   : > { %v1465_v57 = vor.u32 %v1464_v19, %v1461_v39  ;;  %v1467_v26 = vshrl.u32 %v1412_v44, 16  ;;  %v1470_v50 = vshll.u32 %v1412_v44, 16  ;;  %v1016_v63 = vrot.slane %v1014_v8, 3  ;;  %2203 = vmatprep.mubr.msk.bf16.mxu1 %vm838_vm7, %v1013_v49  ;;  %v417_v55 = vpop.permute.xlu0 %416 }
  0xf8   : > { %v1019_v61 = vrot.slane %v1017_v29, 4  ;;  %v483_v47 = vsel %vm459_vm4, %v3473_v42, %v417_v55  ;;  %v3241_v55 = vld [vmem:[%s3342_s2] ss:$0 sm:$0xff] }
  0xf9   : > { %v1469_v31 = vrot.slane %v1467_v26, 3  ;;  %v1472_v43 = vrot.slane %v1470_v50, 4  ;;  %v1331_v15 = vpop.permute.xlu1 %1330  ;;  %v1466_v56 = vsel %vm761_vm6, %v1457_v4, %v1465_v57  ;;  %v3475_v4 = vld [vmem:[#allocation22_spill] sm:$0xff] }
  0xfa   : > { %v1020_v40 = vor.u32 %v1019_v61, %v1016_v63  ;;  %2221 = vmatprep.mubr.msk.bf16.mxu0 %vm838_vm7, %v1466_v56  ;;  %v2085_v20 = vcombine.low %v3475_v4, %v3475_v4  ;;  %v1395_v7 = vsel %vm459_vm4, %v3476_v32, %v1331_v15 }
  0xfb   : > { %v1473_v54 = vor.u32 %v1472_v43, %v1469_v31  ;;  %v419_v13 = vpop.permute.xlu0 %418 }
  0xfc   : > { %v1021_v59 = vsel %vm761_vm6, %v1012_v24, %v1020_v40  ;;  %v486_v3 = vsel %vm459_vm4, %v2017_v5, %v419_v13 }
  0xfd   : > { %v456_v45 = vpop.permute.xlu1 %455  ;;  %2204 = vmatmul.mubr.msk.bf16.vlgmr.msra.gmra.mrb[8].mxu1 %vm838_vm7, %v1021_v59  ;;  %v1474_v37 = vsel %vm761_vm6, %v1465_v57, %v1473_v54 }
  0xfe   : > { %v503_v11 = vsel %vm487_vm5, %v483_v47, %v456_v45  ;;  %2222 = vmatmul.mubr.msk.bf16.gmra.mrb[8].mxu0 %vm838_vm7, %v1474_v37 }
  0xff   : > { %v1022_v34 = vshrl.u32 %v503_v11, 16  ;;  %v1025_v2 = vshll.u32 %v503_v11, 16  ;;  %v1333_v12 = vpop.permute.xlu0 %1332 }
 0x100   : > { %v1398_v35 = vsel %vm459_vm4, %v2085_v20, %v1333_v12 }
 0x101   : > { %v1024_v62 = vrot.slane %v1022_v34, 3  ;;  %v1027_v53 = vrot.slane %v1025_v2, 4  ;;  %v1369_v28 = vpop.permute.xlu1 %1368 }
 0x102   : > { %v1414_v60 = vsel %vm487_vm5, %v1395_v7, %v1369_v28 }
 0x103   : > { %v1028_v1 = vor.u32 %v1027_v53, %v1024_v62  ;;  %v1475_v0 = vshrl.u32 %v1414_v60, 16  ;;  %v1478_v48 = vshll.u32 %v1414_v60, 16  ;;  %v458_v22 = vpop.permute.xlu0 %457 }
 0x104   : > { %v505_v17 = vsel %vm487_vm5, %v486_v3, %v458_v22 }
 0x105   : > { %v1477_v27 = vrot.slane %v1475_v0, 3  ;;  %v1480_v18 = vrot.slane %v1478_v48, 4  ;;  %v1371_v25 = vpop.permute.xlu1 %1370  ;;  %v1030_v21 = vshrl.u32 %v505_v17, 16  ;;  %v1033_v41 = vshll.u32 %v505_v17, 16 }
 0x106   : > { %v1416_v51 = vsel %vm487_vm5, %v1398_v35, %v1371_v25  ;;  %v1029_v9 = vsel %vm761_vm6, %v1020_v40, %v1028_v1 }
 0x107   : > { %v1481_v58 = vor.u32 %v1480_v18, %v1477_v27  ;;  %v1483_v10 = vshrl.u32 %v1416_v51, 16  ;;  %v1486_v46 = vshll.u32 %v1416_v51, 16  ;;  %v1032_v24 = vrot.slane %v1030_v21, 3  ;;  %2207 = vmatprep.mubr.msk.bf16.mxu1 %vm838_vm7, %v1029_v9 }
 0x108   : > { %v1035_v6 = vrot.slane %v1033_v41, 4 }
 0x109   : > { %v1485_v36 = vrot.slane %v1483_v10, 3  ;;  %v1488_v33 = vrot.slane %v1486_v46, 4  ;;  %v1482_v14 = vsel %vm761_vm6, %v1473_v54, %v1481_v58 }
 0x10a   : > { %v1036_v16 = vor.u32 %v1035_v6, %v1032_v24  ;;  %2225 = vmatprep.mubr.msk.bf16.mxu0 %vm838_vm7, %v1482_v14 }
 0x10b   : > { %v1489_v30 = vor.u32 %v1488_v33, %v1485_v36 }
 0x10c   : > { %v1037_v52 = vsel %vm761_vm6, %v1028_v1, %v1036_v16 }
 0x10d   : > { %2208 = vmatmul.mubr.msk.bf16.gmra.mrb[12].mxu1 %vm838_vm7, %v1037_v52  ;;  %v1490_v39 = vsel %vm761_vm6, %v1481_v58, %v1489_v30 }
 0x10e   : > { %2226 = vmatmul.mubr.msk.bf16.gmra.mrb[12].mxu0 %vm838_vm7, %v1490_v39 }
 0x114   : > { %v1694_v43 = vpop.permute.xlu0 %1693 }
 0x116   : > { %v1699_v50 = vpop.permute.xlu1 %1698 }
 0x118   : > { %v1709_v4 = vpop.permute.xlu0 %1708 }
 0x11a   : > { %v1704_v47 = vpop.permute.xlu1 %1703 }
 0x11c   : > { %v1719_v48 = vpop.permute.xlu0 %1718 }
 0x11e   : > { %v1714_v60 = vpop.permute.xlu1 %1713 }
 0x120   : > { %v1729_v6 = vpop.permute.xlu0 %1728 }
 0x122   : > { %v1724_v9 = vpop.permute.xlu1 %1723 }
 0x18e   : > { %v2179_v19 = vpop.f32.mrb[0].mxu1 }
 0x18f   : > { %v904_v38 = vpop.f32.mrb[1].mxu1 }
 0x190   : > { %v2180_v8 = vpop.f32.mrb[2].mxu1 }
 0x191   : > { %v907_v29 = vpop.f32.mrb[3].mxu1 }
 0x19d   : > { %v2183_v44 = vpop.f32.mrb[4].mxu1 }
 0x19e   : > { %v920_v49 = vpop.f32.mrb[5].mxu1 }
 0x19f   : > { %v2184_v57 = vpop.f32.mrb[6].mxu1 }
 0x1a0   : > { %v923_v26 = vpop.f32.mrb[7].mxu1 }
 0x1b1   : > { %v2215_v63 = vpop.f32.mrb[0].mxu0 }
 0x1b2   : > { %v2231_v61 = vadd.f32 %v2215_v63, %v2179_v19  ;;  %v1557_v31 = vpop.f32.mrb[1].mxu0 }
 0x1b3   : > { %v2232_v15 = vadd.f32 %v1557_v31, %v904_v38  ;;  %v2216_v56 = vpop.f32.mrb[2].mxu0  ;;  %v1734_v38 = vpop.permute.xlu1 %1733 }
 0x1b4   : > { %v1645_v40 = vadd.f32 %v2231_v61, %v3241_v55  ;;  %v2233_v54 = vadd.f32 %v2216_v56, %v2180_v8  ;;  %v1560_v13 = vpop.f32.mrb[3].mxu0  ;;  %v1739_v8 = vpop.permute.xlu0 %1738 }
 0x1b5   : > { %v1643_v59 = vadd.f32 %v2232_v15, %v3241_v55  ;;  %v2234_v42 = vadd.f32 %v1560_v13, %v907_v29 }
 0x1b6   : > { %v1646_v45 = vadd.f32 %v2233_v54, %v3241_v55  ;;  %v1661_v37 = vmax.f32 %v1645_v40, 0.0 }
 0x1b7   : > { %v1659_v11 = vmax.f32 %v1643_v59, 0.0  ;;  %v1644_v34 = vadd.f32 %v2234_v42, %v3241_v55  ;;  %v1744_v42 = vpop.permute.xlu1 %1743 }
 0x1b8   : > { %v1773_v2 = vmul.f32 %v1704_v47, %v1661_v37  ;;  %v1662_v23 = vmax.f32 %v1646_v45, 0.0 }
 0x1b9   : > { %v1771_v5 = vmul.f32 %v1694_v43, %v1659_v11  ;;  %v1660_v12 = vmax.f32 %v1644_v34, 0.0  ;;  %v1749_v34 = vpop.permute.xlu0 %1748 }
 0x1ba   : > { %v2134_v20 = vpack.c.bf16 %v1773_v2, %v1773_v2  ;;  %v1774_v32 = vmul.f32 %v1709_v4, %v1662_v23 }
 0x1bb   : > { %v2132_v7 = vpack.c.bf16 %v1771_v5, %v1771_v5  ;;  %v1772_v62 = vmul.f32 %v1699_v50, %v1660_v12 }
 0x1bc   : > { %1854 = vst.msk [vmem:[%s2480_s11 + $0x8] sm:$0xf] %vm1851_vm8, %v2134_v20  ;;  %v2135_v53 = vpack.c.bf16 %v1774_v32, %v1774_v32 }
 0x1bd   : > { %1852 = vst.msk [vmem:[%s2480_s11] sm:$0xf] %vm1851_vm8, %v2132_v7  ;;  %v2133_v28 = vpack.c.bf16 %v1772_v62, %v1772_v62  ;;  %v1754_v62 = vpop.permute.xlu1 %1753 }
 0x1be   : > { %1855 = vst.msk [vmem:[%s2480_s11 + $0xc] sm:$0xf] %vm1851_vm8, %v2135_v53  ;;  %v1759_v53 = vpop.permute.xlu0 %1758 }
 0x1bf   : > { %1853 = vst.msk [vmem:[%s2480_s11 + $0x4] sm:$0xf] %vm1851_vm8, %v2133_v28 }
 0x1c1   : > { %v2219_v1 = vpop.f32.mrb[4].mxu0 }
 0x1c2   : > { %v2235_v3 = vadd.f32 %v2219_v1, %v2183_v44  ;;  %v1573_v0 = vpop.f32.mrb[5].mxu0 }
 0x1c3   : > { %v2236_v22 = vadd.f32 %v1573_v0, %v920_v49  ;;  %v2220_v35 = vpop.f32.mrb[6].mxu0 }
 0x1c4   : > { %v1649_v17 = vadd.f32 %v2235_v3, %v3241_v55  ;;  %v2237_v27 = vadd.f32 %v2220_v35, %v2184_v57  ;;  %v1576_v18 = vpop.f32.mrb[7].mxu0 }
 0x1c5   : > { %v1647_v25 = vadd.f32 %v2236_v22, %v3241_v55  ;;  %v2238_v21 = vadd.f32 %v1576_v18, %v923_v26 }
 0x1c6   : > { %v1665_v41 = vmax.f32 %v1649_v17, 0.0  ;;  %v1650_v51 = vadd.f32 %v2237_v27, %v3241_v55 }
 0x1c7   : > { %v1663_v58 = vmax.f32 %v1647_v25, 0.0  ;;  %v1648_v10 = vadd.f32 %v2238_v21, %v3241_v55 }
 0x1c8   : > { %v1777_v46 = vmul.f32 %v1724_v9, %v1665_v41  ;;  %v1666_v24 = vmax.f32 %v1650_v51, 0.0 }
 0x1c9   : > { %v1775_v36 = vmul.f32 %v1714_v60, %v1663_v58  ;;  %v1664_v33 = vmax.f32 %v1648_v10, 0.0  ;;  %v1764_v58 = vpop.permute.xlu1 %1763 }
 0x1ca   : > { %v2138_v14 = vpack.c.bf16 %v1777_v46, %v1777_v46  ;;  %v1778_v16 = vmul.f32 %v1729_v6, %v1666_v24 }
 0x1cb   : > { %v2136_v30 = vpack.c.bf16 %v1775_v36, %v1775_v36  ;;  %v1776_v52 = vmul.f32 %v1719_v48, %v1664_v33  ;;  %v1769_v36 = vpop.permute.xlu0 %1768 }
 0x1cc   : > { %1858 = vst.msk [vmem:[%s2480_s11 + $0x18] sm:$0xf] %vm1851_vm8, %v2138_v14  ;;  %v2139_v39 = vpack.c.bf16 %v1778_v16, %v1778_v16 }
 0x1cd   : > { %1856 = vst.msk [vmem:[%s2480_s11 + $0x10] sm:$0xf] %vm1851_vm8, %v2136_v30  ;;  %v2137_v19 = vpack.c.bf16 %v1776_v52, %v1776_v52 }
 0x1ce   : > { %1859 = vst.msk [vmem:[%s2480_s11 + $0x1c] sm:$0xf] %vm1851_vm8, %v2139_v39 }
 0x1cf   : > { %1857 = vst.msk [vmem:[%s2480_s11 + $0x14] sm:$0xf] %vm1851_vm8, %v2137_v19 }
 0x1d0   : > { %v2205_v29 = vpop.f32.mrb[8].mxu1 }
 0x1d1   : > { %v2223_v44 = vpop.f32.mrb[8].mxu0  ;;  %v1136_v49 = vpop.f32.mrb[9].mxu1 }
 0x1d2   : > { %v2239_v57 = vadd.f32 %v2223_v44, %v2205_v29  ;;  %v1589_v26 = vpop.f32.mrb[9].mxu0  ;;  %v2206_v50 = vpop.f32.mrb[10].mxu1 }
 0x1d3   : > { %v2240_v63 = vadd.f32 %v1589_v26, %v1136_v49  ;;  %v2224_v61 = vpop.f32.mrb[10].mxu0  ;;  %v1139_v31 = vpop.f32.mrb[11].mxu1 }
 0x1d4   : > { %v1653_v43 = vadd.f32 %v2239_v57, %v3241_v55  ;;  %v2241_v15 = vadd.f32 %v2224_v61, %v2206_v50  ;;  %v1592_v56 = vpop.f32.mrb[11].mxu0 }
 0x1d5   : > { %v1651_v40 = vadd.f32 %v2240_v63, %v3241_v55  ;;  %v2242_v54 = vadd.f32 %v1592_v56, %v1139_v31 }
 0x1d6   : > { %v1669_v13 = vmax.f32 %v1653_v43, 0.0  ;;  %v1654_v59 = vadd.f32 %v2241_v15, %v3241_v55 }
 0x1d7   : > { %v1667_v47 = vmax.f32 %v1651_v40, 0.0  ;;  %v1652_v45 = vadd.f32 %v2242_v54, %v3241_v55 }
 0x1d8   : > { %v1781_v37 = vmul.f32 %v1744_v42, %v1669_v13  ;;  %v1670_v11 = vmax.f32 %v1654_v59, 0.0 }
 0x1d9   : > { %v1779_v2 = vmul.f32 %v1734_v38, %v1667_v47  ;;  %v1668_v23 = vmax.f32 %v1652_v45, 0.0 }
 0x1da   : > { %v2142_v5 = vpack.c.bf16 %v1781_v37, %v1781_v37  ;;  %v1782_v12 = vmul.f32 %v1749_v34, %v1670_v11 }
 0x1db   : > { %v2140_v4 = vpack.c.bf16 %v1779_v2, %v1779_v2  ;;  %v1780_v20 = vmul.f32 %v1739_v8, %v1668_v23 }
 0x1dc   : > { %1862 = vst.msk [vmem:[%s2480_s11 + $0x28] sm:$0xf] %vm1851_vm8, %v2142_v5  ;;  %v2143_v32 = vpack.c.bf16 %v1782_v12, %v1782_v12 }
 0x1dd   : > { %1860 = vst.msk [vmem:[%s2480_s11 + $0x20] sm:$0xf] %vm1851_vm8, %v2140_v4  ;;  %v2141_v7 = vpack.c.bf16 %v1780_v20, %v1780_v20 }
 0x1de   : > { %1863 = vst.msk [vmem:[%s2480_s11 + $0x2c] sm:$0xf] %vm1851_vm8, %v2143_v32 }
 0x1df   : > { %1861 = vst.msk [vmem:[%s2480_s11 + $0x24] sm:$0xf] %vm1851_vm8, %v2141_v7 }
 0x1e0   : > { %v2209_v28 = vpop.f32.mrb[12].mxu1 }
 0x1e1   : > { %v2227_v60 = vpop.f32.mrb[12].mxu0  ;;  %v1152_v1 = vpop.f32.mrb[13].mxu1 }
 0x1e2   : > { %v2243_v3 = vadd.f32 %v2227_v60, %v2209_v28  ;;  %v1605_v0 = vpop.f32.mrb[13].mxu0  ;;  %v2210_v48 = vpop.f32.mrb[14].mxu1 }
 0x1e3   : > { %v2244_v22 = vadd.f32 %v1605_v0, %v1152_v1  ;;  %v2228_v35 = vpop.f32.mrb[14].mxu0  ;;  %v1155_v17 = vpop.f32.mrb[15].mxu1 }
 0x1e4   : > { %v1657_v27 = vadd.f32 %v2243_v3, %v3241_v55  ;;  %v2245_v18 = vadd.f32 %v2228_v35, %v2210_v48  ;;  %v1608_v25 = vpop.f32.mrb[15].mxu0 }
 0x1e5   : > { %v1655_v21 = vadd.f32 %v2244_v22, %v3241_v55  ;;  %v2246_v41 = vadd.f32 %v1608_v25, %v1155_v17 }
 0x1e6   : > { %v1673_v51 = vmax.f32 %v1657_v27, 0.0  ;;  %v1658_v9 = vadd.f32 %v2245_v18, %v3241_v55 }
 0x1e7   : > { %v1671_v10 = vmax.f32 %v1655_v21, 0.0  ;;  %v1656_v46 = vadd.f32 %v2246_v41, %v3241_v55 }
 0x1e8   : > { %v1785_v24 = vmul.f32 %v1764_v58, %v1673_v51  ;;  %v1674_v6 = vmax.f32 %v1658_v9, 0.0 }
 0x1e9   : > { %v1783_v33 = vmul.f32 %v1754_v62, %v1671_v10  ;;  %v1672_v14 = vmax.f32 %v1656_v46, 0.0 }
 0x1ea   : > { %v2146_v16 = vpack.c.bf16 %v1785_v24, %v1785_v24  ;;  %v1786_v30 = vmul.f32 %v1769_v36, %v1674_v6 }
 0x1eb   : > { %v2144_v52 = vpack.c.bf16 %v1783_v33, %v1783_v33  ;;  %v1784_v39 = vmul.f32 %v1759_v53, %v1672_v14 }
 0x1ec   : > { %1866 = vst.msk [vmem:[%s2480_s11 + $0x38] sm:$0xf] %vm1851_vm8, %v2146_v16  ;;  %v2147_v19 = vpack.c.bf16 %v1786_v30, %v1786_v30 }
 0x1ed   : > { %1864 = vst.msk [vmem:[%s2480_s11 + $0x30] sm:$0xf] %vm1851_vm8, %v2144_v52  ;;  %v2145_v38 = vpack.c.bf16 %v1784_v39, %v1784_v39 }
 0x1ee   : > { %1867 = vst.msk [vmem:[%s2480_s11 + $0x3c] sm:$0xf] %vm1851_vm8, %v2147_v19 }
 0x1ef   : > { %1865 = vst.msk [vmem:[%s2480_s11 + $0x34] sm:$0xf] %vm1851_vm8, %v2145_v38 }
 0x1f0 PF: > { %1870 = sbr.rel (!%p2482_p9) target bundleno = 505 (0x1f9), region = 44  ;;  %vm1871_vm9 = vcmask (%p2482_p9), 519168   ;;  %v2411_v55 = vmov (%p2482_p9), 0  }
 0x1f1   : > { %1872 = vst.msk [vmem:[%s2480_s11] sm:$0xf] (%p2482_p9), %vm1871_vm9, %v2411_v55  ;;  %1873 = vst.msk [vmem:[%s2480_s11 + $0x4] sm:$0xf] (%p2482_p9), %vm1871_vm9, %v2411_v55 }
 0x1f2   : > { %1874 = vst.msk [vmem:[%s2480_s11 + $0x8] sm:$0xf] (%p2482_p9), %vm1871_vm9, %v2411_v55  ;;  %1875 = vst.msk [vmem:[%s2480_s11 + $0xc] sm:$0xf] (%p2482_p9), %vm1871_vm9, %v2411_v55 }
 0x1f3   : > { %1876 = vst.msk [vmem:[%s2480_s11 + $0x10] sm:$0xf] (%p2482_p9), %vm1871_vm9, %v2411_v55  ;;  %1877 = vst.msk [vmem:[%s2480_s11 + $0x14] sm:$0xf] (%p2482_p9), %vm1871_vm9, %v2411_v55 }
 0x1f4   : > { %1878 = vst.msk [vmem:[%s2480_s11 + $0x18] sm:$0xf] (%p2482_p9), %vm1871_vm9, %v2411_v55  ;;  %1879 = vst.msk [vmem:[%s2480_s11 + $0x1c] sm:$0xf] (%p2482_p9), %vm1871_vm9, %v2411_v55 }
 0x1f5   : > { %1880 = vst.msk [vmem:[%s2480_s11 + $0x20] sm:$0xf] (%p2482_p9), %vm1871_vm9, %v2411_v55  ;;  %1881 = vst.msk [vmem:[%s2480_s11 + $0x24] sm:$0xf] (%p2482_p9), %vm1871_vm9, %v2411_v55 }
 0x1f6   : > { %1882 = vst.msk [vmem:[%s2480_s11 + $0x28] sm:$0xf] (%p2482_p9), %vm1871_vm9, %v2411_v55  ;;  %1883 = vst.msk [vmem:[%s2480_s11 + $0x2c] sm:$0xf] (%p2482_p9), %vm1871_vm9, %v2411_v55 }
 0x1f7   : > { %1884 = vst.msk [vmem:[%s2480_s11 + $0x30] sm:$0xf] %vm1871_vm9, %v2411_v55  ;;  %1885 = vst.msk [vmem:[%s2480_s11 + $0x34] sm:$0xf] %vm1871_vm9, %v2411_v55 }
 0x1f8   : > { %1886 = vst.msk [vmem:[%s2480_s11 + $0x38] sm:$0xf] %vm1871_vm9, %v2411_v55  ;;  %1887 = vst.msk [vmem:[%s2480_s11 + $0x3c] sm:$0xf] %vm1871_vm9, %v2411_v55 }
 0x1f9 PF: > { %s14_s19 = sadd.s32 1, %s2405_s19   ;;  %s3477_s15 = smov %s2397_s17 }
 0x1fa   : > { %p11_p2 = scmp.ge.s32.totalorder %s14_s19, 18   ;;  %s3478_s16 = smov %s2401_s18 }
 0x1fb   : > { %s3479_s17 = smov %s3482_s20  ;;  %s3480_s18 = smov %s3486_s21 }
 0x1fc   :  { %13 = sbr.rel (!%p11_p2) target bundleno = 3 (0x3), region = 82 }

// kernel: adnet_forward.17
= control target key start
LH: loop header
LB: loop body
LE: loop exit
PB: predicated region body
PF: predicated region fallthrough
CT: control target
= control target key end

     0   :  { %s2368_s15 = smov 0   ;;  %s2370_s16 = smov 0   ;;  %s3564_s0 = inlined_call_operand.vmem [shape: bf16[2,1024,64], index: 0, kind: input, shape index: {}]   ;;  %s3565_s1 = inlined_call_operand.vmem [shape: bf16[3,192,64], index: 1, kind: input, shape index: {}]   ;;  %s3566_s2 = inlined_call_operand.vmem [shape: f32[1,64], index: 2, kind: input, shape index: {}]   ;;  %s3567_s3 = inlined_call_operand.vmem [shape: f32[1024,1], index: 3, kind: input, shape index: {}]   ;;  %s3568_s4 = inlined_call_operand.vmem [shape: bf16[2,1024,64], index: 4, kind: output, shape index: {}]  }
   0x1   :  { %s2372_s17 = smov 0   ;;  %s2374_s18 = smov 0  }
   0x2   :  { %s2376_s19 = smov 0  }
   0x3 LB: > { %s23_s20 = sadd.s32 1, %s2330_s17  ;;  %s26_s21 = sadd.s32 1, %s2334_s18  ;;  %s2338_s19 = sphi %s2376_s19, %s14_s19   ;;  %s2334_s18 = sphi %s2374_s18, %s3718_s18   ;;  %s2330_s17 = sphi %s2372_s17, %s3717_s17   ;;  %s2326_s16 = sphi %s2370_s16, %s3716_s16   ;;  %s2322_s15 = sphi %s2368_s15, %s3715_s15  }
   0x4   : > { %p24_p0 = scmp.ge.s32.totalorder %s23_s20, 8  ;;  %p1910_p1 = scmp.ge.s32.totalorder %s2338_s19, 1 }
   0x5   : > { %p187_p2 = scmp.lt.s32.totalorder %s2338_s19, 17 }
   0x6   : > { %s3720_s20 = smov (%p24_p0, %s23_s20), 0  ;;  %s3722_s21 = smov (!%p24_p0, %s26_s21), %s2334_s18 }
   0x7   : > { %p188_p3 = pnand %p1910_p1, %p187_p2  ;;  %p28_p4 = scmp.ge.s32.totalorder %s3722_s21, 2 }
   0x8   : > { %p222_p5 = scmp.lt.s32.totalorder (!%p188_p3), %s2326_s16, 1  ;;  %s1913_s22 = sshll.u32 (!%p188_p3), %s2322_s15, 4 }
   0x9   : > { %s3724_s21 = smov (%p28_p4, %s3722_s21), 0  ;;  %191 = sbr.rel (%p188_p3) target bundleno = 492 (0x1ec), region = 36 }
   0xa   : > { %p228_p6 = scmp.lt.s32.totalorder (!%p188_p3), %s1913_s22, 127  ;;  %s2398_s23 = sshll.u32 (!%p188_p3), %s2322_s15, 7 }
   0xb   : > { %p245_p7 = scmp.lt.s32.totalorder (!%p188_p3), %s2398_s23, 706  ;;  %s246_s12 = sadd.s32 (!%p188_p3), 128, %s2398_s23 }
   0xc   : > { %p247_p8 = scmp.gt.s32.totalorder (!%p188_p3), %s246_s12, 210 }
   0xe   : > { %p2417_p9 = pnand (!%p188_p3), %p247_p8, %p245_p7 }
  0x10   : > { %s3726_s16 = smov (!%p222_p5, %s2326_s16), 1  ;;  %s3728_s22 = smov (!%p228_p6, %s1913_s22), 127 }
  0x11   : > { %s2118_s24 = sshll.u32 %s3726_s16, 9  ;;  %s1916_s25 = sshll.u32 %s3726_s16, 7 }
  0x12   : > { %s2403_s28 = scalar_lea.vmem %s3564_s0, %s2118_s24  ;;  %s1914_s29 = sshll.u32 %s3728_s22, 3 }
  0x13   : > { %s2408_s6 = scalar_lea.vmem %s3567_s3, %s1914_s29  ;;  %s239_s7 = sadd.s32 %s1916_s25, %s3728_s22 }
  0x14   : > { %s1917_s8 = sshll.u32 %s239_s7, 2  ;;  %251 = sbr.rel (%p2417_p9) target bundleno = 483 (0x1e3), region = 40 }
  0x15   : > { %s2414_s11 = scalar_lea.vmem %s3568_s4, %s1917_s8 }
  0x1b   : > { %s437_s14 = sadd.s32 4294967280, %s2398_s23  ;;  %v3569_v0 = vmov 0   ;;  %v2237_v1 = vld [vmem:[%s3565_s1 + $0x60] sm:$0xff]   ;;  %s2433_s25 = sadd.s32 4294967216, %s2398_s23  ;;  %v2240_v3 = vld [vmem:[%s3565_s1 + $0x68] sm:$0xff]   ;;  %v2242_v5 = vld [vmem:[%s3565_s1 + $0x70] sm:$0xff]  }
  0x1c   : > { %p438_p10 = scmp.gt.s32.totalorder %s437_s14, 0  ;;  %p1943_p11 = scmp.lt.s32.totalorder %s437_s14, 864  ;;  %768 = vmatprep.subr.bf16.mxu0 %v3569_v0  ;;  %1012 = vmatprep.subr.bf16.mxu1 %v3569_v0  ;;  %v2238_v2 = vld [vmem:[%s3565_s1] sm:$0xff]   ;;  %v2241_v4 = vld [vmem:[%s3565_s1 + $0x8] sm:$0xff]   ;;  %v2243_v6 = vld [vmem:[%s3565_s1 + $0x10] sm:$0xff]   ;;  %vm330_vm0 = vcmask 1042432  }
  0x1d   : > { %2208 = vset.pattern.permute.xlu1 %v3569_v0  ;;  %2209 = vset.pattern.permute.xlu0 %v3569_v0  ;;  %p253_p12 = scmp.gt.s32.totalorder %s2433_s25, 0  ;;  %p1919_p13 = scmp.lt.s32.totalorder %s2433_s25, 864  ;;  %v2244_v14 = vld [vmem:[%s3565_s1 + $0x78] sm:$0xff]   ;;  %v2246_v26 = vld [vmem:[%s3565_s1 + $0x80] sm:$0xff]   ;;  %v2248_v49 = vld [vmem:[%s3565_s1 + $0x88] sm:$0xff]   ;;  %vm385_vm1 = vcmask 523264  }
  0x1e   : > { %s439_s26 = scalar_select %p438_p10, %s437_s14, 0  ;;  %769 = vmatpush1.bf16.msra.mxu0 %v2237_v1  ;;  %1013 = vmatpush1.bf16.msra.mxu1 %v2238_v2  ;;  %v2245_v19 = vld [vmem:[%s3565_s1 + $0x18] sm:$0xff]   ;;  %v2247_v30 = vld [vmem:[%s3565_s1 + $0x20] sm:$0xff]   ;;  %vm367_vm2 = vcmask 1041408   ;;  %vm629_vm3 = vcmask 1044480   ;;  %vm1767_vm4 = vcmask 519168  }
  0x1f   : > { %770 = vmatprep.subr.bf16.mxu0 %v3569_v0  ;;  %1014 = vmatprep.subr.bf16.mxu1 %v3569_v0  ;;  %s254_s7 = scalar_select %p253_p12, %s2433_s25, 0 }
  0x20   : > { %s3730_s26 = smov (!%p1943_p11, %s439_s26), 864  ;;  %s2461_s22 = sadd.s32 48, %s2398_s23 }
  0x21   : > { %s442_s8 = sshra.s32 %s3730_s26, 3  ;;  %s3732_s7 = smov (!%p1919_p13, %s254_s7), 864 }
  0x22   : > { %771 = vmatpush1.bf16.msra.mxu0 %v2240_v3  ;;  %1015 = vmatpush1.bf16.msra.mxu1 %v2241_v4  ;;  %s1948_s14 = sshll.u32 %s442_s8, 2  ;;  %s257_s27 = sshra.s32 %s3732_s7, 3 }
  0x23   : > { %772 = vmatprep.subr.bf16.mxu0 %v3569_v0  ;;  %1016 = vmatprep.subr.bf16.mxu1 %v3569_v0  ;;  %s2458_s16 = scalar_lea.vmem %s2403_s28, %s1948_s14  ;;  %s1924_s29 = sshll.u32 %s257_s27, 2 }
  0x24   : > { %v2464_v7 = vld [vmem:[%s2458_s16 + $0x4] sm:$0xf]  ;;  %v2467_v8 = vld [vmem:[%s2458_s16 + $0x8] sm:$0xf]  ;;  %v2470_v9 = vld [vmem:[%s2458_s16 + $0xc] sm:$0xf]  ;;  %s2526_s8 = scalar_lea.vmem %s2403_s28, %s1924_s29 }
  0x25   : > { %v2473_v10 = vld [vmem:[%s2458_s16 + $0x10] sm:$0xf]  ;;  %v2476_v11 = vld [vmem:[%s2458_s16 + $0x14] sm:$0xf]  ;;  %v2482_v13 = vcombine.low %v2467_v8, %v2470_v9  ;;  %v2496_v17 = vld [vmem:[%s2458_s16 + $0x18] sm:$0xf] }
  0x26   : > { %773 = vmatpush1.bf16.msra.mxu0 %v2242_v5  ;;  %1017 = vmatpush1.bf16.msra.mxu1 %v2243_v6  ;;  %v2493_v16 = vcombine.low %v2473_v10, %v2476_v11  ;;  %v2499_v18 = vld [vmem:[%s2458_s16 + $0x1c] sm:$0xf]  ;;  %v2512_v22 = vld [vmem:[%s2458_s16 + $0x20] sm:$0xf]  ;;  %v2515_v23 = vld [vmem:[%s2458_s16 + $0x24] sm:$0xf] }
  0x27   : > { %3598 = vst [vmem:[#allocation2_spill] sm:$0xff] %v2499_v18  ;;  %774 = vmatprep.subr.bf16.mxu0 %v3569_v0  ;;  %1018 = vmatprep.subr.bf16.mxu1 %v3569_v0  ;;  %v515_v20 = vrot.slane %v2482_v13, 5  ;;  %v2509_v21 = vcombine.low %v2496_v17, %v2499_v18  ;;  %3599 = vst [vmem:[#allocation3_spill] sm:$0xff] %v2512_v22  ;;  %p1110_p0 = scmp.gt.s32.totalorder %s2461_s22, 0  ;;  %s2341_s7 = smov 64   ;;  %v2550_v35 = vcombine.low %v2512_v22, %v2515_v23 }
  0x28   : > { %3600 = vst [vmem:[#allocation4_spill] sm:$0xff] %v2515_v23  ;;  %v516_v25 = vrot.slane %v2493_v16, 5  ;;  %v2530_v28 = vld [vmem:[%s2458_s16 + $0x28] sm:$0xf]  ;;  %v2533_v29 = vld [vmem:[%s2458_s16 + $0x2c] sm:$0xf] }
  0x29   : > { %530 = vrot.lane.b32.xlu1 %v515_v20, %s2341_s7  ;;  %v518_v27 = vrot.slane %v2509_v21, 5  ;;  %3601 = vst [vmem:[#allocation5_spill] sm:$0xff] %v2530_v28  ;;  %3602 = vst [vmem:[#allocation6_spill] sm:$0xff] %v2533_v29  ;;  %v2539_v31 = vld [vmem:[%s2526_s8 + $0x8] sm:$0xf]  ;;  %p2031_p1 = scmp.lt.s32.totalorder %s2461_s22, 864  ;;  %v2604_v53 = vcombine.low %v2530_v28, %v2533_v29 }
  0x2a   : > { %775 = vmatpush1.bf16.msra.mxu0 %v2244_v14  ;;  %v2542_v32 = vld [vmem:[%s2526_s8 + $0xc] sm:$0xf]  ;;  %v2545_v33 = vld [vmem:[%s2526_s8 + $0x10] sm:$0xf]  ;;  %v517_v34 = vsel %vm330_vm0, %v515_v20, %v516_v25  ;;  %1019 = vmatpush1.bf16.msra.mxu1 %v2245_v19  ;;  %v2554_v36 = vld [vmem:[%s2526_s8 + $0x14] sm:$0xf] }
  0x2b   : > { %3603 = vst [vmem:[#allocation7_spill] sm:$0xff] %v2545_v33  ;;  %776 = vmatprep.subr.bf16.mxu0 %v3569_v0  ;;  %3604 = vst [vmem:[#allocation8_spill] sm:$0xff] %v2554_v36  ;;  %v2560_v38 = vcombine.low %v2539_v31, %v2542_v32  ;;  %v2563_v39 = vld [vmem:[%s2526_s8 + $0x4] sm:$0xf]  ;;  %v2566_v40 = vld [vmem:[%s2526_s8 + $0x18] sm:$0xf]  ;;  %1020 = vmatprep.subr.bf16.mxu1 %v3569_v0  ;;  %v2573_v42 = vcombine.low %v2545_v33, %v2554_v36 }
  0x2c   : > { %3605 = vst [vmem:[#allocation9_spill] sm:$0xff] %v2566_v40  ;;  %v2578_v44 = vld [vmem:[%s2526_s8 + $0x1c] sm:$0xf]  ;;  %v2581_v45 = vld [vmem:[%s2526_s8 + $0x20] sm:$0xf]  ;;  %s1111_s12 = scalar_select %p1110_p0, %s2461_s22, 0  ;;  %v519_v51 = vsel %vm330_vm0, %v516_v25, %v518_v27 }
  0x2d   : > { %3606 = vst [vmem:[#allocation10_spill] sm:$0xff] %v2578_v44  ;;  %3607 = vst [vmem:[#allocation11_spill] sm:$0xff] %v2581_v45  ;;  %v331_v46 = vrot.slane %v2560_v38, 5  ;;  %532 = vrot.lane.b32.xlu1 %v517_v34, %s2341_s7  ;;  %v2588_v47 = vcombine.low %v2566_v40, %v2578_v44  ;;  %v2591_v48 = vld [vmem:[%s2526_s8 + $0x24] sm:$0xf]  ;;  %v332_v50 = vrot.slane %v2573_v42, 5 }
  0x2e   : > { %3608 = vst [vmem:[#allocation12_spill] sm:$0xff] %v2591_v48  ;;  %777 = vmatpush1.bf16.msra.mxu0 %v2246_v26  ;;  %v520_v52 = vrot.slane %v2550_v35, 5  ;;  %1021 = vmatpush1.bf16.msra.mxu1 %v2247_v30  ;;  %v2610_v54 = vcombine.low %v2581_v45, %v2591_v48  ;;  %v2613_v55 = vld [vmem:[%s2458_s16 + $0x30] sm:$0xf]  ;;  %v2616_v56 = vld [vmem:[%s2458_s16 + $0x34] sm:$0xf] }
  0x2f   : > { %778 = vmatprep.subr.bf16.mxu0 %v3569_v0  ;;  %346 = vrot.lane.b32.xlu0 %v331_v46, %s2341_s7  ;;  %3609 = vst [vmem:[#allocation13_spill] sm:$0xff] %v2613_v55  ;;  %3610 = vst [vmem:[#allocation14_spill] sm:$0xff] %v2616_v56  ;;  %v333_v59 = vsel %vm330_vm0, %v331_v46, %v332_v50  ;;  %v334_v60 = vrot.slane %v2588_v47, 5  ;;  %v2626_v62 = vld [vmem:[%s2526_s8 + $0x28] sm:$0xf]  ;;  %s3734_s12 = smov (!%p2031_p1, %s1111_s12), 864  ;;  %v2638_v4 = vcombine.low %v2613_v55, %v2616_v56 }
  0x30   : > { %1022 = vmatprep.subr.bf16.mxu1 %v3569_v0  ;;  %3611 = vst [vmem:[#allocation15_spill] sm:$0xff] %v2626_v62  ;;  %v2629_v63 = vld [vmem:[%s2526_s8 + $0x2c] sm:$0xf]  ;;  %v521_v1 = vsel %vm330_vm0, %v518_v27, %v520_v52  ;;  %v522_v3 = vrot.slane %v2604_v53, 5  ;;  %v2641_v5 = vld [vmem:[%s2458_s16 + $0x38] sm:$0xf] }
  0x31   : > { %534 = vrot.lane.b32.xlu1 %v519_v51, %s2341_s7  ;;  %3612 = vst [vmem:[#allocation16_spill] sm:$0xff] %v2629_v63  ;;  %3613 = vst [vmem:[#allocation17_spill] sm:$0xff] %v2641_v5  ;;  %v2644_v6 = vld [vmem:[%s2458_s16 + $0x3c] sm:$0xf]  ;;  %v336_v25 = vrot.slane %v2610_v54, 5  ;;  %v335_v27 = vsel %vm330_vm0, %v332_v50, %v334_v60  ;;  %v2658_v30 = vcombine.low %v2626_v62, %v2629_v63  ;;  %s1114_s22 = sshra.s32 %s3734_s12, 3 }
  0x32   : > { %779 = vmatpush1.bf16.msra.mxu0 %v2248_v49  ;;  %v2653_v26 = vld [vmem:[%s2526_s8 + $0x30] sm:$0xf]  ;;  %v2661_v34 = vld [vmem:[%s2526_s8 + $0x34] sm:$0xf]  ;;  %v2664_v46 = vld [vmem:[%s2526_s8 + $0x38] sm:$0xf]  ;;  %v2672_v51 = vcombine.low %v2641_v5, %v2644_v6 }
  0x33   : > { %780 = vmatprep.subr.bf16.mxu0 %v3569_v0  ;;  %348 = vrot.lane.b32.xlu0 %v333_v59, %s2341_s7  ;;  %3614 = vst [vmem:[#allocation18_spill] sm:$0xff] %v2653_v26  ;;  %3615 = vst [vmem:[#allocation19_spill] sm:$0xff] %v2661_v34  ;;  %v2667_v49 = vld [vmem:[%s2526_s8 + $0x3c] sm:$0xf]  ;;  %v2249_v50 = vld [vmem:[%s3565_s1 + $0x28] sm:$0xff]   ;;  %v523_v59 = vsel %vm330_vm0, %v520_v52, %v522_v3  ;;  %v524_v37 = vrot.slane %v2638_v4, 5  ;;  %v2688_v43 = vcombine.low %v2653_v26, %v2661_v34 }
  0x34   : > { %3616 = vst [vmem:[#allocation20_spill] sm:$0xff] %v2664_v46  ;;  %3617 = vst [vmem:[#allocation21_spill] sm:$0xff] %v2667_v49  ;;  %s2036_s25 = sshll.u32 %s1114_s22, 2  ;;  %v2691_v15 = vld [vmem:[%s2458_s16 + $0x40] sm:$0xf]  ;;  %1023 = vmatpush1.bf16.msra.mxu1 %v2249_v50  ;;  %v337_v12 = vsel %vm330_vm0, %v334_v60, %v336_v25  ;;  %v338_v41 = vrot.slane %v2658_v30, 5 }
  0x35   : > { %536 = vrot.lane.b32.xlu1 %v521_v1, %s2341_s7  ;;  %v2250_v1 = vld [vmem:[%s3565_s1 + $0x90] sm:$0xff]   ;;  %3618 = vst [vmem:[#allocation22_spill] sm:$0xff] %v2691_v15  ;;  %v2694_v52 = vld [vmem:[%s2458_s16 + $0x44] sm:$0xf]  ;;  %s2697_s29 = scalar_lea.vmem %s2403_s28, %s2036_s25  ;;  %v2702_v2 = vld [vmem:[%s2526_s8 + $0x40] sm:$0xf]  ;;  %1024 = vmatprep.subr.bf16.mxu1 %v3569_v0 }
  0x36   : > { %3619 = vst [vmem:[#allocation23_spill] sm:$0xff] %v2694_v52  ;;  %3620 = vst [vmem:[#allocation24_spill] sm:$0xff] %v2702_v2  ;;  %v2705_v24 = vld [vmem:[%s2526_s8 + $0x44] sm:$0xf]  ;;  %781 = vmatpush1.bf16.msra.mxu0 %v2250_v1  ;;  %v526_v61 = vrot.slane %v2672_v51, 5  ;;  %v2718_v1 = vcombine.low %v2664_v46, %v2667_v49  ;;  %v2724_v50 = vcombine.low %v2691_v15, %v2694_v52  ;;  %v2251_v20 = vld [vmem:[%s3565_s1 + $0x30] sm:$0xff]  }
  0x37   : > { %350 = vrot.lane.b32.xlu0 %v335_v27, %s2341_s7  ;;  %3621 = vst [vmem:[#allocation25_spill] sm:$0xff] %v2705_v24  ;;  %782 = vmatprep.subr.bf16.mxu0 %v3569_v0  ;;  %v525_v27 = vsel %vm330_vm0, %v522_v3, %v524_v37  ;;  %v2727_v14 = vld [vmem:[%s2697_s29 + $0x8] sm:$0xf]  ;;  %v2736_v60 = vcombine.low %v2702_v2, %v2705_v24  ;;  %v2739_v19 = vld [vmem:[%s2697_s29 + $0xc] sm:$0xf]  ;;  %v3624_v55 = vmov 0  }
  0x38   : > { %3622 = vst [vmem:[#allocation26_spill] sm:$0xff] %v2727_v14  ;;  %v2742_v3 = vld [vmem:[%s2697_s29 + $0x10] sm:$0xf]  ;;  %v2745_v57 = vld [vmem:[%s2697_s29 + $0x14] sm:$0xf]  ;;  %v527_v24 = vsel %vm330_vm0, %v524_v37, %v526_v61  ;;  %v342_v58 = vrot.slane %v2718_v1, 5  ;;  %v2762_v63 = vcombine.low %v2727_v14, %v2739_v19  ;;  %1025 = vmatpush1.bf16.msra.mxu1 %v2251_v20 }
  0x39   : > { %538 = vrot.lane.b32.xlu1 %v523_v59, %s2341_s7  ;;  %v339_v59 = vsel %vm330_vm0, %v336_v25, %v338_v41  ;;  %v2771_v52 = vld [vmem:[%s2697_s29 + $0x28] sm:$0xf]  ;;  %v2774_v0 = vld [vmem:[%s2697_s29 + $0x2c] sm:$0xf]  ;;  %v2777_v26 = vld [vmem:[%s2697_s29 + $0x30] sm:$0xf]  ;;  %1026 = vmatprep.subr.bf16.mxu1 %v3624_v55 }
  0x3a   : > { %v2785_v62 = vld [vmem:[%s2697_s29 + $0x34] sm:$0xf]  ;;  %v3623_v37 = vrot.slane %v2724_v50, 5  ;;  %v2802_v20 = vld [vmem:[%s2697_s29 + $0x20] sm:$0xf]  ;;  %v2815_v29 = vcombine.low %v2771_v52, %v2774_v0  ;;  %v3627_v14 = vrot.slane %v2482_v13, 6 }
  0x3b   : > { %352 = vrot.lane.b32.xlu0 %v337_v12, %s2341_s7  ;;  %v340_v12 = vrot.slane %v2688_v43, 5  ;;  %v2805_v45 = vld [vmem:[%s2697_s29 + $0x24] sm:$0xf]  ;;  %v3628_v34 = vrot.slane %v2573_v42, 6  ;;  %v3629_v5 = vrot.slane %v2560_v38, 6  ;;  %v3630_v44 = vrot.slane %v2509_v21, 6 }
  0x3c   : > { %v529_v48 = vsel %vm330_vm0, %v526_v61, %v3623_v37  ;;  %v3625_v37 = vrot.slane %v2736_v60, 5  ;;  %v2253_v61 = vld [vmem:[%s3565_s1 + $0x38] sm:$0xff]   ;;  %v3633_v40 = vrot.slane %v2588_v47, 6  ;;  %v3652_v18 = vrot.slane %v2672_v51, 6 }
  0x3d   : > { %540 = vrot.lane.b32.xlu1 %v525_v27, %s2341_s7  ;;  %v2766_v27 = vcombine.low %v2742_v3, %v2745_v57  ;;  %v341_v25 = vsel %vm330_vm0, %v338_v41, %v340_v12  ;;  %v2825_v41 = vld [vmem:[%s2697_s29 + $0x3c] sm:$0xf]  ;;  %v370_v56 = vsel %vm367_vm2, %v3629_v5, %v3628_v34  ;;  %1027 = vmatpush1.bf16.msra.mxu1 %v2253_v61  ;;  %v3637_v61 = vrot.slane %v2610_v54, 6  ;;  %v2906_v54 = vld [vmem:[%s2697_s29 + $0x40] sm:$0xf] }
  0x3e   : > { %v3634_v5 = vmov %v3628_v34  ;;  %v3636_v36 = vmov %v3630_v44  ;;  %1028 = vmatprep.subr.bf16.mxu1 %v3624_v55  ;;  %v3653_v33 = vrot.slane %v2638_v4, 6  ;;  %v3659_v49 = vrot.slane %v2762_v63, 5 }
  0x3f   : > { %354 = vrot.lane.b32.xlu0 %v339_v59, %s2341_s7  ;;  %v2252_v59 = vld [vmem:[%s3565_s1 + $0x98] sm:$0xff]   ;;  %v372_v34 = vsel %vm367_vm2, %v3634_v5, %v3633_v40  ;;  %v3642_v5 = vmov %v3637_v61 }
  0x40   : > { %783 = vmatpush1.bf16.msra.mxu0 %v2252_v59  ;;  %v345_v59 = vsel %vm330_vm0, %v342_v58, %v3625_v37  ;;  %v3626_v37 = vrot.slane %v2493_v16, 6  ;;  %v3635_v16 = vrot.slane %v2550_v35, 6  ;;  %v3646_v35 = vrot.slane %v2762_v63, 5 }
  0x41   : > { %542 = vrot.lane.b32.xlu1 %v527_v24, %s2341_s7  ;;  %v343_v24 = vsel %vm330_vm0, %v340_v12, %v342_v58  ;;  %784 = vmatprep.subr.bf16.mxu0 %v3624_v55  ;;  %v2819_v12 = vcombine.low %v2777_v26, %v2785_v62  ;;  %v2254_v58 = vld [vmem:[%s3565_s1 + $0xa0] sm:$0xff]  }
  0x42   : > { %v553_v46 = vsel %vm367_vm2, %v3627_v14, %v3626_v37  ;;  %v2255_v14 = vld [vmem:[%s3565_s1 + $0x40] sm:$0xff]  }
  0x43   : > { %356 = vrot.lane.b32.xlu0 %v341_v25, %s2341_s7  ;;  %v2822_v25 = vld [vmem:[%s2697_s29 + $0x38] sm:$0xf]  ;;  %v634_v42 = vrot.slane %v553_v46, 3  ;;  %1029 = vmatpush1.bf16.msra.mxu1 %v2255_v14 }
  0x44   : > { %785 = vmatpush1.bf16.msra.mxu0 %v2254_v58  ;;  %v1196_v58 = vrot.slane %v2819_v12, 5  ;;  %v2929_v22 = vcombine.low %v2822_v25, %v2825_v41  ;;  %v2951_v14 = vld [vmem:[%s2697_s29 + $0x18] sm:$0xf]  ;;  %1030 = vmatprep.subr.bf16.mxu1 %v3624_v55 }
  0x45   : > { %544 = vrot.lane.b32.xlu1 %v529_v48, %s2341_s7  ;;  %v3631_v48 = vmov %v3626_v37  ;;  %v3632_v37 = vrot.slane %v2482_v13, 6  ;;  %786 = vmatprep.subr.bf16.mxu0 %v3624_v55 }
  0x46   : > { %v555_v28 = vsel %vm367_vm2, %v3631_v48, %v3630_v44  ;;  %v2864_v44 = vsel %vm367_vm2, %v3636_v36, %v3635_v16  ;;  %v3638_v48 = vmov %v3633_v40  ;;  %v3639_v40 = vrot.slane %v2604_v53, 6  ;;  %v2256_v53 = vld [vmem:[%s3565_s1 + $0xa8] sm:$0xff]  }
  0x47   : > { %v633_v23 = vrot.slane %v3632_v37, 3  ;;  %v2871_v13 = vsel %vm367_vm2, %v3638_v48, %v3637_v61  ;;  %358 = vrot.lane.b32.xlu0 %v343_v24, %s2341_s7  ;;  %v3640_v37 = vmov %v3635_v16  ;;  %v3641_v36 = vrot.slane %v2658_v30, 6 }
  0x48   : > { %v2880_v21 = vsel %vm367_vm2, %v3640_v37, %v3639_v40  ;;  %v3643_v16 = vrot.slane %v2638_v4, 6  ;;  %v3644_v24 = vmov %v3639_v40  ;;  %v3645_v61 = vrot.slane %v2766_v27, 5  ;;  %v2909_v37 = vld [vmem:[%s2697_s29 + $0x44] sm:$0xf]  ;;  %787 = vmatpush1.bf16.msra.mxu0 %v2256_v53 }
  0x49   : > { %v2887_v47 = vsel %vm367_vm2, %v3642_v5, %v3641_v36  ;;  %v2903_v40 = vcombine.low %v2802_v20, %v2805_v45  ;;  %3647 = vst [vmem:[#allocation27_spill] sm:$0xff] %v2909_v37  ;;  %v3648_v36 = vrot.slane %v2560_v38, 6  ;;  %v635_v38 = vsel %vm629_vm3, %v633_v23, %v634_v42  ;;  %788 = vmatprep.subr.bf16.mxu0 %v3624_v55 }
  0x4a   : > { %v2894_v46 = vsel %vm367_vm2, %v3644_v24, %v3643_v16  ;;  %v1189_v48 = vsel %vm330_vm0, %v3646_v35, %v3645_v61  ;;  %v3649_v16 = vrot.slane %v2688_v43, 6  ;;  %v3650_v24 = vrot.slane %v2658_v30, 6  ;;  %2003 = vmatprep.mubr.msk.bf16.mxu0 %vm385_vm1, %v635_v38 }
  0x4b   : > { %v877_v5 = vrot.slane %v3648_v36, 3  ;;  %v3651_v35 = vrot.slane %v2724_v50, 5  ;;  %v878_v30 = vrot.slane %v370_v56, 3  ;;  %v2257_v36 = vld [vmem:[%s3565_s1 + $0x48] sm:$0xff]   ;;  %v2946_v23 = vsel %vm367_vm2, %v3653_v33, %v3652_v18  ;;  %360 = vrot.lane.b32.xlu0 %v345_v59, %s2341_s7  ;;  %v2258_v33 = vld [vmem:[%s3565_s1 + $0xb0] sm:$0xff]  }
  0x4c   : > { %v2921_v61 = vsel %vm367_vm2, %v3650_v24, %v3649_v16  ;;  %v638_v16 = vrot.slane %v555_v28, 3  ;;  %v1194_v56 = vrot.slane %v2815_v29, 5  ;;  %v2954_v28 = vld [vmem:[%s2697_s29 + $0x1c] sm:$0xf]  ;;  %v3654_v24 = vrot.slane %v2718_v1, 6  ;;  %1031 = vmatpush1.bf16.msra.mxu1 %v2257_v36  ;;  %789 = vmatpush1.bf16.msra.mxu0 %v2258_v33 }
  0x4d   : > { %546 = vrot.lane.b32.xlu1 %v3651_v35, %s2341_s7  ;;  %v879_v38 = vsel %vm629_vm3, %v877_v5, %v878_v30  ;;  %v882_v35 = vrot.slane %v372_v34, 3  ;;  %v3655_v4 = vrot.slane %v2688_v43, 6  ;;  %v642_v2 = vrot.slane %v2864_v44, 3  ;;  %v2259_v44 = vld [vmem:[%s3565_s1 + $0x50] sm:$0xff]   ;;  %1032 = vmatprep.subr.bf16.mxu1 %v3624_v55 }
  0x4e   : > { %2023 = vmatprep.mubr.msk.bf16.mxu1 %vm385_vm1, %v879_v38  ;;  %v2968_v59 = vsel %vm629_vm3, %v634_v42, %v638_v16  ;;  %v1198_v34 = vrot.slane %v2929_v22, 5  ;;  %v2975_v43 = vcombine.low %v2906_v54, %v2909_v37  ;;  %v886_v5 = vrot.slane %v2871_v13, 3  ;;  %790 = vmatprep.subr.bf16.mxu0 %v3624_v55 }
  0x4f   : > { %v380_v18 = vsel %vm367_vm2, %v3655_v4, %v3654_v24  ;;  %v2979_v53 = vsel %vm629_vm3, %v878_v30, %v882_v35  ;;  %v1197_v42 = vsel %vm330_vm0, %v1194_v56, %v1196_v58  ;;  %v646_v24 = vrot.slane %v2880_v21, 3  ;;  %v2260_v21 = vld [vmem:[%s3565_s1 + $0xb8] sm:$0xff]  }
  0x50   : > { %v3656_v38 = vrot.slane %v2736_v60, 5  ;;  %v1192_v30 = vrot.slane %v2903_v40, 5  ;;  %v2996_v13 = vsel %vm629_vm3, %v882_v35, %v886_v5  ;;  %v890_v36 = vrot.slane %v2887_v47, 3  ;;  %1033 = vmatpush1.bf16.msra.mxu1 %v2259_v44  ;;  %791 = vmatpush1.bf16.msra.mxu0 %v2260_v21 }
  0x51   : > { %1204 = vrot.lane.b32.xlu1 %v1189_v48, %s2341_s7  ;;  %v2987_v48 = vsel %vm629_vm3, %v638_v16, %v642_v2  ;;  %v3001_v4 = vcombine.low %v2951_v14, %v2954_v28  ;;  %v3007_v16 = vsel %vm629_vm3, %v642_v2, %v646_v24  ;;  %v1200_v35 = vrot.slane %v2975_v43, 5  ;;  %v2261_v2 = vld [vmem:[%s3565_s1 + $0x58] sm:$0xff]   ;;  %1034 = vmatprep.subr.bf16.mxu1 %v3624_v55 }
  0x52   : > { %362 = vrot.lane.b32.xlu0 %v3656_v38, %s2341_s7  ;;  %v650_v38 = vrot.slane %v2894_v46, 3  ;;  %v3014_v47 = vsel %vm629_vm3, %v886_v5, %v890_v36  ;;  %v894_v33 = vrot.slane %v2921_v61, 3  ;;  %v1199_v37 = vsel %vm330_vm0, %v1196_v58, %v1198_v34  ;;  %1439 = vmatprep.subr.bf16.mxu0 %v3624_v55 }
  0x53   : > { %3657 = vst [vmem:[#allocation28_spill] sm:$0xff] %v3014_v47  ;;  %v898_v58 = vrot.slane %v380_v18, 3  ;;  %v3660_v5 = vrot.slane %v2724_v50, 6  ;;  %v3661_v44 = vrot.slane %v2672_v51, 6  ;;  %v1190_v15 = vrot.slane %v3001_v4, 5 }
  0x54   : > { %v3022_v46 = vsel %vm629_vm3, %v646_v24, %v650_v38  ;;  %v3030_v61 = vsel %vm629_vm3, %v890_v36, %v894_v33  ;;  %v3662_v24 = vrot.slane %v2736_v60, 6  ;;  %1035 = vmatpush1.bf16.msra.mxu1 %v2261_v2  ;;  %v1223_v2 = vrot.slane %v2762_v63, 6 }
  0x55   : > { %1212 = vrot.lane.b32.xlu1 %v1197_v42, %s2341_s7  ;;  %3658 = vst [vmem:[#allocation29_spill] sm:$0xff] %v3022_v46  ;;  %v654_v42 = vrot.slane %v2946_v23, 3  ;;  %v565_v47 = vsel %vm367_vm2, %v3661_v44, %v3660_v5  ;;  %v3663_v23 = vrot.slane %v2718_v1, 6  ;;  %v3050_v51 = vsel %vm629_vm3, %v894_v33, %v898_v58  ;;  %2141 = vmatprep.subr.bf16.mxu1 %v3624_v55  ;;  %v2293_v33 = vld [vmem:[%s2526_s8 + $0x48] ss:$0 sps:$4 sm:$0xff]  }
  0x56   : > { %1202 = vrot.lane.b32.xlu0 %v3659_v49, %s2341_s7  ;;  %v1195_v49 = vsel %vm330_vm0, %v1192_v30, %v1194_v56  ;;  %v658_v36 = vrot.slane %v565_v47, 3  ;;  %v1201_v5 = vsel %vm330_vm0, %v1198_v34, %v1200_v35  ;;  %v2290_v47 = vld [vmem:[%s2458_s16 + $0x48] ss:$0 sps:$4 sm:$0xff]   ;;  %v383_v44 = vrot.slane %v2293_v33, 6 }
  0x57   : > { %v382_v46 = vsel %vm367_vm2, %v3663_v23, %v3662_v24  ;;  %v3045_v18 = vsel %vm629_vm3, %v650_v38, %v654_v42  ;;  %v1193_v24 = vsel %vm330_vm0, %v1190_v15, %v1192_v30  ;;  %v3665_v23 = vrot.slane %v2724_v50, 6 }
  0x58   : > { %v902_v1 = vrot.slane %v382_v46, 3  ;;  %v3054_v56 = vsel %vm629_vm3, %v654_v42, %v658_v36  ;;  %v1224_v46 = vrot.slane %v2766_v27, 6  ;;  %v2043_v63 = vcombine.low %v2785_v62, %v2822_v25 }
  0x59   : > { %1214 = vrot.lane.b32.xlu1 %v1199_v37, %s2341_s7  ;;  %v3664_v37 = vrot.slane %v2766_v27, 5  ;;  %v2040_v27 = vcombine.low %v2954_v28, %v2802_v20  ;;  %v1304_v30 = vrot.slane %v1223_v2, 3 }
  0x5a   : > { %1210 = vrot.lane.b32.xlu0 %v1195_v49, %s2341_s7  ;;  %v3059_v21 = vsel %vm629_vm3, %v898_v58, %v902_v1  ;;  %v566_v58 = vrot.slane %v2290_v47, 6  ;;  %v1230_v47 = vrot.slane %v2815_v29, 6 }
  0x5b   : > { %v1191_v38 = vsel %vm330_vm0, %v3664_v37, %v1190_v15  ;;  %v1232_v15 = vrot.slane %v2819_v12, 6 }
  0x5c   : > { %v567_v49 = vsel %vm367_vm2, %v3665_v23, %v566_v58  ;;  %v1234_v58 = vrot.slane %v2929_v22, 6  ;;  %v1236_v22 = vrot.slane %v2975_v43, 6 }
  0x5d   : > { %1216 = vrot.lane.b32.xlu1 %v1201_v5, %s2341_s7  ;;  %v3666_v5 = vrot.slane %v2736_v60, 6  ;;  %v662_v34 = vrot.slane %v567_v49, 3 }
  0x5e   : > { %1206 = vrot.lane.b32.xlu0 %v1191_v38, %s2341_s7  ;;  %v1228_v38 = vrot.slane %v2903_v40, 6  ;;  %v1225_v40 = vsel %vm367_vm2, %v1223_v2, %v1224_v46 }
  0x5f   : > { %v384_v37 = vsel %vm367_vm2, %v3666_v5, %v383_v44  ;;  %v3090_v50 = vsel %vm629_vm3, %v658_v36, %v662_v34  ;;  %v1305_v29 = vrot.slane %v1225_v40, 3  ;;  %v1233_v36 = vsel %vm367_vm2, %v1230_v47, %v1232_v15 }
  0x60   : > { %v906_v42 = vrot.slane %v384_v37, 3  ;;  %v1231_v12 = vsel %vm367_vm2, %v1228_v38, %v1230_v47  ;;  %v1321_v34 = vrot.slane %v1233_v36, 3  ;;  %v1237_v47 = vsel %vm367_vm2, %v1234_v58, %v1236_v22 }
  0x61   : > { %v1317_v33 = vrot.slane %v1231_v12, 3 }
  0x62   : > { %1208 = vrot.lane.b32.xlu0 %v1193_v24, %s2341_s7  ;;  %v3093_v60 = vsel %vm629_vm3, %v902_v1, %v906_v42  ;;  %v3104_v1 = vsel %vm629_vm3, %v1304_v30, %v1305_v29  ;;  %v1226_v42 = vrot.slane %v3001_v4, 6  ;;  %v1235_v24 = vsel %vm367_vm2, %v1232_v15, %v1234_v58  ;;  %v1592_v58 = vld [vmem:[%s2408_s6 + $0x8] sm:$0xff] }
  0x63   : > { %v3109_v44 = vsel %vm629_vm3, %v1317_v33, %v1321_v34  ;;  %v1325_v49 = vrot.slane %v1235_v24, 3  ;;  %v1329_v15 = vrot.slane %v1237_v47, 3  ;;  %v1595_v24 = vld [vmem:[%s2408_s6 + $0x20] sm:$0xff]  ;;  %v1601_v47 = vld [vmem:[%s2408_s6 + $0x50] sm:$0xff] }
  0x64   : > { %v1227_v2 = vsel %vm367_vm2, %v1224_v46, %v1226_v42  ;;  %v1229_v37 = vsel %vm367_vm2, %v1226_v42, %v1228_v38  ;;  %v1591_v42 = vld [vmem:[%s2408_s6] sm:$0xff] }
  0x65   : > { %v1309_v23 = vrot.slane %v1227_v2, 3  ;;  %v3119_v4 = vsel %vm629_vm3, %v1321_v34, %v1325_v49  ;;  %v1313_v46 = vrot.slane %v1229_v37, 3  ;;  %v3128_v30 = vsel %vm629_vm3, %v1325_v49, %v1329_v15  ;;  %1609 = vperm.xlu1 %2208, %v1591_v42   ;;  %v1593_v2 = vld [vmem:[%s2408_s6 + $0x10] sm:$0xff]  ;;  %v1596_v49 = vld [vmem:[%s2408_s6 + $0x28] sm:$0xff]  ;;  %v1598_v37 = vld [vmem:[%s2408_s6 + $0x38] sm:$0xff] }
  0x66   : > { %1218 = vrot.lane.b32.xlu0 %v1200_v35, %s2341_s7  ;;  %v2044_v35 = vcombine.low %v2825_v41, %v2906_v54  ;;  %v3667_v42 = vcombine.low %v2464_v7, %v2467_v8  ;;  %v3669_v8 = vcombine.low %v2563_v39, %v2539_v31  ;;  %v3671_v31 = vld [vmem:[#allocation7_spill] sm:$0xff] }
  0x67   : > { %v3116_v5 = vsel %vm629_vm3, %v1305_v29, %v1309_v23  ;;  %v3125_v40 = vsel %vm629_vm3, %v1309_v23, %v1313_v46  ;;  %v2299_v29 = vld [vmem:[%s2697_s29 + $0x48] ss:$0 sps:$4 sm:$0xff]   ;;  %v3132_v12 = vsel %vm629_vm3, %v1313_v46, %v1317_v33  ;;  %v1594_v33 = vld [vmem:[%s2408_s6 + $0x18] sm:$0xff]  ;;  %v1597_v23 = vld [vmem:[%s2408_s6 + $0x30] sm:$0xff]  ;;  %v3672_v39 = vcombine.low %v2542_v32, %v3671_v31 }
  0x68   : > { %v1238_v43 = vrot.slane %v2299_v29, 6  ;;  %v1600_v46 = vld [vmem:[%s2408_s6 + $0x48] sm:$0xff]  ;;  %v1602_v29 = vld [vmem:[%s2408_s6 + $0x58] sm:$0xff]  ;;  %v2268_v32 = vld [vmem:[%s3565_s1 + $0xd0] sm:$0xff]  }
  0x69   : > { %1619 = vperm.xlu1 %2208, %v1593_v2   ;;  %v3680_v31 = vld [vmem:[#allocation5_spill] sm:$0xff] }
  0x6a   : > { %v1239_v38 = vsel %vm367_vm2, %v1236_v22, %v1238_v43  ;;  %1614 = vperm.xlu0 %2209, %v1592_v58   ;;  %v1599_v22 = vld [vmem:[%s2408_s6 + $0x40] sm:$0xff]  ;;  %v1605_v43 = vld [vmem:[%s2408_s6 + $0x70] sm:$0xff] }
  0x6b   : > { %v1333_v36 = vrot.slane %v1239_v38, 3 }
  0x6d   : > { %v3136_v34 = vsel %vm629_vm3, %v1329_v15, %v1333_v36  ;;  %1624 = vperm.xlu1 %2208, %v1594_v33   ;;  %v1603_v15 = vld [vmem:[%s2408_s6 + $0x60] sm:$0xff]  ;;  %v1604_v36 = vld [vmem:[%s2408_s6 + $0x68] sm:$0xff] }
  0x6e   : > { %1629 = vperm.xlu0 %2209, %v1595_v24   ;;  %v3668_v24 = vcombine.low %v2470_v9, %v2473_v10  ;;  %v3670_v9 = vcombine.low %v2476_v11, %v2496_v17 }
  0x71   : > { %1634 = vperm.xlu1 %2208, %v1596_v49  }
  0x72   : > { %1639 = vperm.xlu0 %2209, %v1597_v23   ;;  %v1606_v23 = vld [vmem:[%s2408_s6 + $0x78] sm:$0xff] }
  0x75   : > { %1644 = vperm.xlu1 %2208, %v1598_v37  }
  0x76   : > { %1649 = vperm.xlu0 %2209, %v1599_v22  }
  0x79   : > { %1654 = vperm.xlu1 %2208, %v1600_v46  }
  0x7a   : > { %1659 = vperm.xlu0 %2209, %v1601_v47   ;;  %v2264_v47 = vld [vmem:[%s3565_s1 + $0xc0] sm:$0xff]  }
  0x7d   : > { %1664 = vperm.xlu1 %2208, %v1602_v29  }
  0x7e   : > { %1669 = vperm.xlu0 %2209, %v1603_v15  }
  0x81   : > { %1674 = vperm.xlu1 %2208, %v1604_v36  }
  0x82   : > { %1679 = vperm.xlu0 %2209, %v1605_v43  }
  0x85   : > { %1684 = vperm.xlu1 %2208, %v1606_v23  }
  0x9b   : > { %v531_v38 = vpop.permute.xlu1 %530 }
  0x9c   : > { %v570_v58 = vsel %vm385_vm1, %v3667_v42, %v531_v38  ;;  %v2267_v38 = vld [vmem:[%s3565_s1 + $0xc8] sm:$0xff]  }
  0x9d   : > { %v630_v49 = vrot.slane %v570_v58, 3 }
  0x9f   : > { %v533_v2 = vpop.permute.xlu1 %532 }
  0xa0   : > { %v573_v33 = vsel %vm385_vm1, %v3668_v24, %v533_v2  ;;  %v3673_v2 = vld [vmem:[#allocation2_spill] sm:$0xff]  ;;  %v3674_v24 = vld [vmem:[#allocation3_spill] sm:$0xff] }
  0xa1   : > { %v347_v22 = vpop.permute.xlu0 %346  ;;  %v631_v37 = vrot.slane %v573_v33, 3  ;;  %v3675_v33 = vcombine.low %v3673_v2, %v3674_v24 }
  0xa2   : > { %v388_v15 = vsel %vm385_vm1, %v3669_v8, %v347_v22 }
  0xa3   : > { %v535_v46 = vpop.permute.xlu1 %534  ;;  %v632_v7 = vsel %vm629_vm3, %v630_v49, %v631_v37  ;;  %v874_v11 = vrot.slane %v388_v15, 3 }
  0xa4   : > { %v576_v10 = vsel %vm385_vm1, %v3670_v9, %v535_v46  ;;  %801 = vmatmul.mubr.bf16.vlgmr.msra.gmra.mrb[0].mxu0 %v632_v7  ;;  %v3676_v46 = vld [vmem:[#allocation8_spill] sm:$0xff]  ;;  %v3677_v7 = vld [vmem:[#allocation9_spill] sm:$0xff] }
  0xa5   : > { %v349_v29 = vpop.permute.xlu0 %348  ;;  %v636_v43 = vrot.slane %v576_v10, 3  ;;  %1440 = vmatpush1.bf16.msra.mxu0 %v2264_v47  ;;  %2004 = vmatprep.mubr.msk.bf16.mxu0 %vm385_vm1, %v2968_v59  ;;  %v3678_v8 = vcombine.low %v3676_v46, %v3677_v7 }
  0xa6   : > { %v391_v36 = vsel %vm385_vm1, %v3672_v39, %v349_v29  ;;  %1441 = vmatprep.subr.bf16.mxu0 %v3624_v55  ;;  %v3679_v29 = vld [vmem:[#allocation4_spill] sm:$0xff] }
  0xa7   : > { %v875_v17 = vrot.slane %v391_v36, 3  ;;  %v537_v42 = vpop.permute.xlu1 %536  ;;  %v637_v58 = vsel %vm629_vm3, %v631_v37, %v636_v43  ;;  %v3681_v39 = vcombine.low %v3679_v29, %v3680_v31  ;;  %v3689_v29 = vld [vmem:[#allocation15_spill] sm:$0xff] }
  0xa8   : > { %v579_v23 = vsel %vm385_vm1, %v3675_v33, %v537_v42 }
  0xa9   : > { %v351_v49 = vpop.permute.xlu0 %350  ;;  %v876_v59 = vsel %vm629_vm3, %v874_v11, %v875_v17  ;;  %v640_v22 = vrot.slane %v579_v23, 3  ;;  %1442 = vmatpush1.bf16.msra.mxu0 %v2267_v38 }
  0xaa   : > { %v394_v15 = vsel %vm385_vm1, %v3678_v8, %v351_v49  ;;  %1045 = vmatmul.mubr.bf16.vlgmr.msra.gmra.mrb[0].mxu1 %v876_v59  ;;  %1443 = vmatprep.subr.bf16.mxu0 %v3624_v55  ;;  %v3685_v49 = vld [vmem:[#allocation6_spill] sm:$0xff] }
  0xab   : > { %v880_v37 = vrot.slane %v394_v15, 3  ;;  %2153 = vmatpush1.bf16.msra.mxu1 %v2264_v47  ;;  %2024 = vmatprep.mubr.msk.bf16.mxu1 %vm385_vm1, %v2979_v53  ;;  %v539_v9 = vpop.permute.xlu1 %538  ;;  %v641_v10 = vsel %vm629_vm3, %v636_v43, %v640_v22  ;;  %v2271_v53 = vld [vmem:[%s3565_s1 + $0xd8] sm:$0xff]   ;;  %v3682_v47 = vld [vmem:[#allocation10_spill] sm:$0xff]  ;;  %v3683_v43 = vld [vmem:[#allocation11_spill] sm:$0xff] }
  0xac   : > { %2142 = vmatprep.subr.bf16.mxu1 %v3624_v55  ;;  %809 = vmatmul.mubr.bf16.gmra.mrb[4].mxu0 %v637_v58  ;;  %v582_v36 = vsel %vm385_vm1, %v3681_v39, %v539_v9  ;;  %v3684_v58 = vcombine.low %v3682_v47, %v3683_v43  ;;  %v2274_v9 = vld [vmem:[%s3565_s1 + $0xe0] sm:$0xff]  }
  0xad   : > { %v353_v11 = vpop.permute.xlu0 %352  ;;  %v881_v42 = vsel %vm629_vm3, %v875_v17, %v880_v37  ;;  %1444 = vmatpush1.bf16.msra.mxu0 %v2268_v32  ;;  %v644_v2 = vrot.slane %v582_v36, 3  ;;  %2005 = vmatprep.mubr.msk.bf16.mxu0 %vm385_vm1, %v2987_v48  ;;  %v3686_v48 = vld [vmem:[#allocation13_spill] sm:$0xff] }
  0xae   : > { %v397_v24 = vsel %vm385_vm1, %v3684_v58, %v353_v11  ;;  %1445 = vmatprep.subr.bf16.mxu0 %v3624_v55  ;;  %v3687_v59 = vcombine.low %v3685_v49, %v3686_v48  ;;  %v3691_v11 = vld [vmem:[#allocation14_spill] sm:$0xff] }
  0xaf   : > { %v884_v33 = vrot.slane %v397_v24, 3  ;;  %2154 = vmatpush1.bf16.msra.mxu1 %v2267_v38  ;;  %v541_v23 = vpop.permute.xlu1 %540  ;;  %v645_v17 = vsel %vm629_vm3, %v640_v22, %v644_v2  ;;  %v3688_v38 = vld [vmem:[#allocation12_spill] sm:$0xff] }
  0xb0   : > { %2143 = vmatprep.subr.bf16.mxu1 %v3624_v55  ;;  %v585_v46 = vsel %vm385_vm1, %v3687_v59, %v541_v23  ;;  %v3690_v22 = vcombine.low %v3688_v38, %v3689_v29  ;;  %v3694_v24 = vld [vmem:[#allocation16_spill] sm:$0xff]  ;;  %v3695_v23 = vld [vmem:[#allocation18_spill] sm:$0xff]  ;;  %v3699_v38 = vld [vmem:[#allocation23_spill] sm:$0xff] }
  0xb1   : > { %v355_v7 = vpop.permute.xlu0 %354  ;;  %v885_v8 = vsel %vm629_vm3, %v880_v37, %v884_v33  ;;  %1446 = vmatpush1.bf16.msra.mxu0 %v2271_v53  ;;  %v648_v15 = vrot.slane %v585_v46, 3  ;;  %v1957_v29 = vcombine.low %v3699_v38, %v3699_v38 }
  0xb2   : > { %1053 = vmatmul.mubr.bf16.gmra.mrb[4].mxu1 %v881_v42  ;;  %v400_v31 = vsel %vm385_vm1, %v3690_v22, %v355_v7  ;;  %1447 = vmatprep.subr.bf16.mxu0 %v3624_v55  ;;  %v3692_v42 = vld [vmem:[#allocation17_spill] sm:$0xff] }
  0xb3   : > { %v888_v39 = vrot.slane %v400_v31, 3  ;;  %2155 = vmatpush1.bf16.msra.mxu1 %v2268_v32  ;;  %2025 = vmatprep.mubr.msk.bf16.mxu1 %vm385_vm1, %v2996_v13  ;;  %v543_v37 = vpop.permute.xlu1 %542  ;;  %v649_v36 = vsel %vm629_vm3, %v644_v2, %v648_v15  ;;  %v3693_v47 = vcombine.low %v3691_v11, %v3692_v42  ;;  %v2275_v13 = vld [vmem:[%s3565_s1 + $0xe8] sm:$0xff]   ;;  %v3701_v11 = vld [vmem:[#allocation20_spill] sm:$0xff] }
  0xb4   : > { %2144 = vmatprep.subr.bf16.mxu1 %v3624_v55  ;;  %817 = vmatmul.mubr.bf16.gmra.mrb[8].mxu0 %v641_v10  ;;  %v3696_v10 = vcombine.low %v3694_v24, %v3695_v23  ;;  %v3704_v24 = vld [vmem:[#allocation29_spill] sm:$0xff] }
  0xb5   : > { %v588_v43 = vsel %vm385_vm1, %v3693_v47, %v543_v37  ;;  %v357_v58 = vpop.permute.xlu0 %356  ;;  %1448 = vmatpush1.bf16.msra.mxu0 %v2274_v9  ;;  %2006 = vmatprep.mubr.msk.bf16.mxu0 %vm385_vm1, %v3007_v16  ;;  %v889_v32 = vsel %vm629_vm3, %v884_v33, %v888_v39  ;;  %v3697_v16 = vld [vmem:[#allocation22_spill] sm:$0xff]  ;;  %v3700_v37 = vld [vmem:[#allocation19_spill] sm:$0xff]  ;;  %v3703_v47 = vld [vmem:[#allocation28_spill] sm:$0xff] }
  0xb6   : > { %v652_v2 = vrot.slane %v588_v43, 3  ;;  %v403_v49 = vsel %vm385_vm1, %v3696_v10, %v357_v58  ;;  %1449 = vmatprep.subr.bf16.mxu0 %v3624_v55  ;;  %v3698_v33 = vcombine.low %v2644_v6, %v3697_v16  ;;  %v3702_v42 = vcombine.low %v3700_v37, %v3701_v11 }
  0xb7   : > { %2156 = vmatpush1.bf16.msra.mxu1 %v2271_v53  ;;  %v892_v48 = vrot.slane %v403_v49, 3  ;;  %v545_v59 = vpop.permute.xlu1 %544  ;;  %v2278_v53 = vld [vmem:[%s3565_s1 + $0xf0] sm:$0xff]  }
  0xb8   : > { %v3252_v46 = vsel %vm629_vm3, %v648_v15, %v652_v2  ;;  %2145 = vmatprep.subr.bf16.mxu1 %v3624_v55  ;;  %v591_v7 = vsel %vm385_vm1, %v3698_v33, %v545_v59  ;;  %v3706_v59 = vld [vmem:[#allocation24_spill] sm:$0xff]  ;;  %v3708_v33 = vld [vmem:[#allocation25_spill] sm:$0xff] }
  0xb9   : > { %1450 = vmatpush1.bf16.msra.mxu0 %v2275_v13  ;;  %v359_v22 = vpop.permute.xlu0 %358  ;;  %v3262_v31 = vsel %vm629_vm3, %v888_v39, %v892_v48  ;;  %v656_v15 = vrot.slane %v591_v7, 3  ;;  %v1933_v7 = vcombine.low %v3708_v33, %v3708_v33 }
  0xba   : > { %1061 = vmatmul.mubr.bf16.gmra.mrb[8].mxu1 %v885_v8  ;;  %v406_v6 = vsel %vm385_vm1, %v3702_v42, %v359_v22  ;;  %1451 = vmatprep.subr.bf16.mxu0 %v3624_v55 }
  0xbb   : > { %2157 = vmatpush1.bf16.msra.mxu1 %v2274_v9  ;;  %2026 = vmatprep.mubr.msk.bf16.mxu1 %vm385_vm1, %v3703_v47  ;;  %v896_v43 = vrot.slane %v406_v6, 3  ;;  %v3275_v58 = vsel %vm629_vm3, %v652_v2, %v656_v15  ;;  %v2281_v9 = vld [vmem:[%s3565_s1 + $0xf8] sm:$0xff]   ;;  %v3709_v6 = vld [vmem:[#allocation26_spill] sm:$0xff] }
  0xbc   : > { %825 = vmatmul.mubr.bf16.gmra.mrb[12].mxu0 %v645_v17  ;;  %2146 = vmatprep.subr.bf16.mxu1 %v3624_v55  ;;  %v3705_v2 = vld [vmem:[#allocation21_spill] sm:$0xff] }
  0xbd   : > { %2007 = vmatprep.mubr.msk.bf16.mxu0 %vm385_vm1, %v3704_v24  ;;  %1452 = vmatpush1.bf16.msra.mxu0 %v2278_v53  ;;  %v361_v23 = vpop.permute.xlu0 %360  ;;  %v3285_v10 = vsel %vm629_vm3, %v892_v48, %v896_v43  ;;  %v3707_v17 = vcombine.low %v3705_v2, %v3706_v59  ;;  %v2282_v48 = vld [vmem:[%s3565_s1 + $0x100] sm:$0xff]   ;;  %v2289_v2 = vld [vmem:[%s3565_s1 + $0x110] sm:$0xff]  }
  0xbe   : > { %1453 = vmatprep.subr.bf16.mxu0 %v3624_v55 }
  0xbf   : > { %v547_v39 = vpop.permute.xlu1 %546  ;;  %v409_v16 = vsel %vm385_vm1, %v3707_v17, %v361_v23  ;;  %2158 = vmatpush1.bf16.msra.mxu1 %v2275_v13 }
  0xc0   : > { %v594_v8 = vsel %vm385_vm1, %v1957_v29, %v547_v39  ;;  %v900_v38 = vrot.slane %v409_v16, 3  ;;  %v1118_v29 = vld [vmem:[%s2697_s29 + $0x4] sm:$0xf]  ;;  %2147 = vmatprep.subr.bf16.mxu1 %v3624_v55 }
  0xc1   : > { %v660_v49 = vrot.slane %v594_v8, 3  ;;  %1454 = vmatpush1.bf16.msra.mxu0 %v2281_v9  ;;  %v2037_v47 = vcombine.low %v1118_v29, %v3709_v6 }
  0xc2   : > { %v3303_v42 = vsel %vm629_vm3, %v896_v43, %v900_v38  ;;  %1069 = vmatmul.mubr.bf16.gmra.mrb[12].mxu1 %v889_v32  ;;  %1455 = vmatprep.subr.bf16.mxu0 %v3624_v55  ;;  %v3711_v32 = vcombine.low %v2774_v0, %v2777_v26 }
  0xc3   : > { %v1205_v22 = vpop.permute.xlu1 %1204  ;;  %v3296_v37 = vsel %vm629_vm3, %v656_v15, %v660_v49  ;;  %v3710_v15 = vcombine.low %v2739_v19, %v2742_v3  ;;  %2027 = vmatprep.mubr.msk.bf16.mxu1 %vm385_vm1, %v3030_v61  ;;  %2159 = vmatpush1.bf16.msra.mxu1 %v2278_v53  ;;  %v2286_v3 = vld [vmem:[%s3565_s1 + $0x108] sm:$0xff]  }
  0xc4   : > { %v363_v11 = vpop.permute.xlu0 %362  ;;  %833 = vmatmul.mubr.bf16.gmra.mrb[16].mxu0 %v649_v36  ;;  %2148 = vmatprep.subr.bf16.mxu1 %v3624_v55 }
  0xc5   : > { %v412_v13 = vsel %vm385_vm1, %v1933_v7, %v363_v11  ;;  %v1245_v39 = vsel %vm385_vm1, %v3710_v15, %v1205_v22  ;;  %2008 = vmatprep.mubr.msk.bf16.mxu0 %vm385_vm1, %v3045_v18  ;;  %1456 = vmatpush1.bf16.msra.mxu0 %v2282_v48 }
  0xc6   : > { %v904_v8 = vrot.slane %v412_v13, 3  ;;  %v1302_v61 = vrot.slane %v1245_v39, 3  ;;  %1457 = vmatprep.subr.bf16.mxu0 %v3624_v55 }
  0xc7   : > { %v1213_v24 = vpop.permute.xlu1 %1212  ;;  %2160 = vmatpush1.bf16.msra.mxu1 %v2281_v9  ;;  %v3712_v9 = vcombine.low %v2805_v45, %v2771_v52 }
  0xc8   : > { %v1257_v43 = vsel %vm385_vm1, %v3711_v32, %v1213_v24  ;;  %v1203_v19 = vpop.permute.xlu0 %1202  ;;  %v905_v53 = vsel %vm629_vm3, %v900_v38, %v904_v8  ;;  %2149 = vmatprep.subr.bf16.mxu1 %v3624_v55 }
  0xc9   : > { %v1242_v36 = vsel %vm385_vm1, %v2037_v47, %v1203_v19  ;;  %v1319_v26 = vrot.slane %v1257_v43, 3  ;;  %1458 = vmatpush1.bf16.msra.mxu0 %v2286_v3 }
  0xca   : > { %v1301_v0 = vrot.slane %v1242_v36, 3  ;;  %1077 = vmatmul.mubr.bf16.gmra.mrb[16].mxu1 %v3262_v31  ;;  %1459 = vmatprep.subr.bf16.mxu0 %v3624_v55 }
  0xcb   : > { %v1215_v23 = vpop.permute.xlu1 %1214  ;;  %2028 = vmatprep.mubr.msk.bf16.mxu1 %vm385_vm1, %v3050_v51  ;;  %2161 = vmatpush1.bf16.msra.mxu1 %v2282_v48  ;;  %v2294_v51 = vld [vmem:[%s3565_s1 + $0x118] sm:$0xff]  }
  0xcc   : > { %v1260_v18 = vsel %vm385_vm1, %v2043_v63, %v1215_v23  ;;  %v1211_v49 = vpop.permute.xlu0 %1210  ;;  %v1303_v17 = vsel %vm629_vm3, %v1301_v0, %v1302_v61  ;;  %841 = vmatmul.mubr.bf16.gmra.mrb[20].mxu0 %v3252_v46  ;;  %2150 = vmatprep.subr.bf16.mxu1 %v3624_v55  ;;  %v3713_v46 = vcombine.low %v2745_v57, %v2951_v14  ;;  %v3714_v14 = vld [vmem:[#allocation27_spill] sm:$0xff] }
  0xcd   : > { %v1323_v59 = vrot.slane %v1260_v18, 3  ;;  %v1254_v16 = vsel %vm385_vm1, %v3712_v9, %v1211_v49  ;;  %2009 = vmatprep.mubr.msk.bf16.mxu0 %vm385_vm1, %v3054_v56  ;;  %1460 = vmatpush1.bf16.msra.mxu0 %v2289_v2  ;;  %v2045_v38 = vcombine.low %v3714_v14, %v3714_v14 }
  0xce   : > { %v1315_v62 = vrot.slane %v1254_v16, 3  ;;  %1461 = vmatprep.subr.bf16.mxu0 %v3624_v55 }
  0xcf   : > { %v1217_v25 = vpop.permute.xlu1 %1216  ;;  %v1324_v63 = vsel %vm629_vm3, %v1319_v26, %v1323_v59  ;;  %2162 = vmatpush1.bf16.msra.mxu1 %v2286_v3 }
  0xd0   : > { %v1263_v45 = vsel %vm385_vm1, %v2044_v35, %v1217_v25  ;;  %v1207_v52 = vpop.permute.xlu0 %1206  ;;  %v1320_v31 = vsel %vm629_vm3, %v1315_v62, %v1319_v26  ;;  %2151 = vmatprep.subr.bf16.mxu1 %v3624_v55 }
  0xd1   : > { %v1327_v33 = vrot.slane %v1263_v45, 3  ;;  %v1248_v7 = vsel %vm385_vm1, %v3713_v46, %v1207_v52  ;;  %1462 = vmatpush1.bf16.msra.mxu0 %v2294_v51 }
  0xd2   : > { %v1307_v41 = vrot.slane %v1248_v7, 3  ;;  %1085 = vmatmul.mubr.bf16.gmra.mrb[20].mxu1 %v3285_v10 }
  0xd3   : > { %v1328_v54 = vsel %vm629_vm3, %v1323_v59, %v1327_v33  ;;  %2029 = vmatprep.mubr.msk.bf16.mxu1 %vm385_vm1, %v3059_v21  ;;  %2163 = vmatpush1.bf16.msra.mxu1 %v2289_v2 }
  0xd4   : > { %v1209_v56 = vpop.permute.xlu0 %1208  ;;  %v1308_v35 = vsel %vm629_vm3, %v1302_v61, %v1307_v41  ;;  %849 = vmatmul.mubr.bf16.gmra.mrb[24].mxu0 %v3275_v58  ;;  %2152 = vmatprep.subr.bf16.mxu1 %v3624_v55 }
  0xd5   : > { %v1251_v57 = vsel %vm385_vm1, %v2040_v27, %v1209_v56  ;;  %2010 = vmatprep.mubr.msk.bf16.mxu0 %vm385_vm1, %v3090_v50 }
  0xd6   : > { %v1311_v29 = vrot.slane %v1251_v57, 3 }
  0xd7   : > { %2164 = vmatpush1.bf16.msra.mxu1 %v2294_v51 }
  0xd8   : > { %v1219_v10 = vpop.permute.xlu0 %1218  ;;  %v1312_v20 = vsel %vm629_vm3, %v1307_v41, %v1311_v29  ;;  %v1316_v28 = vsel %vm629_vm3, %v1311_v29, %v1315_v62 }
  0xd9   : > { %v1266_v27 = vsel %vm385_vm1, %v2045_v38, %v1219_v10 }
  0xda   : > { %v1331_v22 = vrot.slane %v1266_v27, 3  ;;  %1093 = vmatmul.mubr.bf16.gmra.mrb[24].mxu1 %v3303_v42 }
  0xdb   : > { %2030 = vmatprep.mubr.msk.bf16.mxu1 %vm385_vm1, %v3093_v60 }
  0xdc   : > { %v1332_v21 = vsel %vm629_vm3, %v1327_v33, %v1331_v22  ;;  %857 = vmatmul.mubr.bf16.gmra.mrb[28].mxu0 %v3296_v37 }
  0xdd   : > { %2091 = vmatprep.mubr.msk.bf16.mxu0 %vm385_vm1, %v3104_v1 }
  0xe2   : > { %1101 = vmatmul.mubr.bf16.gmra.mrb[28].mxu1 %v905_v53 }
  0xe3   : > { %2095 = vmatprep.mubr.msk.bf16.mxu1 %vm385_vm1, %v3109_v44 }
  0xe4   : > { %1472 = vmatmul.mubr.bf16.vlgmr.msra.gmra.mrb[32].mxu0 %v1303_v17  ;;  %v1610_v51 = vpop.permute.xlu1 %1609 }
  0xe5   : > { %2092 = vmatprep.mubr.msk.bf16.mxu0 %vm385_vm1, %v3116_v5 }
  0xe8   : > { %v3418_v38 = vpop.permute.xlu1 %1619 }
  0xea   : > { %1504 = vmatmul.mubr.bf16.vlgmr.msra.gmra.mrb[32].mxu1 %v1320_v31 }
  0xeb   : > { %2096 = vmatprep.mubr.msk.bf16.mxu1 %vm385_vm1, %v3119_v4 }
  0xec   : > { %1480 = vmatmul.mubr.bf16.gmra.mrb[36].mxu0 %v1308_v35 }
  0xed   : > { %2093 = vmatprep.mubr.msk.bf16.mxu0 %vm385_vm1, %v3125_v40 }
  0xf2   : > { %1512 = vmatmul.mubr.bf16.gmra.mrb[36].mxu1 %v1324_v63 }
  0xf3   : > { %2097 = vmatprep.mubr.msk.bf16.mxu1 %vm385_vm1, %v3128_v30 }
  0xf4   : > { %1488 = vmatmul.mubr.bf16.gmra.mrb[40].mxu0 %v1312_v20 }
  0xf5   : > { %2094 = vmatprep.mubr.msk.bf16.mxu0 %vm385_vm1, %v3132_v12 }
  0xfa   : > { %1520 = vmatmul.mubr.bf16.gmra.mrb[40].mxu1 %v1328_v54 }
  0xfb   : > { %2098 = vmatprep.mubr.msk.bf16.mxu1 %vm385_vm1, %v3136_v34 }
  0xfc   : > { %1496 = vmatmul.mubr.bf16.gmra.mrb[44].mxu0 %v1316_v28 }
 0x102   : > { %1528 = vmatmul.mubr.bf16.gmra.mrb[44].mxu1 %v1332_v21 }
 0x177   : > { %v802_v55 = vpop.f32.mrb[0].mxu0 }
 0x178   : > { %v804_v50 = vpop.f32.mrb[1].mxu0 }
 0x179   : > { %v805_v60 = vpop.f32.mrb[2].mxu0 }
 0x17a   : > { %v807_v1 = vpop.f32.mrb[3].mxu0 }
 0x17d   : > { %v1046_v44 = vpop.f32.mrb[0].mxu1 }
 0x17e   : > { %v3402_v5 = vadd.f32 %v1046_v44, %v802_v55  ;;  %v1048_v4 = vpop.f32.mrb[1].mxu1  ;;  %v1615_v44 = vpop.permute.xlu0 %1614 }
 0x17f   : > { %v1049_v40 = vpop.f32.mrb[2].mxu1  ;;  %v810_v30 = vpop.f32.mrb[4].mxu0 }
 0x180   : > { %v3404_v58 = vadd.f32 %v1049_v40, %v805_v60  ;;  %v1051_v37 = vpop.f32.mrb[3].mxu1  ;;  %v812_v12 = vpop.f32.mrb[5].mxu0 }
 0x181   : > { %v813_v48 = vpop.f32.mrb[6].mxu0  ;;  %v3424_v60 = vpop.permute.xlu1 %1624 }
 0x182   : > { %v815_v11 = vpop.f32.mrb[7].mxu0 }
 0x185   : > { %v1054_v42 = vpop.f32.mrb[4].mxu1 }
 0x186   : > { %v3406_v34 = vadd.f32 %v1054_v42, %v810_v30  ;;  %v1056_v13 = vpop.f32.mrb[5].mxu1 }
 0x187   : > { %v1057_v6 = vpop.f32.mrb[6].mxu1  ;;  %v818_v47 = vpop.f32.mrb[8].mxu0 }
 0x188   : > { %v3408_v15 = vadd.f32 %v1057_v6, %v813_v48  ;;  %v1059_v39 = vpop.f32.mrb[7].mxu1  ;;  %v820_v8 = vpop.f32.mrb[9].mxu0 }
 0x189   : > { %v821_v24 = vpop.f32.mrb[10].mxu0  ;;  %v3430_v6 = vpop.permute.xlu1 %1634 }
 0x18a   : > { %v823_v32 = vpop.f32.mrb[11].mxu0  ;;  %v3432_v39 = vpop.permute.xlu0 %1629 }
 0x18d   : > { %v1062_v43 = vpop.f32.mrb[8].mxu1 }
 0x18e   : > { %v3410_v19 = vadd.f32 %v1062_v43, %v818_v47  ;;  %v1064_v3 = vpop.f32.mrb[9].mxu1 }
 0x18f   : > { %v1065_v61 = vpop.f32.mrb[10].mxu1  ;;  %v826_v53 = vpop.f32.mrb[12].mxu0  ;;  %v3439_v3 = vld [vmem:[%s3566_s2] ss:$0 sm:$0xff] }
 0x190   : > { %v3412_v36 = vadd.f32 %v1065_v61, %v821_v24  ;;  %v1067_v0 = vpop.f32.mrb[11].mxu1  ;;  %v828_v26 = vpop.f32.mrb[13].mxu0 }
 0x191   : > { %v829_v23 = vpop.f32.mrb[14].mxu0 }
 0x192   : > { %v831_v18 = vpop.f32.mrb[15].mxu0 }
 0x195   : > { %v1070_v49 = vpop.f32.mrb[12].mxu1 }
 0x196   : > { %v3414_v2 = vadd.f32 %v1070_v49, %v826_v53  ;;  %v1072_v59 = vpop.f32.mrb[13].mxu1 }
 0x197   : > { %v1073_v17 = vpop.f32.mrb[14].mxu1  ;;  %v834_v9 = vpop.f32.mrb[16].mxu0 }
 0x198   : > { %v3416_v16 = vadd.f32 %v1073_v17, %v829_v23  ;;  %v1075_v62 = vpop.f32.mrb[15].mxu1  ;;  %v836_v25 = vpop.f32.mrb[17].mxu0 }
 0x199   : > { %v837_v63 = vpop.f32.mrb[18].mxu0  ;;  %v3447_v62 = vpop.permute.xlu0 %1639 }
 0x19a   : > { %v839_v45 = vpop.f32.mrb[19].mxu0 }
 0x19d   : > { %v1078_v52 = vpop.f32.mrb[16].mxu1 }
 0x19e   : > { %v1079_v31 = vadd.f32 %v1078_v52, %v834_v9  ;;  %v1080_v33 = vpop.f32.mrb[17].mxu1 }
 0x19f   : > { %v1081_v46 = vpop.f32.mrb[18].mxu1  ;;  %v842_v7 = vpop.f32.mrb[20].mxu0 }
 0x1a0   : > { %v1082_v41 = vadd.f32 %v1081_v46, %v837_v63  ;;  %v1083_v54 = vpop.f32.mrb[19].mxu1  ;;  %v844_v56 = vpop.f32.mrb[21].mxu0 }
 0x1a1   : > { %v845_v35 = vpop.f32.mrb[22].mxu0  ;;  %v3449_v63 = vpop.permute.xlu1 %1644 }
 0x1a2   : > { %v847_v57 = vpop.f32.mrb[23].mxu0 }
 0x1a5   : > { %v1086_v14 = vpop.f32.mrb[20].mxu1 }
 0x1a6   : > { %v3420_v29 = vadd.f32 %v1086_v14, %v842_v7  ;;  %v1088_v10 = vpop.f32.mrb[21].mxu1 }
 0x1a7   : > { %v1089_v20 = vpop.f32.mrb[22].mxu1  ;;  %v850_v28 = vpop.f32.mrb[24].mxu0 }
 0x1a8   : > { %v3422_v27 = vadd.f32 %v1089_v20, %v845_v35  ;;  %v1091_v22 = vpop.f32.mrb[23].mxu1  ;;  %v852_v21 = vpop.f32.mrb[25].mxu0 }
 0x1a9   : > { %v853_v55 = vpop.f32.mrb[26].mxu0 }
 0x1aa   : > { %v855_v50 = vpop.f32.mrb[27].mxu0 }
 0x1ad   : > { %v1094_v1 = vpop.f32.mrb[24].mxu1 }
 0x1ae   : > { %v3426_v4 = vadd.f32 %v1094_v1, %v850_v28  ;;  %v1096_v40 = vpop.f32.mrb[25].mxu1 }
 0x1af   : > { %v1097_v30 = vpop.f32.mrb[26].mxu1  ;;  %v858_v37 = vpop.f32.mrb[28].mxu0 }
 0x1b0   : > { %v3428_v12 = vadd.f32 %v1097_v30, %v853_v55  ;;  %v1099_v48 = vpop.f32.mrb[27].mxu1  ;;  %v860_v11 = vpop.f32.mrb[29].mxu0 }
 0x1b1   : > { %v861_v42 = vpop.f32.mrb[30].mxu0  ;;  %v1650_v55 = vpop.permute.xlu0 %1649 }
 0x1b2   : > { %v863_v13 = vpop.f32.mrb[31].mxu0 }
 0x1b5   : > { %v1102_v47 = vpop.f32.mrb[28].mxu1 }
 0x1b6   : > { %v3434_v8 = vadd.f32 %v1102_v47, %v858_v37  ;;  %v1104_v24 = vpop.f32.mrb[29].mxu1 }
 0x1b7   : > { %v1105_v32 = vpop.f32.mrb[30].mxu1  ;;  %v1473_v43 = vpop.f32.mrb[32].mxu0 }
 0x1b8   : > { %v3441_v61 = vadd.f32 %v1105_v32, %v861_v42  ;;  %v1107_v53 = vpop.f32.mrb[31].mxu1  ;;  %v1536_v0 = vadd.f32 %v1473_v43, %v3402_v5  ;;  %v1475_v26 = vpop.f32.mrb[33].mxu0 }
 0x1b9   : > { %v1476_v23 = vpop.f32.mrb[34].mxu0 }
 0x1ba   : > { %v1559_v18 = vadd.f32 %v3439_v3, %v1536_v0  ;;  %v1537_v49 = vadd.f32 %v1476_v23, %v3404_v58  ;;  %v1478_v59 = vpop.f32.mrb[35].mxu0 }
 0x1bc   : > { %v1575_v17 = vmax.f32 %v1559_v18, 0.0  ;;  %v1560_v9 = vadd.f32 %v3439_v3, %v1537_v49 }
 0x1bd   : > { %v1505_v25 = vpop.f32.mrb[32].mxu1 }
 0x1be   : > { %v1687_v45 = vmul.f32 %v1610_v51, %v1575_v17  ;;  %v1544_v52 = vadd.f32 %v1505_v25, %v1079_v31  ;;  %v1507_v33 = vpop.f32.mrb[33].mxu1  ;;  %v1576_v5 = vmax.f32 %v1560_v9, 0.0 }
 0x1bf   : > { %v1508_v46 = vpop.f32.mrb[34].mxu1  ;;  %v1481_v7 = vpop.f32.mrb[36].mxu0 }
 0x1c0   : > { %v2125_v54 = vpack.c.bf16 %v1687_v45, %v1687_v45  ;;  %v1567_v58 = vadd.f32 %v3439_v3, %v1544_v52  ;;  %v1688_v56 = vmul.f32 %v1615_v44, %v1576_v5  ;;  %v1545_v35 = vadd.f32 %v1508_v46, %v1082_v41  ;;  %v1510_v57 = vpop.f32.mrb[35].mxu1  ;;  %v1483_v14 = vpop.f32.mrb[37].mxu0 }
 0x1c1   : > { %v1538_v10 = vadd.f32 %v1481_v7, %v3406_v34  ;;  %v1484_v20 = vpop.f32.mrb[38].mxu0  ;;  %v1655_v44 = vpop.permute.xlu1 %1654 }
 0x1c2   : > { %1768 = vst.msk [vmem:[%s2414_s11] sm:$0xf] %vm1767_vm4, %v2125_v54  ;;  %v1583_v51 = vmax.f32 %v1567_v58, 0.0  ;;  %v2126_v31 = vpack.c.bf16 %v1688_v56, %v1688_v56  ;;  %v1568_v28 = vadd.f32 %v3439_v3, %v1545_v35  ;;  %v1539_v22 = vadd.f32 %v1484_v20, %v3408_v15  ;;  %v1486_v21 = vpop.f32.mrb[39].mxu0  ;;  %v1660_v45 = vpop.permute.xlu0 %1659 }
 0x1c3   : > { %v1561_v50 = vadd.f32 %v3439_v3, %v1538_v10 }
 0x1c4   : > { %v1695_v1 = vmul.f32 %v1650_v55, %v1583_v51  ;;  %1769 = vst.msk [vmem:[%s2414_s11 + $0x4] sm:$0xf] %vm1767_vm4, %v2126_v31  ;;  %v1584_v41 = vmax.f32 %v1568_v28, 0.0  ;;  %v1562_v34 = vadd.f32 %v3439_v3, %v1539_v22 }
 0x1c5   : > { %v1577_v40 = vmax.f32 %v1561_v50, 0.0  ;;  %v1513_v30 = vpop.f32.mrb[36].mxu1  ;;  %v1665_v33 = vpop.permute.xlu1 %1664 }
 0x1c6   : > { %v2133_v37 = vpack.c.bf16 %v1695_v1, %v1695_v1  ;;  %v1696_v48 = vmul.f32 %v1655_v44, %v1584_v41  ;;  %v1546_v11 = vadd.f32 %v1513_v30, %v3420_v29  ;;  %v1515_v15 = vpop.f32.mrb[37].mxu1  ;;  %v1578_v42 = vmax.f32 %v1562_v34, 0.0  ;;  %v1670_v44 = vpop.permute.xlu0 %1669 }
 0x1c7   : > { %v1689_v13 = vmul.f32 %v3418_v38, %v1577_v40  ;;  %v1516_v47 = vpop.f32.mrb[38].mxu1  ;;  %v1489_v24 = vpop.f32.mrb[40].mxu0 }
 0x1c8   : > { %1776 = vst.msk [vmem:[%s2414_s11 + $0x20] sm:$0xf] %vm1767_vm4, %v2133_v37  ;;  %v2134_v32 = vpack.c.bf16 %v1696_v48, %v1696_v48  ;;  %v1569_v43 = vadd.f32 %v3439_v3, %v1546_v11  ;;  %v1690_v53 = vmul.f32 %v3424_v60, %v1578_v42  ;;  %v1547_v0 = vadd.f32 %v1516_v47, %v3422_v27  ;;  %v1518_v26 = vpop.f32.mrb[39].mxu1  ;;  %v1491_v29 = vpop.f32.mrb[41].mxu0 }
 0x1c9   : > { %v2127_v23 = vpack.c.bf16 %v1689_v13, %v1689_v13  ;;  %v1540_v18 = vadd.f32 %v1489_v24, %v3410_v19  ;;  %v1492_v49 = vpop.f32.mrb[42].mxu0  ;;  %v1675_v30 = vpop.permute.xlu1 %1674 }
 0x1ca   : > { %1777 = vst.msk [vmem:[%s2414_s11 + $0x24] sm:$0xf] %vm1767_vm4, %v2134_v32  ;;  %v1585_v38 = vmax.f32 %v1569_v43, 0.0  ;;  %v2128_v59 = vpack.c.bf16 %v1690_v53, %v1690_v53  ;;  %v1570_v17 = vadd.f32 %v3439_v3, %v1547_v0  ;;  %v1541_v9 = vadd.f32 %v1492_v49, %v3412_v36  ;;  %v1494_v25 = vpop.f32.mrb[43].mxu0 }
 0x1cb   : > { %1770 = vst.msk [vmem:[%s2414_s11 + $0x8] sm:$0xf] %vm1767_vm4, %v2127_v23  ;;  %v1563_v27 = vadd.f32 %v3439_v3, %v1540_v18  ;;  %v1680_v18 = vpop.permute.xlu0 %1679 }
 0x1cc   : > { %v1697_v60 = vmul.f32 %v1660_v45, %v1585_v38  ;;  %1771 = vst.msk [vmem:[%s2414_s11 + $0xc] sm:$0xf] %vm1767_vm4, %v2128_v59  ;;  %v1586_v19 = vmax.f32 %v1570_v17, 0.0  ;;  %v1564_v52 = vadd.f32 %v3439_v3, %v1541_v9 }
 0x1cd   : > { %v1579_v5 = vmax.f32 %v1563_v27, 0.0  ;;  %v1521_v46 = vpop.f32.mrb[40].mxu1 }
 0x1ce   : > { %v2135_v7 = vpack.c.bf16 %v1697_v60, %v1697_v60  ;;  %v1698_v54 = vmul.f32 %v1665_v33, %v1586_v19  ;;  %v1548_v36 = vadd.f32 %v1521_v46, %v3426_v4  ;;  %v1523_v58 = vpop.f32.mrb[41].mxu1  ;;  %v1580_v56 = vmax.f32 %v1564_v52, 0.0 }
 0x1cf   : > { %v1691_v35 = vmul.f32 %v3432_v39, %v1579_v5  ;;  %v1524_v57 = vpop.f32.mrb[42].mxu1  ;;  %v1497_v14 = vpop.f32.mrb[44].mxu0 }
 0x1d0   : > { %1778 = vst.msk [vmem:[%s2414_s11 + $0x28] sm:$0xf] %vm1767_vm4, %v2135_v7  ;;  %v2136_v10 = vpack.c.bf16 %v1698_v54, %v1698_v54  ;;  %v1571_v20 = vadd.f32 %v3439_v3, %v1548_v36  ;;  %v1692_v51 = vmul.f32 %v3430_v6, %v1580_v56  ;;  %v1549_v31 = vadd.f32 %v1524_v57, %v3428_v12  ;;  %v1526_v28 = vpop.f32.mrb[43].mxu1  ;;  %v1499_v4 = vpop.f32.mrb[45].mxu0 }
 0x1d1   : > { %v2129_v22 = vpack.c.bf16 %v1691_v35, %v1691_v35  ;;  %v1542_v21 = vadd.f32 %v1497_v14, %v3414_v2  ;;  %v1500_v55 = vpop.f32.mrb[46].mxu0 }
 0x1d2   : > { %1779 = vst.msk [vmem:[%s2414_s11 + $0x2c] sm:$0xf] %vm1767_vm4, %v2136_v10  ;;  %v1587_v39 = vmax.f32 %v1571_v20, 0.0  ;;  %v2130_v50 = vpack.c.bf16 %v1692_v51, %v1692_v51  ;;  %v1572_v1 = vadd.f32 %v3439_v3, %v1549_v31  ;;  %v1543_v41 = vadd.f32 %v1500_v55, %v3416_v16  ;;  %v1502_v34 = vpop.f32.mrb[47].mxu0 }
 0x1d3   : > { %1772 = vst.msk [vmem:[%s2414_s11 + $0x10] sm:$0xf] %vm1767_vm4, %v2129_v22  ;;  %v1565_v12 = vadd.f32 %v3439_v3, %v1542_v21 }
 0x1d4   : > { %v1699_v6 = vmul.f32 %v1670_v44, %v1587_v39  ;;  %1773 = vst.msk [vmem:[%s2414_s11 + $0x14] sm:$0xf] %vm1767_vm4, %v2130_v50  ;;  %v1588_v2 = vmax.f32 %v1572_v1, 0.0  ;;  %v1566_v40 = vadd.f32 %v3439_v3, %v1543_v41 }
 0x1d5   : > { %v1581_v37 = vmax.f32 %v1565_v12, 0.0  ;;  %v1529_v48 = vpop.f32.mrb[44].mxu1 }
 0x1d6   : > { %v2137_v11 = vpack.c.bf16 %v1699_v6, %v1699_v6  ;;  %v1700_v15 = vmul.f32 %v1675_v30, %v1588_v2  ;;  %v1550_v16 = vadd.f32 %v1529_v48, %v3434_v8  ;;  %v1531_v42 = vpop.f32.mrb[45].mxu1  ;;  %v1582_v13 = vmax.f32 %v1566_v40, 0.0 }
 0x1d7   : > { %v1693_v47 = vmul.f32 %v3447_v62, %v1581_v37  ;;  %v1532_v24 = vpop.f32.mrb[46].mxu1 }
 0x1d8   : > { %1780 = vst.msk [vmem:[%s2414_s11 + $0x30] sm:$0xf] %vm1767_vm4, %v2137_v11  ;;  %v2138_v32 = vpack.c.bf16 %v1700_v15, %v1700_v15  ;;  %v1573_v43 = vadd.f32 %v3439_v3, %v1550_v16  ;;  %v1694_v53 = vmul.f32 %v3449_v63, %v1582_v13  ;;  %v1551_v0 = vadd.f32 %v1532_v24, %v3441_v61  ;;  %v1534_v26 = vpop.f32.mrb[47].mxu1  ;;  %v1685_v63 = vpop.permute.xlu1 %1684 }
 0x1d9   : > { %v2131_v8 = vpack.c.bf16 %v1693_v47, %v1693_v47 }
 0x1da   : > { %1781 = vst.msk [vmem:[%s2414_s11 + $0x34] sm:$0xf] %vm1767_vm4, %v2138_v32  ;;  %v1589_v29 = vmax.f32 %v1573_v43, 0.0  ;;  %v2132_v23 = vpack.c.bf16 %v1694_v53, %v1694_v53  ;;  %v1574_v62 = vadd.f32 %v3439_v3, %v1551_v0 }
 0x1db   : > { %1774 = vst.msk [vmem:[%s2414_s11 + $0x18] sm:$0xf] %vm1767_vm4, %v2131_v8 }
 0x1dc   : > { %v1701_v49 = vmul.f32 %v1680_v18, %v1589_v29  ;;  %1775 = vst.msk [vmem:[%s2414_s11 + $0x1c] sm:$0xf] %vm1767_vm4, %v2132_v23  ;;  %v1590_v38 = vmax.f32 %v1574_v62, 0.0 }
 0x1de   : > { %v2139_v59 = vpack.c.bf16 %v1701_v49, %v1701_v49  ;;  %v1702_v17 = vmul.f32 %v1685_v63, %v1590_v38 }
 0x1e0   : > { %1782 = vst.msk [vmem:[%s2414_s11 + $0x38] sm:$0xf] %vm1767_vm4, %v2139_v59  ;;  %v2140_v61 = vpack.c.bf16 %v1702_v17, %v1702_v17 }
 0x1e2   : > { %1783 = vst.msk [vmem:[%s2414_s11 + $0x3c] sm:$0xf] %vm1767_vm4, %v2140_v61 }
 0x1e3 PF: > { %1786 = sbr.rel (!%p2417_p9) target bundleno = 492 (0x1ec), region = 44  ;;  %vm1787_vm5 = vcmask (%p2417_p9), 519168   ;;  %v2342_v3 = vmov (%p2417_p9), 0  }
 0x1e4   : > { %1788 = vst.msk [vmem:[%s2414_s11] sm:$0xf] (%p2417_p9), %vm1787_vm5, %v2342_v3  ;;  %1789 = vst.msk [vmem:[%s2414_s11 + $0x4] sm:$0xf] (%p2417_p9), %vm1787_vm5, %v2342_v3 }
 0x1e5   : > { %1790 = vst.msk [vmem:[%s2414_s11 + $0x8] sm:$0xf] (%p2417_p9), %vm1787_vm5, %v2342_v3  ;;  %1791 = vst.msk [vmem:[%s2414_s11 + $0xc] sm:$0xf] (%p2417_p9), %vm1787_vm5, %v2342_v3 }
 0x1e6   : > { %1792 = vst.msk [vmem:[%s2414_s11 + $0x10] sm:$0xf] (%p2417_p9), %vm1787_vm5, %v2342_v3  ;;  %1793 = vst.msk [vmem:[%s2414_s11 + $0x14] sm:$0xf] (%p2417_p9), %vm1787_vm5, %v2342_v3 }
 0x1e7   : > { %1794 = vst.msk [vmem:[%s2414_s11 + $0x18] sm:$0xf] (%p2417_p9), %vm1787_vm5, %v2342_v3  ;;  %1795 = vst.msk [vmem:[%s2414_s11 + $0x1c] sm:$0xf] (%p2417_p9), %vm1787_vm5, %v2342_v3 }
 0x1e8   : > { %1796 = vst.msk [vmem:[%s2414_s11 + $0x20] sm:$0xf] (%p2417_p9), %vm1787_vm5, %v2342_v3  ;;  %1797 = vst.msk [vmem:[%s2414_s11 + $0x24] sm:$0xf] (%p2417_p9), %vm1787_vm5, %v2342_v3 }
 0x1e9   : > { %1798 = vst.msk [vmem:[%s2414_s11 + $0x28] sm:$0xf] (%p2417_p9), %vm1787_vm5, %v2342_v3  ;;  %1799 = vst.msk [vmem:[%s2414_s11 + $0x2c] sm:$0xf] (%p2417_p9), %vm1787_vm5, %v2342_v3 }
 0x1ea   : > { %1800 = vst.msk [vmem:[%s2414_s11 + $0x30] sm:$0xf] %vm1787_vm5, %v2342_v3  ;;  %1801 = vst.msk [vmem:[%s2414_s11 + $0x34] sm:$0xf] %vm1787_vm5, %v2342_v3 }
 0x1eb   : > { %1802 = vst.msk [vmem:[%s2414_s11 + $0x38] sm:$0xf] %vm1787_vm5, %v2342_v3  ;;  %1803 = vst.msk [vmem:[%s2414_s11 + $0x3c] sm:$0xf] %vm1787_vm5, %v2342_v3 }
 0x1ec PF: > { %s14_s19 = sadd.s32 1, %s2338_s19   ;;  %s3715_s15 = smov %s2330_s17 }
 0x1ed   : > { %p11_p2 = scmp.ge.s32.totalorder %s14_s19, 18   ;;  %s3716_s16 = smov %s2334_s18 }
 0x1ee   : > { %s3717_s17 = smov %s3720_s20  ;;  %s3718_s18 = smov %s3724_s21 }
 0x1ef   :  { %13 = sbr.rel (!%p11_p2) target bundleno = 3 (0x3), region = 82 }

// kernel: adnet_forward.18
= control target key start
LH: loop header
LB: loop body
LE: loop exit
PB: predicated region body
PF: predicated region fallthrough
CT: control target
= control target key end

     0   :  { %s2865_s15 = smov 0   ;;  %s2867_s16 = smov 0   ;;  %s3995_s0 = inlined_call_operand.vmem [shape: bf16[2,1024,64], index: 0, kind: input, shape index: {}]   ;;  %s3996_s1 = inlined_call_operand.vmem [shape: bf16[3,192,64], index: 1, kind: input, shape index: {}]   ;;  %s3997_s2 = inlined_call_operand.vmem [shape: f32[1,64], index: 2, kind: input, shape index: {}]   ;;  %s3998_s3 = inlined_call_operand.vmem [shape: f32[1024,1], index: 3, kind: input, shape index: {}]   ;;  %s3999_s4 = inlined_call_operand.vmem [shape: bf16[2,1024,64], index: 4, kind: output, shape index: {}]  }
   0x1   :  { %s2869_s17 = smov 0   ;;  %s2871_s18 = smov 0  }
   0x2   :  { %s2873_s19 = smov 0  }
   0x3 LB: > { %s23_s20 = sadd.s32 1, %s2827_s17  ;;  %s26_s21 = sadd.s32 1, %s2831_s18  ;;  %s2835_s19 = sphi %s2873_s19, %s14_s19   ;;  %s2831_s18 = sphi %s2871_s18, %s4167_s18   ;;  %s2827_s17 = sphi %s2869_s17, %s4166_s17   ;;  %s2823_s16 = sphi %s2867_s16, %s4165_s16   ;;  %s2819_s15 = sphi %s2865_s15, %s4164_s15  }
   0x4   : > { %p24_p0 = scmp.ge.s32.totalorder %s23_s20, 8  ;;  %p2402_p1 = scmp.ge.s32.totalorder %s2835_s19, 1 }
   0x5   : > { %p187_p2 = scmp.lt.s32.totalorder %s2835_s19, 17 }
   0x6   : > { %s4169_s20 = smov (%p24_p0, %s23_s20), 0  ;;  %s4171_s21 = smov (!%p24_p0, %s26_s21), %s2831_s18 }
   0x7   : > { %p188_p3 = pnand %p2402_p1, %p187_p2  ;;  %p28_p4 = scmp.ge.s32.totalorder %s4171_s21, 2 }
   0x8   : > { %p222_p5 = scmp.lt.s32.totalorder (!%p188_p3), %s2823_s16, 1  ;;  %s2405_s22 = sshll.u32 (!%p188_p3), %s2819_s15, 4 }
   0x9   : > { %s4173_s21 = smov (%p28_p4, %s4171_s21), 0  ;;  %191 = sbr.rel (%p188_p3) target bundleno = 500 (0x1f4), region = 36 }
   0xa   : > { %p228_p6 = scmp.lt.s32.totalorder (!%p188_p3), %s2405_s22, 127  ;;  %s2410_s23 = sshll.u32 (!%p188_p3), %s2819_s15, 7 }
   0xb   : > { %p245_p7 = scmp.lt.s32.totalorder (!%p188_p3), %s2410_s23, 706  ;;  %s246_s12 = sadd.s32 (!%p188_p3), 128, %s2410_s23 }
   0xc   : > { %p247_p8 = scmp.gt.s32.totalorder (!%p188_p3), %s246_s12, 210 }
   0xe   : > { %p2910_p9 = pnand (!%p188_p3), %p247_p8, %p245_p7 }
  0x10   : > { %s4175_s16 = smov (!%p222_p5, %s2823_s16), 1  ;;  %s4177_s22 = smov (!%p228_p6, %s2405_s22), 127 }
  0x11   : > { %s2610_s24 = sshll.u32 %s4175_s16, 9  ;;  %s2408_s25 = sshll.u32 %s4175_s16, 7 }
  0x12   : > { %s2898_s28 = scalar_lea.vmem %s3995_s0, %s2610_s24  ;;  %s2406_s29 = sshll.u32 %s4177_s22, 3 }
  0x13   : > { %s2903_s6 = scalar_lea.vmem %s3998_s3, %s2406_s29  ;;  %s239_s7 = sadd.s32 %s2408_s25, %s4177_s22 }
  0x14   : > { %s2409_s8 = sshll.u32 %s239_s7, 2  ;;  %251 = sbr.rel (%p2910_p9) target bundleno = 491 (0x1eb), region = 40 }
  0x15   : > { %s2908_s11 = scalar_lea.vmem %s3999_s4, %s2409_s8 }
  0x1b   : > { %s493_s14 = sadd.s32 4294967280, %s2410_s23  ;;  %v2726_v0 = vld [vmem:[%s3996_s1 + $0x60] sm:$0xff]   ;;  %v4007_v1 = vmov 0   ;;  %s252_s22 = sadd.s32 4294967248, %s2410_s23  ;;  %v2728_v3 = vld [vmem:[%s3996_s1 + $0x68] sm:$0xff]   ;;  %v2730_v5 = vld [vmem:[%s3996_s1 + $0x70] sm:$0xff]  }
  0x1c   : > { %p494_p10 = scmp.gt.s32.totalorder %s493_s14, 0  ;;  %p2435_p11 = scmp.lt.s32.totalorder %s493_s14, 864  ;;  %988 = vmatprep.subr.bf16.mxu0 %v4007_v1  ;;  %1340 = vmatprep.subr.bf16.mxu1 %v4007_v1  ;;  %v2727_v2 = vld [vmem:[%s3996_s1] sm:$0xff]   ;;  %v2729_v4 = vld [vmem:[%s3996_s1 + $0x8] sm:$0xff]   ;;  %v2731_v6 = vld [vmem:[%s3996_s1 + $0x10] sm:$0xff]   ;;  %vm423_vm1 = vcmask 1042432  }
  0x1d   : > { %s2921_s24 = sadd.s32 16, %s2410_s23  ;;  %989 = vmatpush1.bf16.msra.mxu0 %v2726_v0  ;;  %2700 = vset.pattern.permute.xlu1 %v4007_v1  ;;  %p253_p12 = scmp.gt.s32.totalorder %s252_s22, 0  ;;  %vm330_vm0 = vsmask.f32 3328  ;;  %v2732_v9 = vld [vmem:[%s3996_s1 + $0x78] sm:$0xff]   ;;  %v2734_v22 = vld [vmem:[%s3996_s1 + $0x80] sm:$0xff]  }
  0x1e   : > { %s495_s25 = scalar_select %p494_p10, %s493_s14, 0  ;;  %990 = vmatprep.subr.bf16.mxu0 %v4007_v1  ;;  %2701 = vset.pattern.permute.xlu0 %v4007_v1  ;;  %v2733_v17 = vld [vmem:[%s3996_s1 + $0x18] sm:$0xff]   ;;  %v2735_v33 = vld [vmem:[%s3996_s1 + $0x20] sm:$0xff]   ;;  %v2736_v50 = vld [vmem:[%s3996_s1 + $0x88] sm:$0xff]   ;;  %vm441_vm2 = vcmask 523264   ;;  %vm2259_vm4 = vcmask 519168  }
  0x1f   : > { %p2411_p13 = scmp.lt.s32.totalorder %s252_s22, 864  ;;  %1341 = vmatpush1.bf16.msra.mxu1 %v2727_v2  ;;  %p1438_p0 = scmp.gt.s32.totalorder %s2921_s24, 0  ;;  %vm732_vm3 = vsmask.f32 4352 }
  0x20   : > { %s4179_s25 = smov (!%p2435_p11, %s495_s25), 864  ;;  %1342 = vmatprep.subr.bf16.mxu1 %v4007_v1  ;;  %p2523_p1 = scmp.lt.s32.totalorder %s2921_s24, 864 }
  0x21   : > { %s254_s7 = scalar_select %p253_p12, %s252_s22, 0  ;;  %991 = vmatpush1.bf16.msra.mxu0 %v2728_v3  ;;  %v2737_v3 = vld [vmem:[%s3996_s1 + $0x28] sm:$0xff]  }
  0x22   : > { %s498_s10 = sshra.s32 %s4179_s25, 3  ;;  %992 = vmatprep.subr.bf16.mxu0 %v4007_v1  ;;  %s2838_s14 = smov 64  }
  0x23   : > { %s2440_s12 = sshll.u32 %s498_s10, 2  ;;  %1343 = vmatpush1.bf16.msra.mxu1 %v2729_v4  ;;  %s4181_s7 = smov (!%p2411_p13, %s254_s7), 864 }
  0x24   : > { %s2946_s16 = scalar_lea.vmem %s2898_s28, %s2440_s12  ;;  %1344 = vmatprep.subr.bf16.mxu1 %v4007_v1  ;;  %s257_s22 = sshra.s32 %s4181_s7, 3 }
  0x25   : > { %v503_v7 = vld [vmem:[%s2946_s16 + $0x8] sm:$0xf]  ;;  %v2950_v8 = vld [vmem:[%s2946_s16 + $0xc] sm:$0xf]  ;;  %993 = vmatpush1.bf16.msra.mxu0 %v2730_v5  ;;  %v2961_v11 = vld [vmem:[%s2946_s16 + $0x10] sm:$0xf] }
  0x26   : > { %4049 = vst [vmem:[#allocation2_spill] sm:$0xff] %v2950_v8  ;;  %v2958_v10 = vcombine.low %v503_v7, %v2950_v8  ;;  %4050 = vst [vmem:[#allocation3_spill] sm:$0xff] %v2961_v11  ;;  %v2964_v12 = vld [vmem:[%s2946_s16 + $0x14] sm:$0xf]  ;;  %v2967_v13 = vld [vmem:[%s2946_s16 + $0x18] sm:$0xf]  ;;  %994 = vmatprep.subr.bf16.mxu0 %v4007_v1 }
  0x27   : > { %v2972_v14 = vcombine.low %v2961_v11, %v2964_v12  ;;  %v2975_v15 = vld [vmem:[%s2946_s16 + $0x1c] sm:$0xf]  ;;  %v2978_v16 = vld [vmem:[%s2946_s16 + $0x20] sm:$0xf]  ;;  %s2416_s30 = sshll.u32 %s257_s22, 2  ;;  %1345 = vmatpush1.bf16.msra.mxu1 %v2731_v6 }
  0x28   : > { %v572_v18 = vshrl.u32 %v2958_v10, 16  ;;  %v575_v19 = vshll.u32 %v2958_v10, 16  ;;  %v2987_v20 = vcombine.low %v2967_v13, %v2975_v15  ;;  %v2990_v21 = vld [vmem:[%s2946_s16 + $0x24] sm:$0xf]  ;;  %s2998_s7 = scalar_lea.vmem %s2898_s28, %s2416_s30  ;;  %v3003_v26 = vld [vmem:[%s2946_s16 + $0x28] sm:$0xf]  ;;  %1346 = vmatprep.subr.bf16.mxu1 %v4007_v1 }
  0x29   : > { %v580_v24 = vshrl.u32 %v2972_v14, 16  ;;  %v583_v25 = vshll.u32 %v2972_v14, 16  ;;  %v3006_v27 = vld [vmem:[%s2946_s16 + $0x2c] sm:$0xf]  ;;  %995 = vmatpush1.bf16.msra.mxu0 %v2732_v9  ;;  %v3010_v30 = vld [vmem:[%s2998_s7 + $0x8] sm:$0xf]  ;;  %v3017_v32 = vcombine.low %v2978_v16, %v2990_v21 }
  0x2a   : > { %v574_v28 = vrot.slane %v572_v18, 4  ;;  %v577_v29 = vrot.slane %v575_v19, 5  ;;  %v3013_v31 = vld [vmem:[%s2998_s7 + $0xc] sm:$0xf]  ;;  %996 = vmatprep.subr.bf16.mxu0 %v4007_v1  ;;  %v3028_v37 = vld [vmem:[%s2998_s7 + $0x10] sm:$0xf]  ;;  %v3035_v39 = vcombine.low %v3003_v26, %v3006_v27 }
  0x2b   : > { %v3025_v34 = vcombine.low %v3010_v30, %v3013_v31  ;;  %v582_v35 = vrot.slane %v580_v24, 4  ;;  %v585_v36 = vrot.slane %v583_v25, 5  ;;  %v3031_v38 = vld [vmem:[%s2998_s7 + $0x14] sm:$0xf]  ;;  %v589_v42 = vshrl.u32 %v2987_v20, 16  ;;  %1347 = vmatpush1.bf16.msra.mxu1 %v2733_v17  ;;  %s1439_s15 = scalar_select %p1438_p0, %s2921_s24, 0 }
  0x2c   : > { %v578_v40 = vor.u32 %v577_v29, %v574_v28  ;;  %v3039_v41 = vcombine.low %v3028_v37, %v3031_v38  ;;  %v592_v43 = vshll.u32 %v2987_v20, 16  ;;  %v3044_v44 = vld [vmem:[%s2998_s7 + $0x18] sm:$0xf]  ;;  %v3047_v45 = vld [vmem:[%s2998_s7 + $0x1c] sm:$0xf]  ;;  %1348 = vmatprep.subr.bf16.mxu1 %v4007_v1  ;;  %v598_v6 = vshrl.u32 %v3017_v32, 16 }
  0x2d   : > { %v332_v46 = vshrl.u32 %v3025_v34, 16  ;;  %v335_v47 = vshll.u32 %v3025_v34, 16  ;;  %v586_v48 = vor.u32 %v585_v36, %v582_v35  ;;  %v3053_v49 = vcombine.low %v3044_v44, %v3047_v45  ;;  %997 = vmatpush1.bf16.msra.mxu0 %v2734_v22  ;;  %v3064_v55 = vld [vmem:[%s2998_s7 + $0x20] sm:$0xf]  ;;  %v3070_v60 = vld [vmem:[%s2998_s7 + $0x24] sm:$0xf] }
  0x2e   : > { %642 = vrot.lane.b32.xlu1 %v578_v40, %s2838_s14  ;;  %v340_v51 = vshrl.u32 %v3039_v41, 16  ;;  %v343_v52 = vshll.u32 %v3039_v41, 16  ;;  %v591_v53 = vrot.slane %v589_v42, 4  ;;  %v594_v54 = vrot.slane %v592_v43, 5  ;;  %998 = vmatprep.subr.bf16.mxu0 %v4007_v1  ;;  %4051 = vst [vmem:[#allocation4_spill] sm:$0xff] %v3070_v60  ;;  %v2738_v28 = vld [vmem:[%s3996_s1 + $0x90] sm:$0xff]  }
  0x2f   : > { %v334_v56 = vrot.slane %v332_v46, 4  ;;  %v337_v57 = vrot.slane %v335_v47, 5  ;;  %v587_v58 = vsel %vm330_vm0, %v578_v40, %v586_v48  ;;  %v349_v59 = vshrl.u32 %v3053_v49, 16  ;;  %v3077_v2 = vld [vmem:[%s2998_s7 + $0x28] sm:$0xf]  ;;  %1349 = vmatpush1.bf16.msra.mxu1 %v2735_v33  ;;  %s4183_s15 = smov (!%p2523_p1, %s1439_s15), 864 }
  0x30   : > { %v342_v61 = vrot.slane %v340_v51, 4  ;;  %v345_v62 = vrot.slane %v343_v52, 5  ;;  %v595_v63 = vor.u32 %v594_v54, %v591_v53  ;;  %v352_v0 = vshll.u32 %v3053_v49, 16  ;;  %4052 = vst [vmem:[#allocation5_spill] sm:$0xff] %v3077_v2  ;;  %v3085_v9 = vld [vmem:[%s2998_s7 + $0x2c] sm:$0xf]  ;;  %1350 = vmatprep.subr.bf16.mxu1 %v4007_v1 }
  0x31   : > { %v338_v4 = vor.u32 %v337_v57, %v334_v56  ;;  %v351_v5 = vrot.slane %v349_v59, 4  ;;  %v601_v7 = vshll.u32 %v3017_v32, 16  ;;  %999 = vmatpush1.bf16.msra.mxu0 %v2736_v50  ;;  %v3092_v22 = vcombine.low %v3064_v55, %v3070_v60  ;;  %v3095_v24 = vld [vmem:[%s2946_s16 + $0x30] sm:$0xf]  ;;  %v3098_v25 = vld [vmem:[%s2946_s16 + $0x34] sm:$0xf] }
  0x32   : > { %644 = vrot.lane.b32.xlu1 %v587_v58, %s2838_s14  ;;  %v346_v17 = vor.u32 %v345_v62, %v342_v61  ;;  %v596_v18 = vsel %vm330_vm0, %v586_v48, %v595_v63  ;;  %v354_v19 = vrot.slane %v352_v0, 5  ;;  %1000 = vmatprep.subr.bf16.mxu0 %v4007_v1  ;;  %v600_v29 = vrot.slane %v598_v6, 4  ;;  %v3119_v52 = vld [vmem:[%s2998_s7 + $0x30] sm:$0xf]  ;;  %v3122_v53 = vld [vmem:[%s2998_s7 + $0x34] sm:$0xf] }
  0x33   : > { %402 = vrot.lane.b32.xlu0 %v338_v4, %s2838_s14  ;;  %v603_v33 = vrot.slane %v601_v7, 5  ;;  %v607_v35 = vshrl.u32 %v3035_v39, 16  ;;  %v610_v36 = vshll.u32 %v3035_v39, 16  ;;  %v358_v43 = vshrl.u32 %v3092_v22, 16  ;;  %1351 = vmatpush1.bf16.msra.mxu1 %v2737_v3  ;;  %v3132_v59 = vld [vmem:[%s2946_s16 + $0x38] sm:$0xf] }
  0x34   : > { %v347_v40 = vsel %vm330_vm0, %v338_v4, %v346_v17  ;;  %v355_v42 = vor.u32 %v354_v19, %v351_v5  ;;  %v361_v46 = vshll.u32 %v3092_v22, 16  ;;  %v3116_v51 = vcombine.low %v3077_v2, %v3085_v9  ;;  %1352 = vmatprep.subr.bf16.mxu1 %v4007_v1  ;;  %v3135_v61 = vld [vmem:[%s2946_s16 + $0x3c] sm:$0xf]  ;;  %v3143_v5 = vld [vmem:[%s2998_s7 + $0x38] sm:$0xf]  ;;  %s1442_s24 = sshra.s32 %s4183_s15, 3 }
  0x35   : > { %v604_v47 = vor.u32 %v603_v33, %v600_v29  ;;  %v609_v48 = vrot.slane %v607_v35, 4  ;;  %v612_v50 = vrot.slane %v610_v36, 5  ;;  %1001 = vmatpush1.bf16.msra.mxu0 %v2738_v28  ;;  %v360_v56 = vrot.slane %v358_v43, 4  ;;  %4055 = vst [vmem:[#allocation8_spill] sm:$0xff] %v3135_v61  ;;  %v3146_v6 = vld [vmem:[%s2998_s7 + $0x3c] sm:$0xf] }
  0x36   : > { %4053 = vst [vmem:[#allocation6_spill] sm:$0xff] %v3116_v51  ;;  %646 = vrot.lane.b32.xlu1 %v596_v18, %s2838_s14  ;;  %v356_v54 = vsel %vm330_vm0, %v346_v17, %v355_v42  ;;  %v363_v57 = vrot.slane %v361_v46, 5  ;;  %v3129_v58 = vcombine.low %v3095_v24, %v3098_v25  ;;  %1002 = vmatprep.subr.bf16.mxu0 %v4007_v1  ;;  %v367_v3 = vshrl.u32 %v3116_v51, 16  ;;  %v3149_v7 = vld [vmem:[%s2946_s16 + $0x40] sm:$0xf]  ;;  %v2739_v18 = vld [vmem:[%s3996_s1 + $0x30] sm:$0xff]  }
  0x37   : > { %404 = vrot.lane.b32.xlu0 %v347_v40, %s2838_s14  ;;  %v605_v62 = vsel %vm330_vm0, %v595_v63, %v604_v47  ;;  %v613_v0 = vor.u32 %v612_v50, %v609_v48  ;;  %v370_v4 = vshll.u32 %v3116_v51, 16  ;;  %4056 = vst [vmem:[#allocation9_spill] sm:$0xff] %v3146_v6  ;;  %4057 = vst [vmem:[#allocation10_spill] sm:$0xff] %v3149_v7  ;;  %v518_v17 = vld [vmem:[%s2946_s16 + $0x44] sm:$0xf]  ;;  %s2528_s23 = sshll.u32 %s1442_s24, 2  ;;  %1353 = vmatpush1.bf16.msra.mxu1 %v2739_v18 }
  0x38   : > { %4054 = vst [vmem:[#allocation7_spill] sm:$0xff] %v3129_v58  ;;  %v364_v19 = vor.u32 %v363_v57, %v360_v56  ;;  %v616_v63 = vshrl.u32 %v3129_v58, 16  ;;  %v619_v28 = vshll.u32 %v3129_v58, 16  ;;  %v3160_v29 = vcombine.low %v3119_v52, %v3122_v53  ;;  %v2740_v33 = vld [vmem:[%s3996_s1 + $0x98] sm:$0xff]   ;;  %s3171_s9 = scalar_lea.vmem %s2898_s28, %s2528_s23  ;;  %1354 = vmatprep.subr.bf16.mxu1 %v4007_v1  ;;  %v2742_v18 = vld [vmem:[%s3996_s1 + $0xa0] sm:$0xff]  }
  0x39   : > { %v614_v35 = vsel %vm330_vm0, %v604_v47, %v613_v0  ;;  %v369_v36 = vrot.slane %v367_v3, 4  ;;  %v372_v40 = vrot.slane %v370_v4, 5  ;;  %v3168_v43 = vcombine.low %v3132_v59, %v3135_v61  ;;  %v2741_v47 = vld [vmem:[%s3996_s1 + $0x38] sm:$0xff]   ;;  %v3187_v4 = vld [vmem:[%s2998_s7 + $0x40] sm:$0xf]  ;;  %1003 = vmatpush1.bf16.msra.mxu0 %v2740_v33 }
  0x3a   : > { %4058 = vst [vmem:[#allocation11_spill] sm:$0xff] %v3160_v29  ;;  %648 = vrot.lane.b32.xlu1 %v605_v62, %s2838_s14  ;;  %v365_v46 = vsel %vm330_vm0, %v355_v42, %v364_v19  ;;  %v618_v48 = vrot.slane %v616_v63, 4  ;;  %v621_v50 = vrot.slane %v619_v28, 5  ;;  %v376_v56 = vshrl.u32 %v3160_v29, 16  ;;  %4060 = vst [vmem:[#allocation13_spill] sm:$0xff] %v3187_v4  ;;  %1004 = vmatprep.subr.bf16.mxu0 %v4007_v1 }
  0x3b   : > { %4059 = vst [vmem:[#allocation12_spill] sm:$0xff] %v3168_v43  ;;  %406 = vrot.lane.b32.xlu0 %v356_v54, %s2838_s14  ;;  %v3181_v57 = vor.u32 %v372_v40, %v369_v36  ;;  %v379_v62 = vshll.u32 %v3160_v29, 16  ;;  %v625_v42 = vshrl.u32 %v3168_v43, 16  ;;  %v628_v3 = vshll.u32 %v3168_v43, 16  ;;  %v277_v40 = vld [vmem:[%s2998_s7 + $0x44] sm:$0xf]  ;;  %1355 = vmatpush1.bf16.msra.mxu1 %v2741_v47 }
  0x3c   : > { %v622_v63 = vor.u32 %v621_v50, %v618_v48  ;;  %v378_v28 = vrot.slane %v376_v56, 4  ;;  %v3194_v54 = vcombine.low %v3143_v5, %v3146_v6  ;;  %v3197_v36 = vcombine.low %v3149_v7, %v518_v17  ;;  %v1447_v23 = vld [vmem:[%s3171_s9 + $0x8] sm:$0xf]  ;;  %v3205_v48 = vld [vmem:[%s3171_s9 + $0xc] sm:$0xf]  ;;  %v2743_v17 = vld [vmem:[%s3996_s1 + $0x40] sm:$0xff]   ;;  %1356 = vmatprep.subr.bf16.mxu1 %v4007_v1 }
  0x3d   : > { %v374_v33 = vsel %vm330_vm0, %v364_v19, %v3181_v57  ;;  %v381_v11 = vrot.slane %v379_v62, 5  ;;  %v627_v8 = vrot.slane %v625_v42, 4  ;;  %v630_v43 = vrot.slane %v628_v3, 5  ;;  %4063 = vst [vmem:[#allocation16_spill] sm:$0xff] %v3205_v48  ;;  %v3216_v42 = vld [vmem:[%s3171_s9 + $0x10] sm:$0xf]  ;;  %1005 = vmatpush1.bf16.msra.mxu0 %v2742_v18 }
  0x3e   : > { %4061 = vst [vmem:[#allocation14_spill] sm:$0xff] %v3194_v54  ;;  %4062 = vst [vmem:[#allocation15_spill] sm:$0xff] %v3197_v36  ;;  %650 = vrot.lane.b32.xlu1 %v614_v35, %s2838_s14  ;;  %v623_v50 = vsel %vm330_vm0, %v613_v0, %v622_v63  ;;  %v385_v56 = vshrl.u32 %v3194_v54, 16  ;;  %v388_v19 = vshll.u32 %v3194_v54, 16  ;;  %v634_v62 = vshrl.u32 %v3197_v36, 16  ;;  %v2746_v6 = vld [vmem:[%s3996_s1 + $0xa8] sm:$0xff]  }
  0x3f   : > { %4064 = vst [vmem:[#allocation17_spill] sm:$0xff] %v3216_v42  ;;  %408 = vrot.lane.b32.xlu0 %v365_v46, %s2838_s14  ;;  %v382_v47 = vor.u32 %v381_v11, %v378_v28  ;;  %v631_v3 = vor.u32 %v630_v43, %v627_v8  ;;  %v637_v35 = vshll.u32 %v3197_v36, 16  ;;  %v3222_v0 = vcombine.low %v3187_v4, %v277_v40  ;;  %v3225_v29 = vld [vmem:[%s3171_s9 + $0x14] sm:$0xf]  ;;  %v3228_v54 = vld [vmem:[%s3171_s9 + $0x20] sm:$0xf] }
  0x40   : > { %4066 = vst [vmem:[#allocation19_spill] sm:$0xff] %v3225_v29  ;;  %4067 = vst [vmem:[#allocation20_spill] sm:$0xff] %v3228_v54  ;;  %v387_v1 = vrot.slane %v385_v56, 4  ;;  %v390_v61 = vrot.slane %v388_v19, 5  ;;  %v636_v11 = vrot.slane %v634_v62, 4  ;;  %v3234_v8 = vcombine.low %v1447_v23, %v3205_v48  ;;  %1357 = vmatpush1.bf16.msra.mxu1 %v2743_v17  ;;  %v2747_v56 = vld [vmem:[%s3996_s1 + $0x48] sm:$0xff]  }
  0x41   : > { %4065 = vst [vmem:[#allocation18_spill] sm:$0xff] %v3222_v0  ;;  %v3237_v43 = vld [vmem:[%s3171_s9 + $0x24] sm:$0xf]  ;;  %v4070_v46 = vmov 0   ;;  %v632_v28 = vsel %vm330_vm0, %v622_v63, %v631_v3  ;;  %v639_v40 = vrot.slane %v637_v35, 5  ;;  %v394_v18 = vshrl.u32 %v3222_v0, 16 }
  0x42   : > { %4068 = vst [vmem:[#allocation21_spill] sm:$0xff] %v3234_v8  ;;  %4069 = vst [vmem:[#allocation22_spill] sm:$0xff] %v3237_v43  ;;  %1006 = vmatprep.subr.bf16.mxu0 %v4070_v46  ;;  %v3243_v36 = vld [vmem:[%s3171_s9 + $0x28] sm:$0xf]  ;;  %652 = vrot.lane.b32.xlu1 %v623_v50, %s2838_s14  ;;  %v391_v23 = vor.u32 %v390_v61, %v387_v1  ;;  %v397_v19 = vshll.u32 %v3222_v0, 16  ;;  %v1516_v62 = vshrl.u32 %v3234_v8, 16 }
  0x43   : > { %4071 = vst [vmem:[#allocation23_spill] sm:$0xff] %v3243_v36  ;;  %v1519_v63 = vshll.u32 %v3234_v8, 16  ;;  %v3253_v35 = vld [vmem:[%s3171_s9 + $0x2c] sm:$0xf]  ;;  %1358 = vmatprep.subr.bf16.mxu1 %v4070_v46  ;;  %410 = vrot.lane.b32.xlu0 %v374_v33, %s2838_s14  ;;  %v3257_v17 = vor.u32 %v639_v40, %v636_v11  ;;  %v396_v48 = vrot.slane %v394_v18, 4  ;;  %v3261_v1 = vcombine.low %v3216_v42, %v3225_v29  ;;  %v2750_v33 = vld [vmem:[%s3996_s1 + $0xb0] sm:$0xff]  }
  0x44   : > { %4072 = vst [vmem:[#allocation24_spill] sm:$0xff] %v3253_v35  ;;  %v3265_v61 = vcombine.low %v3228_v54, %v3237_v43  ;;  %v3268_v50 = vld [vmem:[%s3171_s9 + $0x30] sm:$0xf]  ;;  %v3271_v8 = vld [vmem:[%s3171_s9 + $0x34] sm:$0xf]  ;;  %1007 = vmatpush1.bf16.msra.mxu0 %v2746_v6  ;;  %v383_v11 = vsel %vm330_vm0, %v3181_v57, %v382_v47  ;;  %v399_v40 = vrot.slane %v397_v19, 5  ;;  %v392_v43 = vsel %vm330_vm0, %v382_v47, %v391_v23 }
  0x45   : > { %4073 = vst [vmem:[#allocation25_spill] sm:$0xff] %v3261_v1  ;;  %4075 = vst [vmem:[#allocation27_spill] sm:$0xff] %v3268_v50  ;;  %v1518_v18 = vrot.slane %v1516_v62, 4  ;;  %v1521_v29 = vrot.slane %v1519_v63, 5  ;;  %v3279_v0 = vld [vmem:[%s3171_s9 + $0x18] sm:$0xf]  ;;  %1008 = vmatprep.subr.bf16.mxu0 %v4070_v46  ;;  %v3293_v57 = vcombine.low %v3243_v36, %v3253_v35  ;;  %1359 = vmatpush1.bf16.msra.mxu1 %v2747_v56 }
  0x46   : > { %4074 = vst [vmem:[#allocation26_spill] sm:$0xff] %v3265_v61  ;;  %4076 = vst [vmem:[#allocation28_spill] sm:$0xff] %v3271_v8  ;;  %v3282_v54 = vld [vmem:[%s3171_s9 + $0x1c] sm:$0xf]  ;;  %v2751_v6 = vld [vmem:[%s3996_s1 + $0x50] sm:$0xff]   ;;  %v1524_v42 = vshrl.u32 %v3261_v1, 16  ;;  %654 = vrot.lane.b32.xlu1 %v632_v28, %s2838_s14  ;;  %v641_v47 = vsel %vm330_vm0, %v631_v3, %v3257_v17  ;;  %1360 = vmatprep.subr.bf16.mxu1 %v4070_v46 }
  0x47   : > { %4077 = vst [vmem:[#allocation29_spill] sm:$0xff] %v3279_v0  ;;  %4078 = vst [vmem:[#allocation30_spill] sm:$0xff] %v3282_v54  ;;  %v1527_v4 = vshll.u32 %v3261_v1, 16  ;;  %v3296_v19 = vld [vmem:[%s3171_s9 + $0x38] sm:$0xf]  ;;  %v3307_v1 = vor.u32 %v399_v40, %v396_v48  ;;  %v1542_v35 = vshrl.u32 %v3265_v61, 16  ;;  %412 = vrot.lane.b32.xlu0 %v383_v11, %s2838_s14  ;;  %v3318_v3 = vor.u32 %v1521_v29, %v1518_v18 }
  0x48   : > { %4079 = vst [vmem:[#allocation31_spill] sm:$0xff] %v3293_v57  ;;  %v3299_v62 = vld [vmem:[%s3171_s9 + $0x3c] sm:$0xf]  ;;  %v1545_v36 = vshll.u32 %v3265_v61, 16  ;;  %v1526_v56 = vrot.slane %v1524_v42, 4  ;;  %v1551_v58 = vshrl.u32 %v3293_v57, 16  ;;  %1009 = vmatpush1.bf16.msra.mxu0 %v2750_v33  ;;  %v3322_v61 = vcombine.low %v3268_v50, %v3271_v8 }
  0x49   : > { %4080 = vst [vmem:[#allocation32_spill] sm:$0xff] %v3299_v62  ;;  %v2754_v63 = vld [vmem:[%s3996_s1 + $0xb8] sm:$0xff]   ;;  %v1529_v7 = vrot.slane %v1527_v4, 5  ;;  %v1554_v28 = vshll.u32 %v3293_v57, 16  ;;  %v1544_v40 = vrot.slane %v1542_v35, 4  ;;  %1010 = vmatprep.subr.bf16.mxu0 %v4070_v46  ;;  %v401_v42 = vsel %vm330_vm0, %v391_v23, %v3307_v1  ;;  %1361 = vmatpush1.bf16.msra.mxu1 %v2751_v6 }
  0x4a   : > { %v2755_v48 = vld [vmem:[%s3996_s1 + $0x58] sm:$0xff]   ;;  %v1547_v51 = vrot.slane %v1545_v36, 5  ;;  %4081 = vst [vmem:[#allocation33_spill] sm:$0xff] %v3322_v61  ;;  %v3325_v11 = vld [vmem:[%s3171_s9 + $0x40] sm:$0xf]  ;;  %v1553_v33 = vrot.slane %v1551_v58, 4  ;;  %v3333_v29 = vcombine.low %v3279_v0, %v3282_v54  ;;  %656 = vrot.lane.b32.xlu1 %v641_v47, %s2838_s14  ;;  %v3340_v8 = vcombine.low %v3296_v19, %v3299_v62  ;;  %1362 = vmatprep.subr.bf16.mxu1 %v4070_v46 }
  0x4b   : > { %v1462_v4 = vld [vmem:[%s3171_s9 + $0x44] sm:$0xf]  ;;  %v1556_v57 = vrot.slane %v1554_v28, 5  ;;  %v1530_v36 = vor.u32 %v1529_v7, %v1526_v56  ;;  %v1560_v35 = vshrl.u32 %v3322_v61, 16  ;;  %v1563_v18 = vshll.u32 %v3322_v61, 16  ;;  %414 = vrot.lane.b32.xlu0 %v392_v43, %s2838_s14  ;;  %v4107_v50 = vld [vmem:[#allocation21_spill] sm:$0xff] }
  0x4c   : > { %v1548_v58 = vor.u32 %v1547_v51, %v1544_v40  ;;  %v1533_v28 = vshrl.u32 %v3333_v29, 16  ;;  %v1536_v6 = vshll.u32 %v3333_v29, 16  ;;  %1011 = vmatpush1.bf16.msra.mxu0 %v2754_v63  ;;  %v1569_v56 = vshrl.u32 %v3340_v8, 16 }
  0x4d   : > { %v1557_v23 = vor.u32 %v1556_v57, %v1553_v33  ;;  %v1562_v7 = vrot.slane %v1560_v35, 4  ;;  %v1565_v47 = vrot.slane %v1563_v18, 5  ;;  %v1572_v61 = vshll.u32 %v3340_v8, 16  ;;  %1931 = vmatprep.subr.bf16.mxu0 %v4070_v46  ;;  %1363 = vmatpush1.bf16.msra.mxu1 %v2755_v48  ;;  %v3361_v18 = vld [vmem:[%s2998_s7 + $0x4] sm:$0xf] }
  0x4e   : > { %v1535_v62 = vrot.slane %v1533_v28, 4  ;;  %v1538_v54 = vrot.slane %v1536_v6, 5  ;;  %v3350_v43 = vcombine.low %v3325_v11, %v1462_v4  ;;  %658 = vrot.lane.b32.xlu1 %v3257_v17, %s2838_s14  ;;  %v1531_v51 = vsel %vm330_vm0, %v3318_v3, %v1530_v36  ;;  %2633 = vmatprep.subr.bf16.mxu1 %v4070_v46 }
  0x4f   : > { %v1566_v57 = vor.u32 %v1565_v47, %v1562_v7  ;;  %v1571_v63 = vrot.slane %v1569_v56, 4  ;;  %v1574_v40 = vrot.slane %v1572_v61, 5  ;;  %416 = vrot.lane.b32.xlu0 %v401_v42, %s2838_s14  ;;  %v1558_v48 = vsel %vm330_vm0, %v1548_v58, %v1557_v23 }
  0x50   : > { %v1539_v33 = vor.u32 %v1538_v54, %v1535_v62  ;;  %v1578_v35 = vshrl.u32 %v3350_v43, 16  ;;  %v1581_v4 = vshll.u32 %v3350_v43, 16 }
  0x51   : > { %v1567_v28 = vsel %vm330_vm0, %v1557_v23, %v1566_v57  ;;  %v1575_v6 = vor.u32 %v1574_v40, %v1571_v63  ;;  %v663_v40 = vrot.slane %v2958_v10, 5 }
  0x52   : > { %v3370_v42 = vsel %vm330_vm0, %v1530_v36, %v1539_v33  ;;  %v3373_v54 = vsel %vm330_vm0, %v1539_v33, %v1548_v58  ;;  %v1580_v62 = vrot.slane %v1578_v35, 4  ;;  %v1583_v7 = vrot.slane %v1581_v4, 5  ;;  %1588 = vrot.lane.b32.xlu1 %v1531_v51, %s2838_s14 }
  0x53   : > { %v1576_v47 = vsel %vm330_vm0, %v1566_v57, %v1575_v6  ;;  %418 = vrot.lane.b32.xlu0 %v3307_v1, %s2838_s14  ;;  %v664_v33 = vrot.slane %v2972_v14, 5  ;;  %v424_v35 = vrot.slane %v3025_v34, 5  ;;  %v425_v4 = vrot.slane %v3039_v41, 5 }
  0x54   : > { %v3385_v36 = vor.u32 %v1583_v7, %v1580_v62  ;;  %v666_v62 = vrot.slane %v2987_v20, 5  ;;  %v749_v57 = vshrl.u32 %v663_v40, 16  ;;  %v752_v58 = vshll.u32 %v663_v40, 16 }
  0x55   : > { %v665_v7 = vsel %vm423_vm1, %v663_v40, %v664_v33  ;;  %v1101_v10 = vshrl.u32 %v424_v35, 16  ;;  %v1104_v51 = vshll.u32 %v424_v35, 16 }
  0x56   : > { %v1585_v1 = vsel %vm330_vm0, %v1575_v6, %v3385_v36  ;;  %1596 = vrot.lane.b32.xlu1 %v1567_v28, %s2838_s14  ;;  %v757_v14 = vshrl.u32 %v665_v7, 16  ;;  %v760_v34 = vshll.u32 %v665_v7, 16  ;;  %v426_v6 = vsel %vm423_vm1, %v424_v35, %v425_v4 }
  0x57   : > { %1586 = vrot.lane.b32.xlu0 %v3318_v3, %s2838_s14  ;;  %v751_v23 = vrot.slane %v749_v57, 3  ;;  %v754_v63 = vrot.slane %v752_v58, 4  ;;  %v1103_v41 = vrot.slane %v1101_v10, 3  ;;  %v1109_v17 = vshrl.u32 %v426_v6, 16 }
  0x58   : > { %v759_v20 = vrot.slane %v757_v14, 3  ;;  %v762_v56 = vrot.slane %v760_v34, 4  ;;  %v1106_v28 = vrot.slane %v1104_v51, 4  ;;  %v1112_v61 = vshll.u32 %v426_v6, 16 }
  0x59   : > { %v755_v40 = vor.u32 %v754_v63, %v751_v23  ;;  %v1111_v2 = vrot.slane %v1109_v17, 3  ;;  %v667_v60 = vsel %vm423_vm1, %v664_v33, %v666_v62  ;;  %v427_v3 = vrot.slane %v3053_v49, 5 }
  0x5a   : > { %1598 = vrot.lane.b32.xlu1 %v1576_v47, %s2838_s14  ;;  %v763_v7 = vor.u32 %v762_v56, %v759_v20  ;;  %v1107_v35 = vor.u32 %v1106_v28, %v1103_v41  ;;  %v1114_v57 = vrot.slane %v1112_v61, 4  ;;  %v774_v58 = vshrl.u32 %v667_v60, 16  ;;  %v4090_v28 = vld [vmem:[#allocation14_spill] sm:$0xff] }
  0x5b   : > { %1594 = vrot.lane.b32.xlu0 %v1558_v48, %s2838_s14  ;;  %v777_v10 = vshll.u32 %v667_v60, 16  ;;  %v428_v14 = vsel %vm423_vm1, %v425_v4, %v427_v3  ;;  %v668_v51 = vrot.slane %v3017_v32, 5  ;;  %v429_v6 = vrot.slane %v3092_v22, 5 }
  0x5c   : > { %v764_v17 = vsel %vm732_vm3, %v755_v40, %v763_v7  ;;  %v1115_v23 = vor.u32 %v1114_v57, %v1111_v2  ;;  %v776_v63 = vrot.slane %v774_v58, 3  ;;  %v1126_v33 = vshrl.u32 %v428_v14, 16 }
  0x5d   : > { %2495 = vmatprep.mubr.msk.bf16.mxu0 %vm441_vm2, %v764_v17  ;;  %v779_v49 = vrot.slane %v777_v10, 4  ;;  %v1129_v48 = vshll.u32 %v428_v14, 16  ;;  %v669_v60 = vsel %vm423_vm1, %v666_v62, %v668_v51  ;;  %v670_v41 = vrot.slane %v3035_v39, 5 }
  0x5e   : > { %1600 = vrot.lane.b32.xlu1 %v1585_v1, %s2838_s14  ;;  %v1116_v32 = vsel %vm732_vm3, %v1107_v35, %v1115_v23  ;;  %v1128_v56 = vrot.slane %v1126_v33, 3  ;;  %v791_v2 = vshrl.u32 %v669_v60, 16  ;;  %v794_v4 = vshll.u32 %v669_v60, 16  ;;  %v4082_v33 = vld [vmem:[#allocation6_spill] sm:$0xff] }
  0x5f   : > { %1590 = vrot.lane.b32.xlu0 %v3370_v42, %s2838_s14  ;;  %2515 = vmatprep.mubr.msk.bf16.mxu1 %vm441_vm2, %v1116_v32  ;;  %v780_v1 = vor.u32 %v779_v49, %v776_v63  ;;  %v1131_v34 = vrot.slane %v1129_v48, 4  ;;  %v430_v57 = vsel %vm423_vm1, %v427_v3, %v429_v6  ;;  %v671_v58 = vsel %vm423_vm1, %v668_v51, %v670_v41 }
  0x60   : > { %v793_v62 = vrot.slane %v791_v2, 3  ;;  %v796_v20 = vrot.slane %v794_v4, 4  ;;  %v1143_v22 = vshrl.u32 %v430_v57, 16  ;;  %v1146_v10 = vshll.u32 %v430_v57, 16  ;;  %v4084_v4 = vld [vmem:[#allocation10_spill] sm:$0xff] }
  0x61   : > { %v3430_v40 = vsel %vm732_vm3, %v763_v7, %v780_v1  ;;  %v1132_v35 = vor.u32 %v1131_v34, %v1128_v56  ;;  %v808_v14 = vshrl.u32 %v671_v58, 16  ;;  %v811_v63 = vshll.u32 %v671_v58, 16  ;;  %v4083_v7 = vld [vmem:[#allocation7_spill] sm:$0xff]  ;;  %v4085_v34 = vld [vmem:[#allocation8_spill] sm:$0xff] }
  0x62   : > { %v797_v39 = vor.u32 %v796_v20, %v793_v62  ;;  %v431_v49 = vrot.slane %v4082_v33, 5  ;;  %v672_v48 = vrot.slane %v4083_v7, 5  ;;  %v1145_v3 = vrot.slane %v1143_v22, 3 }
  0x63   : > { %1592 = vrot.lane.b32.xlu0 %v3373_v54, %s2838_s14  ;;  %v3437_v17 = vsel %vm732_vm3, %v1115_v23, %v1132_v35  ;;  %v1148_v51 = vrot.slane %v1146_v10, 4  ;;  %v810_v32 = vrot.slane %v808_v14, 3  ;;  %v813_v56 = vrot.slane %v811_v63, 4  ;;  %v4088_v63 = vld [vmem:[#allocation11_spill] sm:$0xff] }
  0x64   : > { %v3442_v60 = vsel %vm732_vm3, %v780_v1, %v797_v39  ;;  %v432_v54 = vsel %vm423_vm1, %v429_v6, %v431_v49  ;;  %v673_v2 = vsel %vm423_vm1, %v670_v41, %v672_v48  ;;  %v433_v7 = vrot.slane %v4088_v63, 5  ;;  %v2784_v10 = vld [vmem:[%s2946_s16 + $0x48] ss:$0 sps:$4 sm:$0xff]  }
  0x65   : > { %v1149_v62 = vor.u32 %v1148_v51, %v1145_v3  ;;  %v1160_v20 = vshrl.u32 %v432_v54, 16  ;;  %v1163_v57 = vshll.u32 %v432_v54, 16  ;;  %v825_v58 = vshrl.u32 %v673_v2, 16  ;;  %v4089_v51 = vld [vmem:[#allocation12_spill] sm:$0xff] }
  0x66   : > { %v814_v1 = vor.u32 %v813_v56, %v810_v32  ;;  %v828_v33 = vshll.u32 %v673_v2, 16  ;;  %v434_v3 = vsel %vm423_vm1, %v431_v49, %v433_v7  ;;  %v674_v32 = vrot.slane %v4089_v51, 5  ;;  %v4093_v51 = vld [vmem:[#allocation15_spill] sm:$0xff] }
  0x67   : > { %1602 = vrot.lane.b32.xlu0 %v3385_v36, %s2838_s14  ;;  %v3454_v6 = vsel %vm732_vm3, %v1132_v35, %v1149_v62  ;;  %v1162_v41 = vrot.slane %v1160_v20, 3  ;;  %v1165_v42 = vrot.slane %v1163_v57, 4  ;;  %v827_v23 = vrot.slane %v825_v58, 3 }
  0x68   : > { %v3457_v61 = vsel %vm732_vm3, %v797_v39, %v814_v1  ;;  %v830_v36 = vrot.slane %v828_v33, 4  ;;  %v1177_v54 = vshrl.u32 %v434_v3, 16  ;;  %v1180_v2 = vshll.u32 %v434_v3, 16 }
  0x69   : > { %v1166_v56 = vor.u32 %v1165_v42, %v1162_v41  ;;  %v675_v63 = vsel %vm423_vm1, %v672_v48, %v674_v32  ;;  %v435_v35 = vrot.slane %v4090_v28, 5  ;;  %v676_v28 = vrot.slane %v4093_v51, 5 }
  0x6a   : > { %v831_v14 = vor.u32 %v830_v36, %v827_v23  ;;  %v1179_v57 = vrot.slane %v1177_v54, 3  ;;  %v1182_v39 = vrot.slane %v1180_v2, 4  ;;  %v842_v58 = vshrl.u32 %v675_v63, 16  ;;  %v4104_v2 = vld [vmem:[#allocation28_spill] sm:$0xff] }
  0x6b   : > { %v3464_v20 = vsel %vm732_vm3, %v1149_v62, %v1166_v56  ;;  %v845_v49 = vshll.u32 %v675_v63, 16  ;;  %v436_v42 = vsel %vm423_vm1, %v433_v7, %v435_v35 }
  0x6c   : > { %4091 = vst [vmem:[#allocation6_spill] sm:$0xff] %v3464_v20  ;;  %v3467_v33 = vsel %vm732_vm3, %v814_v1, %v831_v14  ;;  %v1183_v41 = vor.u32 %v1182_v39, %v1179_v57  ;;  %v844_v3 = vrot.slane %v842_v58, 3  ;;  %v1194_v23 = vshrl.u32 %v436_v42, 16  ;;  %v4099_v57 = vld [vmem:[#allocation18_spill] sm:$0xff] }
  0x6d   : > { %4092 = vst [vmem:[#allocation7_spill] sm:$0xff] %v3467_v33  ;;  %v1197_v36 = vshll.u32 %v436_v42, 16  ;;  %v847_v48 = vrot.slane %v845_v49, 4  ;;  %v437_v39 = vrot.slane %v4099_v57, 5  ;;  %v677_v49 = vsel %vm423_vm1, %v674_v32, %v676_v28 }
  0x6e   : > { %v3477_v1 = vsel %vm732_vm3, %v1166_v56, %v1183_v41  ;;  %v1196_v63 = vrot.slane %v1194_v23, 3  ;;  %v859_v22 = vshrl.u32 %v677_v49, 16  ;;  %v862_v20 = vshll.u32 %v677_v49, 16  ;;  %v2787_v56 = vld [vmem:[%s2998_s7 + $0x48] ss:$0 sps:$4 sm:$0xff]  }
  0x6f   : > { %4098 = vst [vmem:[#allocation10_spill] sm:$0xff] %v3477_v1  ;;  %v1199_v7 = vrot.slane %v1197_v36, 4  ;;  %v848_v58 = vor.u32 %v847_v48, %v844_v3  ;;  %v438_v54 = vsel %vm423_vm1, %v435_v35, %v437_v39  ;;  %v678_v3 = vrot.slane %v2784_v10, 5 }
  0x70   : > { %v1211_v36 = vshrl.u32 %v438_v54, 16  ;;  %v1214_v57 = vshll.u32 %v438_v54, 16  ;;  %v861_v48 = vrot.slane %v859_v22, 3  ;;  %v864_v51 = vrot.slane %v862_v20, 4  ;;  %v4109_v20 = vld [vmem:[#allocation32_spill] sm:$0xff] }
  0x71   : > { %v1200_v47 = vor.u32 %v1199_v7, %v1196_v63  ;;  %v3488_v23 = vsel %vm732_vm3, %v831_v14, %v848_v58  ;;  %v679_v49 = vsel %vm423_vm1, %v676_v28, %v678_v3  ;;  %v439_v54 = vrot.slane %v2787_v56, 5 }
  0x72   : > { %4102 = vst [vmem:[#allocation8_spill] sm:$0xff] %v3488_v23  ;;  %v1213_v63 = vrot.slane %v1211_v36, 3  ;;  %v1216_v7 = vrot.slane %v1214_v57, 4  ;;  %v865_v14 = vor.u32 %v864_v51, %v861_v48  ;;  %v876_v23 = vshrl.u32 %v679_v49, 16 }
  0x73   : > { %v3491_v32 = vsel %vm732_vm3, %v1183_v41, %v1200_v47  ;;  %v879_v1 = vshll.u32 %v679_v49, 16  ;;  %v1607_v41 = vrot.slane %v4107_v50, 5  ;;  %v440_v3 = vsel %vm423_vm1, %v437_v39, %v439_v54 }
  0x74   : > { %4103 = vst [vmem:[#allocation11_spill] sm:$0xff] %v3491_v32  ;;  %v1217_v10 = vor.u32 %v1216_v7, %v1213_v63  ;;  %v4108_v32 = vld [vmem:[#allocation25_spill] sm:$0xff]  ;;  %v3503_v36 = vsel %vm732_vm3, %v848_v58, %v865_v14  ;;  %v878_v57 = vrot.slane %v876_v23, 3  ;;  %v1228_v48 = vshrl.u32 %v440_v3, 16  ;;  %v4112_v58 = vld [vmem:[#allocation26_spill] sm:$0xff] }
  0x75   : > { %v1608_v22 = vrot.slane %v4108_v32, 5  ;;  %4110 = vst [vmem:[#allocation12_spill] sm:$0xff] %v3503_v36  ;;  %v881_v28 = vrot.slane %v879_v1, 4  ;;  %v1231_v56 = vshll.u32 %v440_v3, 16  ;;  %v1692_v7 = vshrl.u32 %v1607_v41, 16  ;;  %v4113_v3 = vld [vmem:[#allocation31_spill] sm:$0xff] }
  0x76   : > { %v3507_v51 = vsel %vm732_vm3, %v1200_v47, %v1217_v10  ;;  %v1695_v32 = vshll.u32 %v1607_v41, 16  ;;  %v1230_v33 = vrot.slane %v1228_v48, 3  ;;  %v1612_v35 = vrot.slane %v4112_v58, 5  ;;  %v4114_v36 = vld [vmem:[#allocation33_spill] sm:$0xff] }
  0x77   : > { %4111 = vst [vmem:[#allocation14_spill] sm:$0xff] %v3507_v51  ;;  %v1609_v63 = vsel %vm423_vm1, %v1607_v41, %v1608_v22  ;;  %v882_v50 = vor.u32 %v881_v28, %v878_v57  ;;  %v1233_v42 = vrot.slane %v1231_v56, 4  ;;  %v1694_v39 = vrot.slane %v1692_v7, 3 }
  0x78   : > { %v1700_v49 = vshrl.u32 %v1609_v63, 16  ;;  %v1703_v62 = vshll.u32 %v1609_v63, 16  ;;  %v1697_v23 = vrot.slane %v1695_v32, 4  ;;  %v1614_v0 = vrot.slane %v4113_v3, 5 }
  0x79   : > { %v3512_v1 = vsel %vm732_vm3, %v865_v14, %v882_v50  ;;  %v1234_v54 = vor.u32 %v1233_v42, %v1230_v33  ;;  %v1616_v57 = vrot.slane %v4114_v36, 5  ;;  %v1610_v41 = vrot.slane %v3333_v29, 5 }
  0x7a   : > { %v1702_v47 = vrot.slane %v1700_v49, 3  ;;  %v1705_v51 = vrot.slane %v1703_v62, 4  ;;  %v1698_v28 = vor.u32 %v1697_v23, %v1694_v39  ;;  %v1618_v48 = vrot.slane %v3340_v8, 5 }
  0x7b   : > { %v3519_v56 = vsel %vm732_vm3, %v1217_v10, %v1234_v54  ;;  %v1615_v14 = vsel %vm423_vm1, %v1612_v35, %v1614_v0  ;;  %v1617_v50 = vsel %vm423_vm1, %v1614_v0, %v1616_v57  ;;  %v1611_v29 = vsel %vm423_vm1, %v1608_v22, %v1610_v41  ;;  %v2791_v54 = vld [vmem:[%s3171_s9 + $0x48] ss:$0 sps:$4 sm:$0xff]  }
  0x7c   : > { %4115 = vst [vmem:[#allocation15_spill] sm:$0xff] %v3519_v56  ;;  %v1706_v63 = vor.u32 %v1705_v51, %v1702_v47  ;;  %v1751_v7 = vshrl.u32 %v1615_v14, 16  ;;  %v1754_v33 = vshll.u32 %v1615_v14, 16  ;;  %v1768_v62 = vshrl.u32 %v1617_v50, 16 }
  0x7d   : > { %v1771_v42 = vshll.u32 %v1617_v50, 16  ;;  %v1619_v8 = vsel %vm423_vm1, %v1616_v57, %v1618_v48  ;;  %v1613_v10 = vsel %vm423_vm1, %v1610_v41, %v1612_v35  ;;  %v1717_v39 = vshrl.u32 %v1611_v29, 16 }
  0x7e   : > { %v3524_v36 = vsel %vm732_vm3, %v1698_v28, %v1706_v63  ;;  %v1753_v32 = vrot.slane %v1751_v7, 3  ;;  %v1756_v51 = vrot.slane %v1754_v33, 4  ;;  %v1770_v49 = vrot.slane %v1768_v62, 3 }
  0x7f   : > { %4116 = vst [vmem:[#allocation18_spill] sm:$0xff] %v3524_v36  ;;  %v1773_v58 = vrot.slane %v1771_v42, 4  ;;  %v1720_v0 = vshll.u32 %v1611_v29, 16  ;;  %v1785_v23 = vshrl.u32 %v1619_v8, 16  ;;  %v1788_v47 = vshll.u32 %v1619_v8, 16 }
  0x80   : > { %v1757_v3 = vor.u32 %v1756_v51, %v1753_v32  ;;  %v1734_v50 = vshrl.u32 %v1613_v10, 16  ;;  %v1737_v28 = vshll.u32 %v1613_v10, 16  ;;  %v1719_v36 = vrot.slane %v1717_v39, 3  ;;  %v2083_v39 = vld [vmem:[%s2903_s6] sm:$0xff] }
  0x81   : > { %v1774_v14 = vor.u32 %v1773_v58, %v1770_v49  ;;  %v1722_v56 = vrot.slane %v1720_v0, 4  ;;  %v1787_v22 = vrot.slane %v1785_v23, 3  ;;  %v1790_v57 = vrot.slane %v1788_v47, 4  ;;  %2101 = vperm.xlu1 %2700, %v2083_v39  }
  0x82   : > { %v1736_v41 = vrot.slane %v1734_v50, 3  ;;  %v1739_v7 = vrot.slane %v1737_v28, 4  ;;  %v1620_v33 = vrot.slane %v3350_v43, 5  ;;  %v1622_v29 = vrot.slane %v2791_v54, 5  ;;  %v2085_v54 = vld [vmem:[%s2903_s6 + $0x10] sm:$0xff] }
  0x83   : > { %v3531_v35 = vsel %vm732_vm3, %v1757_v3, %v1774_v14  ;;  %v1723_v62 = vor.u32 %v1722_v56, %v1719_v36  ;;  %v1791_v42 = vor.u32 %v1790_v57, %v1787_v22 }
  0x84   : > { %v1740_v8 = vor.u32 %v1739_v7, %v1736_v41  ;;  %v1621_v10 = vsel %vm423_vm1, %v1618_v48, %v1620_v33  ;;  %v1623_v56 = vsel %vm423_vm1, %v1620_v33, %v1622_v29  ;;  %v2084_v48 = vld [vmem:[%s2903_s6 + $0x8] sm:$0xff]  ;;  %v2086_v41 = vld [vmem:[%s2903_s6 + $0x18] sm:$0xff]  ;;  %v2089_v7 = vld [vmem:[%s2903_s6 + $0x30] sm:$0xff] }
  0x85   : > { %v3536_v32 = vsel %vm732_vm3, %v1706_v63, %v1723_v62  ;;  %v3539_v51 = vsel %vm732_vm3, %v1774_v14, %v1791_v42  ;;  %v1802_v49 = vshrl.u32 %v1621_v10, 16  ;;  %v1805_v58 = vshll.u32 %v1621_v10, 16  ;;  %2106 = vperm.xlu0 %2701, %v2084_v48   ;;  %v2087_v14 = vld [vmem:[%s2903_s6 + $0x20] sm:$0xff]  ;;  %2111 = vperm.xlu1 %2700, %v2085_v54  }
  0x86   : > { %v3543_v0 = vsel %vm732_vm3, %v1723_v62, %v1740_v8  ;;  %v3546_v43 = vsel %vm732_vm3, %v1740_v8, %v1757_v3  ;;  %v1819_v23 = vshrl.u32 %v1623_v56, 16  ;;  %v1822_v47 = vshll.u32 %v1623_v56, 16  ;;  %v2088_v62 = vld [vmem:[%s2903_s6 + $0x28] sm:$0xff]  ;;  %v2091_v29 = vld [vmem:[%s2903_s6 + $0x40] sm:$0xff]  ;;  %v2090_v8 = vld [vmem:[%s2903_s6 + $0x38] sm:$0xff] }
  0x87   : > { %v1804_v63 = vrot.slane %v1802_v49, 3  ;;  %v1807_v36 = vrot.slane %v1805_v58, 4  ;;  %v502_v10 = vld [vmem:[%s2946_s16 + $0x4] sm:$0xf]  ;;  %v2092_v49 = vld [vmem:[%s2903_s6 + $0x48] sm:$0xff] }
  0x88   : > { %v1821_v28 = vrot.slane %v1819_v23, 3  ;;  %v1824_v3 = vrot.slane %v1822_v47, 4  ;;  %v2792_v58 = vld [vmem:[%s2946_s16 + $0x8] sm:$0xf]  ;;  %v2095_v56 = vld [vmem:[%s2903_s6 + $0x60] sm:$0xff]  ;;  %v2097_v23 = vld [vmem:[%s2903_s6 + $0x70] sm:$0xff] }
  0x89   : > { %v1808_v50 = vor.u32 %v1807_v36, %v1804_v63  ;;  %2121 = vperm.xlu0 %2701, %v2087_v14   ;;  %2116 = vperm.xlu1 %2700, %v2086_v41   ;;  %v2441_v39 = vcombine.low %v502_v10, %v2792_v58  ;;  %v2094_v63 = vld [vmem:[%s2903_s6 + $0x58] sm:$0xff]  ;;  %v4117_v41 = vld [vmem:[#allocation2_spill] sm:$0xff] }
  0x8a   : > { %v1825_v57 = vor.u32 %v1824_v3, %v1821_v28 }
  0x8b   : > { %v3553_v22 = vsel %vm732_vm3, %v1791_v42, %v1808_v50  ;;  %v2093_v42 = vld [vmem:[%s2903_s6 + $0x50] sm:$0xff] }
  0x8c   : > { %v3558_v33 = vsel %vm732_vm3, %v1808_v50, %v1825_v57  ;;  %v2096_v50 = vld [vmem:[%s2903_s6 + $0x68] sm:$0xff] }
  0x8d   : > { %2131 = vperm.xlu0 %2701, %v2089_v7   ;;  %2126 = vperm.xlu1 %2700, %v2088_v62   ;;  %v4118_v7 = vld [vmem:[#allocation3_spill] sm:$0xff] }
  0x8e   : > { %v4119_v62 = vcombine.low %v4117_v41, %v4118_v7 }
  0x91   : > { %2141 = vperm.xlu0 %2701, %v2091_v29   ;;  %2136 = vperm.xlu1 %2700, %v2090_v8   ;;  %v4120_v8 = vcombine.low %v3361_v18, %v3010_v30  ;;  %v4122_v30 = vcombine.low %v3013_v31, %v3028_v37 }
  0x95   : > { %2151 = vperm.xlu0 %2701, %v2093_v42   ;;  %2146 = vperm.xlu1 %2700, %v2092_v49  }
  0x99   : > { %2161 = vperm.xlu0 %2701, %v2095_v56   ;;  %2156 = vperm.xlu1 %2700, %v2094_v63  }
  0x9d   : > { %2171 = vperm.xlu0 %2701, %v2097_v23   ;;  %2166 = vperm.xlu1 %2700, %v2096_v50   ;;  %v2758_v50 = vld [vmem:[%s3996_s1 + $0xc0] sm:$0xff]  }
  0xa0   : > { %v643_v48 = vpop.permute.xlu1 %642 }
  0xa1   : > { %v682_v36 = vsel %vm441_vm2, %v2441_v39, %v643_v48 }
  0xa2   : > { %v733_v47 = vshrl.u32 %v682_v36, 16  ;;  %v736_v54 = vshll.u32 %v682_v36, 16  ;;  %v2098_v36 = vld [vmem:[%s2903_s6 + $0x78] sm:$0xff] }
  0xa3   : > { %2176 = vperm.xlu1 %2700, %v2098_v36  }
  0xa4   : > { %v645_v14 = vpop.permute.xlu1 %644  ;;  %v735_v28 = vrot.slane %v733_v47, 3  ;;  %v738_v3 = vrot.slane %v736_v54, 4  ;;  %v4121_v54 = vcombine.low %v2964_v12, %v2967_v13 }
  0xa5   : > { %v403_v57 = vpop.permute.xlu0 %402  ;;  %v685_v29 = vsel %vm441_vm2, %v4119_v62, %v645_v14 }
  0xa6   : > { %v444_v42 = vsel %vm441_vm2, %v4120_v8, %v403_v57  ;;  %v740_v10 = vshrl.u32 %v685_v29, 16  ;;  %v743_v49 = vshll.u32 %v685_v29, 16  ;;  %v739_v23 = vor.u32 %v738_v3, %v735_v28 }
  0xa7   : > { %v1085_v58 = vshrl.u32 %v444_v42, 16  ;;  %v1088_v39 = vshll.u32 %v444_v42, 16 }
  0xa8   : > { %v742_v56 = vrot.slane %v740_v10, 3  ;;  %v745_v48 = vrot.slane %v743_v49, 4  ;;  %v647_v63 = vpop.permute.xlu1 %646  ;;  %v4123_v49 = vcombine.low %v2975_v15, %v2978_v16 }
  0xa9   : > { %v405_v47 = vpop.permute.xlu0 %404  ;;  %v688_v14 = vsel %vm441_vm2, %v4121_v54, %v647_v63  ;;  %v1087_v62 = vrot.slane %v1085_v58, 3  ;;  %v1090_v28 = vrot.slane %v1088_v39, 4  ;;  %v4124_v58 = vcombine.low %v3031_v38, %v3044_v44 }
  0xaa   : > { %v746_v41 = vor.u32 %v745_v48, %v742_v56  ;;  %v447_v18 = vsel %vm441_vm2, %v4122_v30, %v405_v47  ;;  %v765_v57 = vshrl.u32 %v688_v14, 16  ;;  %v768_v7 = vshll.u32 %v688_v14, 16 }
  0xab   : > { %v1092_v3 = vshrl.u32 %v447_v18, 16  ;;  %v1095_v29 = vshll.u32 %v447_v18, 16  ;;  %v1091_v15 = vor.u32 %v1090_v28, %v1087_v62  ;;  %v4126_v28 = vcombine.low %v3047_v45, %v3064_v55 }
  0xac   : > { %v767_v12 = vrot.slane %v765_v57, 3  ;;  %v770_v13 = vrot.slane %v768_v7, 4  ;;  %v649_v8 = vpop.permute.xlu1 %648  ;;  %v747_v42 = vsel %vm732_vm3, %v739_v23, %v746_v41  ;;  %v2759_v23 = vld [vmem:[%s3996_s1 + $0xc8] sm:$0xff]  }
  0xad   : > { %v1094_v10 = vrot.slane %v1092_v3, 3  ;;  %v1097_v31 = vrot.slane %v1095_v29, 4  ;;  %v407_v37 = vpop.permute.xlu0 %406  ;;  %v691_v56 = vsel %vm441_vm2, %v4123_v49, %v649_v8  ;;  %1021 = vmatmul.mubr.bf16.vlgmr.msra.gmra.mrb[0].mxu0 %v747_v42  ;;  %v4125_v29 = vcombine.low %v2990_v21, %v3003_v26  ;;  %v2762_v8 = vld [vmem:[%s3996_s1 + $0xd0] sm:$0xff]  }
  0xae   : > { %v771_v48 = vor.u32 %v770_v13, %v767_v12  ;;  %v450_v39 = vsel %vm441_vm2, %v4124_v58, %v407_v37  ;;  %v782_v63 = vshrl.u32 %v691_v56, 16  ;;  %v785_v36 = vshll.u32 %v691_v56, 16  ;;  %1932 = vmatpush1.bf16.msra.mxu0 %v2758_v50  ;;  %2496 = vmatprep.mubr.msk.bf16.mxu0 %vm441_vm2, %v3430_v40 }
  0xaf   : > { %v1098_v16 = vor.u32 %v1097_v31, %v1094_v10  ;;  %v1117_v47 = vshrl.u32 %v450_v39, 16  ;;  %v1120_v54 = vshll.u32 %v450_v39, 16  ;;  %1933 = vmatprep.subr.bf16.mxu0 %v4070_v46 }
  0xb0   : > { %v784_v14 = vrot.slane %v782_v63, 3  ;;  %v787_v38 = vrot.slane %v785_v36, 4  ;;  %v651_v44 = vpop.permute.xlu1 %650  ;;  %v772_v30 = vsel %vm732_vm3, %v746_v41, %v771_v48  ;;  %v4128_v63 = vld [vmem:[#allocation4_spill] sm:$0xff]  ;;  %v4129_v36 = vld [vmem:[#allocation5_spill] sm:$0xff] }
  0xb1   : > { %v1119_v18 = vrot.slane %v1117_v47, 3  ;;  %v1122_v57 = vrot.slane %v1120_v54, 4  ;;  %v409_v7 = vpop.permute.xlu0 %408  ;;  %v1099_v3 = vsel %vm732_vm3, %v1091_v15, %v1098_v16  ;;  %v694_v40 = vsel %vm441_vm2, %v4125_v29, %v651_v44 }
  0xb2   : > { %v788_v62 = vor.u32 %v787_v38, %v784_v14  ;;  %v453_v12 = vsel %vm441_vm2, %v4126_v28, %v409_v7  ;;  %1373 = vmatmul.mubr.bf16.vlgmr.msra.gmra.mrb[0].mxu1 %v1099_v3  ;;  %1934 = vmatpush1.bf16.msra.mxu0 %v2759_v23  ;;  %v799_v13 = vshrl.u32 %v694_v40, 16  ;;  %v802_v41 = vshll.u32 %v694_v40, 16 }
  0xb3   : > { %v1123_v42 = vor.u32 %v1122_v57, %v1119_v18  ;;  %v1134_v10 = vshrl.u32 %v453_v12, 16  ;;  %v1137_v31 = vshll.u32 %v453_v12, 16  ;;  %2645 = vmatpush1.bf16.msra.mxu1 %v2758_v50  ;;  %2516 = vmatprep.mubr.msk.bf16.mxu1 %vm441_vm2, %v3437_v17  ;;  %v4127_v50 = vcombine.low %v3006_v27, %v3095_v24 }
  0xb4   : > { %2634 = vmatprep.subr.bf16.mxu1 %v4070_v46  ;;  %v801_v21 = vrot.slane %v799_v13, 3  ;;  %v804_v26 = vrot.slane %v802_v41, 4  ;;  %1935 = vmatprep.subr.bf16.mxu0 %v4070_v46  ;;  %v653_v45 = vpop.permute.xlu1 %652  ;;  %v789_v55 = vsel %vm732_vm3, %v771_v48, %v788_v62  ;;  %v4130_v15 = vcombine.low %v4128_v63, %v4129_v36 }
  0xb5   : > { %v1136_v37 = vrot.slane %v1134_v10, 3  ;;  %v1139_v49 = vrot.slane %v1137_v31, 4  ;;  %v411_v56 = vpop.permute.xlu0 %410  ;;  %1029 = vmatmul.mubr.bf16.gmra.mrb[4].mxu0 %v772_v30  ;;  %v1124_v58 = vsel %vm732_vm3, %v1098_v16, %v1123_v42  ;;  %v697_v17 = vsel %vm441_vm2, %v4127_v50, %v653_v45  ;;  %v2765_v16 = vld [vmem:[%s3996_s1 + $0xd8] sm:$0xff]  }
  0xb6   : > { %v805_v39 = vor.u32 %v804_v26, %v801_v21  ;;  %v456_v47 = vsel %vm441_vm2, %v4130_v15, %v411_v56  ;;  %1936 = vmatpush1.bf16.msra.mxu0 %v2762_v8  ;;  %2497 = vmatprep.mubr.msk.bf16.mxu0 %vm441_vm2, %v3442_v60  ;;  %v816_v48 = vshrl.u32 %v697_v17, 16  ;;  %v819_v54 = vshll.u32 %v697_v17, 16  ;;  %v2793_v21 = vld [vmem:[%s2946_s16 + $0x44] sm:$0xf]  ;;  %v2769_v17 = vld [vmem:[%s3996_s1 + $0xe8] sm:$0xff]  }
  0xb7   : > { %v1140_v14 = vor.u32 %v1139_v49, %v1136_v37  ;;  %2646 = vmatpush1.bf16.msra.mxu1 %v2759_v23  ;;  %v1151_v27 = vshrl.u32 %v456_v47, 16  ;;  %v1154_v24 = vshll.u32 %v456_v47, 16  ;;  %1937 = vmatprep.subr.bf16.mxu0 %v4070_v46  ;;  %v4131_v23 = vcombine.low %v3098_v25, %v3132_v59 }
  0xb8   : > { %2635 = vmatprep.subr.bf16.mxu1 %v4070_v46  ;;  %v818_v38 = vrot.slane %v816_v48, 3  ;;  %v821_v44 = vrot.slane %v819_v54, 4  ;;  %v655_v30 = vpop.permute.xlu1 %654  ;;  %v3642_v18 = vsel %vm732_vm3, %v788_v62, %v805_v39  ;;  %v4132_v28 = vcombine.low %v3085_v9, %v3119_v52  ;;  %v2766_v62 = vld [vmem:[%s3996_s1 + $0xe0] sm:$0xff]  }
  0xb9   : > { %v1153_v60 = vrot.slane %v1151_v27, 3  ;;  %v1156_v57 = vrot.slane %v1154_v24, 4  ;;  %v413_v7 = vpop.permute.xlu0 %412  ;;  %v1141_v3 = vsel %vm732_vm3, %v1123_v42, %v1140_v14  ;;  %v700_v29 = vsel %vm441_vm2, %v4131_v23, %v655_v30  ;;  %v4135_v30 = vld [vmem:[#allocation9_spill] sm:$0xff]  ;;  %v2772_v23 = vld [vmem:[%s3996_s1 + $0xf0] sm:$0xff]  }
  0xba   : > { %1381 = vmatmul.mubr.bf16.gmra.mrb[4].mxu1 %v1124_v58  ;;  %v822_v40 = vor.u32 %v821_v44, %v818_v38  ;;  %v459_v12 = vsel %vm441_vm2, %v4132_v28, %v413_v7  ;;  %1938 = vmatpush1.bf16.msra.mxu0 %v2765_v16  ;;  %v833_v13 = vshrl.u32 %v700_v29, 16  ;;  %v836_v41 = vshll.u32 %v700_v29, 16  ;;  %v1446_v38 = vld [vmem:[%s3171_s9 + $0x4] sm:$0xf] }
  0xbb   : > { %v1157_v42 = vor.u32 %v1156_v57, %v1153_v60  ;;  %2647 = vmatpush1.bf16.msra.mxu1 %v2762_v8  ;;  %v1168_v25 = vshrl.u32 %v459_v12, 16  ;;  %v1171_v59 = vshll.u32 %v459_v12, 16  ;;  %2517 = vmatprep.mubr.msk.bf16.mxu1 %vm441_vm2, %v3454_v6  ;;  %v2449_v26 = vcombine.low %v2793_v21, %v2793_v21  ;;  %v4136_v60 = vld [vmem:[#allocation13_spill] sm:$0xff]  ;;  %v4138_v12 = vld [vmem:[#allocation6_spill] sm:$0xff] }
  0xbc   : > { %2636 = vmatprep.subr.bf16.mxu1 %v4070_v46  ;;  %1939 = vmatprep.subr.bf16.mxu0 %v4070_v46  ;;  %v835_v9 = vrot.slane %v833_v13, 3  ;;  %v838_v52 = vrot.slane %v836_v41, 4  ;;  %v657_v10 = vpop.permute.xlu1 %656  ;;  %v3661_v31 = vsel %vm732_vm3, %v805_v39, %v822_v40  ;;  %v4133_v6 = vcombine.low %v4085_v34, %v4084_v4 }
  0xbd   : > { %v1170_v45 = vrot.slane %v1168_v25, 3  ;;  %v1173_v37 = vrot.slane %v1171_v59, 4  ;;  %1037 = vmatmul.mubr.bf16.gmra.mrb[8].mxu0 %v789_v55  ;;  %v415_v8 = vpop.permute.xlu0 %414  ;;  %v3665_v49 = vsel %vm732_vm3, %v1140_v14, %v1157_v42  ;;  %v4134_v50 = vcombine.low %v3122_v53, %v3143_v5  ;;  %v2794_v5 = vld [vmem:[%s2998_s7 + $0x44] sm:$0xf]  ;;  %v2795_v25 = vld [vmem:[%s3171_s9 + $0x8] sm:$0xf] }
  0xbe   : > { %v703_v56 = vsel %vm441_vm2, %v4133_v6, %v657_v10  ;;  %1940 = vmatpush1.bf16.msra.mxu0 %v2766_v62  ;;  %2498 = vmatprep.mubr.msk.bf16.mxu0 %vm441_vm2, %v3457_v61  ;;  %v839_v58 = vor.u32 %v838_v52, %v835_v9  ;;  %v2425_v47 = vcombine.low %v2794_v5, %v2794_v5 }
  0xbf   : > { %v462_v55 = vsel %vm441_vm2, %v4134_v50, %v415_v8  ;;  %v850_v39 = vshrl.u32 %v703_v56, 16  ;;  %v853_v63 = vshll.u32 %v703_v56, 16  ;;  %v1174_v4 = vor.u32 %v1173_v37, %v1170_v45  ;;  %2648 = vmatpush1.bf16.msra.mxu1 %v2765_v16  ;;  %1941 = vmatprep.subr.bf16.mxu0 %v4070_v46  ;;  %v4139_v45 = vld [vmem:[#allocation16_spill] sm:$0xff]  ;;  %v4140_v37 = vld [vmem:[#allocation17_spill] sm:$0xff]  ;;  %v4142_v56 = vld [vmem:[#allocation7_spill] sm:$0xff] }
  0xc0   : > { %v1185_v34 = vshrl.u32 %v462_v55, 16  ;;  %v1188_v36 = vshll.u32 %v462_v55, 16  ;;  %2637 = vmatprep.subr.bf16.mxu1 %v4070_v46  ;;  %v659_v53 = vpop.permute.xlu1 %658  ;;  %v3684_v48 = vsel %vm732_vm3, %v822_v40, %v839_v58  ;;  %v4137_v57 = vcombine.low %v4135_v30, %v4136_v60  ;;  %v2776_v30 = vld [vmem:[%s3996_s1 + $0x100] sm:$0xff]  }
  0xc1   : > { %v852_v61 = vrot.slane %v850_v39, 3  ;;  %v855_v15 = vrot.slane %v853_v63, 4  ;;  %v417_v27 = vpop.permute.xlu0 %416  ;;  %v3687_v16 = vsel %vm732_vm3, %v1157_v42, %v1174_v4  ;;  %v706_v24 = vsel %vm441_vm2, %v2449_v26, %v659_v53 }
  0xc2   : > { %v1187_v54 = vrot.slane %v1185_v34, 3  ;;  %v1190_v14 = vrot.slane %v1188_v36, 4  ;;  %1389 = vmatmul.mubr.bf16.gmra.mrb[8].mxu1 %v1141_v3  ;;  %1942 = vmatpush1.bf16.msra.mxu0 %v2769_v17  ;;  %v465_v7 = vsel %vm441_vm2, %v4137_v57, %v417_v27  ;;  %v867_v29 = vshrl.u32 %v706_v24, 16  ;;  %v4144_v27 = vld [vmem:[#allocation27_spill] sm:$0xff] }
  0xc3   : > { %v856_v44 = vor.u32 %v855_v15, %v852_v61  ;;  %v870_v40 = vshll.u32 %v706_v24, 16  ;;  %2649 = vmatpush1.bf16.msra.mxu1 %v2766_v62  ;;  %2518 = vmatprep.mubr.msk.bf16.mxu1 %vm441_vm2, %v4138_v12  ;;  %v1202_v3 = vshrl.u32 %v465_v7, 16  ;;  %v1205_v13 = vshll.u32 %v465_v7, 16  ;;  %v4146_v7 = vld [vmem:[#allocation10_spill] sm:$0xff] }
  0xc4   : > { %v1191_v28 = vor.u32 %v1190_v14, %v1187_v54  ;;  %2638 = vmatprep.subr.bf16.mxu1 %v4070_v46  ;;  %1943 = vmatprep.subr.bf16.mxu0 %v4070_v46  ;;  %v869_v41 = vrot.slane %v867_v29, 3  ;;  %v2529_v59 = vcombine.low %v1446_v38, %v2795_v25  ;;  %v1589_v9 = vpop.permute.xlu1 %1588  ;;  %v4141_v8 = vcombine.low %v4139_v45, %v4140_v37  ;;  %v2780_v37 = vld [vmem:[%s3996_s1 + $0x108] sm:$0xff]  }
  0xc5   : > { %v872_v42 = vrot.slane %v870_v40, 4  ;;  %v3704_v52 = vsel %vm732_vm3, %v839_v58, %v856_v44  ;;  %1045 = vmatmul.mubr.bf16.gmra.mrb[12].mxu0 %v3642_v18  ;;  %v1204_v62 = vrot.slane %v1202_v3, 3  ;;  %v1207_v10 = vrot.slane %v1205_v13, 4  ;;  %v419_v21 = vpop.permute.xlu0 %418  ;;  %v2773_v58 = vld [vmem:[%s3996_s1 + $0xf8] sm:$0xff]  }
  0xc6   : > { %v3708_v26 = vsel %vm732_vm3, %v1174_v4, %v1191_v28  ;;  %v1629_v6 = vsel %vm441_vm2, %v4141_v8, %v1589_v9  ;;  %2499 = vmatprep.mubr.msk.bf16.mxu0 %vm441_vm2, %v4142_v56  ;;  %1944 = vmatpush1.bf16.msra.mxu0 %v2772_v23  ;;  %v468_v50 = vsel %vm441_vm2, %v2425_v47, %v419_v21  ;;  %v4150_v21 = vld [vmem:[#allocation23_spill] sm:$0xff] }
  0xc7   : > { %v873_v18 = vor.u32 %v872_v42, %v869_v41  ;;  %v1683_v55 = vshrl.u32 %v1629_v6, 16  ;;  %v1686_v39 = vshll.u32 %v1629_v6, 16  ;;  %2650 = vmatpush1.bf16.msra.mxu1 %v2769_v17  ;;  %v1208_v63 = vor.u32 %v1207_v10, %v1204_v62  ;;  %1945 = vmatprep.subr.bf16.mxu0 %v4070_v46  ;;  %v4143_v17 = vld [vmem:[#allocation24_spill] sm:$0xff]  ;;  %v4149_v10 = vld [vmem:[#allocation22_spill] sm:$0xff] }
  0xc8   : > { %v1219_v4 = vshrl.u32 %v468_v50, 16  ;;  %v1222_v34 = vshll.u32 %v468_v50, 16  ;;  %2639 = vmatprep.subr.bf16.mxu1 %v4070_v46  ;;  %v1597_v15 = vpop.permute.xlu1 %1596  ;;  %v4145_v24 = vcombine.low %v4143_v17, %v4144_v27  ;;  %v4148_v62 = vld [vmem:[#allocation8_spill] sm:$0xff]  ;;  %v4151_v45 = vcombine.low %v4149_v10, %v4150_v21 }
  0xc9   : > { %v1685_v36 = vrot.slane %v1683_v55, 3  ;;  %v1688_v61 = vrot.slane %v1686_v39, 4  ;;  %v3723_v53 = vsel %vm732_vm3, %v856_v44, %v873_v18  ;;  %v1587_v14 = vpop.permute.xlu0 %1586  ;;  %v3726_v47 = vsel %vm732_vm3, %v1191_v28, %v1208_v63  ;;  %v2783_v17 = vld [vmem:[%s3996_s1 + $0x110] sm:$0xff]  }
  0xca   : > { %v1221_v5 = vrot.slane %v1219_v4, 3  ;;  %v1224_v54 = vrot.slane %v1222_v34, 4  ;;  %v1641_v38 = vsel %vm441_vm2, %v4145_v24, %v1597_v15  ;;  %1397 = vmatmul.mubr.bf16.gmra.mrb[12].mxu1 %v3665_v49  ;;  %1946 = vmatpush1.bf16.msra.mxu0 %v2773_v58  ;;  %v1626_v44 = vsel %vm441_vm2, %v2529_v59, %v1587_v14  ;;  %v4153_v15 = vld [vmem:[#allocation19_spill] sm:$0xff] }
  0xcb   : > { %v1759_v60 = vshrl.u32 %v1641_v38, 16  ;;  %v1762_v57 = vshll.u32 %v1641_v38, 16  ;;  %2519 = vmatprep.mubr.msk.bf16.mxu1 %vm441_vm2, %v4146_v7  ;;  %2651 = vmatpush1.bf16.msra.mxu1 %v2772_v23  ;;  %v1676_v40 = vshrl.u32 %v1626_v44, 16  ;;  %v1679_v28 = vshll.u32 %v1626_v44, 16  ;;  %v4156_v24 = vld [vmem:[#allocation11_spill] sm:$0xff] }
  0xcc   : > { %v1225_v29 = vor.u32 %v1224_v54, %v1221_v5  ;;  %2640 = vmatprep.subr.bf16.mxu1 %v4070_v46  ;;  %1947 = vmatprep.subr.bf16.mxu0 %v4070_v46  ;;  %v3741_v49 = vor.u32 %v1688_v61, %v1685_v36  ;;  %v1599_v13 = vpop.permute.xlu1 %1598  ;;  %v4147_v23 = vcombine.low %v4104_v2, %v3296_v19  ;;  %v4154_v5 = vld [vmem:[#allocation29_spill] sm:$0xff] }
  0xcd   : > { %v1761_v12 = vrot.slane %v1759_v60, 3  ;;  %v1764_v3 = vrot.slane %v1762_v57, 4  ;;  %1053 = vmatmul.mubr.bf16.gmra.mrb[16].mxu0 %v3661_v31  ;;  %v1678_v41 = vrot.slane %v1676_v40, 3  ;;  %v1681_v42 = vrot.slane %v1679_v28, 4  ;;  %v1595_v25 = vpop.permute.xlu0 %1594 }
  0xce   : > { %v1644_v59 = vsel %vm441_vm2, %v4147_v23, %v1599_v13  ;;  %v3749_v9 = vsel %vm732_vm3, %v1208_v63, %v1225_v29  ;;  %2500 = vmatprep.mubr.msk.bf16.mxu0 %vm441_vm2, %v4148_v62  ;;  %1948 = vmatpush1.bf16.msra.mxu0 %v2776_v30  ;;  %v1638_v31 = vsel %vm441_vm2, %v4151_v45, %v1595_v25  ;;  %v4159_v13 = vld [vmem:[#allocation20_spill] sm:$0xff]  ;;  %v2788_v25 = vld [vmem:[%s3996_s1 + $0x118] sm:$0xff]  }
  0xcf   : > { %v1776_v8 = vshrl.u32 %v1644_v59, 16  ;;  %v1779_v19 = vshll.u32 %v1644_v59, 16  ;;  %2652 = vmatpush1.bf16.msra.mxu1 %v2773_v58  ;;  %v1682_v2 = vor.u32 %v1681_v42, %v1678_v41  ;;  %1949 = vmatprep.subr.bf16.mxu0 %v4070_v46  ;;  %v1742_v6 = vshrl.u32 %v1638_v31, 16 }
  0xd0   : > { %v1745_v56 = vshll.u32 %v1638_v31, 16  ;;  %2641 = vmatprep.subr.bf16.mxu1 %v4070_v46  ;;  %v1765_v18 = vor.u32 %v1764_v3, %v1761_v12  ;;  %v1601_v39 = vpop.permute.xlu1 %1600  ;;  %v4152_v36 = vcombine.low %v4109_v20, %v3325_v11  ;;  %v4155_v54 = vcombine.low %v4153_v15, %v4154_v5  ;;  %v4158_v3 = vld [vmem:[#allocation30_spill] sm:$0xff] }
  0xd1   : > { %v1778_v50 = vrot.slane %v1776_v8, 3  ;;  %v1781_v55 = vrot.slane %v1779_v19, 4  ;;  %v1744_v63 = vrot.slane %v1742_v6, 3  ;;  %v1591_v34 = vpop.permute.xlu0 %1590  ;;  %v3768_v58 = vsel %vm732_vm3, %v1682_v2, %v3741_v49  ;;  %v4161_v6 = vld [vmem:[#allocation14_spill] sm:$0xff] }
  0xd2   : > { %v1747_v4 = vrot.slane %v1745_v56, 4  ;;  %v1647_v61 = vsel %vm441_vm2, %v4152_v36, %v1601_v39  ;;  %1405 = vmatmul.mubr.bf16.gmra.mrb[16].mxu1 %v3687_v16  ;;  %1950 = vmatpush1.bf16.msra.mxu0 %v2780_v37  ;;  %v1632_v14 = vsel %vm441_vm2, %v4155_v54, %v1591_v34  ;;  %v4160_v41 = vcombine.low %v4158_v3, %v4159_v13  ;;  %v4162_v34 = vld [vmem:[#allocation15_spill] sm:$0xff] }
  0xd3   : > { %v1782_v27 = vor.u32 %v1781_v55, %v1778_v50  ;;  %v1793_v11 = vshrl.u32 %v1647_v61, 16  ;;  %v1796_v20 = vshll.u32 %v1647_v61, 16  ;;  %2520 = vmatprep.mubr.msk.bf16.mxu1 %vm441_vm2, %v4156_v24  ;;  %2653 = vmatpush1.bf16.msra.mxu1 %v2776_v30  ;;  %v1708_v44 = vshrl.u32 %v1632_v14, 16  ;;  %v4157_v30 = vld [vmem:[#allocation12_spill] sm:$0xff] }
  0xd4   : > { %v1748_v38 = vor.u32 %v1747_v4, %v1744_v63  ;;  %v1711_v16 = vshll.u32 %v1632_v14, 16  ;;  %2642 = vmatprep.subr.bf16.mxu1 %v4070_v46  ;;  %1951 = vmatprep.subr.bf16.mxu0 %v4070_v46 }
  0xd5   : > { %v1795_v60 = vrot.slane %v1793_v11, 3  ;;  %v1798_v57 = vrot.slane %v1796_v20, 4  ;;  %v1783_v7 = vsel %vm732_vm3, %v1765_v18, %v1782_v27  ;;  %1061 = vmatmul.mubr.bf16.gmra.mrb[20].mxu0 %v3684_v48  ;;  %v1710_v29 = vrot.slane %v1708_v44, 3  ;;  %v1593_v28 = vpop.permute.xlu0 %1592  ;;  %v2796_v48 = vld [vmem:[%s3171_s9 + $0x44] sm:$0xf] }
  0xd6   : > { %v1713_v40 = vrot.slane %v1711_v16, 4  ;;  %v1766_v12 = vsel %vm732_vm3, %v1748_v38, %v1765_v18  ;;  %2501 = vmatprep.mubr.msk.bf16.mxu0 %vm441_vm2, %v4157_v30  ;;  %1952 = vmatpush1.bf16.msra.mxu0 %v2783_v17  ;;  %v1635_v42 = vsel %vm441_vm2, %v4160_v41, %v1593_v28  ;;  %v2537_v59 = vcombine.low %v2796_v48, %v2796_v48 }
  0xd7   : > { %v1799_v23 = vor.u32 %v1798_v57, %v1795_v60  ;;  %2654 = vmatpush1.bf16.msra.mxu1 %v2780_v37  ;;  %v1725_v10 = vshrl.u32 %v1635_v42, 16  ;;  %v1728_v21 = vshll.u32 %v1635_v42, 16  ;;  %1953 = vmatprep.subr.bf16.mxu0 %v4070_v46 }
  0xd8   : > { %v1714_v62 = vor.u32 %v1713_v40, %v1710_v29  ;;  %2643 = vmatprep.subr.bf16.mxu1 %v4070_v46 }
  0xd9   : > { %v1800_v45 = vsel %vm732_vm3, %v1782_v27, %v1799_v23  ;;  %v1727_v31 = vrot.slane %v1725_v10, 3  ;;  %v1730_v8 = vrot.slane %v1728_v21, 4  ;;  %v1603_v19 = vpop.permute.xlu0 %1602 }
  0xda   : > { %v1715_v2 = vsel %vm732_vm3, %v3741_v49, %v1714_v62  ;;  %1413 = vmatmul.mubr.bf16.gmra.mrb[20].mxu1 %v3708_v26  ;;  %1954 = vmatpush1.bf16.msra.mxu0 %v2788_v25  ;;  %v1650_v37 = vsel %vm441_vm2, %v2537_v59, %v1603_v19 }
  0xdb   : > { %2521 = vmatprep.mubr.msk.bf16.mxu1 %vm441_vm2, %v4161_v6  ;;  %2655 = vmatpush1.bf16.msra.mxu1 %v2783_v17  ;;  %v1731_v56 = vor.u32 %v1730_v8, %v1727_v31  ;;  %v1810_v18 = vshrl.u32 %v1650_v37, 16  ;;  %v1813_v50 = vshll.u32 %v1650_v37, 16 }
  0xdc   : > { %2644 = vmatprep.subr.bf16.mxu1 %v4070_v46  ;;  %v4163_v46 = vld [vmem:[#allocation18_spill] sm:$0xff] }
  0xdd   : > { %1069 = vmatmul.mubr.bf16.gmra.mrb[24].mxu0 %v3704_v52  ;;  %v1812_v55 = vrot.slane %v1810_v18, 3  ;;  %v1815_v39 = vrot.slane %v1813_v50, 4  ;;  %v1732_v49 = vsel %vm732_vm3, %v1714_v62, %v1731_v56  ;;  %v1749_v26 = vsel %vm732_vm3, %v1731_v56, %v1748_v38 }
  0xde   : > { %2502 = vmatprep.mubr.msk.bf16.mxu0 %vm441_vm2, %v3512_v1 }
  0xdf   : > { %2656 = vmatpush1.bf16.msra.mxu1 %v2788_v25  ;;  %v1816_v63 = vor.u32 %v1815_v39, %v1812_v55 }
  0xe1   : > { %v1817_v4 = vsel %vm732_vm3, %v1799_v23, %v1816_v63 }
  0xe2   : > { %1421 = vmatmul.mubr.bf16.gmra.mrb[24].mxu1 %v3726_v47 }
  0xe3   : > { %2522 = vmatprep.mubr.msk.bf16.mxu1 %vm441_vm2, %v4162_v34 }
  0xe5   : > { %1077 = vmatmul.mubr.bf16.gmra.mrb[28].mxu0 %v3723_v53 }
  0xe6   : > { %2583 = vmatprep.mubr.msk.bf16.mxu0 %vm441_vm2, %v4163_v46 }
  0xea   : > { %1429 = vmatmul.mubr.bf16.gmra.mrb[28].mxu1 %v3749_v9 }
  0xeb   : > { %2587 = vmatprep.mubr.msk.bf16.mxu1 %vm441_vm2, %v3531_v35 }
  0xed   : > { %1964 = vmatmul.mubr.bf16.vlgmr.msra.gmra.mrb[32].mxu0 %v3768_v58 }
  0xee   : > { %2584 = vmatprep.mubr.msk.bf16.mxu0 %vm441_vm2, %v3536_v32 }
  0xf2   : > { %1996 = vmatmul.mubr.bf16.vlgmr.msra.gmra.mrb[32].mxu1 %v1766_v12 }
  0xf3   : > { %2588 = vmatprep.mubr.msk.bf16.mxu1 %vm441_vm2, %v3539_v51 }
  0xf5   : > { %1972 = vmatmul.mubr.bf16.gmra.mrb[36].mxu0 %v1715_v2 }
  0xf6   : > { %2585 = vmatprep.mubr.msk.bf16.mxu0 %vm441_vm2, %v3543_v0 }
  0xfa   : > { %2004 = vmatmul.mubr.bf16.gmra.mrb[36].mxu1 %v1783_v7 }
  0xfb   : > { %2589 = vmatprep.mubr.msk.bf16.mxu1 %vm441_vm2, %v3553_v22 }
  0xfd   : > { %1980 = vmatmul.mubr.bf16.gmra.mrb[40].mxu0 %v1732_v49 }
  0xfe   : > { %2586 = vmatprep.mubr.msk.bf16.mxu0 %vm441_vm2, %v3546_v43 }
 0x100   : > { %v2102_v39 = vpop.permute.xlu1 %2101 }
 0x102   : > { %2012 = vmatmul.mubr.bf16.gmra.mrb[40].mxu1 %v1800_v45 }
 0x103   : > { %2590 = vmatprep.mubr.msk.bf16.mxu1 %vm441_vm2, %v3558_v33 }
 0x105   : > { %1988 = vmatmul.mubr.bf16.gmra.mrb[44].mxu0 %v1749_v26 }
 0x10a   : > { %2020 = vmatmul.mubr.bf16.gmra.mrb[44].mxu1 %v1817_v4 }
 0x180   : > { %v1022_v1 = vpop.f32.mrb[0].mxu0 }
 0x181   : > { %v1024_v35 = vpop.f32.mrb[1].mxu0 }
 0x182   : > { %v1025_v32 = vpop.f32.mrb[2].mxu0  ;;  %v3853_v35 = vpop.permute.xlu1 %2111 }
 0x183   : > { %v1027_v51 = vpop.f32.mrb[3].mxu0 }
 0x185   : > { %v1374_v52 = vpop.f32.mrb[0].mxu1 }
 0x186   : > { %v3833_v0 = vadd.f32 %v1374_v52, %v1022_v1  ;;  %v1376_v53 = vpop.f32.mrb[1].mxu1 }
 0x187   : > { %v1377_v47 = vpop.f32.mrb[2].mxu1 }
 0x188   : > { %v3835_v22 = vadd.f32 %v1377_v47, %v1025_v32  ;;  %v1379_v9 = vpop.f32.mrb[3].mxu1  ;;  %v1030_v36 = vpop.f32.mrb[4].mxu0 }
 0x189   : > { %v1032_v43 = vpop.f32.mrb[5].mxu0 }
 0x18a   : > { %v1033_v61 = vpop.f32.mrb[6].mxu0  ;;  %v2107_v43 = vpop.permute.xlu0 %2106 }
 0x18b   : > { %v1035_v58 = vpop.f32.mrb[7].mxu0 }
 0x18d   : > { %v1382_v15 = vpop.f32.mrb[4].mxu1 }
 0x18e   : > { %v3837_v33 = vadd.f32 %v1382_v15, %v1030_v36  ;;  %v1384_v5 = vpop.f32.mrb[5].mxu1  ;;  %v3859_v15 = vpop.permute.xlu1 %2116 }
 0x18f   : > { %v1385_v54 = vpop.f32.mrb[6].mxu1 }
 0x190   : > { %v3839_v14 = vadd.f32 %v1385_v54, %v1033_v61  ;;  %v1387_v17 = vpop.f32.mrb[7].mxu1  ;;  %v1038_v27 = vpop.f32.mrb[8].mxu0 }
 0x191   : > { %v1040_v11 = vpop.f32.mrb[9].mxu0 }
 0x192   : > { %v1041_v20 = vpop.f32.mrb[10].mxu0  ;;  %v3863_v11 = vpop.permute.xlu0 %2121 }
 0x193   : > { %v1043_v24 = vpop.f32.mrb[11].mxu0 }
 0x195   : > { %v1390_v38 = vpop.f32.mrb[8].mxu1 }
 0x196   : > { %v3841_v44 = vadd.f32 %v1390_v38, %v1038_v27  ;;  %v1392_v16 = vpop.f32.mrb[9].mxu1 }
 0x197   : > { %v1393_v60 = vpop.f32.mrb[10].mxu1 }
 0x198   : > { %v3843_v57 = vadd.f32 %v1393_v60, %v1041_v20  ;;  %v1395_v7 = vpop.f32.mrb[11].mxu1  ;;  %v1046_v29 = vpop.f32.mrb[12].mxu0  ;;  %v3870_v60 = vld [vmem:[%s3997_s2] ss:$0 sm:$0xff] }
 0x199   : > { %v1048_v40 = vpop.f32.mrb[13].mxu0  ;;  %v3872_v7 = vpop.permute.xlu1 %2126 }
 0x19a   : > { %v1049_v28 = vpop.f32.mrb[14].mxu0 }
 0x19b   : > { %v1051_v12 = vpop.f32.mrb[15].mxu0 }
 0x19d   : > { %v1398_v30 = vpop.f32.mrb[12].mxu1 }
 0x19e   : > { %v3845_v3 = vadd.f32 %v1398_v30, %v1046_v29  ;;  %v1400_v13 = vpop.f32.mrb[13].mxu1 }
 0x19f   : > { %v1401_v41 = vpop.f32.mrb[14].mxu1 }
 0x1a0   : > { %v3847_v42 = vadd.f32 %v1401_v41, %v1049_v28  ;;  %v1403_v25 = vpop.f32.mrb[15].mxu1  ;;  %v1054_v23 = vpop.f32.mrb[16].mxu0 }
 0x1a1   : > { %v1056_v48 = vpop.f32.mrb[17].mxu0  ;;  %v3877_v41 = vpop.permute.xlu0 %2131 }
 0x1a2   : > { %v1057_v59 = vpop.f32.mrb[18].mxu0 }
 0x1a3   : > { %v1059_v62 = vpop.f32.mrb[19].mxu0 }
 0x1a5   : > { %v1406_v10 = vpop.f32.mrb[16].mxu1 }
 0x1a6   : > { %v1407_v21 = vadd.f32 %v1406_v10, %v1054_v23  ;;  %v1408_v45 = vpop.f32.mrb[17].mxu1  ;;  %v3880_v10 = vpop.permute.xlu1 %2136 }
 0x1a7   : > { %v1409_v31 = vpop.f32.mrb[18].mxu1 }
 0x1a8   : > { %v1410_v8 = vadd.f32 %v1409_v31, %v1057_v59  ;;  %v1411_v19 = vpop.f32.mrb[19].mxu1  ;;  %v1062_v2 = vpop.f32.mrb[20].mxu0 }
 0x1a9   : > { %v1064_v37 = vpop.f32.mrb[21].mxu0 }
 0x1aa   : > { %v1065_v6 = vpop.f32.mrb[22].mxu0 }
 0x1ab   : > { %v1067_v56 = vpop.f32.mrb[23].mxu0 }
 0x1ad   : > { %v1414_v18 = vpop.f32.mrb[20].mxu1 }
 0x1ae   : > { %v3849_v50 = vadd.f32 %v1414_v18, %v1062_v2  ;;  %v1416_v55 = vpop.f32.mrb[21].mxu1 }
 0x1af   : > { %v1417_v49 = vpop.f32.mrb[22].mxu1 }
 0x1b0   : > { %v3851_v26 = vadd.f32 %v1417_v49, %v1065_v6  ;;  %v1419_v63 = vpop.f32.mrb[23].mxu1  ;;  %v1070_v4 = vpop.f32.mrb[24].mxu0 }
 0x1b1   : > { %v1072_v34 = vpop.f32.mrb[25].mxu0 }
 0x1b2   : > { %v1073_v46 = vpop.f32.mrb[26].mxu0 }
 0x1b3   : > { %v1075_v1 = vpop.f32.mrb[27].mxu0 }
 0x1b5   : > { %v1422_v32 = vpop.f32.mrb[24].mxu1 }
 0x1b6   : > { %v3855_v51 = vadd.f32 %v1422_v32, %v1070_v4  ;;  %v1424_v52 = vpop.f32.mrb[25].mxu1 }
 0x1b7   : > { %v1425_v53 = vpop.f32.mrb[26].mxu1  ;;  %v2147_v52 = vpop.permute.xlu1 %2146 }
 0x1b8   : > { %v3857_v47 = vadd.f32 %v1425_v53, %v1073_v46  ;;  %v1427_v9 = vpop.f32.mrb[27].mxu1  ;;  %v1078_v36 = vpop.f32.mrb[28].mxu0 }
 0x1b9   : > { %v1080_v61 = vpop.f32.mrb[29].mxu0 }
 0x1ba   : > { %v1081_v58 = vpop.f32.mrb[30].mxu0 }
 0x1bb   : > { %v1083_v5 = vpop.f32.mrb[31].mxu0 }
 0x1bd   : > { %v1430_v54 = vpop.f32.mrb[28].mxu1 }
 0x1be   : > { %v3861_v17 = vadd.f32 %v1430_v54, %v1078_v36  ;;  %v1432_v27 = vpop.f32.mrb[29].mxu1 }
 0x1bf   : > { %v1433_v20 = vpop.f32.mrb[30].mxu1 }
 0x1c0   : > { %v3865_v24 = vadd.f32 %v1433_v20, %v1081_v58  ;;  %v1435_v38 = vpop.f32.mrb[31].mxu1  ;;  %v1965_v16 = vpop.f32.mrb[32].mxu0 }
 0x1c1   : > { %v2028_v29 = vadd.f32 %v1965_v16, %v3833_v0  ;;  %v1967_v40 = vpop.f32.mrb[33].mxu0 }
 0x1c2   : > { %v1968_v28 = vpop.f32.mrb[34].mxu0 }
 0x1c3   : > { %v2051_v12 = vadd.f32 %v3870_v60, %v2028_v29  ;;  %v2029_v30 = vadd.f32 %v1968_v28, %v3835_v22  ;;  %v1970_v13 = vpop.f32.mrb[35].mxu0 }
 0x1c5   : > { %v2067_v25 = vmax.f32 %v2051_v12, 0.0  ;;  %v1997_v23 = vpop.f32.mrb[32].mxu1  ;;  %v2052_v48 = vadd.f32 %v3870_v60, %v2029_v30 }
 0x1c6   : > { %v2036_v59 = vadd.f32 %v1997_v23, %v1407_v21  ;;  %v1999_v62 = vpop.f32.mrb[33].mxu1 }
 0x1c7   : > { %v2179_v45 = vmul.f32 %v2102_v39, %v2067_v25  ;;  %v2068_v0 = vmax.f32 %v2052_v48, 0.0  ;;  %v2000_v31 = vpop.f32.mrb[34].mxu1  ;;  %v2142_v39 = vpop.permute.xlu0 %2141 }
 0x1c8   : > { %v2059_v19 = vadd.f32 %v3870_v60, %v2036_v59  ;;  %v2037_v2 = vadd.f32 %v2000_v31, %v1410_v8  ;;  %v2002_v22 = vpop.f32.mrb[35].mxu1  ;;  %v1973_v37 = vpop.f32.mrb[36].mxu0 }
 0x1c9   : > { %v2617_v6 = vpack.c.bf16 %v2179_v45, %v2179_v45  ;;  %v2180_v56 = vmul.f32 %v2107_v43, %v2068_v0  ;;  %v2030_v18 = vadd.f32 %v1973_v37, %v3837_v33  ;;  %v1975_v55 = vpop.f32.mrb[37].mxu0 }
 0x1ca   : > { %v2075_v21 = vmax.f32 %v2059_v19, 0.0  ;;  %v2060_v49 = vadd.f32 %v3870_v60, %v2037_v2  ;;  %v1976_v63 = vpop.f32.mrb[38].mxu0 }
 0x1cb   : > { %2260 = vst.msk [vmem:[%s2908_s11] sm:$0xf] %vm2259_vm4, %v2617_v6  ;;  %v2618_v4 = vpack.c.bf16 %v2180_v56, %v2180_v56  ;;  %v2053_v34 = vadd.f32 %v3870_v60, %v2030_v18  ;;  %v2031_v8 = vadd.f32 %v1976_v63, %v3839_v14  ;;  %v1978_v46 = vpop.f32.mrb[39].mxu0  ;;  %v2152_v25 = vpop.permute.xlu0 %2151 }
 0x1cc   : > { %v2187_v1 = vmul.f32 %v2142_v39, %v2075_v21  ;;  %v2076_v32 = vmax.f32 %v2060_v49, 0.0 }
 0x1cd   : > { %2261 = vst.msk [vmem:[%s2908_s11 + $0x4] sm:$0xf] %vm2259_vm4, %v2618_v4  ;;  %v2069_v33 = vmax.f32 %v2053_v34, 0.0  ;;  %v2005_v53 = vpop.f32.mrb[36].mxu1  ;;  %v2054_v9 = vadd.f32 %v3870_v60, %v2031_v8 }
 0x1ce   : > { %v2625_v36 = vpack.c.bf16 %v2187_v1, %v2187_v1  ;;  %v2188_v43 = vmul.f32 %v2147_v52, %v2076_v32  ;;  %v2038_v61 = vadd.f32 %v2005_v53, %v3849_v50  ;;  %v2007_v58 = vpop.f32.mrb[37].mxu1 }
 0x1cf   : > { %v2181_v5 = vmul.f32 %v3853_v35, %v2069_v33  ;;  %v2070_v14 = vmax.f32 %v2054_v9, 0.0  ;;  %v2008_v54 = vpop.f32.mrb[38].mxu1  ;;  %v2162_v1 = vpop.permute.xlu0 %2161 }
 0x1d0   : > { %2268 = vst.msk [vmem:[%s2908_s11 + $0x20] sm:$0xf] %vm2259_vm4, %v2625_v36  ;;  %v2626_v27 = vpack.c.bf16 %v2188_v43, %v2188_v43  ;;  %v2061_v20 = vadd.f32 %v3870_v60, %v2038_v61  ;;  %v2039_v38 = vadd.f32 %v2008_v54, %v3851_v26  ;;  %v2010_v16 = vpop.f32.mrb[39].mxu1  ;;  %v1981_v29 = vpop.f32.mrb[40].mxu0 }
 0x1d1   : > { %v2619_v40 = vpack.c.bf16 %v2181_v5, %v2181_v5  ;;  %v2182_v28 = vmul.f32 %v3859_v15, %v2070_v14  ;;  %v2032_v50 = vadd.f32 %v1981_v29, %v3841_v44  ;;  %v1983_v12 = vpop.f32.mrb[41].mxu0  ;;  %v2157_v44 = vpop.permute.xlu1 %2156 }
 0x1d2   : > { %2269 = vst.msk [vmem:[%s2908_s11 + $0x24] sm:$0xf] %vm2259_vm4, %v2626_v27  ;;  %v2077_v35 = vmax.f32 %v2061_v20, 0.0  ;;  %v2062_v30 = vadd.f32 %v3870_v60, %v2039_v38  ;;  %v1984_v13 = vpop.f32.mrb[42].mxu0 }
 0x1d3   : > { %2262 = vst.msk [vmem:[%s2908_s11 + $0x8] sm:$0xf] %vm2259_vm4, %v2619_v40  ;;  %v2620_v23 = vpack.c.bf16 %v2182_v28, %v2182_v28  ;;  %v2055_v26 = vadd.f32 %v3870_v60, %v2032_v50  ;;  %v2033_v48 = vadd.f32 %v1984_v13, %v3843_v57  ;;  %v1986_v15 = vpop.f32.mrb[43].mxu0  ;;  %v2172_v50 = vpop.permute.xlu0 %2171 }
 0x1d4   : > { %v2189_v59 = vmul.f32 %v2152_v25, %v2077_v35  ;;  %v2078_v62 = vmax.f32 %v2062_v30, 0.0 }
 0x1d5   : > { %2263 = vst.msk [vmem:[%s2908_s11 + $0xc] sm:$0xf] %vm2259_vm4, %v2620_v23  ;;  %v2071_v45 = vmax.f32 %v2055_v26, 0.0  ;;  %v2013_v0 = vpop.f32.mrb[40].mxu1  ;;  %v2056_v31 = vadd.f32 %v3870_v60, %v2033_v48 }
 0x1d6   : > { %v2627_v19 = vpack.c.bf16 %v2189_v59, %v2189_v59  ;;  %v2190_v2 = vmul.f32 %v2157_v44, %v2078_v62  ;;  %v2040_v22 = vadd.f32 %v2013_v0, %v3855_v51  ;;  %v2015_v37 = vpop.f32.mrb[41].mxu1 }
 0x1d7   : > { %v2183_v6 = vmul.f32 %v3863_v11, %v2071_v45  ;;  %v2072_v57 = vmax.f32 %v2056_v31, 0.0  ;;  %v2016_v56 = vpop.f32.mrb[42].mxu1 }
 0x1d8   : > { %2270 = vst.msk [vmem:[%s2908_s11 + $0x28] sm:$0xf] %vm2259_vm4, %v2627_v19  ;;  %v2628_v18 = vpack.c.bf16 %v2190_v2, %v2190_v2  ;;  %v2063_v55 = vadd.f32 %v3870_v60, %v2040_v22  ;;  %v2041_v21 = vadd.f32 %v2016_v56, %v3857_v47  ;;  %v2018_v49 = vpop.f32.mrb[43].mxu1  ;;  %v1989_v63 = vpop.f32.mrb[44].mxu0 }
 0x1d9   : > { %v2621_v39 = vpack.c.bf16 %v2183_v6, %v2183_v6  ;;  %v2184_v4 = vmul.f32 %v3872_v7, %v2072_v57  ;;  %v2034_v51 = vadd.f32 %v1989_v63, %v3845_v3  ;;  %v1991_v34 = vpop.f32.mrb[45].mxu0  ;;  %v2167_v3 = vpop.permute.xlu1 %2166 }
 0x1da   : > { %2271 = vst.msk [vmem:[%s2908_s11 + $0x2c] sm:$0xf] %vm2259_vm4, %v2628_v18  ;;  %v2079_v11 = vmax.f32 %v2063_v55, 0.0  ;;  %v2064_v8 = vadd.f32 %v3870_v60, %v2041_v21  ;;  %v1992_v46 = vpop.f32.mrb[46].mxu0 }
 0x1db   : > { %2264 = vst.msk [vmem:[%s2908_s11 + $0x10] sm:$0xf] %vm2259_vm4, %v2621_v39  ;;  %v2622_v32 = vpack.c.bf16 %v2184_v4, %v2184_v4  ;;  %v2057_v47 = vadd.f32 %v3870_v60, %v2034_v51  ;;  %v2035_v52 = vadd.f32 %v1992_v46, %v3847_v42  ;;  %v1994_v7 = vpop.f32.mrb[47].mxu0 }
 0x1dc   : > { %v2191_v33 = vmul.f32 %v2162_v1, %v2079_v11  ;;  %v2080_v53 = vmax.f32 %v2064_v8, 0.0 }
 0x1dd   : > { %2265 = vst.msk [vmem:[%s2908_s11 + $0x14] sm:$0xf] %vm2259_vm4, %v2622_v32  ;;  %v2073_v9 = vmax.f32 %v2057_v47, 0.0  ;;  %v2021_v36 = vpop.f32.mrb[44].mxu1  ;;  %v2058_v43 = vadd.f32 %v3870_v60, %v2035_v52  ;;  %v2177_v13 = vpop.permute.xlu1 %2176 }
 0x1de   : > { %v2629_v61 = vpack.c.bf16 %v2191_v33, %v2191_v33  ;;  %v2192_v58 = vmul.f32 %v2167_v3, %v2080_v53  ;;  %v2042_v5 = vadd.f32 %v2021_v36, %v3861_v17  ;;  %v2023_v14 = vpop.f32.mrb[45].mxu1 }
 0x1df   : > { %v2185_v42 = vmul.f32 %v3877_v41, %v2073_v9  ;;  %v2074_v54 = vmax.f32 %v2058_v43, 0.0  ;;  %v2024_v27 = vpop.f32.mrb[46].mxu1 }
 0x1e0   : > { %2272 = vst.msk [vmem:[%s2908_s11 + $0x30] sm:$0xf] %vm2259_vm4, %v2629_v61  ;;  %v2630_v20 = vpack.c.bf16 %v2192_v58, %v2192_v58  ;;  %v2065_v38 = vadd.f32 %v3870_v60, %v2042_v5  ;;  %v2043_v16 = vadd.f32 %v2024_v27, %v3865_v24  ;;  %v2026_v29 = vpop.f32.mrb[47].mxu1 }
 0x1e1   : > { %v2623_v40 = vpack.c.bf16 %v2185_v42, %v2185_v42  ;;  %v2186_v17 = vmul.f32 %v3880_v10, %v2074_v54 }
 0x1e2   : > { %2273 = vst.msk [vmem:[%s2908_s11 + $0x34] sm:$0xf] %vm2259_vm4, %v2630_v20  ;;  %v2081_v28 = vmax.f32 %v2065_v38, 0.0  ;;  %v2066_v41 = vadd.f32 %v3870_v60, %v2043_v16 }
 0x1e3   : > { %2266 = vst.msk [vmem:[%s2908_s11 + $0x18] sm:$0xf] %vm2259_vm4, %v2623_v40  ;;  %v2624_v12 = vpack.c.bf16 %v2186_v17, %v2186_v17 }
 0x1e4   : > { %v2193_v35 = vmul.f32 %v2172_v50, %v2081_v28  ;;  %v2082_v30 = vmax.f32 %v2066_v41, 0.0 }
 0x1e5   : > { %2267 = vst.msk [vmem:[%s2908_s11 + $0x1c] sm:$0xf] %vm2259_vm4, %v2624_v12 }
 0x1e6   : > { %v2631_v24 = vpack.c.bf16 %v2193_v35, %v2193_v35  ;;  %v2194_v25 = vmul.f32 %v2177_v13, %v2082_v30 }
 0x1e8   : > { %2274 = vst.msk [vmem:[%s2908_s11 + $0x38] sm:$0xf] %vm2259_vm4, %v2631_v24  ;;  %v2632_v23 = vpack.c.bf16 %v2194_v25, %v2194_v25 }
 0x1ea   : > { %2275 = vst.msk [vmem:[%s2908_s11 + $0x3c] sm:$0xf] %vm2259_vm4, %v2632_v23 }
 0x1eb PF: > { %2278 = sbr.rel (!%p2910_p9) target bundleno = 500 (0x1f4), region = 44  ;;  %vm2279_vm5 = vcmask (%p2910_p9), 519168   ;;  %v2839_v60 = vmov (%p2910_p9), 0  }
 0x1ec   : > { %2280 = vst.msk [vmem:[%s2908_s11] sm:$0xf] (%p2910_p9), %vm2279_vm5, %v2839_v60  ;;  %2281 = vst.msk [vmem:[%s2908_s11 + $0x4] sm:$0xf] (%p2910_p9), %vm2279_vm5, %v2839_v60 }
 0x1ed   : > { %2282 = vst.msk [vmem:[%s2908_s11 + $0x8] sm:$0xf] (%p2910_p9), %vm2279_vm5, %v2839_v60  ;;  %2283 = vst.msk [vmem:[%s2908_s11 + $0xc] sm:$0xf] (%p2910_p9), %vm2279_vm5, %v2839_v60 }
 0x1ee   : > { %2284 = vst.msk [vmem:[%s2908_s11 + $0x10] sm:$0xf] (%p2910_p9), %vm2279_vm5, %v2839_v60  ;;  %2285 = vst.msk [vmem:[%s2908_s11 + $0x14] sm:$0xf] (%p2910_p9), %vm2279_vm5, %v2839_v60 }
 0x1ef   : > { %2286 = vst.msk [vmem:[%s2908_s11 + $0x18] sm:$0xf] (%p2910_p9), %vm2279_vm5, %v2839_v60  ;;  %2287 = vst.msk [vmem:[%s2908_s11 + $0x1c] sm:$0xf] (%p2910_p9), %vm2279_vm5, %v2839_v60 }
 0x1f0   : > { %2288 = vst.msk [vmem:[%s2908_s11 + $0x20] sm:$0xf] (%p2910_p9), %vm2279_vm5, %v2839_v60  ;;  %2289 = vst.msk [vmem:[%s2908_s11 + $0x24] sm:$0xf] (%p2910_p9), %vm2279_vm5, %v2839_v60 }
 0x1f1   : > { %2290 = vst.msk [vmem:[%s2908_s11 + $0x28] sm:$0xf] (%p2910_p9), %vm2279_vm5, %v2839_v60  ;;  %2291 = vst.msk [vmem:[%s2908_s11 + $0x2c] sm:$0xf] (%p2910_p9), %vm2279_vm5, %v2839_v60 }
 0x1f2   : > { %2292 = vst.msk [vmem:[%s2908_s11 + $0x30] sm:$0xf] %vm2279_vm5, %v2839_v60  ;;  %2293 = vst.msk [vmem:[%s2908_s11 + $0x34] sm:$0xf] %vm2279_vm5, %v2839_v60 }
 0x1f3   : > { %2294 = vst.msk [vmem:[%s2908_s11 + $0x38] sm:$0xf] %vm2279_vm5, %v2839_v60  ;;  %2295 = vst.msk [vmem:[%s2908_s11 + $0x3c] sm:$0xf] %vm2279_vm5, %v2839_v60 }
 0x1f4 PF: > { %s14_s19 = sadd.s32 1, %s2835_s19   ;;  %s4164_s15 = smov %s2827_s17 }
 0x1f5   : > { %p11_p2 = scmp.ge.s32.totalorder %s14_s19, 18   ;;  %s4165_s16 = smov %s2831_s18 }
 0x1f6   : > { %s4166_s17 = smov %s4169_s20  ;;  %s4167_s18 = smov %s4173_s21 }
 0x1f7   :  { %13 = sbr.rel (!%p11_p2) target bundleno = 3 (0x3), region = 82 }

// kernel: adnet_forward.31
= control target key start
LH: loop header
LB: loop body
LE: loop exit
PB: predicated region body
PF: predicated region fallthrough
CT: control target
= control target key end

     0   :  { %s3750_s21 = smov 0   ;;  %s3752_s22 = smov 0   ;;  %s5445_s0 = inlined_call_operand.vmem [shape: f32[2,1024,3], index: 0, kind: input, shape index: {}]   ;;  %s5446_s1 = inlined_call_operand.vmem [shape: bf16[2,1024,64], index: 1, kind: input, shape index: {}]   ;;  %s5447_s2 = inlined_call_operand.vmem [shape: bf16[3,192,3], index: 2, kind: input, shape index: {}]   ;;  %s5448_s3 = inlined_call_operand.vmem [shape: f32[6,3], index: 3, kind: input, shape index: {}]   ;;  %s5449_s4 = inlined_call_operand.vmem [shape: f32[1,3], index: 4, kind: input, shape index: {}]   ;;  %s5450_s5 = inlined_call_operand.vmem [shape: f32[1024,1], index: 5, kind: input, shape index: {}]   ;;  %s5451_s6 = inlined_call_operand.vmem [shape: f32[2,1024,3], index: 6, kind: output, shape index: {}]  }
   0x1   :  { %s3754_s23 = smov 0   ;;  %s3756_s24 = smov 0  }
   0x2   :  { %s3758_s25 = smov 0  }
   0x3 LB: > { %s25_s26 = sadd.s32 1, %s3700_s23  ;;  %s28_s27 = sadd.s32 1, %s3704_s24  ;;  %s3708_s25 = sphi %s3758_s25, %s16_s25   ;;  %s3704_s24 = sphi %s3756_s24, %s5708_s24   ;;  %s3700_s23 = sphi %s3754_s23, %s5707_s23   ;;  %s3696_s22 = sphi %s3752_s22, %s5706_s22   ;;  %s3692_s21 = sphi %s3750_s21, %s5705_s21  }
   0x4   : > { %p26_p0 = scmp.ge.s32.totalorder %s25_s26, 8  ;;  %p3148_p1 = scmp.ge.s32.totalorder %s3708_s25, 1 }
   0x5   : > { %p254_p2 = scmp.lt.s32.totalorder %s3708_s25, 17 }
   0x6   : > { %s5710_s26 = smov (%p26_p0, %s25_s26), 0  ;;  %s5712_s27 = smov (!%p26_p0, %s28_s27), %s3704_s24 }
   0x7   : > { %p255_p3 = pnand %p3148_p1, %p254_p2  ;;  %p30_p4 = scmp.ge.s32.totalorder %s5712_s27, 2 }
   0x8   : > { %s3149_s28 = sshll.u32 (!%p255_p3), %s3692_s21, 4  ;;  %p303_p5 = scmp.lt.s32.totalorder (!%p255_p3), %s3696_s22, 1 }
   0x9   : > { %s5714_s27 = smov (%p30_p4, %s5712_s27), 0  ;;  %258 = sbr.rel (%p255_p3) target bundleno = 741 (0x2e5), region = 44 }
   0xa   : > { %p305_p6 = scmp.lt.s32.totalorder (!%p255_p3), %s3149_s28, 127  ;;  %s3780_s29 = sshll.u32 (!%p255_p3), %s3692_s21, 7 }
   0xb   : > { %p335_p7 = scmp.lt.s32.totalorder (!%p255_p3), %s3780_s29, 706 }
  0x10   : > { %s5716_s22 = smov (!%p303_p5, %s3696_s22), 1  ;;  %s5718_s28 = smov (!%p305_p6, %s3149_s28), 127 }
  0x11   : > { %s3150_s30 = sshll.u32 %s5716_s22, 7  ;;  %s3349_s7 = sshll.u32 %s5716_s22, 9 }
  0x12   : > { %s308_s8 = sadd.s32 %s3150_s30, %s5718_s28  ;;  %s3785_s11 = scalar_lea.vmem %s5446_s1, %s3349_s7 }
  0x13   : > { %s3151_s12 = sshll.u32 %s308_s8, 3  ;;  %s3155_s13 = sshll.u32 %s5718_s28, 3 }
  0x14   : > { %s3790_s16 = scalar_lea.vmem %s5445_s0, %s3151_s12  ;;  %s3795_s19 = scalar_lea.vmem %s5450_s5, %s3155_s13 }
  0x15   : > { %s3800_s22 = scalar_lea.vmem %s5451_s6, %s3151_s12  ;;  %s336_s30 = sadd.s32 128, %s3780_s29 }
  0x16   : > { %p337_p8 = scmp.gt.s32.totalorder %s336_s30, 210 }
  0x18   : > { %p3804_p9 = pnand %p337_p8, %p335_p7 }
  0x1a   : > { %341 = sbr.rel (%p3804_p9) target bundleno = 732 (0x2dc), region = 48 }
  0x21   : > { %s583_s7 = sadd.s32 4294967280, %s3780_s29  ;;  %v3516_v0 = vld [vmem:[%s5447_s2] sm:$0xff]   ;;  %v5452_v1 = vmov 0   ;;  %s342_s10 = sadd.s32 4294967248, %s3780_s29  ;;  %v3519_v2 = vld [vmem:[%s5447_s2 + $0x8] sm:$0xff]   ;;  %v3520_v4 = vld [vmem:[%s5447_s2 + $0x10] sm:$0xff]  }
  0x22   : > { %p584_p10 = scmp.gt.s32.totalorder %s583_s7, 0  ;;  %p3184_p11 = scmp.lt.s32.totalorder %s583_s7, 864  ;;  %1430 = vmatprep.subr.bf16.mxu0 %v5452_v1  ;;  %1078 = vmatprep.subr.bf16.mxu1 %v5452_v1  ;;  %v3521_v3 = vld [vmem:[%s5447_s2 + $0x60] sm:$0xff]   ;;  %v3523_v5 = vld [vmem:[%s5447_s2 + $0x68] sm:$0xff]   ;;  %v3522_v6 = vld [vmem:[%s5447_s2 + $0x18] sm:$0xff]   ;;  %vm513_vm1 = vcmask 1042432  }
  0x23   : > { %1431 = vmatpush1.bf16.msra.mxu0 %v3516_v0  ;;  %3465 = vset.pattern.permute.xlu1 %v5452_v1  ;;  %p343_p12 = scmp.gt.s32.totalorder %s342_s10, 0  ;;  %p3160_p13 = scmp.lt.s32.totalorder %s342_s10, 864  ;;  %v3526_v9 = vld [vmem:[%s5447_s2 + $0x70] sm:$0xff]   ;;  %v3524_v22 = vld [vmem:[%s5447_s2 + $0x20] sm:$0xff]   ;;  %v3528_v23 = vld [vmem:[%s5447_s2 + $0x78] sm:$0xff]   ;;  %vm531_vm3 = vcmask 523264  }
  0x24   : > { %s5720_s7 = smov (!%p584_p10, %s583_s7), 0  ;;  %1432 = vmatprep.subr.bf16.mxu0 %v5452_v1  ;;  %1079 = vmatpush1.bf16.msra.mxu1 %v3521_v3  ;;  %s3834_s12 = sadd.s32 16, %s3780_s29  ;;  %vm420_vm0 = vsmask.f32 3328  ;;  %v3527_v33 = vld [vmem:[%s5447_s2 + $0x28] sm:$0xff]   ;;  %vm2987_vm4 = vcmask 23552  }
  0x25   : > { %s5722_s7 = smov (!%p3184_p11, %s5720_s7), 864  ;;  %1080 = vmatprep.subr.bf16.mxu1 %v5452_v1  ;;  %p1528_p0 = scmp.gt.s32.totalorder %s3834_s12, 0  ;;  %vm822_vm2 = vsmask.f32 4352 }
  0x26   : > { %s344_s20 = scalar_select %p343_p12, %s342_s10, 0 }
  0x27   : > { %1433 = vmatpush1.bf16.msra.mxu0 %v3519_v2  ;;  %s588_s8 = sshra.s32 %s5722_s7, 3  ;;  %p3272_p1 = scmp.lt.s32.totalorder %s3834_s12, 864 }
  0x28   : > { %1434 = vmatprep.subr.bf16.mxu0 %v5452_v1  ;;  %s3189_s9 = sshll.u32 %s588_s8, 2  ;;  %s5724_s20 = smov (!%p3160_p13, %s344_s20), 864  ;;  %1081 = vmatpush1.bf16.msra.mxu1 %v3523_v5 }
  0x29   : > { %s3840_s15 = scalar_lea.vmem %s3785_s11, %s3189_s9  ;;  %1082 = vmatprep.subr.bf16.mxu1 %v5452_v1  ;;  %s347_s10 = sshra.s32 %s5724_s20, 3 }
  0x2a   : > { %v593_v7 = vld [vmem:[%s3840_s15 + $0x8] sm:$0xf]  ;;  %v3844_v8 = vld [vmem:[%s3840_s15 + $0xc] sm:$0xf]  ;;  %v3854_v11 = vld [vmem:[%s3840_s15 + $0x10] sm:$0xf] }
  0x2b   : > { %5519 = vst [vmem:[#allocation2_spill] sm:$0xff] %v3844_v8  ;;  %1435 = vmatpush1.bf16.msra.mxu0 %v3520_v4  ;;  %v3851_v10 = vcombine.low %v593_v7, %v3844_v8  ;;  %5520 = vst [vmem:[#allocation3_spill] sm:$0xff] %v3854_v11  ;;  %v3857_v12 = vld [vmem:[%s3840_s15 + $0x14] sm:$0xf]  ;;  %v3862_v13 = vld [vmem:[%s3840_s15 + $0x18] sm:$0xf] }
  0x2c   : > { %1436 = vmatprep.subr.bf16.mxu0 %v5452_v1  ;;  %v3866_v14 = vcombine.low %v3854_v11, %v3857_v12  ;;  %s3165_s17 = sshll.u32 %s347_s10, 2  ;;  %v3872_v17 = vld [vmem:[%s3840_s15 + $0x1c] sm:$0xf]  ;;  %v3881_v20 = vld [vmem:[%s3840_s15 + $0x20] sm:$0xf]  ;;  %1083 = vmatpush1.bf16.msra.mxu1 %v3526_v9  ;;  %s3711_s14 = smov 64  }
  0x2d   : > { %v662_v15 = vshrl.u32 %v3851_v10, 16  ;;  %v665_v16 = vshll.u32 %v3851_v10, 16  ;;  %s3876_s18 = scalar_lea.vmem %s3785_s11, %s3165_s17  ;;  %v3884_v21 = vld [vmem:[%s3840_s15 + $0x24] sm:$0xf]  ;;  %1084 = vmatprep.subr.bf16.mxu1 %v5452_v1  ;;  %v3915_v32 = vcombine.low %v3862_v13, %v3872_v17  ;;  %v3934_v39 = vld [vmem:[%s3840_s15 + $0x28] sm:$0xf] }
  0x2e   : > { %v670_v18 = vshrl.u32 %v3866_v14, 16  ;;  %v673_v19 = vshll.u32 %v3866_v14, 16  ;;  %v3893_v26 = vld [vmem:[%s3876_s18 + $0x8] sm:$0xf]  ;;  %v3896_v27 = vld [vmem:[%s3876_s18 + $0xc] sm:$0xf]  ;;  %v3974_v54 = vcombine.low %v3881_v20, %v3884_v21 }
  0x2f   : > { %1437 = vmatpush1.bf16.msra.mxu0 %v3522_v6  ;;  %v664_v24 = vrot.slane %v662_v15, 4  ;;  %v667_v25 = vrot.slane %v665_v16, 5  ;;  %5521 = vst [vmem:[#allocation4_spill] sm:$0xff] %v3896_v27  ;;  %v3902_v28 = vcombine.low %v3893_v26, %v3896_v27  ;;  %v3905_v29 = vld [vmem:[%s3876_s18 + $0x10] sm:$0xf]  ;;  %s1529_s29 = scalar_select %p1528_p0, %s3834_s12, 0 }
  0x30   : > { %1438 = vmatprep.subr.bf16.mxu0 %v5452_v1  ;;  %5522 = vst [vmem:[#allocation5_spill] sm:$0xff] %v3905_v29  ;;  %v3908_v30 = vld [vmem:[%s3876_s18 + $0x14] sm:$0xf]  ;;  %v3911_v31 = vld [vmem:[%s3876_s18 + $0x18] sm:$0xf]  ;;  %1085 = vmatpush1.bf16.msra.mxu1 %v3528_v23  ;;  %v675_v41 = vrot.slane %v673_v19, 5 }
  0x31   : > { %5523 = vst [vmem:[#allocation6_spill] sm:$0xff] %v3908_v30  ;;  %5524 = vst [vmem:[#allocation7_spill] sm:$0xff] %v3911_v31  ;;  %v3920_v34 = vor.u32 %v667_v25, %v664_v24  ;;  %v3923_v35 = vld [vmem:[%s3876_s18 + $0x1c] sm:$0xf]  ;;  %v3927_v36 = vcombine.low %v3905_v29, %v3908_v30  ;;  %v3930_v37 = vld [vmem:[%s3876_s18 + $0x40] sm:$0xf]  ;;  %1086 = vmatprep.subr.bf16.mxu1 %v5452_v1 }
  0x32   : > { %v367_v38 = vld [vmem:[%s3876_s18 + $0x44] sm:$0xf]  ;;  %v3937_v40 = vld [vmem:[%s3840_s15 + $0x2c] sm:$0xf]  ;;  %v422_v43 = vshrl.u32 %v3902_v28, 16  ;;  %v425_v44 = vshll.u32 %v3902_v28, 16  ;;  %v3947_v45 = vcombine.low %v3911_v31, %v3923_v35 }
  0x33   : > { %v3950_v46 = vcombine.low %v3930_v37, %v367_v38  ;;  %v3953_v47 = vld [vmem:[%s3876_s18 + $0x20] sm:$0xf]  ;;  %v3956_v48 = vld [vmem:[%s3876_s18 + $0x24] sm:$0xf]  ;;  %1439 = vmatpush1.bf16.msra.mxu0 %v3524_v22  ;;  %732 = vrot.lane.b32.xlu1 %v3920_v34, %s3711_s14  ;;  %v430_v49 = vshrl.u32 %v3927_v36, 16  ;;  %v433_v50 = vshll.u32 %v3927_v36, 16  ;;  %v3993_v6 = vcombine.low %v3934_v39, %v3937_v40 }
  0x34   : > { %v3964_v51 = vcombine.low %v3953_v47, %v3956_v48  ;;  %v3967_v52 = vld [vmem:[%s3876_s18 + $0x28] sm:$0xf]  ;;  %v3970_v53 = vld [vmem:[%s3876_s18 + $0x2c] sm:$0xf]  ;;  %1440 = vmatprep.subr.bf16.mxu0 %v5452_v1  ;;  %v424_v55 = vrot.slane %v422_v43, 4  ;;  %v427_v56 = vrot.slane %v425_v44, 5 }
  0x35   : > { %5525 = vst [vmem:[#allocation8_spill] sm:$0xff] %v3950_v46  ;;  %v439_v57 = vshrl.u32 %v3947_v45, 16  ;;  %v442_v58 = vshll.u32 %v3947_v45, 16  ;;  %v3980_v59 = vld [vmem:[%s3876_s18 + $0x30] sm:$0xf]  ;;  %v432_v60 = vrot.slane %v430_v49, 4  ;;  %v4013_v38 = vcombine.low %v3967_v52, %v3970_v53 }
  0x36   : > { %v435_v61 = vrot.slane %v433_v50, 5  ;;  %v484_v62 = vshrl.u32 %v3950_v46, 16  ;;  %v487_v63 = vshll.u32 %v3950_v46, 16  ;;  %v3986_v0 = vld [vmem:[%s3876_s18 + $0x34] sm:$0xf]  ;;  %v428_v2 = vor.u32 %v427_v56, %v424_v55  ;;  %5526 = vst [vmem:[#allocation9_spill] sm:$0xff] %v3993_v6 }
  0x37   : > { %v441_v3 = vrot.slane %v439_v57, 4  ;;  %v444_v4 = vrot.slane %v442_v58, 5  ;;  %v3989_v5 = vld [vmem:[%s3876_s18 + $0x38] sm:$0xf]  ;;  %1441 = vmatpush1.bf16.msra.mxu0 %v3527_v33  ;;  %v3529_v7 = vld [vmem:[%s5447_s2 + $0x30] sm:$0xff]   ;;  %v448_v22 = vshrl.u32 %v3964_v51, 16  ;;  %v4017_v43 = vcombine.low %v3980_v59, %v3986_v0 }
  0x38   : > { %v436_v9 = vor.u32 %v435_v61, %v432_v60  ;;  %v486_v15 = vrot.slane %v484_v62, 4  ;;  %v489_v16 = vrot.slane %v487_v63, 5  ;;  %v4003_v23 = vld [vmem:[%s3876_s18 + $0x3c] sm:$0xf]  ;;  %1442 = vmatprep.subr.bf16.mxu0 %v5452_v1  ;;  %v3530_v24 = vld [vmem:[%s5447_s2 + $0x80] sm:$0xff]   ;;  %492 = vrot.lane.b32.xlu0 %v428_v2, %s3711_s14  ;;  %v451_v33 = vshll.u32 %v3964_v51, 16 }
  0x39   : > { %v445_v25 = vor.u32 %v444_v4, %v441_v3  ;;  %s5726_s29 = smov (!%p3272_p1, %s1529_s29), 864  ;;  %v450_v49 = vrot.slane %v448_v22, 4  ;;  %v4024_v55 = vcombine.low %v3989_v5, %v4003_v23  ;;  %1087 = vmatpush1.bf16.msra.mxu1 %v3530_v24  ;;  %v457_v58 = vshrl.u32 %v4013_v38, 16  ;;  %v3531_v61 = vld [vmem:[%s5447_s2 + $0x38] sm:$0xff]   ;;  %v4056_v19 = vld [vmem:[%s3840_s15 + $0x34] sm:$0xf] }
  0x3a   : > { %v490_v44 = vor.u32 %v489_v16, %v486_v15  ;;  %v437_v50 = vsel %vm420_vm0, %v428_v2, %v436_v9  ;;  %v453_v57 = vrot.slane %v451_v33, 5  ;;  %v460_v60 = vshll.u32 %v4013_v38, 16  ;;  %s1532_s21 = sshra.s32 %s5726_s29, 3  ;;  %1088 = vmatprep.subr.bf16.mxu1 %v5452_v1  ;;  %5528 = vst [vmem:[#allocation11_spill] sm:$0xff] %v4056_v19 }
  0x3b   : > { %5527 = vst [vmem:[#allocation10_spill] sm:$0xff] %v4024_v55  ;;  %v446_v56 = vsel %vm420_vm0, %v436_v9, %v445_v25  ;;  %1443 = vmatpush1.bf16.msra.mxu0 %v3529_v7  ;;  %v466_v62 = vshrl.u32 %v4017_v43, 16  ;;  %v469_v63 = vshll.u32 %v4017_v43, 16  ;;  %v475_v2 = vshrl.u32 %v4024_v55, 16  ;;  %s3277_s8 = sshll.u32 %s1532_s21, 2 }
  0x3c   : > { %496 = vrot.lane.b32.xlu1 %v446_v56, %s3711_s14  ;;  %v478_v3 = vshll.u32 %v4024_v55, 16  ;;  %1444 = vmatprep.subr.bf16.mxu0 %v5452_v1  ;;  %v454_v4 = vor.u32 %v453_v57, %v450_v49  ;;  %v459_v7 = vrot.slane %v457_v58, 4  ;;  %v462_v9 = vrot.slane %v460_v60, 5  ;;  %v4047_v57 = vld [vmem:[%s3840_s15 + $0x30] sm:$0xf]  ;;  %s4050_s9 = scalar_lea.vmem %s3785_s11, %s3277_s8 }
  0x3d   : > { %508 = vrot.lane.b32.xlu0 %v490_v44, %s3711_s14  ;;  %v672_v15 = vrot.slane %v670_v18, 4  ;;  %v468_v16 = vrot.slane %v466_v62, 4  ;;  %v471_v22 = vrot.slane %v469_v63, 5  ;;  %v477_v24 = vrot.slane %v475_v2, 4  ;;  %v4059_v62 = vld [vmem:[%s3840_s15 + $0x38] sm:$0xf] }
  0x3e   : > { %v480_v33 = vrot.slane %v478_v3, 5  ;;  %v455_v56 = vsel %vm420_vm0, %v445_v25, %v454_v4  ;;  %v463_v42 = vor.u32 %v462_v9, %v459_v7  ;;  %v679_v49 = vshrl.u32 %v3915_v32, 16  ;;  %v4065_v2 = vld [vmem:[%s3840_s15 + $0x3c] sm:$0xf]  ;;  %v4068_v3 = vld [vmem:[%s3840_s15 + $0x40] sm:$0xf] }
  0x3f   : > { %1445 = vmatpush1.bf16.msra.mxu0 %v3531_v61  ;;  %v472_v18 = vor.u32 %v471_v22, %v468_v16  ;;  %v682_v25 = vshll.u32 %v3915_v32, 16  ;;  %v688_v60 = vshrl.u32 %v3974_v54, 16  ;;  %v691_v63 = vshll.u32 %v3974_v54, 16  ;;  %5529 = vst [vmem:[#allocation12_spill] sm:$0xff] %v4065_v2  ;;  %5530 = vst [vmem:[#allocation13_spill] sm:$0xff] %v4068_v3 }
  0x40   : > { %498 = vrot.lane.b32.xlu1 %v455_v56, %s3711_s14  ;;  %v481_v58 = vor.u32 %v480_v33, %v477_v24  ;;  %1446 = vmatprep.subr.bf16.mxu0 %v5452_v1  ;;  %v681_v61 = vrot.slane %v679_v49, 4  ;;  %v464_v9 = vsel %vm420_vm0, %v454_v4, %v463_v42  ;;  %v676_v16 = vor.u32 %v675_v41, %v672_v15  ;;  %v608_v24 = vld [vmem:[%s3840_s15 + $0x44] sm:$0xf]  ;;  %v1537_v33 = vld [vmem:[%s4050_s9 + $0x8] sm:$0xf] }
  0x41   : > { %494 = vrot.lane.b32.xlu0 %v437_v50, %s3711_s14  ;;  %v473_v7 = vsel %vm420_vm0, %v463_v42, %v472_v18  ;;  %v684_v22 = vrot.slane %v682_v25, 5  ;;  %v3534_v50 = vld [vmem:[%s5447_s2 + $0x88] sm:$0xff]   ;;  %v690_v49 = vrot.slane %v688_v60, 4  ;;  %v693_v1 = vrot.slane %v691_v63, 5  ;;  %v3535_v41 = vld [vmem:[%s5447_s2 + $0x40] sm:$0xff]   ;;  %v3538_v25 = vld [vmem:[%s5447_s2 + $0x90] sm:$0xff]  }
  0x42   : > { %v491_v56 = vsel %vm420_vm0, %v481_v58, %v490_v44  ;;  %v697_v29 = vshrl.u32 %v3993_v6, 16  ;;  %v4080_v27 = vld [vmem:[%s4050_s9 + $0xc] sm:$0xf]  ;;  %v700_v4 = vshll.u32 %v3993_v6, 16  ;;  %v4089_v44 = vcombine.low %v4047_v57, %v4056_v19  ;;  %1089 = vmatpush1.bf16.msra.mxu1 %v3534_v50  ;;  %v4161_v46 = vld [vmem:[%s4050_s9 + $0x34] sm:$0xf] }
  0x43   : > { %5531 = vst [vmem:[#allocation14_spill] sm:$0xff] %v4080_v27  ;;  %v685_v42 = vor.u32 %v684_v22, %v681_v61  ;;  %v4093_v15 = vcombine.low %v4059_v62, %v4065_v2  ;;  %v482_v60 = vsel %vm420_vm0, %v472_v18, %v481_v58  ;;  %v694_v61 = vor.u32 %v693_v1, %v690_v49  ;;  %v4104_v22 = vld [vmem:[%s4050_s9 + $0x10] sm:$0xf]  ;;  %v3539_v50 = vld [vmem:[%s5447_s2 + $0x48] sm:$0xff]   ;;  %v4112_v18 = vld [vmem:[%s4050_s9 + $0x14] sm:$0xf] }
  0x44   : > { %502 = vrot.lane.b32.xlu1 %v473_v7, %s3711_s14  ;;  %5532 = vst [vmem:[#allocation15_spill] sm:$0xff] %v4089_v44  ;;  %v699_v63 = vrot.slane %v697_v29, 4  ;;  %v4101_v7 = vcombine.low %v4068_v3, %v608_v24  ;;  %5535 = vst [vmem:[#allocation18_spill] sm:$0xff] %v4104_v22  ;;  %1447 = vmatpush1.bf16.msra.mxu0 %v3535_v41  ;;  %v702_v31 = vrot.slane %v700_v4, 5  ;;  %v706_v30 = vshrl.u32 %v4089_v44, 16 }
  0x45   : > { %5533 = vst [vmem:[#allocation16_spill] sm:$0xff] %v4093_v15  ;;  %500 = vrot.lane.b32.xlu0 %v464_v9, %s3711_s14  ;;  %v709_v9 = vshll.u32 %v4089_v44, 16  ;;  %5536 = vst [vmem:[#allocation19_spill] sm:$0xff] %v4112_v18  ;;  %v4115_v1 = vcombine.low %v1537_v33, %v4080_v27  ;;  %v5538_v29 = vmov 0   ;;  %v686_v58 = vsel %vm420_vm0, %v676_v16, %v685_v42  ;;  %v4124_v4 = vld [vmem:[%s4050_s9 + $0x18] sm:$0xf] }
  0x46   : > { %5534 = vst [vmem:[#allocation17_spill] sm:$0xff] %v4101_v7  ;;  %1090 = vmatprep.subr.bf16.mxu1 %v5538_v29  ;;  %1448 = vmatprep.subr.bf16.mxu0 %v5538_v29  ;;  %v715_v24 = vshrl.u32 %v4093_v15, 16  ;;  %v718_v49 = vshll.u32 %v4093_v15, 16  ;;  %v724_v41 = vshrl.u32 %v4101_v7, 16  ;;  %5539 = vst [vmem:[#allocation21_spill] sm:$0xff] %v4124_v4  ;;  %v703_v33 = vor.u32 %v702_v31, %v699_v63  ;;  %v3542_v15 = vld [vmem:[%s5447_s2 + $0x98] sm:$0xff]  }
  0x47   : > { %5537 = vst [vmem:[#allocation20_spill] sm:$0xff] %v4115_v1  ;;  %v708_v27 = vrot.slane %v706_v30, 4  ;;  %v711_v2 = vrot.slane %v709_v9, 5  ;;  %v727_v3 = vshll.u32 %v4101_v7, 16  ;;  %v4129_v44 = vld [vmem:[%s4050_s9 + $0x1c] sm:$0xf]  ;;  %1091 = vmatpush1.bf16.msra.mxu1 %v3538_v25  ;;  %v4137_v30 = vcombine.low %v4104_v22, %v4112_v18 }
  0x48   : > { %506 = vrot.lane.b32.xlu1 %v491_v56, %s3711_s14  ;;  %5540 = vst [vmem:[#allocation22_spill] sm:$0xff] %v4129_v44  ;;  %v717_v55 = vrot.slane %v715_v24, 4  ;;  %v720_v56 = vrot.slane %v718_v49, 5  ;;  %v726_v31 = vrot.slane %v724_v41, 4  ;;  %v4140_v63 = vld [vmem:[%s4050_s9 + $0x20] sm:$0xf]  ;;  %1449 = vmatpush1.bf16.msra.mxu0 %v3539_v50  ;;  %v4173_v19 = vcombine.low %v4124_v4, %v4129_v44 }
  0x49   : > { %504 = vrot.lane.b32.xlu0 %v482_v60, %s3711_s14  ;;  %5541 = vst [vmem:[#allocation23_spill] sm:$0xff] %v4137_v30  ;;  %5542 = vst [vmem:[#allocation24_spill] sm:$0xff] %v4140_v63  ;;  %v4143_v9 = vld [vmem:[%s4050_s9 + $0x24] sm:$0xf]  ;;  %v3543_v25 = vld [vmem:[%s5447_s2 + $0x50] sm:$0xff]   ;;  %v677_v60 = vsel %vm420_vm0, %v3920_v34, %v676_v16  ;;  %v712_v7 = vor.u32 %v711_v2, %v708_v27  ;;  %v729_v24 = vrot.slane %v727_v3, 5  ;;  %1092 = vmatprep.subr.bf16.mxu1 %v5538_v29 }
  0x4a   : > { %5543 = vst [vmem:[#allocation25_spill] sm:$0xff] %v4143_v9  ;;  %v1606_v49 = vshrl.u32 %v4115_v1, 16  ;;  %v4152_v41 = vld [vmem:[%s4050_s9 + $0x28] sm:$0xf]  ;;  %v4155_v18 = vld [vmem:[%s4050_s9 + $0x2c] sm:$0xf]  ;;  %1450 = vmatprep.subr.bf16.mxu0 %v5538_v29  ;;  %v721_v50 = vor.u32 %v720_v56, %v717_v55  ;;  %v695_v2 = vsel %vm420_vm0, %v685_v42, %v694_v61  ;;  %v704_v3 = vsel %vm420_vm0, %v694_v61, %v703_v33 }
  0x4b   : > { %5544 = vst [vmem:[#allocation26_spill] sm:$0xff] %v4152_v41  ;;  %5545 = vst [vmem:[#allocation27_spill] sm:$0xff] %v4155_v18  ;;  %v4158_v22 = vld [vmem:[%s4050_s9 + $0x30] sm:$0xf]  ;;  %v1609_v6 = vshll.u32 %v4115_v1, 16  ;;  %v1614_v27 = vshrl.u32 %v4137_v30, 16  ;;  %1093 = vmatpush1.bf16.msra.mxu1 %v3542_v15 }
  0x4c   : > { %5546 = vst [vmem:[#allocation28_spill] sm:$0xff] %v4158_v22  ;;  %5547 = vst [vmem:[#allocation29_spill] sm:$0xff] %v4161_v46  ;;  %v1617_v34 = vshll.u32 %v4137_v30, 16  ;;  %736 = vrot.lane.b32.xlu1 %v686_v58, %s3711_s14  ;;  %v1608_v16 = vrot.slane %v1606_v49, 4  ;;  %v3546_v55 = vld [vmem:[%s5447_s2 + $0xa0] sm:$0xff]   ;;  %v713_v58 = vsel %vm420_vm0, %v703_v33, %v712_v7  ;;  %1451 = vmatpush1.bf16.msra.mxu0 %v3543_v25  ;;  %v3547_v61 = vld [vmem:[%s5447_s2 + $0x58] sm:$0xff]  }
  0x4d   : > { %5548 = vst [vmem:[#allocation30_spill] sm:$0xff] %v4173_v19  ;;  %734 = vrot.lane.b32.xlu0 %v677_v60, %s3711_s14  ;;  %v1611_v56 = vrot.slane %v1609_v6, 5  ;;  %v1616_v42 = vrot.slane %v1614_v27, 4  ;;  %v730_v49 = vor.u32 %v729_v24, %v726_v31  ;;  %v1623_v15 = vshrl.u32 %v4173_v19, 16  ;;  %v4190_v33 = vld [vmem:[%s4050_s9 + $0x38] sm:$0xf]  ;;  %1094 = vmatprep.subr.bf16.mxu1 %v5538_v29 }
  0x4e   : > { %v1619_v30 = vrot.slane %v1617_v34, 5  ;;  %v1626_v1 = vshll.u32 %v4173_v19, 16  ;;  %v4187_v60 = vcombine.low %v4140_v63, %v4143_v9  ;;  %5549 = vst [vmem:[#allocation31_spill] sm:$0xff] %v4190_v33  ;;  %v4193_v6 = vld [vmem:[%s4050_s9 + $0x3c] sm:$0xf]  ;;  %1452 = vmatprep.subr.bf16.mxu0 %v5538_v29  ;;  %v3550_v31 = vld [vmem:[%s5447_s2 + $0xa8] sm:$0xff]   ;;  %v722_v25 = vsel %vm420_vm0, %v712_v7, %v721_v50 }
  0x4f   : > { %v4201_v24 = vor.u32 %v1611_v56, %v1608_v16  ;;  %v4205_v27 = vcombine.low %v4152_v41, %v4155_v18  ;;  %v4209_v34 = vcombine.low %v4158_v22, %v4161_v46  ;;  %v4212_v19 = vld [vmem:[%s4050_s9 + $0x40] sm:$0xf]  ;;  %v1552_v9 = vld [vmem:[%s4050_s9 + $0x44] sm:$0xf]  ;;  %v1625_v44 = vrot.slane %v1623_v15, 4  ;;  %1095 = vmatpush1.bf16.msra.mxu1 %v3546_v55  ;;  %v3553_v15 = vld [vmem:[%s5447_s2 + $0xb0] sm:$0xff]  }
  0x50   : > { %740 = vrot.lane.b32.xlu1 %v704_v3, %s3711_s14  ;;  %v1628_v63 = vrot.slane %v1626_v1, 5  ;;  %v1632_v4 = vshrl.u32 %v4187_v60, 16  ;;  %v1635_v7 = vshll.u32 %v4187_v60, 16  ;;  %v1620_v16 = vor.u32 %v1619_v30, %v1616_v42  ;;  %1453 = vmatpush1.bf16.msra.mxu0 %v3547_v61 }
  0x51   : > { %738 = vrot.lane.b32.xlu0 %v695_v2, %s3711_s14  ;;  %v1641_v56 = vshrl.u32 %v4205_v27, 16  ;;  %v1644_v46 = vshll.u32 %v4205_v27, 16  ;;  %v1650_v18 = vshrl.u32 %v4209_v34, 16  ;;  %v1653_v1 = vshll.u32 %v4209_v34, 16  ;;  %1096 = vmatprep.subr.bf16.mxu1 %v5538_v29 }
  0x52   : > { %v1629_v22 = vor.u32 %v1628_v63, %v1625_v44  ;;  %v1634_v41 = vrot.slane %v1632_v4, 4  ;;  %v1637_v3 = vrot.slane %v1635_v7, 5  ;;  %2021 = vmatprep.subr.bf16.mxu0 %v5538_v29  ;;  %v4227_v42 = vcombine.low %v4190_v33, %v4193_v6 }
  0x53   : > { %v1643_v55 = vrot.slane %v1641_v56, 4  ;;  %v1646_v2 = vrot.slane %v1644_v46, 5  ;;  %v1652_v30 = vrot.slane %v1650_v18, 4  ;;  %v731_v44 = vsel %vm420_vm0, %v721_v50, %v730_v49  ;;  %1097 = vmatpush1.bf16.msra.mxu1 %v3550_v31 }
  0x54   : > { %5550 = vst [vmem:[#allocation32_spill] sm:$0xff] %v4227_v42  ;;  %744 = vrot.lane.b32.xlu1 %v722_v25, %s3711_s14  ;;  %v1638_v4 = vor.u32 %v1637_v3, %v1634_v41  ;;  %v1655_v63 = vrot.slane %v1653_v1, 5  ;;  %v4232_v61 = vcombine.low %v4212_v19, %v1552_v9  ;;  %v1621_v46 = vsel %vm420_vm0, %v4201_v24, %v1620_v16  ;;  %v4243_v41 = vld [vmem:[%s3876_s18 + $0x4] sm:$0xf] }
  0x55   : > { %742 = vrot.lane.b32.xlu0 %v713_v58, %s3711_s14  ;;  %v1647_v18 = vor.u32 %v1646_v2, %v1643_v55  ;;  %v1659_v25 = vshrl.u32 %v4227_v42, 16  ;;  %v1662_v50 = vshll.u32 %v4227_v42, 16  ;;  %1098 = vmatprep.subr.bf16.mxu1 %v5538_v29  ;;  %v1630_v9 = vsel %vm420_vm0, %v1620_v16, %v1629_v22  ;;  %v3554_v58 = vld [vmem:[%s5447_s2 + $0xb8] sm:$0xff]  }
  0x56   : > { %5551 = vst [vmem:[#allocation33_spill] sm:$0xff] %v4232_v61  ;;  %v1656_v31 = vor.u32 %v1655_v63, %v1652_v30  ;;  %v1668_v7 = vshrl.u32 %v4232_v61, 16  ;;  %v1671_v56 = vshll.u32 %v4232_v61, 16  ;;  %v1639_v3 = vsel %vm420_vm0, %v1629_v22, %v1638_v4 }
  0x57   : > { %v4254_v1 = vsel %vm420_vm0, %v1638_v4, %v1647_v18  ;;  %v1661_v55 = vrot.slane %v1659_v25, 4  ;;  %v1664_v2 = vrot.slane %v1662_v50, 5  ;;  %1099 = vmatpush1.bf16.msra.mxu1 %v3553_v15  ;;  %v514_v15 = vrot.slane %v3902_v28, 5 }
  0x58   : > { %748 = vrot.lane.b32.xlu1 %v730_v49, %s3711_s14  ;;  %v1657_v16 = vsel %vm420_vm0, %v1647_v18, %v1656_v31  ;;  %v1670_v30 = vrot.slane %v1668_v7, 4  ;;  %v1673_v63 = vrot.slane %v1671_v56, 5  ;;  %1100 = vmatprep.subr.bf16.mxu1 %v5538_v29  ;;  %v515_v50 = vrot.slane %v3927_v36, 5 }
  0x59   : > { %746 = vrot.lane.b32.xlu0 %v731_v44, %s3711_s14  ;;  %v1665_v42 = vor.u32 %v1664_v2, %v1661_v55  ;;  %v1191_v55 = vshrl.u32 %v514_v15, 16  ;;  %v1194_v2 = vshll.u32 %v514_v15, 16  ;;  %v754_v28 = vrot.slane %v3866_v14, 5 }
  0x5a   : > { %v4267_v25 = vor.u32 %v1673_v63, %v1670_v30  ;;  %v516_v36 = vsel %vm513_vm1, %v514_v15, %v515_v50  ;;  %v753_v30 = vrot.slane %v3851_v10, 5 }
  0x5b   : > { %v4274_v44 = vsel %vm420_vm0, %v1656_v31, %v1665_v42  ;;  %1101 = vmatpush1.bf16.msra.mxu1 %v3554_v58  ;;  %v1196_v63 = vrot.slane %v1194_v2, 4  ;;  %v1199_v7 = vshrl.u32 %v516_v36, 16  ;;  %v1202_v18 = vshll.u32 %v516_v36, 16 }
  0x5c   : > { %1678 = vrot.lane.b32.xlu1 %v1621_v46, %s3711_s14  ;;  %v1675_v56 = vsel %vm420_vm0, %v1665_v42, %v4267_v25  ;;  %v517_v46 = vrot.slane %v3947_v45, 5  ;;  %3356 = vmatprep.subr.bf16.mxu1 %v5538_v29  ;;  %v1193_v42 = vrot.slane %v1191_v55, 3  ;;  %v842_v49 = vshll.u32 %v753_v30, 16 }
  0x5d   : > { %1676 = vrot.lane.b32.xlu0 %v4201_v24, %s3711_s14  ;;  %v839_v24 = vshrl.u32 %v753_v30, 16  ;;  %v1201_v31 = vrot.slane %v1199_v7, 3  ;;  %v1204_v4 = vrot.slane %v1202_v18, 4  ;;  %v755_v55 = vsel %vm513_vm1, %v753_v30, %v754_v28 }
  0x5e   : > { %v518_v58 = vsel %vm513_vm1, %v515_v50, %v517_v46  ;;  %v1197_v15 = vor.u32 %v1196_v63, %v1193_v42  ;;  %v844_v22 = vrot.slane %v842_v49, 4  ;;  %v847_v50 = vshrl.u32 %v755_v55, 16 }
  0x5f   : > { %v1216_v45 = vshrl.u32 %v518_v58, 16  ;;  %v1219_v10 = vshll.u32 %v518_v58, 16  ;;  %v841_v2 = vrot.slane %v839_v24, 3  ;;  %v1205_v36 = vor.u32 %v1204_v4, %v1201_v31 }
  0x60   : > { %1682 = vrot.lane.b32.xlu1 %v1639_v3, %s3711_s14  ;;  %v850_v11 = vshll.u32 %v755_v55, 16  ;;  %v519_v7 = vrot.slane %v3964_v51, 5  ;;  %v849_v18 = vrot.slane %v847_v50, 3  ;;  %v756_v31 = vrot.slane %v3915_v32, 5  ;;  %v2246_v50 = vld [vmem:[%s3790_s16] sm:$0xff] }
  0x61   : > { %1680 = vrot.lane.b32.xlu0 %v1630_v9, %s3711_s14  ;;  %v1218_v61 = vrot.slane %v1216_v45, 3  ;;  %v1221_v14 = vrot.slane %v1219_v10, 4  ;;  %v845_v8 = vor.u32 %v844_v22, %v841_v2  ;;  %v1206_v9 = vsel %vm822_vm2, %v1197_v15, %v1205_v36 }
  0x62   : > { %v852_v42 = vrot.slane %v850_v11, 4  ;;  %3264 = vmatprep.mubr.msk.bf16.mxu0 %vm531_vm3, %v1206_v9  ;;  %v520_v4 = vsel %vm513_vm1, %v517_v46, %v519_v7  ;;  %v521_v51 = vrot.slane %v4013_v38, 5  ;;  %v758_v11 = vrot.slane %v3974_v54, 5  ;;  %v2249_v9 = vld [vmem:[%s3790_s16 + $0x18] sm:$0xff] }
  0x63   : > { %v1222_v22 = vor.u32 %v1221_v14, %v1218_v61  ;;  %v1233_v30 = vshrl.u32 %v520_v4, 16  ;;  %v1236_v63 = vshll.u32 %v520_v4, 16  ;;  %v757_v24 = vsel %vm513_vm1, %v754_v28, %v756_v31 }
  0x64   : > { %1686 = vrot.lane.b32.xlu1 %v1657_v16, %s3711_s14  ;;  %v853_v16 = vor.u32 %v852_v42, %v849_v18  ;;  %v864_v15 = vshrl.u32 %v757_v24, 16  ;;  %v867_v54 = vshll.u32 %v757_v24, 16  ;;  %v759_v10 = vsel %vm513_vm1, %v756_v31, %v758_v11  ;;  %v5552_v24 = vld [vmem:[#allocation11_spill] sm:$0xff] }
  0x65   : > { %1684 = vrot.lane.b32.xlu0 %v4254_v1, %s3711_s14  ;;  %v4312_v58 = vsel %vm822_vm2, %v1205_v36, %v1222_v22  ;;  %v522_v1 = vsel %vm513_vm1, %v519_v7, %v521_v51  ;;  %v1235_v38 = vrot.slane %v1233_v30, 3  ;;  %v1238_v46 = vrot.slane %v1236_v63, 4 }
  0x66   : > { %v854_v32 = vsel %vm822_vm2, %v845_v8, %v853_v16  ;;  %v1250_v28 = vshrl.u32 %v522_v1, 16  ;;  %v1253_v45 = vshll.u32 %v522_v1, 16  ;;  %v866_v2 = vrot.slane %v864_v15, 3 }
  0x67   : > { %3244 = vmatprep.mubr.msk.bf16.mxu1 %vm531_vm3, %v854_v32  ;;  %v1239_v55 = vor.u32 %v1238_v46, %v1235_v38  ;;  %v881_v36 = vshrl.u32 %v759_v10, 16  ;;  %v869_v8 = vrot.slane %v867_v54, 4  ;;  %v5499_v4 = vmov 1   ;;  %v5553_v38 = vld [vmem:[#allocation9_spill] sm:$0xff] }
  0x68   : > { %1690 = vrot.lane.b32.xlu1 %v1675_v56, %s3711_s14  ;;  %v884_v56 = vshll.u32 %v759_v10, 16  ;;  %v1252_v14 = vrot.slane %v1250_v28, 3  ;;  %v1255_v7 = vrot.slane %v1253_v45, 4  ;;  %3466 = vset.pattern.permute.xlu0 %v5499_v4  ;;  %v523_v31 = vrot.slane %v4017_v43, 5  ;;  %v2251_v28 = vld [vmem:[%s3790_s16 + $0x28] sm:$0xff]  ;;  %v5554_v45 = vld [vmem:[#allocation8_spill] sm:$0xff] }
  0x69   : > { %1688 = vrot.lane.b32.xlu0 %v4274_v44, %s3711_s14  ;;  %v4327_v18 = vsel %vm822_vm2, %v1222_v22, %v1239_v55  ;;  %v883_v44 = vrot.slane %v881_v36, 3  ;;  %v870_v30 = vor.u32 %v869_v8, %v866_v2  ;;  %3585 = vtanh.f32 %v2246_v50 }
  0x6a   : > { %v886_v42 = vrot.slane %v884_v56, 4  ;;  %v1256_v63 = vor.u32 %v1255_v7, %v1252_v14  ;;  %v524_v22 = vsel %vm513_vm1, %v521_v51, %v523_v31  ;;  %v760_v46 = vrot.slane %v5553_v38, 5  ;;  %v5556_v51 = vld [vmem:[#allocation10_spill] sm:$0xff]  ;;  %v5557_v7 = vld [vmem:[#allocation15_spill] sm:$0xff] }
  0x6b   : > { %3587 = vtanh.f32 %v2249_v9  ;;  %v4338_v15 = vsel %vm822_vm2, %v853_v16, %v870_v30  ;;  %v1267_v54 = vshrl.u32 %v524_v22, 16  ;;  %v527_v10 = vrot.slane %v5554_v45, 5 }
  0x6c   : > { %v887_v32 = vor.u32 %v886_v42, %v883_v44  ;;  %v4341_v43 = vsel %vm822_vm2, %v1239_v55, %v1256_v63  ;;  %v761_v36 = vsel %vm513_vm1, %v758_v11, %v760_v46  ;;  %v525_v56 = vrot.slane %v5556_v51, 5  ;;  %v5558_v44 = vld [vmem:[#allocation13_spill] sm:$0xff]  ;;  %v5559_v42 = vld [vmem:[#allocation12_spill] sm:$0xff] }
  0x6d   : > { %1692 = vrot.lane.b32.xlu0 %v4267_v25, %s3711_s14  ;;  %v1270_v25 = vshll.u32 %v524_v22, 16  ;;  %v1269_v50 = vrot.slane %v1267_v54, 3  ;;  %v898_v16 = vshrl.u32 %v761_v36, 16  ;;  %v901_v14 = vshll.u32 %v761_v36, 16  ;;  %v2253_v54 = vld [vmem:[%s3790_s16 + $0x38] sm:$0xff] }
  0x6e   : > { %v4346_v2 = vsel %vm822_vm2, %v870_v30, %v887_v32  ;;  %v526_v55 = vsel %vm513_vm1, %v523_v31, %v525_v56  ;;  %3589 = vtanh.f32 %v2251_v28  ;;  %v762_v9 = vrot.slane %v5557_v7, 5 }
  0x6f   : > { %5555 = vst [vmem:[#allocation11_spill] sm:$0xff] %v4346_v2  ;;  %v1272_v8 = vrot.slane %v1270_v25, 4  ;;  %v900_v30 = vrot.slane %v898_v16, 3  ;;  %v903_v45 = vrot.slane %v901_v14, 4  ;;  %v1284_v4 = vshrl.u32 %v526_v55, 16 }
  0x70   : > { %v1287_v11 = vshll.u32 %v526_v55, 16  ;;  %v763_v1 = vsel %vm513_vm1, %v760_v46, %v762_v9  ;;  %v528_v25 = vsel %vm513_vm1, %v525_v56, %v527_v10  ;;  %3591 = vtanh.f32 %v2253_v54  ;;  %v5563_v55 = vld [vmem:[#allocation16_spill] sm:$0xff] }
  0x71   : > { %v1273_v38 = vor.u32 %v1272_v8, %v1269_v50  ;;  %v904_v31 = vor.u32 %v903_v45, %v900_v30  ;;  %v1286_v28 = vrot.slane %v1284_v4, 3  ;;  %v915_v51 = vshrl.u32 %v763_v1, 16 }
  0x72   : > { %v1289_v7 = vrot.slane %v1287_v11, 4  ;;  %v918_v22 = vshll.u32 %v763_v1, 16  ;;  %v1301_v50 = vshrl.u32 %v528_v25, 16  ;;  %v1304_v8 = vshll.u32 %v528_v25, 16  ;;  %v2255_v11 = vld [vmem:[%s3790_s16 + $0x48] sm:$0xff] }
  0x73   : > { %v4358_v36 = vsel %vm822_vm2, %v1256_v63, %v1273_v38  ;;  %v4360_v16 = vpop.eup %3585  ;;  %v4363_v14 = vsel %vm822_vm2, %v887_v32, %v904_v31  ;;  %v917_v46 = vrot.slane %v915_v51, 3  ;;  %v764_v56 = vrot.slane %v5563_v55, 5  ;;  %v3573_v63 = vld [vmem:[%s3876_s18 + $0x48] ss:$0 sps:$4 sm:$0xff]  }
  0x74   : > { %5560 = vst [vmem:[#allocation9_spill] sm:$0xff] %v4358_v36  ;;  %5561 = vst [vmem:[#allocation8_spill] sm:$0xff] %v4360_v16  ;;  %2530 = vperm.xlu0 %3466, %v4360_v16   ;;  %v1290_v4 = vor.u32 %v1289_v7, %v1286_v28  ;;  %v920_v30 = vrot.slane %v918_v22, 4  ;;  %v1303_v1 = vrot.slane %v1301_v50, 3  ;;  %v1306_v45 = vrot.slane %v1304_v8, 4  ;;  %v2257_v36 = vld [vmem:[%s3790_s16 + $0x58] sm:$0xff] }
  0x75   : > { %5562 = vst [vmem:[#allocation10_spill] sm:$0xff] %v4363_v14  ;;  %v4367_v61 = vpop.eup %3587  ;;  %v765_v25 = vsel %vm513_vm1, %v762_v9, %v764_v56  ;;  %3593 = vtanh.f32 %v2255_v11  ;;  %v529_v16 = vrot.slane %v3573_v63, 5  ;;  %v5567_v28 = vld [vmem:[#allocation17_spill] sm:$0xff]  ;;  %v5584_v8 = vld [vmem:[#allocation30_spill] sm:$0xff] }
  0x76   : > { %v4375_v54 = vsel %vm822_vm2, %v1273_v38, %v1290_v4  ;;  %v921_v51 = vor.u32 %v920_v30, %v917_v46  ;;  %v1307_v55 = vor.u32 %v1306_v45, %v1303_v1  ;;  %v932_v14 = vshrl.u32 %v765_v25, 16  ;;  %v5576_v30 = vld [vmem:[#allocation20_spill] sm:$0xff] }
  0x77   : > { %5566 = vst [vmem:[#allocation15_spill] sm:$0xff] %v4375_v54  ;;  %v935_v2 = vshll.u32 %v765_v25, 16  ;;  %v766_v22 = vrot.slane %v5567_v28, 5  ;;  %3595 = vtanh.f32 %v2257_v36  ;;  %v530_v63 = vsel %vm513_vm1, %v527_v10, %v529_v16 }
  0x78   : > { %v4379_v7 = vpop.eup %3589  ;;  %2542 = vperm.xlu0 %3466, %v4367_v61   ;;  %v4383_v9 = vsel %vm822_vm2, %v904_v31, %v921_v51  ;;  %v4386_v38 = vsel %vm822_vm2, %v1290_v4, %v1307_v55  ;;  %v934_v50 = vrot.slane %v932_v14, 3  ;;  %v1318_v11 = vshrl.u32 %v530_v63, 16  ;;  %v3580_v4 = vld [vmem:[%s3840_s15 + $0x48] ss:$0 sps:$4 sm:$0xff]  }
  0x79   : > { %5568 = vst [vmem:[#allocation13_spill] sm:$0xff] %v4383_v9  ;;  %5569 = vst [vmem:[#allocation12_spill] sm:$0xff] %v4386_v38  ;;  %v937_v1 = vrot.slane %v935_v2, 4  ;;  %v767_v45 = vsel %vm513_vm1, %v764_v56, %v766_v22  ;;  %v1321_v25 = vshll.u32 %v530_v63, 16  ;;  %v2259_v9 = vld [vmem:[%s3790_s16 + $0x68] sm:$0xff]  ;;  %v1697_v2 = vrot.slane %v5576_v30, 5 }
  0x7a   : > { %v949_v28 = vshrl.u32 %v767_v45, 16  ;;  %v952_v49 = vshll.u32 %v767_v45, 16  ;;  %v1320_v10 = vrot.slane %v1318_v11, 3  ;;  %v4399_v63 = vpop.eup %3591  ;;  %3597 = vtanh.f32 %v2259_v9  ;;  %v2261_v30 = vld [vmem:[%s3790_s16 + $0x78] sm:$0xff] }
  0x7b   : > { %v938_v31 = vor.u32 %v937_v1, %v934_v50  ;;  %v1323_v36 = vrot.slane %v1321_v25, 4  ;;  %v5578_v1 = vld [vmem:[#allocation23_spill] sm:$0xff]  ;;  %v1782_v38 = vshrl.u32 %v1697_v2, 16  ;;  %v1785_v54 = vshll.u32 %v1697_v2, 16 }
  0x7c   : > { %2550 = vperm.xlu0 %3466, %v4379_v7   ;;  %v951_v16 = vrot.slane %v949_v28, 3  ;;  %v954_v56 = vrot.slane %v952_v49, 4  ;;  %v1698_v45 = vrot.slane %v5578_v1, 5  ;;  %3599 = vtanh.f32 %v2261_v30 }
  0x7d   : > { %v4402_v50 = vsel %vm822_vm2, %v921_v51, %v938_v31  ;;  %v1324_v32 = vor.u32 %v1323_v36, %v1320_v10  ;;  %v1784_v11 = vrot.slane %v1782_v38, 3  ;;  %v1787_v25 = vrot.slane %v1785_v54, 4 }
  0x7e   : > { %5577 = vst [vmem:[#allocation16_spill] sm:$0xff] %v4402_v50  ;;  %v955_v14 = vor.u32 %v954_v56, %v951_v16  ;;  %v1699_v3 = vsel %vm513_vm1, %v1697_v2, %v1698_v45  ;;  %v768_v36 = vrot.slane %v3580_v4, 5  ;;  %v1700_v28 = vrot.slane %v5584_v8, 5 }
  0x7f   : > { %v4412_v51 = vsel %vm822_vm2, %v1307_v55, %v1324_v32  ;;  %v1790_v50 = vshrl.u32 %v1699_v3, 16  ;;  %v1793_v10 = vshll.u32 %v1699_v3, 16  ;;  %v4417_v9 = vpop.eup %3593  ;;  %v1788_v2 = vor.u32 %v1787_v25, %v1784_v11  ;;  %v2247_v11 = vld [vmem:[%s3790_s16 + $0x8] sm:$0xff] }
  0x80   : > { %2558 = vperm.xlu0 %3466, %v4399_v63   ;;  %5581 = vst [vmem:[#allocation17_spill] sm:$0xff] %v4412_v51  ;;  %v4415_v1 = vsel %vm822_vm2, %v938_v31, %v955_v14  ;;  %v769_v55 = vsel %vm513_vm1, %v766_v22, %v768_v36  ;;  %v1702_v31 = vrot.slane %v4187_v60, 5  ;;  %v1704_v3 = vrot.slane %v4205_v27, 5 }
  0x81   : > { %5582 = vst [vmem:[#allocation20_spill] sm:$0xff] %v4415_v1  ;;  %v1792_v16 = vrot.slane %v1790_v50, 3  ;;  %v1795_v56 = vrot.slane %v1793_v10, 4  ;;  %v4422_v32 = vpop.eup %3595  ;;  %v1706_v30 = vrot.slane %v4209_v34, 5  ;;  %v966_v1 = vshrl.u32 %v769_v55, 16 }
  0x82   : > { %v969_v54 = vshll.u32 %v769_v55, 16  ;;  %v1701_v50 = vsel %vm513_vm1, %v1698_v45, %v1700_v28  ;;  %v1705_v10 = vsel %vm513_vm1, %v1702_v31, %v1704_v3  ;;  %3601 = vtanh.f32 %v2247_v11 }
  0x83   : > { %v1796_v4 = vor.u32 %v1795_v56, %v1792_v16  ;;  %v1807_v25 = vshrl.u32 %v1701_v50, 16  ;;  %v1810_v8 = vshll.u32 %v1701_v50, 16  ;;  %v1707_v22 = vsel %vm513_vm1, %v1704_v3, %v1706_v30  ;;  %v2250_v50 = vld [vmem:[%s3790_s16 + $0x20] sm:$0xff] }
  0x84   : > { %2566 = vperm.xlu0 %3466, %v4417_v9   ;;  %v968_v27 = vrot.slane %v966_v1, 3  ;;  %v971_v34 = vrot.slane %v969_v54, 4  ;;  %v1841_v36 = vshrl.u32 %v1705_v10, 16  ;;  %v1844_v56 = vshll.u32 %v1705_v10, 16  ;;  %v4436_v33 = vpop.eup %3597 }
  0x85   : > { %v4434_v60 = vsel %vm822_vm2, %v1788_v2, %v1796_v4  ;;  %v1809_v51 = vrot.slane %v1807_v25, 3  ;;  %v1812_v16 = vrot.slane %v1810_v8, 4  ;;  %v1858_v55 = vshrl.u32 %v1707_v22, 16 }
  0x86   : > { %5585 = vst [vmem:[#allocation23_spill] sm:$0xff] %v4434_v60  ;;  %v972_v45 = vor.u32 %v971_v34, %v968_v27  ;;  %v1843_v38 = vrot.slane %v1841_v36, 3  ;;  %v1861_v3 = vshll.u32 %v1707_v22, 16  ;;  %v1846_v2 = vrot.slane %v1844_v56, 4  ;;  %v4444_v46 = vpop.eup %3599  ;;  %v5588_v34 = vld [vmem:[#allocation32_spill] sm:$0xff]  ;;  %v5589_v56 = vld [vmem:[#allocation33_spill] sm:$0xff] }
  0x87   : > { %v1813_v49 = vor.u32 %v1812_v16, %v1809_v51  ;;  %v1860_v60 = vrot.slane %v1858_v55, 3  ;;  %v1703_v1 = vsel %vm513_vm1, %v1700_v28, %v1702_v31  ;;  %3603 = vtanh.f32 %v2250_v50  ;;  %v2252_v28 = vld [vmem:[%s3790_s16 + $0x30] sm:$0xff]  ;;  %v2134_v16 = vld [vmem:[%s3795_s19] sm:$0xff] }
  0x88   : > { %2574 = vperm.xlu0 %3466, %v4422_v32   ;;  %v4442_v54 = vsel %vm822_vm2, %v955_v14, %v972_v45  ;;  %v1863_v25 = vrot.slane %v1861_v3, 4  ;;  %v1824_v8 = vshrl.u32 %v1703_v1, 16  ;;  %v1827_v10 = vshll.u32 %v1703_v1, 16  ;;  %2152 = vperm.xlu1 %3465, %v2134_v16  }
  0x89   : > { %5586 = vst [vmem:[#allocation30_spill] sm:$0xff] %v4442_v54  ;;  %v4447_v11 = vsel %vm822_vm2, %v1796_v4, %v1813_v49  ;;  %v1847_v27 = vor.u32 %v1846_v2, %v1843_v38  ;;  %v1708_v36 = vrot.slane %v5588_v34, 5  ;;  %v1710_v55 = vrot.slane %v5589_v56, 5 }
  0x8a   : > { %5587 = vst [vmem:[#allocation34_spill] sm:$0xff] %v4447_v11  ;;  %v1864_v31 = vor.u32 %v1863_v25, %v1860_v60  ;;  %v1826_v22 = vrot.slane %v1824_v8, 3  ;;  %v1829_v14 = vrot.slane %v1827_v10, 4  ;;  %3605 = vtanh.f32 %v2252_v28  ;;  %v2136_v10 = vld [vmem:[%s3795_s19 + $0x10] sm:$0xff]  ;;  %v3584_v28 = vld [vmem:[%s4050_s9 + $0x48] ss:$0 sps:$4 sm:$0xff]  }
  0x8b   : > { %v1709_v45 = vsel %vm513_vm1, %v1706_v30, %v1708_v36  ;;  %v1711_v3 = vsel %vm513_vm1, %v1708_v36, %v1710_v55 }
  0x8c   : > { %2582 = vperm.xlu0 %3466, %v4436_v33   ;;  %v4457_v4 = vsel %vm822_vm2, %v1847_v27, %v1864_v31  ;;  %v1830_v38 = vor.u32 %v1829_v14, %v1826_v22  ;;  %v1875_v50 = vshrl.u32 %v1709_v45, 16  ;;  %v1878_v60 = vshll.u32 %v1709_v45, 16  ;;  %v2254_v22 = vld [vmem:[%s3790_s16 + $0x40] sm:$0xff]  ;;  %2162 = vperm.xlu1 %3465, %v2136_v10   ;;  %v4471_v34 = vpop.eup %3601 }
  0x8d   : > { %5590 = vst [vmem:[#allocation32_spill] sm:$0xff] %v4457_v4  ;;  %v1892_v25 = vshrl.u32 %v1711_v3, 16  ;;  %v1895_v8 = vshll.u32 %v1711_v3, 16  ;;  %v5504_v45 = vmov 2   ;;  %3607 = vtanh.f32 %v2254_v22 }
  0x8e   : > { %v4463_v2 = vsel %vm822_vm2, %v1813_v49, %v1830_v38  ;;  %v4466_v1 = vsel %vm822_vm2, %v1830_v38, %v1847_v27  ;;  %v1877_v14 = vrot.slane %v1875_v50, 3  ;;  %v1880_v30 = vrot.slane %v1878_v60, 4  ;;  %v2137_v38 = vld [vmem:[%s3795_s19 + $0x18] sm:$0xff]  ;;  %v2256_v50 = vld [vmem:[%s3790_s16 + $0x50] sm:$0xff] }
  0x8f   : > { %5591 = vst [vmem:[#allocation33_spill] sm:$0xff] %v4463_v2  ;;  %5592 = vst [vmem:[#allocation35_spill] sm:$0xff] %v4466_v1  ;;  %v1894_v36 = vrot.slane %v1892_v25, 3  ;;  %v1897_v16 = vrot.slane %v1895_v8, 4  ;;  %v1712_v49 = vrot.slane %v3584_v28, 5  ;;  %3609 = vtanh.f32 %v2256_v50  ;;  %v2143_v50 = vld [vmem:[%s3795_s19 + $0x48] sm:$0xff] }
  0x90   : > { %2590 = vperm.xlu0 %3466, %v4444_v46   ;;  %v1881_v56 = vor.u32 %v1880_v30, %v1877_v14  ;;  %2167 = vperm.xlu1 %3465, %v2137_v38   ;;  %v2139_v14 = vld [vmem:[%s3795_s19 + $0x28] sm:$0xff]  ;;  %v5602_v1 = vld [vmem:[#allocation6_spill] sm:$0xff] }
  0x91   : > { %v1898_v27 = vor.u32 %v1897_v16, %v1894_v36  ;;  %v4475_v3 = vpop.eup %3603  ;;  %v1713_v25 = vsel %vm513_vm1, %v1710_v55, %v1712_v49  ;;  %v2260_v49 = vld [vmem:[%s3790_s16 + $0x70] sm:$0xff] }
  0x92   : > { %v4480_v60 = vsel %vm822_vm2, %v1864_v31, %v1881_v56  ;;  %v1909_v10 = vshrl.u32 %v1713_v25, 16  ;;  %v1912_v22 = vshll.u32 %v1713_v25, 16  ;;  %v2258_v31 = vld [vmem:[%s3790_s16 + $0x60] sm:$0xff] }
  0x93   : > { %5593 = vst [vmem:[#allocation36_spill] sm:$0xff] %v4480_v60  ;;  %v4484_v8 = vsel %vm822_vm2, %v1881_v56, %v1898_v27  ;;  %3611 = vtanh.f32 %v2258_v31  ;;  %v2141_v56 = vld [vmem:[%s3795_s19 + $0x38] sm:$0xff]  ;;  %v2147_v31 = vld [vmem:[%s3795_s19 + $0x68] sm:$0xff] }
  0x94   : > { %3469 = vset.pattern.permute.xlu0 %v5504_v45  ;;  %5594 = vst [vmem:[#allocation37_spill] sm:$0xff] %v4484_v8  ;;  %v1911_v30 = vrot.slane %v1909_v10, 3  ;;  %v1914_v28 = vrot.slane %v1912_v22, 4  ;;  %v4487_v36 = vpop.eup %3605  ;;  %2177 = vperm.xlu1 %3465, %v2139_v14   ;;  %3613 = vtanh.f32 %v2260_v49  ;;  %v2145_v10 = vld [vmem:[%s3795_s19 + $0x58] sm:$0xff]  ;;  %v592_v22 = vld [vmem:[%s3840_s15 + $0x4] sm:$0xf] }
  0x95   : > { %2736 = vperm.xlu0 %3469, %v4471_v34   ;;  %5595 = vst [vmem:[#allocation38_spill] sm:$0xff] %v4487_v36  ;;  %v3650_v8 = vld [vmem:[%s3876_s18 + $0x44] sm:$0xf]  ;;  %v5603_v60 = vld [vmem:[#allocation7_spill] sm:$0xff] }
  0x96   : > { %v1915_v55 = vor.u32 %v1914_v28, %v1911_v30  ;;  %v3649_v30 = vld [vmem:[%s3840_s15 + $0x8] sm:$0xf]  ;;  %v5604_v2 = vcombine.low %v5602_v1, %v5603_v60  ;;  %v5605_v1 = vcombine.low %v3923_v35, %v3953_v47 }
  0x97   : > { %v4497_v38 = vpop.eup %3607  ;;  %v3190_v28 = vcombine.low %v592_v22, %v3649_v30  ;;  %v3174_v22 = vcombine.low %v3650_v8, %v3650_v8  ;;  %v2149_v30 = vld [vmem:[%s3795_s19 + $0x78] sm:$0xff] }
  0x98   : > { %v4492_v16 = vsel %vm822_vm2, %v1898_v27, %v1915_v55  ;;  %2187 = vperm.xlu1 %3465, %v2141_v56   ;;  %5597 = vst [vmem:[#allocation40_spill] sm:$0xff] %v4497_v38  ;;  %v5600_v56 = vcombine.low %v4243_v41, %v3893_v26 }
  0x99   : > { %2748 = vperm.xlu0 %3469, %v4475_v3   ;;  %5596 = vst [vmem:[#allocation39_spill] sm:$0xff] %v4492_v16  ;;  %v4501_v25 = vpop.eup %3609 }
  0x9a   : > { %5598 = vst [vmem:[#allocation41_spill] sm:$0xff] %v4501_v25 }
  0x9c   : > { %2197 = vperm.xlu1 %3465, %v2143_v50  }
  0x9d   : > { %2756 = vperm.xlu0 %3469, %v4487_v36   ;;  %v4506_v14 = vpop.eup %3611 }
  0x9e   : > { %5599 = vst [vmem:[#allocation42_spill] sm:$0xff] %v4506_v14  ;;  %v4515_v50 = vpop.eup %3613 }
  0x9f   : > { %5601 = vst [vmem:[#allocation43_spill] sm:$0xff] %v4515_v50 }
  0xa0   : > { %2207 = vperm.xlu1 %3465, %v2145_v10  }
  0xa1   : > { %2764 = vperm.xlu0 %3469, %v4497_v38  }
  0xa4   : > { %2217 = vperm.xlu1 %3465, %v2147_v31  }
  0xa5   : > { %v733_v27 = vpop.permute.xlu1 %732  ;;  %2772 = vperm.xlu0 %3469, %v4501_v25  }
  0xa6   : > { %v4518_v45 = vsel %vm531_vm3, %v3190_v28, %v733_v27 }
  0xa8   : > { %2227 = vperm.xlu1 %3465, %v2149_v30   ;;  %v5607_v30 = vld [vmem:[#allocation5_spill] sm:$0xff] }
  0xa9   : > { %2780 = vperm.xlu0 %3469, %v4506_v14  }
  0xaa   : > { %v493_v55 = vpop.permute.xlu0 %492 }
  0xab   : > { %v534_v49 = vsel %vm531_vm3, %v5600_v56, %v493_v55  ;;  %v823_v56 = vshrl.u32 %v4518_v45, 16 }
  0xac   : > { %v1175_v10 = vshrl.u32 %v534_v49, 16  ;;  %v1178_v51 = vshll.u32 %v534_v49, 16  ;;  %2302 = vperm.xlu1 %3465, %v4471_v34  }
  0xad   : > { %2788 = vperm.xlu0 %3469, %v4515_v50   ;;  %v5606_v50 = vld [vmem:[#allocation4_spill] sm:$0xff] }
  0xae   : > { %v497_v16 = vpop.permute.xlu1 %496  ;;  %v1177_v27 = vrot.slane %v1175_v10, 3  ;;  %v1180_v28 = vrot.slane %v1178_v51, 4  ;;  %v5608_v10 = vcombine.low %v5606_v50, %v5607_v30 }
  0xaf   : > { %v540_v26 = vsel %vm531_vm3, %v5604_v2, %v497_v16  ;;  %v509_v41 = vpop.permute.xlu0 %508  ;;  %v2135_v16 = vld [vmem:[%s3795_s19 + $0x8] sm:$0xff] }
  0xb0   : > { %v1207_v55 = vshrl.u32 %v540_v26, 16  ;;  %v1210_v31 = vshll.u32 %v540_v26, 16  ;;  %v558_v49 = vsel %vm531_vm3, %v3174_v22, %v509_v41  ;;  %v826_v26 = vshll.u32 %v4518_v45, 16  ;;  %2312 = vperm.xlu1 %3465, %v4367_v61  }
  0xb1   : > { %v4539_v22 = vrot.slane %v823_v56, 3  ;;  %v1309_v41 = vshrl.u32 %v558_v49, 16  ;;  %3470 = vset.pattern.permute.xlu0 %v5538_v29  ;;  %v1181_v35 = vor.u32 %v1180_v28, %v1177_v27  ;;  %v1312_v47 = vshll.u32 %v558_v49, 16 }
  0xb2   : > { %v499_v8 = vpop.permute.xlu1 %498  ;;  %v1209_v4 = vrot.slane %v1207_v55, 3  ;;  %v1212_v11 = vrot.slane %v1210_v31, 4  ;;  %2157 = vperm.xlu0 %3470, %v2135_v16   ;;  %v5609_v56 = vcombine.low %v3970_v53, %v3980_v59  ;;  %v5610_v27 = vcombine.low %v3956_v48, %v3967_v52  ;;  %v4555_v53 = vld [vmem:[%s5447_s2 + $0xc0] sm:$0xff]  }
  0xb3   : > { %v543_v2 = vsel %vm531_vm3, %v5605_v1, %v499_v8  ;;  %v495_v60 = vpop.permute.xlu0 %494  ;;  %v1314_v59 = vrot.slane %v1312_v47, 4 }
  0xb4   : > { %v1224_v54 = vshrl.u32 %v543_v2, 16  ;;  %v1227_v14 = vshll.u32 %v543_v2, 16  ;;  %v537_v51 = vsel %vm531_vm3, %v5608_v10, %v495_v60  ;;  %v1213_v2 = vor.u32 %v1212_v11, %v1209_v4  ;;  %2322 = vperm.xlu1 %3465, %v4379_v7  }
  0xb5   : > { %v1182_v55 = vshrl.u32 %v537_v51, 16  ;;  %v1185_v31 = vshll.u32 %v537_v51, 16  ;;  %v2138_v51 = vld [vmem:[%s3795_s19 + $0x20] sm:$0xff] }
  0xb6   : > { %v1226_v45 = vrot.slane %v1224_v54, 3  ;;  %v1229_v8 = vrot.slane %v1227_v14, 4  ;;  %v503_v1 = vpop.permute.xlu1 %502  ;;  %v1311_v14 = vrot.slane %v1309_v41, 3  ;;  %2172 = vperm.xlu0 %3470, %v2138_v51  }
  0xb7   : > { %v1184_v50 = vrot.slane %v1182_v55, 3  ;;  %v1187_v30 = vrot.slane %v1185_v31, 4  ;;  %v549_v60 = vsel %vm531_vm3, %v5609_v56, %v503_v1  ;;  %v501_v10 = vpop.permute.xlu0 %500  ;;  %v5611_v31 = vcombine.low %v4003_v23, %v3930_v37  ;;  %v4578_v23 = vld [vmem:[%s5447_s2 + $0xc8] sm:$0xff]  }
  0xb8   : > { %v1230_v25 = vor.u32 %v1229_v8, %v1226_v45  ;;  %v1258_v38 = vshrl.u32 %v549_v60, 16  ;;  %v1261_v36 = vshll.u32 %v549_v60, 16  ;;  %v546_v54 = vsel %vm531_vm3, %v5610_v27, %v501_v10  ;;  %2332 = vperm.xlu1 %3465, %v4399_v63  }
  0xb9   : > { %v1188_v28 = vor.u32 %v1187_v30, %v1184_v50  ;;  %v1241_v11 = vshrl.u32 %v546_v54, 16  ;;  %v1244_v4 = vshll.u32 %v546_v54, 16  ;;  %v2140_v50 = vld [vmem:[%s3795_s19 + $0x30] sm:$0xff] }
  0xba   : > { %v1260_v49 = vrot.slane %v1258_v38, 3  ;;  %v1263_v16 = vrot.slane %v1261_v36, 4  ;;  %v507_v55 = vpop.permute.xlu1 %506  ;;  %v4559_v48 = vsel %vm822_vm2, %v1213_v2, %v1230_v25  ;;  %v5612_v36 = vcombine.low %v3986_v0, %v3989_v5  ;;  %2182 = vperm.xlu0 %3470, %v2140_v50  }
  0xbb   : > { %v1243_v52 = vrot.slane %v1241_v11, 3  ;;  %v1246_v41 = vrot.slane %v1244_v4, 4  ;;  %v555_v45 = vsel %vm531_vm3, %v5611_v31, %v507_v55  ;;  %v505_v8 = vpop.permute.xlu0 %504  ;;  %v1189_v1 = vsel %vm822_vm2, %v1181_v35, %v1188_v28  ;;  %v5614_v55 = vld [vmem:[#allocation2_spill] sm:$0xff] }
  0xbc   : > { %v1264_v30 = vor.u32 %v1263_v16, %v1260_v49  ;;  %v1292_v47 = vshrl.u32 %v555_v45, 16  ;;  %v1295_v38 = vshll.u32 %v555_v45, 16  ;;  %v552_v56 = vsel %vm531_vm3, %v5612_v36, %v505_v8  ;;  %1463 = vmatmul.mubr.bf16.vlgmr.msra.gmra.mrb[0].mxu0 %v1189_v1  ;;  %v2142_v16 = vld [vmem:[%s3795_s19 + $0x40] sm:$0xff]  ;;  %2342 = vperm.xlu1 %3465, %v4417_v9  }
  0xbd   : > { %v1247_v60 = vor.u32 %v1246_v41, %v1243_v52  ;;  %v1275_v10 = vshrl.u32 %v552_v56, 16  ;;  %v1278_v51 = vshll.u32 %v552_v56, 16  ;;  %3265 = vmatprep.mubr.msk.bf16.mxu0 %vm531_vm3, %v4312_v58  ;;  %v1214_v37 = vsel %vm822_vm2, %v1188_v28, %v1213_v2  ;;  %2022 = vmatpush1.bf16.msra.mxu0 %v4555_v53  ;;  %v5615_v52 = vld [vmem:[#allocation3_spill] sm:$0xff] }
  0xbe   : > { %v828_v0 = vrot.slane %v826_v26, 4  ;;  %v1315_v5 = vor.u32 %v1314_v59, %v1311_v14  ;;  %v1294_v35 = vrot.slane %v1292_v47, 3  ;;  %v1297_v27 = vrot.slane %v1295_v38, 4  ;;  %v737_v54 = vpop.permute.xlu1 %736  ;;  %2023 = vmatprep.subr.bf16.mxu0 %v5538_v29  ;;  %2192 = vperm.xlu0 %3470, %v2142_v16  }
  0xbf   : > { %v1277_v11 = vrot.slane %v1275_v10, 3  ;;  %v1280_v58 = vrot.slane %v1278_v51, 4  ;;  %v5613_v2 = vcombine.low %v3857_v12, %v3862_v13  ;;  %v735_v4 = vpop.permute.xlu0 %734  ;;  %v4586_v49 = vsel %vm822_vm2, %v1230_v25, %v1247_v60  ;;  %v4598_v13 = vld [vmem:[%s5447_s2 + $0xd0] sm:$0xff]  }
  0xc0   : > { %v1298_v26 = vor.u32 %v1297_v27, %v1294_v35  ;;  %v5616_v41 = vcombine.low %v5614_v55, %v5615_v52  ;;  %v4601_v25 = vsel %vm822_vm2, %v1247_v60, %v1264_v30  ;;  %v829_v1 = vor.u32 %v828_v0, %v4539_v22  ;;  %v2144_v22 = vld [vmem:[%s3795_s19 + $0x50] sm:$0xff]  ;;  %2352 = vperm.xlu1 %3465, %v4422_v32  }
  0xc1   : > { %v778_v28 = vsel %vm531_vm3, %v5613_v2, %v737_v54  ;;  %v1281_v45 = vor.u32 %v1280_v58, %v1277_v11  ;;  %2024 = vmatpush1.bf16.msra.mxu0 %v4578_v23  ;;  %v5617_v35 = vcombine.low %v3884_v21, %v3934_v39  ;;  %v2248_v55 = vld [vmem:[%s3790_s16 + $0x10] sm:$0xff] }
  0xc2   : > { %v855_v14 = vshrl.u32 %v778_v28, 16  ;;  %v858_v59 = vshll.u32 %v778_v28, 16  ;;  %v775_v31 = vsel %vm531_vm3, %v5616_v41, %v735_v4  ;;  %2025 = vmatprep.subr.bf16.mxu0 %v5538_v29  ;;  %v741_v38 = vpop.permute.xlu1 %740  ;;  %v4606_v36 = vsel %vm822_vm2, %v1298_v26, %v1315_v5  ;;  %2202 = vperm.xlu0 %3470, %v2144_v22  }
  0xc3   : > { %v830_v8 = vshrl.u32 %v775_v31, 16  ;;  %v833_v12 = vshll.u32 %v775_v31, 16  ;;  %v739_v51 = vpop.permute.xlu0 %738  ;;  %v784_v60 = vsel %vm531_vm3, %v5617_v35, %v741_v38  ;;  %v4613_v27 = vsel %vm822_vm2, %v1264_v30, %v1281_v45 }
  0xc4   : > { %v857_v50 = vrot.slane %v855_v14, 3  ;;  %v860_v47 = vrot.slane %v858_v59, 4  ;;  %1471 = vmatmul.mubr.bf16.gmra.mrb[4].mxu0 %v1214_v37  ;;  %v5618_v5 = vcombine.low %v3872_v17, %v3881_v20  ;;  %v889_v11 = vshrl.u32 %v784_v60, 16  ;;  %v4631_v17 = vld [vmem:[%s5447_s2 + $0xd8] sm:$0xff]   ;;  %v4636_v59 = vld [vmem:[%s4050_s9 + $0x4] sm:$0xf]  ;;  %2362 = vperm.xlu1 %3465, %v4436_v33  }
  0xc5   : > { %v832_v56 = vrot.slane %v830_v8, 3  ;;  %v835_v10 = vrot.slane %v833_v12, 4  ;;  %v892_v58 = vshll.u32 %v784_v60, 16  ;;  %3266 = vmatprep.mubr.msk.bf16.mxu0 %vm531_vm3, %v4327_v18  ;;  %2026 = vmatpush1.bf16.msra.mxu0 %v4598_v13  ;;  %v4625_v39 = vsel %vm822_vm2, %v1281_v45, %v1298_v26  ;;  %v3651_v12 = vld [vmem:[%s3840_s15 + $0x44] sm:$0xf] }
  0xc6   : > { %v861_v0 = vor.u32 %v860_v47, %v857_v50  ;;  %v781_v54 = vsel %vm531_vm3, %v5618_v5, %v739_v51  ;;  %v891_v30 = vrot.slane %v889_v11, 3  ;;  %2027 = vmatprep.subr.bf16.mxu0 %v5538_v29  ;;  %v745_v20 = vpop.permute.xlu1 %744  ;;  %v5619_v41 = vcombine.low %v3937_v40, %v4047_v57  ;;  %v2146_v50 = vld [vmem:[%s3795_s19 + $0x60] sm:$0xff] }
  0xc7   : > { %v836_v2 = vor.u32 %v835_v10, %v832_v56  ;;  %v872_v28 = vshrl.u32 %v781_v54, 16  ;;  %v875_v21 = vshll.u32 %v781_v54, 16  ;;  %v894_v37 = vrot.slane %v892_v58, 4  ;;  %v743_v14 = vpop.permute.xlu0 %742  ;;  %v4658_v57 = vld [vmem:[%s5447_s2 + $0xe0] sm:$0xff]   ;;  %v3652_v10 = vld [vmem:[%s4050_s9 + $0x8] sm:$0xf]  ;;  %2212 = vperm.xlu0 %3470, %v2146_v50  }
  0xc8   : > { %v787_v31 = vsel %vm531_vm3, %v5619_v41, %v743_v14  ;;  %v5620_v45 = vcombine.low %v5552_v24, %v4059_v62  ;;  %3615 = vtanh.f32 %v2248_v55  ;;  %v5621_v11 = vcombine.low %v5559_v42, %v5558_v44  ;;  %v4685_v42 = vld [vmem:[%s5447_s2 + $0xe8] sm:$0xff]   ;;  %v5622_v55 = vld [vmem:[#allocation14_spill] sm:$0xff]  ;;  %2372 = vperm.xlu1 %3465, %v4444_v46  }
  0xc9   : > { %v874_v4 = vrot.slane %v872_v28, 3  ;;  %v877_v18 = vrot.slane %v875_v21, 4  ;;  %v837_v16 = vsel %vm822_vm2, %v829_v1, %v836_v2  ;;  %v862_v26 = vsel %vm822_vm2, %v836_v2, %v861_v0  ;;  %2028 = vmatpush1.bf16.msra.mxu0 %v4631_v17  ;;  %v5623_v41 = vld [vmem:[#allocation18_spill] sm:$0xff] }
  0xca   : > { %1111 = vmatmul.mubr.bf16.vlgmr.msra.gmra.mrb[0].mxu1 %v837_v16  ;;  %v895_v52 = vor.u32 %v894_v37, %v891_v30  ;;  %v790_v8 = vsel %vm531_vm3, %v5620_v45, %v745_v20  ;;  %v3198_v1 = vcombine.low %v3651_v12, %v3651_v12  ;;  %v906_v38 = vshrl.u32 %v787_v31, 16  ;;  %v749_v24 = vpop.permute.xlu1 %748  ;;  %2029 = vmatprep.subr.bf16.mxu0 %v5538_v29 }
  0xcb   : > { %v878_v47 = vor.u32 %v877_v18, %v874_v4  ;;  %3368 = vmatpush1.bf16.msra.mxu1 %v4555_v53  ;;  %3245 = vmatprep.mubr.msk.bf16.mxu1 %vm531_vm3, %v4338_v15  ;;  %v909_v56 = vshll.u32 %v787_v31, 16  ;;  %v923_v40 = vshrl.u32 %v790_v8, 16  ;;  %v926_v62 = vshll.u32 %v790_v8, 16  ;;  %v747_v22 = vpop.permute.xlu0 %746 }
  0xcc   : > { %3357 = vmatprep.subr.bf16.mxu1 %v5538_v29  ;;  %v3278_v53 = vcombine.low %v4636_v59, %v3652_v10  ;;  %v908_v15 = vrot.slane %v906_v38, 3  ;;  %1479 = vmatmul.mubr.bf16.gmra.mrb[8].mxu0 %v4559_v48  ;;  %v793_v58 = vsel %vm531_vm3, %v5621_v11, %v747_v22  ;;  %v796_v2 = vsel %vm531_vm3, %v3198_v1, %v749_v24  ;;  %v5627_v22 = vld [vmem:[#allocation19_spill] sm:$0xff] }
  0xcd   : > { %v911_v51 = vrot.slane %v909_v56, 4  ;;  %v4663_v35 = vsel %vm822_vm2, %v861_v0, %v878_v47  ;;  %v925_v60 = vrot.slane %v923_v40, 3  ;;  %v928_v5 = vrot.slane %v926_v62, 4  ;;  %v2148_v0 = vld [vmem:[%s3795_s19 + $0x70] sm:$0xff]  ;;  %3267 = vmatprep.mubr.msk.bf16.mxu0 %vm531_vm3, %v4341_v43  ;;  %2030 = vmatpush1.bf16.msra.mxu0 %v4658_v57 }
  0xce   : > { %v4668_v54 = vsel %vm822_vm2, %v878_v47, %v895_v52  ;;  %v940_v28 = vshrl.u32 %v793_v58, 16  ;;  %v943_v21 = vshll.u32 %v793_v58, 16  ;;  %v957_v30 = vshrl.u32 %v796_v2, 16  ;;  %v1679_v20 = vpop.permute.xlu1 %1678  ;;  %2031 = vmatprep.subr.bf16.mxu0 %v5538_v29  ;;  %2222 = vperm.xlu0 %3470, %v2148_v0   ;;  %v4708_v47 = vld [vmem:[%s5447_s2 + $0xf0] sm:$0xff]  }
  0xcf   : > { %3369 = vmatpush1.bf16.msra.mxu1 %v4578_v23  ;;  %v912_v48 = vor.u32 %v911_v51, %v908_v15  ;;  %v929_v44 = vor.u32 %v928_v5, %v925_v60  ;;  %v960_v37 = vshll.u32 %v796_v2, 16  ;;  %v1677_v16 = vpop.permute.xlu0 %1676  ;;  %v5624_v31 = vcombine.low %v5622_v55, %v5623_v41  ;;  %v5626_v15 = vld [vmem:[#allocation8_spill] sm:$0xff]  ;;  %v5628_v5 = vld [vmem:[#allocation21_spill] sm:$0xff]  ;;  %v5630_v2 = vld [vmem:[#allocation22_spill] sm:$0xff] }
  0xd0   : > { %3358 = vmatprep.subr.bf16.mxu1 %v5538_v29  ;;  %v942_v23 = vrot.slane %v940_v28, 3  ;;  %v945_v43 = vrot.slane %v943_v21, 4  ;;  %v959_v18 = vrot.slane %v957_v30, 3  ;;  %v1716_v8 = vsel %vm531_vm3, %v3278_v53, %v1677_v16  ;;  %v5631_v0 = vld [vmem:[#allocation24_spill] sm:$0xff]  ;;  %v5633_v30 = vld [vmem:[#allocation9_spill] sm:$0xff] }
  0xd1   : > { %v4689_v4 = vsel %vm822_vm2, %v895_v52, %v912_v48  ;;  %v962_v14 = vrot.slane %v960_v37, 4  ;;  %v4692_v59 = vsel %vm822_vm2, %v912_v48, %v929_v44  ;;  %v1719_v45 = vsel %vm531_vm3, %v5624_v31, %v1679_v20  ;;  %v5625_v52 = vld [vmem:[#allocation11_spill] sm:$0xff]  ;;  %2032 = vmatpush1.bf16.msra.mxu0 %v4685_v42 }
  0xd2   : > { %1119 = vmatmul.mubr.bf16.gmra.mrb[4].mxu1 %v862_v26  ;;  %v946_v12 = vor.u32 %v945_v43, %v942_v23  ;;  %v1773_v26 = vshrl.u32 %v1719_v45, 16  ;;  %v1776_v1 = vshll.u32 %v1719_v45, 16  ;;  %v1766_v50 = vshrl.u32 %v1716_v8, 16  ;;  %v1683_v40 = vpop.permute.xlu1 %1682  ;;  %2033 = vmatprep.subr.bf16.mxu0 %v5538_v29  ;;  %v4715_v51 = vpop.eup %3615  ;;  %v4738_v23 = vld [vmem:[%s5447_s2 + $0xf8] sm:$0xff]   ;;  %v5634_v31 = vld [vmem:[#allocation27_spill] sm:$0xff]  ;;  %v5635_v45 = vld [vmem:[#allocation28_spill] sm:$0xff] }
  0xd3   : > { %3370 = vmatpush1.bf16.msra.mxu1 %v4598_v13  ;;  %3246 = vmatprep.mubr.msk.bf16.mxu1 %vm531_vm3, %v5625_v52  ;;  %v963_v38 = vor.u32 %v962_v14, %v959_v18  ;;  %v1769_v56 = vshll.u32 %v1716_v8, 16  ;;  %v1681_v10 = vpop.permute.xlu0 %1680  ;;  %v5629_v11 = vcombine.low %v5627_v22, %v5628_v5  ;;  %v5632_v48 = vcombine.low %v5630_v2, %v5631_v0  ;;  %v3568_v22 = vld [vmem:[%s5447_s2 + $0x100] sm:$0xff]  }
  0xd4   : > { %3359 = vmatprep.subr.bf16.mxu1 %v5538_v29  ;;  %v1775_v13 = vrot.slane %v1773_v26, 3  ;;  %v1778_v62 = vrot.slane %v1776_v1, 4  ;;  %v1768_v24 = vrot.slane %v1766_v50, 3  ;;  %v4712_v53 = vsel %vm822_vm2, %v929_v44, %v946_v12  ;;  %2297 = vperm.xlu0 %3470, %v5626_v15   ;;  %v5637_v26 = vld [vmem:[#allocation25_spill] sm:$0xff]  ;;  %v5638_v1 = vld [vmem:[#allocation26_spill] sm:$0xff] }
  0xd5   : > { %1487 = vmatmul.mubr.bf16.gmra.mrb[12].mxu0 %v4586_v49  ;;  %v1771_v60 = vrot.slane %v1769_v56, 4  ;;  %v1722_v58 = vsel %vm531_vm3, %v5629_v11, %v1681_v10  ;;  %v1725_v28 = vsel %vm531_vm3, %v5632_v48, %v1683_v40  ;;  %v4727_v21 = vsel %vm822_vm2, %v946_v12, %v963_v38 }
  0xd6   : > { %3268 = vmatprep.mubr.msk.bf16.mxu0 %vm531_vm3, %v5633_v30  ;;  %v1779_v49 = vor.u32 %v1778_v62, %v1775_v13  ;;  %v1798_v44 = vshrl.u32 %v1722_v58, 16  ;;  %v1801_v37 = vshll.u32 %v1722_v58, 16  ;;  %v1815_v20 = vshrl.u32 %v1725_v28, 16  ;;  %2034 = vmatpush1.bf16.msra.mxu0 %v4708_v47  ;;  %v1687_v16 = vpop.permute.xlu1 %1686  ;;  %v5641_v62 = vld [vmem:[#allocation10_spill] sm:$0xff]  ;;  %v5642_v30 = vld [vmem:[#allocation29_spill] sm:$0xff] }
  0xd7   : > { %3371 = vmatpush1.bf16.msra.mxu1 %v4631_v17  ;;  %v1772_v43 = vor.u32 %v1771_v60, %v1768_v24  ;;  %v1818_v18 = vshll.u32 %v1725_v28, 16  ;;  %2035 = vmatprep.subr.bf16.mxu0 %v5538_v29  ;;  %v1685_v41 = vpop.permute.xlu0 %1684  ;;  %v5636_v8 = vcombine.low %v5634_v31, %v5635_v45  ;;  %v5639_v50 = vcombine.low %v5637_v26, %v5638_v1  ;;  %v5648_v26 = vld [vmem:[#allocation13_spill] sm:$0xff] }
  0xd8   : > { %3360 = vmatprep.subr.bf16.mxu1 %v5538_v29  ;;  %v1800_v17 = vrot.slane %v1798_v44, 3  ;;  %v1803_v14 = vrot.slane %v1801_v37, 4  ;;  %v1817_v55 = vrot.slane %v1815_v20, 3  ;;  %2307 = vperm.xlu0 %3470, %v4715_v51   ;;  %v5640_v13 = vmov 1   ;;  %v5643_v44 = vld [vmem:[#allocation31_spill] sm:$0xff] }
  0xd9   : > { %v1731_v52 = vsel %vm531_vm3, %v5636_v8, %v1687_v16  ;;  %v1820_v12 = vrot.slane %v1818_v18, 4  ;;  %v1728_v38 = vsel %vm531_vm3, %v5639_v50, %v1685_v41  ;;  %v4752_v56 = vsel %vm822_vm2, %v1772_v43, %v1779_v49  ;;  %3467 = vset.pattern.permute.xlu1 %v5640_v13  ;;  %v5647_v8 = vld [vmem:[#allocation38_spill] sm:$0xff]  ;;  %v3574_v50 = vld [vmem:[%s5447_s2 + $0x110] sm:$0xff]  }
  0xda   : > { %1127 = vmatmul.mubr.bf16.gmra.mrb[8].mxu1 %v4663_v35  ;;  %v1849_v40 = vshrl.u32 %v1731_v52, 16  ;;  %v1804_v24 = vor.u32 %v1803_v14, %v1800_v17  ;;  %v1832_v10 = vshrl.u32 %v1728_v38, 16  ;;  %v1835_v35 = vshll.u32 %v1728_v38, 16  ;;  %2036 = vmatpush1.bf16.msra.mxu0 %v4738_v23  ;;  %v1691_v58 = vpop.permute.xlu1 %1690 }
  0xdb   : > { %3372 = vmatpush1.bf16.msra.mxu1 %v4658_v57  ;;  %3247 = vmatprep.mubr.msk.bf16.mxu1 %vm531_vm3, %v5641_v62  ;;  %v1852_v60 = vshll.u32 %v1731_v52, 16  ;;  %v1821_v5 = vor.u32 %v1820_v12, %v1817_v55  ;;  %v1689_v48 = vpop.permute.xlu0 %1688  ;;  %v5644_v37 = vcombine.low %v5642_v30, %v5643_v44  ;;  %v5645_v18 = vcombine.low %v4193_v6, %v4212_v19  ;;  %v3570_v19 = vld [vmem:[%s5447_s2 + $0x108] sm:$0xff]   ;;  %v5650_v62 = vld [vmem:[#allocation12_spill] sm:$0xff] }
  0xdc   : > { %3361 = vmatprep.subr.bf16.mxu1 %v5538_v29  ;;  %v1851_v11 = vrot.slane %v1849_v40, 3  ;;  %2037 = vmatprep.subr.bf16.mxu0 %v5538_v29  ;;  %v1834_v57 = vrot.slane %v1832_v10, 3  ;;  %v1837_v2 = vrot.slane %v1835_v35, 4  ;;  %v4765_v28 = vsel %vm822_vm2, %v1779_v49, %v1804_v24  ;;  %v5646_v49 = vld [vmem:[#allocation15_spill] sm:$0xff]  ;;  %v5649_v40 = vld [vmem:[#allocation40_spill] sm:$0xff]  ;;  %v5654_v10 = vld [vmem:[#allocation17_spill] sm:$0xff] }
  0xdd   : > { %v1854_v0 = vrot.slane %v1852_v60, 4  ;;  %2317 = vperm.xlu0 %3470, %v4475_v3   ;;  %1495 = vmatmul.mubr.bf16.gmra.mrb[16].mxu0 %v4601_v25  ;;  %v1734_v20 = vsel %vm531_vm3, %v5644_v37, %v1689_v48  ;;  %v4774_v43 = vsel %vm822_vm2, %v1804_v24, %v1821_v5  ;;  %v1737_v16 = vsel %vm531_vm3, %v5645_v18, %v1691_v58  ;;  %v3576_v24 = vld [vmem:[%s5447_s2 + $0x118] sm:$0xff]   ;;  %v5656_v35 = vld [vmem:[#allocation20_spill] sm:$0xff]  ;;  %v5657_v60 = vld [vmem:[#allocation23_spill] sm:$0xff] }
  0xde   : > { %2534 = vperm.xlu1 %3467, %v4471_v34   ;;  %3269 = vmatprep.mubr.msk.bf16.mxu0 %vm531_vm3, %v5646_v49  ;;  %v1838_v25 = vor.u32 %v1837_v2, %v1834_v57  ;;  %v1866_v14 = vshrl.u32 %v1734_v20, 16  ;;  %v1869_v55 = vshll.u32 %v1734_v20, 16  ;;  %v1883_v6 = vshrl.u32 %v1737_v16, 16  ;;  %v5668_v48 = vld [vmem:[#allocation35_spill] sm:$0xff] }
  0xdf   : > { %3373 = vmatpush1.bf16.msra.mxu1 %v4685_v42  ;;  %v1855_v17 = vor.u32 %v1854_v0, %v1851_v11  ;;  %2038 = vmatpush1.bf16.msra.mxu0 %v3568_v22  ;;  %v1886_v41 = vshll.u32 %v1737_v16, 16  ;;  %v5661_v11 = vld [vmem:[#allocation34_spill] sm:$0xff] }
  0xe0   : > { %3362 = vmatprep.subr.bf16.mxu1 %v5538_v29  ;;  %2039 = vmatprep.subr.bf16.mxu0 %v5538_v29  ;;  %v1868_v34 = vrot.slane %v1866_v14, 3  ;;  %v1871_v31 = vrot.slane %v1869_v55, 4  ;;  %v4793_v42 = vsel %vm822_vm2, %v1821_v5, %v1838_v25  ;;  %v1885_v52 = vrot.slane %v1883_v6, 3 }
  0xe1   : > { %v4790_v45 = vsel %vm822_vm2, %v1838_v25, %v1855_v17  ;;  %2327 = vperm.xlu0 %3470, %v5647_v8   ;;  %v1888_v12 = vrot.slane %v1886_v41, 4 }
  0xe2   : > { %1135 = vmatmul.mubr.bf16.gmra.mrb[12].mxu1 %v4668_v54  ;;  %2538 = vperm.xlu1 %3467, %v4715_v51   ;;  %v1872_v1 = vor.u32 %v1871_v31, %v1868_v34 }
  0xe3   : > { %3248 = vmatprep.mubr.msk.bf16.mxu1 %vm531_vm3, %v5648_v26  ;;  %3374 = vmatpush1.bf16.msra.mxu1 %v4708_v47  ;;  %v4805_v38 = vor.u32 %v1888_v12, %v1885_v52 }
  0xe4   : > { %3363 = vmatprep.subr.bf16.mxu1 %v5538_v29  ;;  %2040 = vmatpush1.bf16.msra.mxu0 %v3570_v19  ;;  %v4809_v54 = vsel %vm822_vm2, %v1855_v17, %v1872_v1  ;;  %v5672_v17 = vld [vmem:[#allocation39_spill] sm:$0xff] }
  0xe5   : > { %2041 = vmatprep.subr.bf16.mxu0 %v5538_v29  ;;  %2337 = vperm.xlu0 %3470, %v5649_v40   ;;  %v4815_v47 = vsel %vm822_vm2, %v1872_v1, %v4805_v38 }
  0xe6   : > { %1503 = vmatmul.mubr.bf16.gmra.mrb[20].mxu0 %v4613_v27  ;;  %2546 = vperm.xlu1 %3467, %v4475_v3   ;;  %v5651_v27 = vld [vmem:[#allocation41_spill] sm:$0xff]  ;;  %v5652_v3 = vld [vmem:[#allocation16_spill] sm:$0xff] }
  0xe7   : > { %3270 = vmatprep.mubr.msk.bf16.mxu0 %vm531_vm3, %v5650_v62  ;;  %3375 = vmatpush1.bf16.msra.mxu1 %v4738_v23  ;;  %v5653_v23 = vld [vmem:[#allocation42_spill] sm:$0xff] }
  0xe8   : > { %3364 = vmatprep.subr.bf16.mxu1 %v5538_v29  ;;  %2042 = vmatpush1.bf16.msra.mxu0 %v3574_v50 }
  0xe9   : > { %2043 = vmatprep.subr.bf16.mxu0 %v5538_v29  ;;  %2347 = vperm.xlu0 %3470, %v5651_v27  }
  0xea   : > { %1143 = vmatmul.mubr.bf16.gmra.mrb[16].mxu1 %v4689_v4  ;;  %2554 = vperm.xlu1 %3467, %v5647_v8   ;;  %v5655_v4 = vld [vmem:[#allocation43_spill] sm:$0xff] }
  0xeb   : > { %3249 = vmatprep.mubr.msk.bf16.mxu1 %vm531_vm3, %v5652_v3  ;;  %3376 = vmatpush1.bf16.msra.mxu1 %v3568_v22 }
  0xec   : > { %3365 = vmatprep.subr.bf16.mxu1 %v5538_v29  ;;  %2044 = vmatpush1.bf16.msra.mxu0 %v3576_v24 }
  0xed   : > { %2357 = vperm.xlu0 %3470, %v5653_v23  }
  0xee   : > { %1511 = vmatmul.mubr.bf16.gmra.mrb[24].mxu0 %v4625_v39  ;;  %2562 = vperm.xlu1 %3467, %v5649_v40   ;;  %v1693_v39 = vpop.permute.xlu0 %1692 }
  0xef   : > { %3271 = vmatprep.mubr.msk.bf16.mxu0 %vm531_vm3, %v5654_v10  ;;  %3377 = vmatpush1.bf16.msra.mxu1 %v3570_v19 }
  0xf0   : > { %3366 = vmatprep.subr.bf16.mxu1 %v5538_v29 }
  0xf1   : > { %2367 = vperm.xlu0 %3470, %v5655_v4  }
  0xf2   : > { %1151 = vmatmul.mubr.bf16.gmra.mrb[20].mxu1 %v4692_v59  ;;  %2570 = vperm.xlu1 %3467, %v5651_v27   ;;  %v5658_v59 = vld [vmem:[#allocation30_spill] sm:$0xff] }
  0xf3   : > { %3250 = vmatprep.mubr.msk.bf16.mxu1 %vm531_vm3, %v5656_v35  ;;  %3378 = vmatpush1.bf16.msra.mxu1 %v3574_v50  ;;  %v4848_v22 = vpop.permute.xlu0 %2530  ;;  %v4950_v50 = vld [vmem:[%s5448_s3] ss:$0 sm:$0xff] }
  0xf4   : > { %3367 = vmatprep.subr.bf16.mxu1 %v5538_v29 }
  0xf6   : > { %1519 = vmatmul.mubr.bf16.gmra.mrb[28].mxu0 %v4606_v36  ;;  %2578 = vperm.xlu1 %3467, %v5653_v23   ;;  %v5660_v36 = vmov 2  }
  0xf7   : > { %3332 = vmatprep.mubr.msk.bf16.mxu0 %vm531_vm3, %v5657_v60  ;;  %3379 = vmatpush1.bf16.msra.mxu1 %v3576_v24  ;;  %v4854_v5 = vpop.permute.xlu0 %2542 }
  0xf8   : > { %5659 = vst [vmem:[#allocation6_spill] sm:$0xff] %v4854_v5 }
  0xfa   : > { %1159 = vmatmul.mubr.bf16.gmra.mrb[24].mxu1 %v4712_v53  ;;  %2586 = vperm.xlu1 %3467, %v5655_v4   ;;  %v5663_v53 = vld [vmem:[#allocation32_spill] sm:$0xff] }
  0xfb   : > { %3251 = vmatprep.mubr.msk.bf16.mxu1 %vm531_vm3, %v5658_v59  ;;  %v4861_v58 = vpop.permute.xlu0 %2550 }
  0xfc   : > { %5662 = vst [vmem:[#allocation7_spill] sm:$0xff] %v4861_v58 }
  0xfe   : > { %2054 = vmatmul.mubr.bf16.vlgmr.msra.gmra.mrb[0].mxu0 %v4752_v56  ;;  %3468 = vset.pattern.permute.xlu1 %v5660_v36  ;;  %v5665_v56 = vld [vmem:[#allocation33_spill] sm:$0xff] }
  0xff   : > { %3333 = vmatprep.mubr.msk.bf16.mxu0 %vm531_vm3, %v5661_v11  ;;  %2732 = vperm.xlu1 %3468, %v5626_v15   ;;  %v4867_v57 = vpop.permute.xlu0 %2558  ;;  %v5666_v15 = vld [vmem:[#allocation36_spill] sm:$0xff] }
 0x100   : > { %5664 = vst [vmem:[#allocation4_spill] sm:$0xff] %v4867_v57 }
 0x102   : > { %1167 = vmatmul.mubr.bf16.gmra.mrb[28].mxu1 %v4727_v21  ;;  %v3653_v21 = vld [vmem:[%s4050_s9 + $0x44] sm:$0xf] }
 0x103   : > { %3336 = vmatprep.mubr.msk.bf16.mxu1 %vm531_vm3, %v5663_v53  ;;  %2740 = vperm.xlu1 %3468, %v4715_v51   ;;  %v4873_v2 = vpop.permute.xlu0 %2566  ;;  %v3286_v51 = vcombine.low %v3653_v21, %v3653_v21 }
 0x106   : > { %2062 = vmatmul.mubr.bf16.gmra.mrb[4].mxu0 %v4765_v28 }
 0x107   : > { %3334 = vmatprep.mubr.msk.bf16.mxu0 %vm531_vm3, %v5665_v56  ;;  %2744 = vperm.xlu1 %3468, %v4367_v61   ;;  %v4880_v0 = vpop.permute.xlu0 %2574  ;;  %v1740_v61 = vsel %vm531_vm3, %v3286_v51, %v1693_v39  ;;  %v4890_v30 = vpop.permute.xlu1 %2152 }
 0x108   : > { %5667 = vst [vmem:[#allocation5_spill] sm:$0xff] %v4880_v0  ;;  %v1900_v44 = vshrl.u32 %v1740_v61, 16  ;;  %v1903_v37 = vshll.u32 %v1740_v61, 16 }
 0x10a   : > { %2086 = vmatmul.mubr.bf16.vlgmr.msra.gmra.mrb[32].mxu1 %v4790_v45  ;;  %v1905_v18 = vrot.slane %v1903_v37, 4 }
 0x10b   : > { %3337 = vmatprep.mubr.msk.bf16.mxu1 %vm531_vm3, %v5666_v15  ;;  %2752 = vperm.xlu1 %3468, %v4379_v7   ;;  %v4887_v28 = vpop.permute.xlu0 %2582  ;;  %v5670_v7 = vld [vmem:[#allocation37_spill] sm:$0xff] }
 0x10c   : > { %5669 = vst [vmem:[#allocation2_spill] sm:$0xff] %v4887_v28 }
 0x10e   : > { %2070 = vmatmul.mubr.bf16.gmra.mrb[8].mxu0 %v4774_v43  ;;  %v1902_v43 = vrot.slane %v1900_v44, 3 }
 0x10f   : > { %3335 = vmatprep.mubr.msk.bf16.mxu0 %vm531_vm3, %v5668_v48  ;;  %2760 = vperm.xlu1 %3468, %v4399_v63   ;;  %v4895_v20 = vpop.permute.xlu0 %2590  ;;  %v4898_v63 = vpop.permute.xlu1 %2162 }
 0x110   : > { %5671 = vst [vmem:[#allocation3_spill] sm:$0xff] %v4895_v20  ;;  %v1906_v25 = vor.u32 %v1905_v18, %v1902_v43 }
 0x112   : > { %2094 = vmatmul.mubr.bf16.gmra.mrb[36].mxu1 %v4809_v54  ;;  %v1907_v14 = vsel %vm822_vm2, %v4805_v38, %v1906_v25 }
 0x113   : > { %3338 = vmatprep.mubr.msk.bf16.mxu1 %vm531_vm3, %v5670_v7  ;;  %2768 = vperm.xlu1 %3468, %v4417_v9   ;;  %v4904_v49 = vpop.permute.xlu1 %2167 }
 0x114   : > { %v4902_v16 = vpop.permute.xlu0 %2736 }
 0x116   : > { %2078 = vmatmul.mubr.bf16.gmra.mrb[12].mxu0 %v4793_v42 }
 0x117   : > { %2776 = vperm.xlu1 %3468, %v4422_v32   ;;  %v4914_v32 = vpop.permute.xlu1 %2177 }
 0x118   : > { %v4909_v9 = vpop.permute.xlu0 %2748 }
 0x119   : > { %5673 = vst [vmem:[#allocation14_spill] sm:$0xff] %v4909_v9 }
 0x11a   : > { %2102 = vmatmul.mubr.bf16.gmra.mrb[40].mxu1 %v4815_v47 }
 0x11b   : > { %3339 = vmatprep.mubr.msk.bf16.mxu1 %vm531_vm3, %v5672_v17  ;;  %2784 = vperm.xlu1 %3468, %v4436_v33   ;;  %v4919_v19 = vpop.permute.xlu1 %2187 }
 0x11c   : > { %v4916_v55 = vpop.permute.xlu0 %2756 }
 0x11d   : > { %5674 = vst [vmem:[#allocation18_spill] sm:$0xff] %v4916_v55 }
 0x11f   : > { %2792 = vperm.xlu1 %3468, %v4444_v46   ;;  %v4923_v41 = vpop.permute.xlu1 %2197 }
 0x120   : > { %v4921_v6 = vpop.permute.xlu0 %2764 }
 0x122   : > { %2110 = vmatmul.mubr.bf16.gmra.mrb[44].mxu1 %v1907_v14 }
 0x123   : > { %3471 = vset.pattern.permute.xlu1 %v5640_v13  ;;  %v4927_v34 = vpop.permute.xlu1 %2207 }
 0x124   : > { %v4925_v33 = vpop.permute.xlu0 %2772 }
 0x127   : > { %v4931_v46 = vpop.permute.xlu1 %2217 }
 0x128   : > { %v4929_v31 = vpop.permute.xlu0 %2780 }
 0x129   : > { %5675 = vst [vmem:[#allocation11_spill] sm:$0xff] %v4929_v31 }
 0x12b   : > { %v4935_v42 = vpop.permute.xlu1 %2227 }
 0x12c   : > { %v4933_v45 = vpop.permute.xlu0 %2788 }
 0x12d   : > { %5676 = vst [vmem:[#allocation8_spill] sm:$0xff] %v4933_v45 }
 0x12f   : > { %v4939_v52 = vpop.permute.xlu1 %2302 }
 0x131   : > { %v4937_v8 = vpop.permute.xlu0 %2157 }
 0x133   : > { %v4943_v26 = vpop.permute.xlu1 %2312 }
 0x135   : > { %v4941_v12 = vpop.permute.xlu0 %2172 }
 0x137   : > { %v2323_v38 = vpop.permute.xlu1 %2322 }
 0x138   : > { %v4953_v54 = vmul.f32 %v4950_v50, %v2323_v38 }
 0x139   : > { %v4945_v1 = vpop.permute.xlu0 %2182 }
 0x13a   : > { %5677 = vst [vmem:[#allocation19_spill] sm:$0xff] %v4953_v54 }
 0x13b   : > { %v2333_v47 = vpop.permute.xlu1 %2332 }
 0x13c   : > { %v4958_v62 = vmul.f32 %v4950_v50, %v2333_v47 }
 0x13d   : > { %v4955_v40 = vpop.permute.xlu0 %2192 }
 0x13e   : > { %5678 = vst [vmem:[#allocation21_spill] sm:$0xff] %v4958_v62 }
 0x13f   : > { %v4962_v27 = vpop.permute.xlu1 %2342 }
 0x141   : > { %v4960_v24 = vpop.permute.xlu0 %2202 }
 0x143   : > { %v4966_v23 = vpop.permute.xlu1 %2352 }
 0x144   : > { %5679 = vst [vmem:[#allocation22_spill] sm:$0xff] %v4966_v23 }
 0x146   : > { %v4964_v3 = vpop.permute.xlu0 %2212 }
 0x147   : > { %v2363_v4 = vpop.permute.xlu1 %2362 }
 0x148   : > { %v4971_v35 = vmul.f32 %v4950_v50, %v2363_v4 }
 0x14a   : > { %5680 = vst [vmem:[#allocation24_spill] sm:$0xff] %v4971_v35 }
 0x14b   : > { %v2373_v60 = vpop.permute.xlu1 %2372 }
 0x14c   : > { %v4978_v11 = vmul.f32 %v4950_v50, %v2373_v60 }
 0x14d   : > { %v4968_v10 = vpop.permute.xlu0 %2222 }
 0x14e   : > { %5681 = vst [vmem:[#allocation9_spill] sm:$0xff] %v4978_v11 }
 0x153   : > { %v4973_v39 = vpop.permute.xlu0 %2297 }
 0x157   : > { %v4975_v59 = vpop.permute.xlu0 %2307 }
 0x15c   : > { %v4980_v53 = vpop.permute.xlu0 %2317 }
 0x15d   : > { %5682 = vst [vmem:[#allocation27_spill] sm:$0xff] %v4980_v53 }
 0x160   : > { %v2328_v56 = vpop.permute.xlu0 %2327 }
 0x161   : > { %v4983_v15 = vmul.f32 %v4950_v50, %v2328_v56 }
 0x163   : > { %5683 = vst [vmem:[#allocation28_spill] sm:$0xff] %v4983_v15 }
 0x19d   : > { %v1112_v21 = vpop.f32.mrb[0].mxu1 }
 0x19e   : > { %v1114_v51 = vpop.f32.mrb[1].mxu1 }
 0x19f   : > { %v1115_v48 = vpop.f32.mrb[2].mxu1 }
 0x1a0   : > { %v1117_v61 = vpop.f32.mrb[3].mxu1 }
 0x1a5   : > { %v1120_v7 = vpop.f32.mrb[4].mxu1 }
 0x1a6   : > { %v1122_v44 = vpop.f32.mrb[5].mxu1 }
 0x1a7   : > { %v1123_v37 = vpop.f32.mrb[6].mxu1 }
 0x1a8   : > { %v1125_v43 = vpop.f32.mrb[7].mxu1 }
 0x1ad   : > { %v4985_v18 = vpop.f32.mrb[8].mxu1 }
 0x1ae   : > { %v1130_v25 = vpop.f32.mrb[9].mxu1 }
 0x1af   : > { %v4987_v17 = vpop.f32.mrb[10].mxu1 }
 0x1b0   : > { %v1133_v14 = vpop.f32.mrb[11].mxu1  ;;  %v1496_v38 = vpop.f32.mrb[16].mxu0 }
 0x1b1   : > { %v1498_v47 = vpop.f32.mrb[17].mxu0 }
 0x1b2   : > { %v1499_v4 = vpop.f32.mrb[18].mxu0 }
 0x1b3   : > { %v1501_v60 = vpop.f32.mrb[19].mxu0 }
 0x1b5   : > { %v4989_v56 = vpop.f32.mrb[12].mxu1 }
 0x1b6   : > { %v1138_v11 = vpop.f32.mrb[13].mxu1 }
 0x1b7   : > { %v4991_v51 = vpop.f32.mrb[14].mxu1 }
 0x1b8   : > { %v1141_v61 = vpop.f32.mrb[15].mxu1 }
 0x1b9   : > { %v1504_v20 = vpop.f32.mrb[20].mxu0 }
 0x1ba   : > { %v1506_v44 = vpop.f32.mrb[21].mxu0 }
 0x1bb   : > { %v1507_v62 = vpop.f32.mrb[22].mxu0 }
 0x1bc   : > { %v1509_v43 = vpop.f32.mrb[23].mxu0 }
 0x1bd   : > { %v1144_v57 = vpop.f32.mrb[16].mxu1 }
 0x1be   : > { %v1497_v45 = vadd.f32 %v1496_v38, %v1144_v57  ;;  %v1146_v25 = vpop.f32.mrb[17].mxu1 }
 0x1bf   : > { %v1147_v55 = vpop.f32.mrb[18].mxu1 }
 0x1c0   : > { %v1500_v15 = vadd.f32 %v1499_v4, %v1147_v55  ;;  %v1149_v14 = vpop.f32.mrb[19].mxu1 }
 0x1c1   : > { %v1512_v58 = vpop.f32.mrb[24].mxu0 }
 0x1c2   : > { %v1514_v47 = vpop.f32.mrb[25].mxu0 }
 0x1c3   : > { %v1515_v35 = vpop.f32.mrb[26].mxu0 }
 0x1c4   : > { %v1517_v60 = vpop.f32.mrb[27].mxu0 }
 0x1c5   : > { %v1152_v28 = vpop.f32.mrb[20].mxu1 }
 0x1c6   : > { %v1505_v54 = vadd.f32 %v1504_v20, %v1152_v28  ;;  %v1154_v11 = vpop.f32.mrb[21].mxu1 }
 0x1c7   : > { %v1155_v31 = vpop.f32.mrb[22].mxu1 }
 0x1c8   : > { %v1508_v9 = vadd.f32 %v1507_v62, %v1155_v31  ;;  %v1157_v61 = vpop.f32.mrb[23].mxu1 }
 0x1c9   : > { %v1520_v53 = vpop.f32.mrb[28].mxu0 }
 0x1ca   : > { %v1522_v44 = vpop.f32.mrb[29].mxu0 }
 0x1cb   : > { %v1523_v5 = vpop.f32.mrb[30].mxu0 }
 0x1cc   : > { %v1525_v43 = vpop.f32.mrb[31].mxu0 }
 0x1cd   : > { %v1160_v0 = vpop.f32.mrb[24].mxu1 }
 0x1ce   : > { %v1513_v57 = vadd.f32 %v1512_v58, %v1160_v0  ;;  %v1162_v38 = vpop.f32.mrb[25].mxu1 }
 0x1cf   : > { %v1163_v25 = vpop.f32.mrb[26].mxu1 }
 0x1d0   : > { %v1516_v55 = vadd.f32 %v1515_v35, %v1163_v25  ;;  %v1165_v4 = vpop.f32.mrb[27].mxu1 }
 0x1d1   : > { %v2055_v14 = vpop.f32.mrb[0].mxu0 }
 0x1d2   : > { %v3380_v47 = vadd.f32 %v2055_v14, %v1112_v21  ;;  %v2057_v23 = vpop.f32.mrb[1].mxu0 }
 0x1d3   : > { %v2058_v60 = vpop.f32.mrb[2].mxu0 }
 0x1d4   : > { %v4994_v28 = vmul.f32 %v3380_v47, %v4890_v30  ;;  %v3381_v20 = vadd.f32 %v2058_v60, %v1115_v48  ;;  %v2060_v31 = vpop.f32.mrb[3].mxu0 }
 0x1d5   : > { %v1168_v62 = vpop.f32.mrb[28].mxu1 }
 0x1d6   : > { %3617 = vtanh.f32 %v4994_v28  ;;  %v1521_v11 = vadd.f32 %v1520_v53, %v1168_v62  ;;  %v1170_v61 = vpop.f32.mrb[29].mxu1  ;;  %v5009_v62 = vmul.f32 %v3381_v20, %v4937_v8 }
 0x1d7   : > { %v1171_v44 = vpop.f32.mrb[30].mxu1 }
 0x1d8   : > { %v4997_v58 = vadd.f32 %v1523_v5, %v1171_v44  ;;  %v1173_v0 = vpop.f32.mrb[31].mxu1 }
 0x1d9   : > { %v2063_v35 = vpop.f32.mrb[4].mxu0 }
 0x1da   : > { %v3382_v43 = vadd.f32 %v2063_v35, %v1120_v7  ;;  %v2065_v38 = vpop.f32.mrb[5].mxu0 }
 0x1db   : > { %v2066_v21 = vpop.f32.mrb[6].mxu0 }
 0x1dc   : > { %v4999_v23 = vadd.f32 %v2066_v21, %v1123_v37  ;;  %v2068_v25 = vpop.f32.mrb[7].mxu0 }
 0x1dd   : > { %v2087_v30 = vpop.f32.mrb[32].mxu1 }
 0x1de   : > { %v2126_v4 = vadd.f32 %v2087_v30, %v1497_v45  ;;  %v2089_v48 = vpop.f32.mrb[33].mxu1 }
 0x1df   : > { %v2090_v14 = vpop.f32.mrb[34].mxu1 }
 0x1e0   : > { %v3618_v47 = vpop.eup %3617  ;;  %v5002_v60 = vmul.f32 %v4955_v40, %v2126_v4  ;;  %v2127_v53 = vadd.f32 %v2090_v14, %v1500_v15  ;;  %v2092_v31 = vpop.f32.mrb[35].mxu1 }
 0x1e1   : > { %2631 = vperm.xlu1 %3471, %v3618_v47   ;;  %2414 = vperm.xlu0 %3470, %v3618_v47   ;;  %v2071_v5 = vpop.f32.mrb[8].mxu0 }
 0x1e2   : > { %3619 = vtanh.f32 %v5002_v60  ;;  %v5006_v7 = vadd.f32 %v2071_v5, %v4985_v18  ;;  %v2073_v37 = vpop.f32.mrb[9].mxu0  ;;  %v5016_v35 = vmul.f32 %v4923_v41, %v2127_v53 }
 0x1e3   : > { %v2074_v45 = vpop.f32.mrb[10].mxu0  ;;  %3621 = vtanh.f32 %v5009_v62 }
 0x1e4   : > { %v5012_v61 = vadd.f32 %v2074_v45, %v4987_v17  ;;  %v2076_v40 = vpop.f32.mrb[11].mxu0  ;;  %3623 = vtanh.f32 %v5016_v35 }
 0x1e5   : > { %v2095_v44 = vpop.f32.mrb[36].mxu1 }
 0x1e6   : > { %v2128_v15 = vadd.f32 %v2095_v44, %v1505_v54  ;;  %v2097_v0 = vpop.f32.mrb[37].mxu1 }
 0x1e7   : > { %v2098_v38 = vpop.f32.mrb[38].mxu1 }
 0x1e8   : > { %v2129_v18 = vadd.f32 %v2098_v38, %v1508_v9  ;;  %v2100_v21 = vpop.f32.mrb[39].mxu1  ;;  %v5039_v0 = vmul.f32 %v4960_v24, %v2128_v15 }
 0x1e9   : > { %v2079_v25 = vpop.f32.mrb[12].mxu0 }
 0x1ea   : > { %v5019_v8 = vadd.f32 %v2079_v25, %v4989_v56  ;;  %v2081_v20 = vpop.f32.mrb[13].mxu0 }
 0x1eb   : > { %v2082_v17 = vpop.f32.mrb[14].mxu0 }
 0x1ec   : > { %v3620_v30 = vpop.eup %3619  ;;  %v5023_v54 = vadd.f32 %v2082_v17, %v4991_v51  ;;  %v2084_v4 = vpop.f32.mrb[15].mxu0  ;;  %v5030_v51 = vmul.f32 %v3382_v43, %v4898_v63  ;;  %v5046_v63 = vmul.f32 %v4999_v23, %v4904_v49  ;;  %v5098_v17 = vmul.f32 %v5019_v8, %v4945_v1 }
 0x1ed   : > { %v2103_v48 = vpop.f32.mrb[40].mxu1  ;;  %2663 = vperm.xlu1 %3471, %v3620_v30   ;;  %2454 = vperm.xlu0 %3470, %v3620_v30   ;;  %v3622_v56 = vpop.eup %3621 }
 0x1ee   : > { %v2130_v41 = vadd.f32 %v2103_v48, %v1513_v57  ;;  %v2105_v14 = vpop.f32.mrb[41].mxu1  ;;  %v3624_v5 = vpop.eup %3623  ;;  %3625 = vtanh.f32 %v5030_v51  ;;  %v5112_v1 = vmul.f32 %v5023_v54, %v4919_v19 }
 0x1ef   : > { %v2106_v9 = vpop.f32.mrb[42].mxu1  ;;  %3627 = vtanh.f32 %v5039_v0 }
 0x1f0   : > { %v5025_v53 = vadd.f32 %v2106_v9, %v1516_v55  ;;  %v2108_v31 = vpop.f32.mrb[43].mxu1  ;;  %3629 = vtanh.f32 %v5046_v63  ;;  %v5069_v38 = vmul.f32 %v4964_v3, %v2130_v41 }
 0x1f1   : > { %3473 = vset.pattern.permute.xlu1 %v5538_v29  ;;  %3472 = vset.pattern.permute.xlu0 %v5660_v36 }
 0x1f2   : > { %2419 = vperm.xlu1 %3473, %v3622_v56   ;;  %2833 = vperm.xlu0 %3472, %v3618_v47   ;;  %v5063_v47 = vmul.f32 %v5006_v7, %v4941_v12  ;;  %v5078_v12 = vmul.f32 %v5012_v61, %v4914_v32  ;;  %v5085_v3 = vmul.f32 %v4931_v46, %v5025_v53  ;;  %v2338_v53 = vpop.permute.xlu0 %2337 }
 0x1f5   : > { %v2111_v37 = vpop.f32.mrb[44].mxu1 }
 0x1f6   : > { %v5032_v45 = vadd.f32 %v2111_v37, %v1521_v11  ;;  %v2113_v57 = vpop.f32.mrb[45].mxu1  ;;  %2459 = vperm.xlu1 %3473, %v3624_v5   ;;  %2865 = vperm.xlu0 %3472, %v3620_v30   ;;  %v5050_v11 = vmul.f32 %v4927_v34, %v2129_v18 }
 0x1f7   : > { %v2114_v55 = vpop.f32.mrb[46].mxu1  ;;  %v5150_v57 = vld [vmem:[%s5448_s3 + $0x3] ss:$0 sm:$0xff] }
 0x1f8   : > { %v5035_v40 = vadd.f32 %v2114_v55, %v4997_v58  ;;  %v2116_v44 = vpop.f32.mrb[47].mxu1  ;;  %v3626_v24 = vpop.eup %3625  ;;  %3631 = vtanh.f32 %v5050_v11  ;;  %v5105_v4 = vmul.f32 %v4968_v10, %v5032_v45 }
 0x1f9   : > { %v5054_v58 = vpop.permute.xlu1 %2534  ;;  %v3628_v49 = vpop.eup %3627  ;;  %3633 = vtanh.f32 %v5063_v47 }
 0x1fa   : > { %3475 = vset.pattern.permute.xlu1 %v5660_v36  ;;  %3474 = vset.pattern.permute.xlu0 %v5640_v13  ;;  %v3630_v23 = vpop.eup %3629  ;;  %3635 = vtanh.f32 %v5069_v38  ;;  %5684 = vst [vmem:[#allocation25_spill] sm:$0xff] %v5105_v4  ;;  %v5117_v10 = vmul.f32 %v4935_v42, %v5035_v40 }
 0x1fb   : > { %2837 = vperm.xlu1 %3475, %v3622_v56   ;;  %2635 = vperm.xlu0 %3474, %v3622_v56   ;;  %3637 = vtanh.f32 %v5078_v12  ;;  %v5134_v56 = vpop.permute.xlu0 %2347 }
 0x1fc   : > { %3639 = vtanh.f32 %v5085_v3  ;;  %5685 = vst [vmem:[#allocation26_spill] sm:$0xff] %v5117_v10 }
 0x1fd   : > { %v5057_v43 = vpop.permute.xlu1 %2538  ;;  %3641 = vtanh.f32 %v5098_v17 }
 0x1fe   : > { %3643 = vtanh.f32 %v5105_v4 }
 0x1ff   : > { %2869 = vperm.xlu1 %3475, %v3624_v5   ;;  %2667 = vperm.xlu0 %3474, %v3624_v5   ;;  %3645 = vtanh.f32 %v5112_v1  ;;  %v5139_v5 = vpop.permute.xlu0 %2357 }
 0x200   : > { %3647 = vtanh.f32 %v5117_v10 }
 0x201   : > { %v5065_v15 = vpop.permute.xlu1 %2546 }
 0x202   : > { %v3632_v34 = vpop.eup %3631 }
 0x203   : > { %3477 = vset.pattern.permute.xlu1 %v5640_v13  ;;  %3476 = vset.pattern.permute.xlu0 %v5538_v29  ;;  %v3634_v21 = vpop.eup %3633 }
 0x204   : > { %2639 = vperm.xlu1 %3477, %v3626_v24   ;;  %2424 = vperm.xlu0 %3476, %v3626_v24   ;;  %v3636_v32 = vpop.eup %3635 }
 0x205   : > { %v5073_v18 = vpop.permute.xlu1 %2554  ;;  %v3638_v25 = vpop.eup %3637 }
 0x206   : > { %v3640_v20 = vpop.eup %3639 }
 0x207   : > { %v3642_v48 = vpop.eup %3641 }
 0x208   : > { %2671 = vperm.xlu1 %3477, %v3628_v49   ;;  %2464 = vperm.xlu0 %3476, %v3628_v49   ;;  %v3644_v19 = vpop.eup %3643 }
 0x209   : > { %v5080_v7 = vpop.permute.xlu1 %2562  ;;  %v3646_v14 = vpop.eup %3645 }
 0x20a   : > { %v3648_v42 = vpop.eup %3647 }
 0x20c   : > { %3479 = vset.pattern.permute.xlu1 %v5538_v29  ;;  %3478 = vset.pattern.permute.xlu0 %v5660_v36 }
 0x20d   : > { %2429 = vperm.xlu1 %3479, %v3630_v23   ;;  %2841 = vperm.xlu0 %3478, %v3626_v24   ;;  %v5090_v61 = vpop.permute.xlu1 %2570  ;;  %v5160_v24 = vld [vmem:[%s5448_s3 + $0x1] ss:$0 sm:$0xff] }
 0x211   : > { %2469 = vperm.xlu1 %3479, %v3632_v34   ;;  %2873 = vperm.xlu0 %3478, %v3628_v49   ;;  %v5094_v46 = vpop.permute.xlu1 %2578 }
 0x215   : > { %3481 = vset.pattern.permute.xlu1 %v5660_v36  ;;  %3480 = vset.pattern.permute.xlu0 %v5640_v13  ;;  %v5100_v30 = vpop.permute.xlu1 %2586 }
 0x216   : > { %2845 = vperm.xlu1 %3481, %v3630_v23   ;;  %2643 = vperm.xlu0 %3480, %v3630_v23   ;;  %v2597_v23 = vmul.f32 %v5160_v24, %v4848_v22  ;;  %v5175_v22 = vld [vmem:[%s5448_s3 + $0x2] ss:$0 sm:$0xff] }
 0x219   : > { %v2733_v8 = vpop.permute.xlu1 %2732 }
 0x21a   : > { %2877 = vperm.xlu1 %3481, %v3632_v34   ;;  %2675 = vperm.xlu0 %3480, %v3632_v34  }
 0x21d   : > { %v5121_v41 = vpop.permute.xlu1 %2740 }
 0x21e   : > { %3483 = vset.pattern.permute.xlu1 %v5640_v13  ;;  %3482 = vset.pattern.permute.xlu0 %v5538_v29 }
 0x21f   : > { %2647 = vperm.xlu1 %3483, %v3634_v21   ;;  %2434 = vperm.xlu0 %3482, %v3634_v21  }
 0x221   : > { %v5124_v54 = vpop.permute.xlu1 %2744 }
 0x223   : > { %2679 = vperm.xlu1 %3483, %v3636_v32   ;;  %2474 = vperm.xlu0 %3482, %v3636_v32  }
 0x225   : > { %v5128_v9 = vpop.permute.xlu1 %2752 }
 0x227   : > { %3485 = vset.pattern.permute.xlu1 %v5538_v29  ;;  %3484 = vset.pattern.permute.xlu0 %v5660_v36 }
 0x228   : > { %2439 = vperm.xlu1 %3485, %v3638_v25   ;;  %2849 = vperm.xlu0 %3484, %v3634_v21   ;;  %v5167_v21 = vld [vmem:[%s5448_s3 + $0x4] ss:$0 sm:$0xff] }
 0x229   : > { %v5132_v31 = vpop.permute.xlu1 %2760 }
 0x22c   : > { %2479 = vperm.xlu1 %3485, %v3640_v20   ;;  %2881 = vperm.xlu0 %3484, %v3636_v32  }
 0x230   : > { %3487 = vset.pattern.permute.xlu1 %v5660_v36  ;;  %3486 = vset.pattern.permute.xlu0 %v5640_v13 }
 0x231   : > { %2853 = vperm.xlu1 %3487, %v3638_v25   ;;  %2651 = vperm.xlu0 %3486, %v3638_v25  }
 0x235   : > { %2885 = vperm.xlu1 %3487, %v3640_v20   ;;  %2683 = vperm.xlu0 %3486, %v3640_v20  }
 0x239   : > { %3489 = vset.pattern.permute.xlu1 %v5640_v13  ;;  %3488 = vset.pattern.permute.xlu0 %v5538_v29 }
 0x23a   : > { %2655 = vperm.xlu1 %3489, %v3642_v48   ;;  %2444 = vperm.xlu0 %3488, %v3642_v48  }
 0x23e   : > { %2687 = vperm.xlu1 %3489, %v3644_v19   ;;  %2484 = vperm.xlu0 %3488, %v3644_v19  }
 0x242   : > { %3491 = vset.pattern.permute.xlu1 %v5538_v29  ;;  %3490 = vset.pattern.permute.xlu0 %v5660_v36  ;;  %v5137_v29 = vpop.permute.xlu1 %2768 }
 0x243   : > { %2449 = vperm.xlu1 %3491, %v3646_v14   ;;  %2857 = vperm.xlu0 %3490, %v3642_v48   ;;  %v2387_v48 = vmul.f32 %v4950_v50, %v2338_v53 }
 0x246   : > { %v5141_v37 = vpop.permute.xlu1 %2776 }
 0x247   : > { %2489 = vperm.xlu1 %3491, %v3648_v42   ;;  %3492 = vset.pattern.permute.xlu0 %v5640_v13  ;;  %v5143_v13 = vpop.permute.xlu0 %2367 }
 0x248   : > { %2659 = vperm.xlu0 %3492, %v3646_v14  }
 0x24a   : > { %v5145_v45 = vpop.permute.xlu1 %2784 }
 0x24b   : > { %3493 = vset.pattern.permute.xlu1 %v5660_v36 }
 0x24c   : > { %2861 = vperm.xlu1 %3493, %v3646_v14   ;;  %2691 = vperm.xlu0 %3492, %v3648_v42  }
 0x24e   : > { %v5155_v44 = vpop.permute.xlu1 %2792 }
 0x250   : > { %2893 = vperm.xlu1 %3493, %v3648_v42   ;;  %3494 = vset.pattern.permute.xlu0 %v5660_v36  ;;  %v2379_v36 = vmul.f32 %v4950_v50, %v4973_v39  ;;  %v2605_v42 = vmul.f32 %v5160_v24, %v5080_v7 }
 0x251   : > { %2889 = vperm.xlu0 %3494, %v3644_v19  }
 0x260   : > { %v2415_v55 = vpop.permute.xlu0 %2414  ;;  %v2632_v34 = vpop.permute.xlu1 %2631 }
 0x261   : > { %v2496_v40 = vmul.f32 %v5150_v57, %v2415_v55  ;;  %v2698_v39 = vmul.f32 %v5167_v21, %v2632_v34 }
 0x263   : > { %v2512_v49 = vadd.f32 %v2496_v40, %v2379_v36  ;;  %v5182_v40 = vld [vmem:[%s5448_s3 + $0x5] ss:$0 sm:$0xff]  ;;  %v2799_v36 = vmul.f32 %v5175_v22, %v2733_v8  ;;  %v5195_v8 = vld [vmem:[%s5449_s4] ss:$0 sm:$0xff] }
 0x265   : > { %v2613_v32 = vadd.f32 %v2597_v23, %v2512_v49 }
 0x267   : > { %v2714_v14 = vadd.f32 %v2698_v39, %v2613_v32  ;;  %v2380_v32 = vmul.f32 %v4950_v50, %v4939_v52 }
 0x26c   : > { %v2664_v25 = vpop.permute.xlu1 %2663  ;;  %v2455_v20 = vpop.permute.xlu0 %2454 }
 0x26d   : > { %v2504_v19 = vmul.f32 %v5150_v57, %v2455_v20  ;;  %v2706_v53 = vmul.f32 %v5167_v21, %v2664_v25  ;;  %v2815_v20 = vadd.f32 %v2799_v36, %v2714_v14 }
 0x26f   : > { %v2520_v55 = vadd.f32 %v2504_v19, %v2387_v48  ;;  %v2807_v48 = vmul.f32 %v5175_v22, %v4921_v6  ;;  %v2598_v19 = vmul.f32 %v5160_v24, %v5054_v58  ;;  %v2388_v58 = vmul.f32 %v4950_v50, %v4962_v27 }
 0x270   : > { %v2800_v27 = vmul.f32 %v5175_v22, %v4902_v16 }
 0x271   : > { %v2621_v49 = vadd.f32 %v2605_v42, %v2520_v55  ;;  %v2420_v23 = vpop.permute.xlu1 %2419  ;;  %v2834_v34 = vpop.permute.xlu0 %2833 }
 0x272   : > { %v2497_v39 = vmul.f32 %v5150_v57, %v2420_v23  ;;  %v2900_v7 = vmul.f32 %v5182_v40, %v2834_v34 }
 0x273   : > { %v2722_v25 = vadd.f32 %v2706_v53, %v2621_v49  ;;  %v3654_v49 = vld [vmem:[%s3790_s16] sm:$0xff] }
 0x274   : > { %v2513_v42 = vadd.f32 %v2497_v39, %v2380_v32  ;;  %v2916_v52 = vadd.f32 %v2900_v7, %v2815_v20 }
 0x275   : > { %v2460_v55 = vpop.permute.xlu1 %2459  ;;  %v2823_v23 = vadd.f32 %v2807_v48, %v2722_v25  ;;  %v2866_v14 = vpop.permute.xlu0 %2865 }
 0x276   : > { %v2939_v36 = vadd.f32 %v5195_v8, %v2916_v52  ;;  %v2908_v6 = vmul.f32 %v5182_v40, %v2866_v14  ;;  %v2614_v34 = vadd.f32 %v2598_v19, %v2513_v42  ;;  %v2505_v4 = vmul.f32 %v5150_v57, %v2460_v55 }
 0x277   : > { %v2606_v19 = vmul.f32 %v5160_v24, %v4873_v2  ;;  %v2808_v2 = vmul.f32 %v5175_v22, %v5137_v29  ;;  %v2599_v29 = vmul.f32 %v5160_v24, %v5057_v43 }
 0x278   : > { %v2955_v10 = vmul.f32 %v2939_v36, %v4994_v28  ;;  %v2924_v53 = vadd.f32 %v2908_v6, %v2823_v23  ;;  %v2521_v48 = vadd.f32 %v2505_v4, %v2388_v58 }
 0x27a   : > { %v2971_v32 = vsub.f32 %v3654_v49, %v2955_v10  ;;  %v2947_v39 = vadd.f32 %v5195_v8, %v2924_v53  ;;  %v2838_v20 = vpop.permute.xlu1 %2837  ;;  %v2636_v7 = vpop.permute.xlu0 %2635  ;;  %v3655_v10 = vld [vmem:[%s3790_s16 + $0x40] sm:$0xff]  ;;  %v2622_v36 = vadd.f32 %v2606_v19, %v2521_v48 }
 0x27b   : > { %v2699_v25 = vmul.f32 %v5167_v21, %v2636_v7  ;;  %v2901_v14 = vmul.f32 %v5182_v40, %v2838_v20 }
 0x27c   : > { %2988 = vst.msk [vmem:[%s3800_s22] sm:$0xff] %vm2987_vm4, %v2971_v32  ;;  %v2963_v28 = vmul.f32 %v2947_v39, %v5002_v60  ;;  %v2381_v39 = vmul.f32 %v4950_v50, %v4975_v59 }
 0x27d   : > { %v2715_v42 = vadd.f32 %v2699_v25, %v2614_v34 }
 0x27e   : > { %v2979_v52 = vsub.f32 %v3655_v10, %v2963_v28  ;;  %v2870_v55 = vpop.permute.xlu1 %2869  ;;  %v2668_v23 = vpop.permute.xlu0 %2667  ;;  %v3656_v28 = vld [vmem:[%s3790_s16 + $0x8] sm:$0xff] }
 0x27f   : > { %v2816_v4 = vadd.f32 %v2800_v27, %v2715_v42  ;;  %v2707_v6 = vmul.f32 %v5167_v21, %v2668_v23  ;;  %v2909_v34 = vmul.f32 %v5182_v40, %v2870_v55  ;;  %v2607_v23 = vmul.f32 %v5160_v24, %v5090_v61 }
 0x280   : > { %2996 = vst.msk [vmem:[%s3800_s22 + $0x40] sm:$0xff] %vm2987_vm4, %v2979_v52  ;;  %v2389_v52 = vmul.f32 %v4950_v50, %v5134_v56  ;;  %v2809_v61 = vmul.f32 %v5175_v22, %v4925_v33 }
 0x281   : > { %v2917_v60 = vadd.f32 %v2901_v14, %v2816_v4  ;;  %v2723_v53 = vadd.f32 %v2707_v6, %v2622_v36  ;;  %v2801_v14 = vmul.f32 %v5175_v22, %v5121_v41  ;;  %v3657_v6 = vld [vmem:[%s3790_s16 + $0x48] sm:$0xff] }
 0x283   : > { %v2940_v16 = vadd.f32 %v5195_v8, %v2917_v60  ;;  %v2824_v58 = vadd.f32 %v2808_v2, %v2723_v53  ;;  %v2640_v49 = vpop.permute.xlu1 %2639  ;;  %v2425_v32 = vpop.permute.xlu0 %2424 }
 0x284   : > { %v2498_v20 = vmul.f32 %v5150_v57, %v2425_v32  ;;  %v2700_v59 = vmul.f32 %v5167_v21, %v2640_v49  ;;  %v2382_v32 = vmul.f32 %v4950_v50, %v4943_v26 }
 0x285   : > { %v2956_v7 = vmul.f32 %v2940_v16, %v5009_v62  ;;  %v2925_v48 = vadd.f32 %v2909_v34, %v2824_v58 }
 0x286   : > { %v2514_v25 = vadd.f32 %v2498_v20, %v2381_v39 }
 0x287   : > { %v2972_v19 = vsub.f32 %v3656_v28, %v2956_v7  ;;  %v2948_v27 = vadd.f32 %v5195_v8, %v2925_v48  ;;  %v2672_v42 = vpop.permute.xlu1 %2671  ;;  %v2465_v10 = vpop.permute.xlu0 %2464  ;;  %v5686_v48 = vld [vmem:[#allocation22_spill] sm:$0xff] }
 0x288   : > { %v2615_v55 = vadd.f32 %v2599_v29, %v2514_v25  ;;  %v2506_v62 = vmul.f32 %v5150_v57, %v2465_v10  ;;  %v2708_v2 = vmul.f32 %v5167_v21, %v2672_v42  ;;  %v2390_v29 = vmul.f32 %v4950_v50, %v5686_v48 }
 0x289   : > { %2989 = vst.msk [vmem:[%s3800_s22 + $0x8] sm:$0xff] %vm2987_vm4, %v2972_v19  ;;  %v2964_v43 = vmul.f32 %v2948_v27, %v5016_v35  ;;  %v5687_v27 = vld [vmem:[#allocation5_spill] sm:$0xff] }
 0x28a   : > { %v2522_v4 = vadd.f32 %v2506_v62, %v2389_v52  ;;  %v2716_v36 = vadd.f32 %v2700_v59, %v2615_v55  ;;  %v2608_v42 = vmul.f32 %v5160_v24, %v5687_v27  ;;  %v5688_v59 = vld [vmem:[#allocation6_spill] sm:$0xff]  ;;  %v3658_v62 = vld [vmem:[%s3790_s16 + $0x10] sm:$0xff] }
 0x28b   : > { %v2980_v56 = vsub.f32 %v3657_v6, %v2964_v43  ;;  %v2600_v55 = vmul.f32 %v5160_v24, %v5688_v59 }
 0x28c   : > { %v2623_v60 = vadd.f32 %v2607_v23, %v2522_v4  ;;  %v2430_v53 = vpop.permute.xlu1 %2429  ;;  %v2817_v16 = vadd.f32 %v2801_v14, %v2716_v36  ;;  %v2842_v34 = vpop.permute.xlu0 %2841 }
 0x28d   : > { %2997 = vst.msk [vmem:[%s3800_s22 + $0x48] sm:$0xff] %vm2987_vm4, %v2980_v56  ;;  %v2902_v35 = vmul.f32 %v5182_v40, %v2842_v34  ;;  %v2499_v58 = vmul.f32 %v5150_v57, %v2430_v53  ;;  %v3659_v53 = vld [vmem:[%s3790_s16 + $0x50] sm:$0xff] }
 0x28e   : > { %v2724_v41 = vadd.f32 %v2708_v2, %v2623_v60  ;;  %v2802_v2 = vmul.f32 %v5175_v22, %v5124_v54 }
 0x28f   : > { %v2918_v49 = vadd.f32 %v2902_v35, %v2817_v16  ;;  %v2515_v19 = vadd.f32 %v2499_v58, %v2382_v32 }
 0x290   : > { %v2470_v39 = vpop.permute.xlu1 %2469  ;;  %v2825_v20 = vadd.f32 %v2809_v61, %v2724_v41  ;;  %v2874_v7 = vpop.permute.xlu0 %2873 }
 0x291   : > { %v2941_v25 = vadd.f32 %v5195_v8, %v2918_v49  ;;  %v2507_v28 = vmul.f32 %v5150_v57, %v2470_v39  ;;  %v2910_v33 = vmul.f32 %v5182_v40, %v2874_v7  ;;  %v2616_v6 = vadd.f32 %v2600_v55, %v2515_v19 }
 0x292   : > { %v2810_v49 = vmul.f32 %v5175_v22, %v5141_v37  ;;  %v2601_v37 = vmul.f32 %v5160_v24, %v5065_v15  ;;  %v2391_v55 = vmul.f32 %v4950_v50, %v5139_v5 }
 0x293   : > { %v2957_v10 = vmul.f32 %v2941_v25, %v5030_v51  ;;  %v2523_v26 = vadd.f32 %v2507_v28, %v2390_v29  ;;  %v2926_v52 = vadd.f32 %v2910_v33, %v2825_v20  ;;  %v5689_v29 = vld [vmem:[#allocation27_spill] sm:$0xff] }
 0x294   : > { %v2383_v25 = vmul.f32 %v4950_v50, %v5689_v29 }
 0x295   : > { %v2973_v43 = vsub.f32 %v3658_v62, %v2957_v10  ;;  %v2949_v23 = vadd.f32 %v5195_v8, %v2926_v52  ;;  %v2846_v14 = vpop.permute.xlu1 %2845  ;;  %v2644_v4 = vpop.permute.xlu0 %2643  ;;  %v2624_v36 = vadd.f32 %v2608_v42, %v2523_v26  ;;  %v3660_v42 = vld [vmem:[%s3790_s16 + $0x18] sm:$0xff] }
 0x296   : > { %v2701_v56 = vmul.f32 %v5167_v21, %v2644_v4  ;;  %v2903_v61 = vmul.f32 %v5182_v40, %v2846_v14  ;;  %v2609_v4 = vmul.f32 %v5160_v24, %v5094_v46 }
 0x297   : > { %2990 = vst.msk [vmem:[%s3800_s22 + $0x10] sm:$0xff] %vm2987_vm4, %v2973_v43  ;;  %v2965_v51 = vmul.f32 %v2949_v23, %v5039_v0  ;;  %v5690_v23 = vld [vmem:[#allocation14_spill] sm:$0xff] }
 0x298   : > { %v2717_v60 = vadd.f32 %v2701_v56, %v2616_v6  ;;  %v2803_v14 = vmul.f32 %v5175_v22, %v5690_v23  ;;  %v3661_v56 = vld [vmem:[%s3790_s16 + $0x58] sm:$0xff]  ;;  %v3663_v23 = vld [vmem:[%s3790_s16 + $0x60] sm:$0xff] }
 0x299   : > { %v2981_v16 = vsub.f32 %v3659_v53, %v2965_v51  ;;  %v2878_v34 = vpop.permute.xlu1 %2877  ;;  %v2676_v35 = vpop.permute.xlu0 %2675 }
 0x29a   : > { %v2818_v58 = vadd.f32 %v2802_v2, %v2717_v60  ;;  %v2709_v41 = vmul.f32 %v5167_v21, %v2676_v35  ;;  %v2911_v39 = vmul.f32 %v5182_v40, %v2878_v34  ;;  %v5691_v34 = vld [vmem:[#allocation11_spill] sm:$0xff] }
 0x29b   : > { %2998 = vst.msk [vmem:[%s3800_s22 + $0x50] sm:$0xff] %vm2987_vm4, %v2981_v16  ;;  %v2811_v35 = vmul.f32 %v5175_v22, %v5691_v34 }
 0x29c   : > { %v2919_v0 = vadd.f32 %v2903_v61, %v2818_v58  ;;  %v2725_v32 = vadd.f32 %v2709_v41, %v2624_v36 }
 0x29e   : > { %v2942_v54 = vadd.f32 %v5195_v8, %v2919_v0  ;;  %v2826_v20 = vadd.f32 %v2810_v49, %v2725_v32  ;;  %v2648_v7 = vpop.permute.xlu1 %2647  ;;  %v2435_v48 = vpop.permute.xlu0 %2434 }
 0x29f   : > { %v2500_v28 = vmul.f32 %v5150_v57, %v2435_v48  ;;  %v2702_v62 = vmul.f32 %v5167_v21, %v2648_v7  ;;  %v5693_v48 = vld [vmem:[#allocation2_spill] sm:$0xff] }
 0x2a0   : > { %v2958_v33 = vmul.f32 %v2942_v54, %v5046_v63  ;;  %v2927_v19 = vadd.f32 %v2911_v39, %v2826_v20  ;;  %v5692_v20 = vld [vmem:[#allocation19_spill] sm:$0xff]  ;;  %v2610_v29 = vmul.f32 %v5160_v24, %v5693_v48  ;;  %v5697_v48 = vld [vmem:[#allocation18_spill] sm:$0xff] }
 0x2a1   : > { %v2516_v27 = vadd.f32 %v2500_v28, %v2383_v25  ;;  %v5694_v28 = vld [vmem:[#allocation24_spill] sm:$0xff] }
 0x2a2   : > { %v2974_v10 = vsub.f32 %v3660_v42, %v2958_v33  ;;  %v2950_v26 = vadd.f32 %v5195_v8, %v2927_v19  ;;  %v2680_v52 = vpop.permute.xlu1 %2679  ;;  %v2475_v59 = vpop.permute.xlu0 %2474  ;;  %v3662_v42 = vld [vmem:[%s3790_s16 + $0x20] sm:$0xff] }
 0x2a3   : > { %v2617_v43 = vadd.f32 %v2601_v37, %v2516_v27  ;;  %v2508_v63 = vmul.f32 %v5150_v57, %v2475_v59  ;;  %v2710_v51 = vmul.f32 %v5167_v21, %v2680_v52  ;;  %v5695_v37 = vld [vmem:[#allocation7_spill] sm:$0xff] }
 0x2a4   : > { %2991 = vst.msk [vmem:[%s3800_s22 + $0x18] sm:$0xff] %vm2987_vm4, %v2974_v10  ;;  %v2966_v15 = vmul.f32 %v2950_v26, %v5050_v11  ;;  %v2602_v27 = vmul.f32 %v5160_v24, %v5695_v37 }
 0x2a5   : > { %v2524_v36 = vadd.f32 %v2508_v63, %v2391_v55  ;;  %v2718_v6 = vadd.f32 %v2702_v62, %v2617_v43  ;;  %v2804_v63 = vmul.f32 %v5175_v22, %v5128_v9 }
 0x2a6   : > { %v2982_v5 = vsub.f32 %v3661_v56, %v2966_v15 }
 0x2a7   : > { %v2625_v2 = vadd.f32 %v2609_v4, %v2524_v36  ;;  %v2440_v60 = vpop.permute.xlu1 %2439  ;;  %v2819_v53 = vadd.f32 %v2803_v14, %v2718_v6  ;;  %v2850_v16 = vpop.permute.xlu0 %2849 }
 0x2a8   : > { %2999 = vst.msk [vmem:[%s3800_s22 + $0x58] sm:$0xff] %vm2987_vm4, %v2982_v5  ;;  %v2904_v11 = vmul.f32 %v5182_v40, %v2850_v16  ;;  %v2501_v46 = vmul.f32 %v5150_v57, %v2440_v60 }
 0x2a9   : > { %v2726_v61 = vadd.f32 %v2710_v51, %v2625_v2  ;;  %v2812_v51 = vmul.f32 %v5175_v22, %v5145_v45 }
 0x2aa   : > { %v2920_v58 = vadd.f32 %v2904_v11, %v2819_v53  ;;  %v2517_v7 = vadd.f32 %v2501_v46, %v5692_v20 }
 0x2ab   : > { %v2480_v41 = vpop.permute.xlu1 %2479  ;;  %v2827_v49 = vadd.f32 %v2811_v35, %v2726_v61  ;;  %v2882_v0 = vpop.permute.xlu0 %2881  ;;  %v2603_v61 = vmul.f32 %v5160_v24, %v5073_v18 }
 0x2ac   : > { %v2943_v32 = vadd.f32 %v5195_v8, %v2920_v58  ;;  %v2509_v54 = vmul.f32 %v5150_v57, %v2480_v41  ;;  %v2912_v39 = vmul.f32 %v5182_v40, %v2882_v0  ;;  %v2618_v62 = vadd.f32 %v2602_v27, %v2517_v7  ;;  %v5696_v58 = vld [vmem:[#allocation28_spill] sm:$0xff]  ;;  %v3664_v41 = vld [vmem:[%s3790_s16 + $0x28] sm:$0xff] }
 0x2ae   : > { %v2959_v25 = vmul.f32 %v2943_v32, %v5063_v47  ;;  %v2525_v33 = vadd.f32 %v2509_v54, %v5694_v28  ;;  %v2928_v19 = vadd.f32 %v2912_v39, %v2827_v49  ;;  %v2393_v39 = vmul.f32 %v4950_v50, %v5143_v13 }
 0x2b0   : > { %v2975_v10 = vsub.f32 %v3662_v42, %v2959_v25  ;;  %v2951_v26 = vadd.f32 %v5195_v8, %v2928_v19  ;;  %v2854_v52 = vpop.permute.xlu1 %2853  ;;  %v2652_v59 = vpop.permute.xlu0 %2651  ;;  %v2626_v55 = vadd.f32 %v2610_v29, %v2525_v33  ;;  %v2805_v29 = vmul.f32 %v5175_v22, %v5697_v48  ;;  %v3665_v19 = vld [vmem:[%s3790_s16 + $0x68] sm:$0xff] }
 0x2b1   : > { %v2703_v43 = vmul.f32 %v5167_v21, %v2652_v59  ;;  %v2905_v6 = vmul.f32 %v5182_v40, %v2854_v52  ;;  %v2611_v25 = vmul.f32 %v5160_v24, %v5100_v30  ;;  %v5698_v52 = vld [vmem:[#allocation8_spill] sm:$0xff] }
 0x2b2   : > { %2992 = vst.msk [vmem:[%s3800_s22 + $0x20] sm:$0xff] %vm2987_vm4, %v2975_v10  ;;  %v2967_v47 = vmul.f32 %v2951_v26, %v5069_v38  ;;  %v2813_v59 = vmul.f32 %v5175_v22, %v5698_v52 }
 0x2b3   : > { %v2719_v15 = vadd.f32 %v2703_v43, %v2618_v62  ;;  %v5700_v43 = vld [vmem:[#allocation21_spill] sm:$0xff] }
 0x2b4   : > { %v2983_v14 = vsub.f32 %v3663_v23, %v2967_v47  ;;  %v2886_v4 = vpop.permute.xlu1 %2885  ;;  %v2684_v36 = vpop.permute.xlu0 %2683 }
 0x2b5   : > { %v2820_v56 = vadd.f32 %v2804_v63, %v2719_v15  ;;  %v2711_v5 = vmul.f32 %v5167_v21, %v2684_v36  ;;  %v2913_v60 = vmul.f32 %v5182_v40, %v2886_v4 }
 0x2b6   : > { %3000 = vst.msk [vmem:[%s3800_s22 + $0x60] sm:$0xff] %vm2987_vm4, %v2983_v14 }
 0x2b7   : > { %v2921_v38 = vadd.f32 %v2905_v6, %v2820_v56  ;;  %v2727_v2 = vadd.f32 %v2711_v5, %v2626_v55  ;;  %v5699_v55 = vld [vmem:[#allocation4_spill] sm:$0xff]  ;;  %v5701_v5 = vld [vmem:[#allocation3_spill] sm:$0xff] }
 0x2b8   : > { %v2604_v62 = vmul.f32 %v5160_v24, %v5699_v55 }
 0x2b9   : > { %v2944_v9 = vadd.f32 %v5195_v8, %v2921_v38  ;;  %v2828_v53 = vadd.f32 %v2812_v51, %v2727_v2  ;;  %v2656_v16 = vpop.permute.xlu1 %2655  ;;  %v2445_v11 = vpop.permute.xlu0 %2444  ;;  %v2612_v51 = vmul.f32 %v5160_v24, %v5701_v5  ;;  %v5702_v2 = vld [vmem:[#allocation9_spill] sm:$0xff] }
 0x2ba   : > { %v2502_v34 = vmul.f32 %v5150_v57, %v2445_v11  ;;  %v2704_v20 = vmul.f32 %v5167_v21, %v2656_v16  ;;  %v3666_v16 = vld [vmem:[%s3790_s16 + $0x30] sm:$0xff] }
 0x2bb   : > { %v2960_v35 = vmul.f32 %v2944_v9, %v5078_v12  ;;  %v2929_v46 = vadd.f32 %v2913_v60, %v2828_v53  ;;  %v2806_v60 = vmul.f32 %v5175_v22, %v5132_v31 }
 0x2bc   : > { %v2518_v45 = vadd.f32 %v2502_v34, %v5696_v58 }
 0x2bd   : > { %v2976_v49 = vsub.f32 %v3664_v41, %v2960_v35  ;;  %v2952_v0 = vadd.f32 %v5195_v8, %v2929_v46  ;;  %v2688_v32 = vpop.permute.xlu1 %2687  ;;  %v2485_v54 = vpop.permute.xlu0 %2484 }
 0x2be   : > { %v2619_v12 = vadd.f32 %v2603_v61, %v2518_v45  ;;  %v2510_v7 = vmul.f32 %v5150_v57, %v2485_v54  ;;  %v2712_v13 = vmul.f32 %v5167_v21, %v2688_v32 }
 0x2bf   : > { %2993 = vst.msk [vmem:[%s3800_s22 + $0x28] sm:$0xff] %vm2987_vm4, %v2976_v49  ;;  %v2968_v18 = vmul.f32 %v2952_v0, %v5085_v3 }
 0x2c0   : > { %v2526_v28 = vadd.f32 %v2510_v7, %v2393_v39  ;;  %v2720_v33 = vadd.f32 %v2704_v20, %v2619_v12 }
 0x2c1   : > { %v2984_v50 = vsub.f32 %v3665_v19, %v2968_v18  ;;  %v5703_v18 = vld [vmem:[#allocation26_spill] sm:$0xff] }
 0x2c2   : > { %v2627_v37 = vadd.f32 %v2611_v25, %v2526_v28  ;;  %v2450_v27 = vpop.permute.xlu1 %2449  ;;  %v2821_v42 = vadd.f32 %v2805_v29, %v2720_v33  ;;  %v2858_v10 = vpop.permute.xlu0 %2857  ;;  %v5704_v29 = vld [vmem:[#allocation25_spill] sm:$0xff] }
 0x2c3   : > { %3001 = vst.msk [vmem:[%s3800_s22 + $0x68] sm:$0xff] %vm2987_vm4, %v2984_v50  ;;  %v2503_v3 = vmul.f32 %v5150_v57, %v2450_v27  ;;  %v2906_v26 = vmul.f32 %v5182_v40, %v2858_v10  ;;  %v3668_v28 = vld [vmem:[%s3790_s16 + $0x78] sm:$0xff] }
 0x2c4   : > { %v2728_v30 = vadd.f32 %v2712_v13, %v2627_v37 }
 0x2c5   : > { %v2519_v47 = vadd.f32 %v2503_v3, %v5700_v43  ;;  %v2922_v63 = vadd.f32 %v2906_v26, %v2821_v42 }
 0x2c6   : > { %v2490_v15 = vpop.permute.xlu1 %2489  ;;  %v2829_v23 = vadd.f32 %v2813_v59, %v2728_v30 }
 0x2c7   : > { %v2945_v14 = vadd.f32 %v5195_v8, %v2922_v63  ;;  %v2511_v4 = vmul.f32 %v5150_v57, %v2490_v15  ;;  %v2620_v36 = vadd.f32 %v2604_v62, %v2519_v47  ;;  %v2660_v6 = vpop.permute.xlu0 %2659 }
 0x2c8   : > { %v2705_v56 = vmul.f32 %v5167_v21, %v2660_v6 }
 0x2c9   : > { %v2961_v38 = vmul.f32 %v2945_v14, %v5098_v17  ;;  %v2527_v9 = vadd.f32 %v2511_v4, %v5702_v2  ;;  %v2814_v17 = vmul.f32 %v5175_v22, %v5155_v44  ;;  %v3667_v22 = vld [vmem:[%s3790_s16 + $0x38] sm:$0xff] }
 0x2ca   : > { %v2721_v53 = vadd.f32 %v2705_v56, %v2620_v36 }
 0x2cb   : > { %v2977_v11 = vsub.f32 %v3666_v16, %v2961_v38  ;;  %v2862_v34 = vpop.permute.xlu1 %2861  ;;  %v2628_v57 = vadd.f32 %v2612_v51, %v2527_v9  ;;  %v2692_v35 = vpop.permute.xlu0 %2691 }
 0x2cc   : > { %v2822_v46 = vadd.f32 %v2806_v60, %v2721_v53  ;;  %v2907_v61 = vmul.f32 %v5182_v40, %v2862_v34  ;;  %v2713_v58 = vmul.f32 %v5167_v21, %v2692_v35 }
 0x2cd   : > { %2994 = vst.msk [vmem:[%s3800_s22 + $0x30] sm:$0xff] %vm2987_vm4, %v2977_v11 }
 0x2ce   : > { %v2923_v24 = vadd.f32 %v2907_v61, %v2822_v46  ;;  %v2729_v31 = vadd.f32 %v2713_v58, %v2628_v57 }
 0x2cf   : > { %v2894_v45 = vpop.permute.xlu1 %2893 }
 0x2d0   : > { %v2946_v41 = vadd.f32 %v5195_v8, %v2923_v24  ;;  %v2830_v49 = vadd.f32 %v2814_v17, %v2729_v31  ;;  %v2915_v0 = vmul.f32 %v5182_v40, %v2894_v45  ;;  %v2890_v32 = vpop.permute.xlu0 %2889 }
 0x2d1   : > { %v2914_v21 = vmul.f32 %v5182_v40, %v2890_v32  ;;  %v3669_v40 = vld [vmem:[%s3790_s16 + $0x70] sm:$0xff] }
 0x2d2   : > { %v2962_v54 = vmul.f32 %v2946_v41, %v5112_v1  ;;  %v2931_v39 = vadd.f32 %v2915_v0, %v2830_v49 }
 0x2d3   : > { %v2930_v44 = vadd.f32 %v2914_v21, %v2829_v23 }
 0x2d4   : > { %v2978_v20 = vsub.f32 %v3667_v22, %v2962_v54  ;;  %v2954_v12 = vadd.f32 %v5195_v8, %v2931_v39 }
 0x2d5   : > { %v2953_v7 = vadd.f32 %v5195_v8, %v2930_v44 }
 0x2d6   : > { %2995 = vst.msk [vmem:[%s3800_s22 + $0x38] sm:$0xff] %vm2987_vm4, %v2978_v20  ;;  %v2970_v48 = vmul.f32 %v2954_v12, %v5703_v18 }
 0x2d7   : > { %v2969_v25 = vmul.f32 %v2953_v7, %v5704_v29 }
 0x2d8   : > { %v2986_v33 = vsub.f32 %v3668_v28, %v2970_v48 }
 0x2d9   : > { %v2985_v19 = vsub.f32 %v3669_v40, %v2969_v25 }
 0x2da   : > { %3003 = vst.msk [vmem:[%s3800_s22 + $0x78] sm:$0xff] %vm2987_vm4, %v2986_v33 }
 0x2db   : > { %3002 = vst.msk [vmem:[%s3800_s22 + $0x70] sm:$0xff] %vm2987_vm4, %v2985_v19 }
 0x2dc PF: > { %3006 = sbr.rel (!%p3804_p9) target bundleno = 741 (0x2e5), region = 52  ;;  %vm3007_vm5 = vcmask (%p3804_p9), 23552   ;;  %v3714_v1 = vmov (%p3804_p9), 0.0  }
 0x2dd   : > { %3008 = vst.msk [vmem:[%s3800_s22] sm:$0xff] (%p3804_p9), %vm3007_vm5, %v3714_v1  ;;  %3009 = vst.msk [vmem:[%s3800_s22 + $0x8] sm:$0xff] (%p3804_p9), %vm3007_vm5, %v3714_v1 }
 0x2de   : > { %3010 = vst.msk [vmem:[%s3800_s22 + $0x10] sm:$0xff] (%p3804_p9), %vm3007_vm5, %v3714_v1  ;;  %3011 = vst.msk [vmem:[%s3800_s22 + $0x18] sm:$0xff] (%p3804_p9), %vm3007_vm5, %v3714_v1 }
 0x2df   : > { %3012 = vst.msk [vmem:[%s3800_s22 + $0x20] sm:$0xff] (%p3804_p9), %vm3007_vm5, %v3714_v1  ;;  %3013 = vst.msk [vmem:[%s3800_s22 + $0x28] sm:$0xff] (%p3804_p9), %vm3007_vm5, %v3714_v1 }
 0x2e0   : > { %3014 = vst.msk [vmem:[%s3800_s22 + $0x30] sm:$0xff] (%p3804_p9), %vm3007_vm5, %v3714_v1  ;;  %3015 = vst.msk [vmem:[%s3800_s22 + $0x38] sm:$0xff] (%p3804_p9), %vm3007_vm5, %v3714_v1 }
 0x2e1   : > { %3016 = vst.msk [vmem:[%s3800_s22 + $0x40] sm:$0xff] (%p3804_p9), %vm3007_vm5, %v3714_v1  ;;  %3017 = vst.msk [vmem:[%s3800_s22 + $0x48] sm:$0xff] (%p3804_p9), %vm3007_vm5, %v3714_v1 }
 0x2e2   : > { %3018 = vst.msk [vmem:[%s3800_s22 + $0x50] sm:$0xff] (%p3804_p9), %vm3007_vm5, %v3714_v1  ;;  %3019 = vst.msk [vmem:[%s3800_s22 + $0x58] sm:$0xff] (%p3804_p9), %vm3007_vm5, %v3714_v1 }
 0x2e3   : > { %3020 = vst.msk [vmem:[%s3800_s22 + $0x60] sm:$0xff] %vm3007_vm5, %v3714_v1  ;;  %3021 = vst.msk [vmem:[%s3800_s22 + $0x68] sm:$0xff] %vm3007_vm5, %v3714_v1 }
 0x2e4   : > { %3022 = vst.msk [vmem:[%s3800_s22 + $0x70] sm:$0xff] %vm3007_vm5, %v3714_v1  ;;  %3023 = vst.msk [vmem:[%s3800_s22 + $0x78] sm:$0xff] %vm3007_vm5, %v3714_v1 }
 0x2e5 PF: > { %s16_s25 = sadd.s32 1, %s3708_s25   ;;  %s5705_s21 = smov %s3700_s23 }
 0x2e6   : > { %p13_p2 = scmp.ge.s32.totalorder %s16_s25, 18   ;;  %s5706_s22 = smov %s3704_s24 }
 0x2e7   : > { %s5707_s23 = smov %s5710_s26  ;;  %s5708_s24 = smov %s5714_s27 }
 0x2e8   :  { %15 = sbr.rel (!%p13_p2) target bundleno = 3 (0x3), region = 93 }

</bundles_post_ra>
